<compile_context>
chip_gen: v6e
topology: v6e:2x2x1
jax: 0.10.0
libtpu: 0.0.40
codegen_flags: <defaults>
</compile_context>

<pallas_src>
import functools

import jax
import jax.numpy as jnp
from jax.experimental import pallas as pl
from jax.experimental.pallas import tpu as pltpu


def _round_up(x, m):
    return (x + m - 1) // m * m


# ----------------------------------------------------------------------------
# Pallas kernel: fused 3x3 conv (+ fused skip-concat) + bias (+ ReLU)
#   -> one big-K matmul per row tile via an in-VMEM im2col stack
# ----------------------------------------------------------------------------
def _conv3x3_kernel(*refs, n_in, cps, th, wp, relu):
    """refs = [main_0, halo_0, ..., main_{n-1}, halo_{n-1}, w_stk, bias, out,
               stk, slab_0, ..., slab_{n-1}]

    main_j : (1, cp_j, th*wp)        bf16  row tile of padded, flattened input j
    halo_j : (1, cp_j, 2*wp)         bf16  next two padded rows
    w_stk  : (cout, 9*sum cp_j)      bf16  weights, K order = (input, kx, ky, chan)
    bias   : (cout, 1)               f32
    out    : (1, cout, th*wp)        bf16
    stk    : (9*sum cp_j, th*wp)     bf16  VMEM im2col stack
    slab_j : (cp_j, (th+2)*wp + 128) bf16  VMEM (th+2)-row slab (+ don't-care tail)
    """
    thwp = th * wp
    mains = [refs[2 * j] for j in range(n_in)]
    halos = [refs[2 * j + 1] for j in range(n_in)]
    w_ref = refs[2 * n_in]
    b_ref = refs[2 * n_in + 1]
    o_ref = refs[2 * n_in + 2]
    stk_ref = refs[2 * n_in + 3]
    slabs = refs[2 * n_in + 4:]

    k0 = 0
    for j in range(n_in):
        cp = cps[j]
        slab = slabs[j]
        # Contiguous (th+2)-row slab (aligned stores).  The 128-lane tail only ever
        # feeds output columns that are cropped, so its contents are don't-care; we
        # still zero it for hygiene (tiny).
        slab[:, :thwp] = mains[j][0]
        slab[:, thwp:thwp + 2 * wp] = halos[j][0]
        slab[:, thwp + 2 * wp:] = jnp.zeros((cp, 128), dtype=slab.dtype)

        # im2col stack build.  kx = 0 taps are 128-aligned slices of the slab; for
        # kx = 1, 2 materialize the lane-shifted slab ONCE and reuse it for the
        # three (aligned) ky row offsets.
        for ky in range(3):
            stk_ref[k0:k0 + cp, :] = slab[:, ky * wp:ky * wp + thwp]
            k0 += cp
        for kx in (1, 2):
            shifted = slab[:, kx:kx + thwp + 2 * wp]          # one shift pass
            for ky in range(3):
                stk_ref[k0:k0 + cp, :] = shifted[:, ky * wp:ky * wp + thwp]
                k0 += cp

    # Single big-K MXU matmul, f32 accumulation stays inside the MXU pipeline.
    acc = jnp.dot(w_ref[...], stk_ref[...], preferred_element_type=jnp.float32)
    acc = acc + b_ref[...]                                    # (cout, 1) broadcast
    if relu:
        acc = jnp.maximum(acc, 0.0)
    o_ref[0] = acc.astype(o_ref.dtype)


def conv3x3(xs, w, b, *, relu, th_target=32):
    """3x3 'same' conv with bias (+ReLU) over the channel-concat of xs.

    xs: list of (N, C_j, H, W) arrays (sum C_j == w.shape[1]); same N, H, W.
    w : (Cout, sum C_j, 3, 3)   b: (Cout,).   Returns (N, Cout, H, W) bf16.
    """
    N, _, H, W = xs[0].shape
    cout = w.shape[0]
    wp = _round_up(W + 2, 128)                      # lane-aligned padded row length
    cps = [_round_up(x.shape[1], 16) for x in xs]   # bf16 sublane pack = 16
    k_total = 9 * sum(cps)

    # Row tile: as large as a conservative VMEM budget for the im2col stack allows.
    th = max(2, min(th_target, H + (H % 2)))
    th -= th % 2
    while th > 2 and k_total * th * wp * 2 > (8 << 20):
        th -= 2
    assert th % 2 == 0 and th >= 2                  # halo index map needs even th
    ntiles = pl.cdiv(H, th)
    h_tot = ntiles * th + 2                         # top pad + data + tail + halo
    thwp = th * wp
    slab_len = thwp + 2 * wp + 128

    flat_args, in_specs, w_blocks = [], [], []
    coff = 0
    for x, cp in zip(xs, cps):
        C = x.shape[1]
        xp = jnp.pad(x.astype(jnp.bfloat16),
                     ((0, 0), (0, cp - C), (1, h_tot - H - 1), (1, wp - W - 1)))
        xf = xp.reshape(N, cp, h_tot * wp)
        flat_args += [xf, xf]                       # same array: main tile + halo
        in_specs.append(pl.BlockSpec((1, cp, thwp), lambda n, i: (n, 0, i)))
        in_specs.append(pl.BlockSpec((1, cp, 2 * wp),
                                     lambda n, i: (n, 0, (i + 1) * (th // 2))))
        wj = jnp.pad(w[:, coff:coff + C], ((0, 0), (0, cp - C), (0, 0), (0, 0)))
        # (cout, cp, ky, kx) -> (cout, kx, ky, cp) -> (cout, 9*cp): matches the
        # kernel's K order (kx outer, ky inner, channel innermost).
        w_blocks.append(jnp.transpose(wj, (0, 3, 2, 1)).reshape(cout, 9 * cp))
        coff += C
    w_stk = jnp.concatenate(w_blocks, axis=1).astype(jnp.bfloat16)
    bias = b.reshape(cout, 1).astype(jnp.float32)

    # TODO(synk): single-buffer the constant weight/bias blocks (pl.Buffered(1))
    # once buffer_count=1 is supported everywhere; they are tiny so skipped here.
    w_spec = pl.BlockSpec((cout, k_total), lambda n, i: (0, 0))
    b_spec = pl.BlockSpec((cout, 1), lambda n, i: (0, 0))

    out = pl.pallas_call(
        functools.partial(_conv3x3_kernel, n_in=len(xs), cps=tuple(cps),
                          th=th, wp=wp, relu=relu),
        out_shape=jax.ShapeDtypeStruct((N, cout, ntiles * thwp), jnp.bfloat16),
        grid=(N, ntiles),
        in_specs=in_specs + [w_spec, b_spec],
        out_specs=pl.BlockSpec((1, cout, thwp), lambda n, i: (n, 0, i)),
        scratch_shapes=[pltpu.VMEM((k_total, thwp), jnp.bfloat16)]
                      + [pltpu.VMEM((cp, slab_len), jnp.bfloat16) for cp in cps],
        compiler_params=pltpu.CompilerParams(
            dimension_semantics=("parallel", "parallel"),
            vmem_limit_bytes=32 * 1024 * 1024),
    )(*flat_args, w_stk, bias)

    return out.reshape(N, cout, ntiles * th, wp)[:, :, :H, :W]


# ----------------------------------------------------------------------------
# Pallas kernel: tanh + 8 curve-enhancement iterations (channels-major, lane-dense)
# ----------------------------------------------------------------------------
def _enhance_kernel(x7_ref, img_ref, enh_ref, xr_ref):
    xr = jnp.tanh(x7_ref[0].astype(jnp.float32))        # (24, tm) f32
    xr_ref[0] = xr.astype(xr_ref.dtype)
    x = img_ref[0].astype(jnp.float32)                  # (3, tm)
    for i in range(8):
        r = xr[3 * i:3 * (i + 1), :]
        x = x + r * (x * x - x)
    enh_ref[0] = x.astype(enh_ref.dtype)


def enhance(x7, img):
    """x7: (N,24,H,W) curve logits (bf16), img: (N,3,H,W).

    Returns (enhanced image in img dtype, x_r in bf16)."""
    N, c24, H, W = x7.shape
    hw = H * W
    if hw <= 32768:
        tm = hw                                         # single lane-dense tile
    else:
        tm = next((c for c in (32768, 16384, 8192) if hw % c == 0), 32768)
    x7f = x7.reshape(N, c24, hw).astype(jnp.bfloat16)
    imgf = img.reshape(N, 3, hw)

    enh, xr = pl.pallas_call(
        _enhance_kernel,
        out_shape=(jax.ShapeDtypeStruct((N, 3, hw), img.dtype),
                   jax.ShapeDtypeStruct((N, c24, hw), jnp.bfloat16)),
        grid=(N, pl.cdiv(hw, tm)),
        in_specs=[pl.BlockSpec((1, c24, tm), lambda n, i: (n, 0, i)),
                  pl.BlockSpec((1, 3, tm), lambda n, i: (n, 0, i))],
        out_specs=(pl.BlockSpec((1, 3, tm), lambda n, i: (n, 0, i)),
                   pl.BlockSpec((1, c24, tm), lambda n, i: (n, 0, i))),
        compiler_params=pltpu.CompilerParams(
            dimension_semantics=("parallel", "parallel"),
            vmem_limit_bytes=32 * 1024 * 1024),
    )(x7f, imgf)
    return enh.reshape(N, 3, H, W), xr.reshape(N, c24, H, W)


# ----------------------------------------------------------------------------
# JAX glue: 2x2 maxpool and bilinear 2x upsample (align_corners=True), NCHW
# ----------------------------------------------------------------------------
def maxpool2x2(x):
    N, C, H, W = x.shape
    return jnp.max(x.reshape(N, C, H // 2, 2, W // 2, 2), axis=(3, 5))


def upsample2x_bilinear_ac(x):
    # nn.UpsamplingBilinear2d(scale_factor=2) => align_corners=True semantics.
    dt = x.dtype

    def lerp_axis(a, axis):
        lin = a.shape[axis]
        lout = 2 * lin
        src = jnp.arange(lout, dtype=jnp.float32) * (lin - 1) / (lout - 1)
        lo = jnp.floor(src).astype(jnp.int32)
        hi = jnp.minimum(lo + 1, lin - 1)
        frac = src - lo.astype(jnp.float32)
        alo = jnp.take(a, lo, axis=axis).astype(jnp.float32)
        ahi = jnp.take(a, hi, axis=axis).astype(jnp.float32)
        shape = [1] * a.ndim
        shape[axis] = lout
        frac = frac.reshape(shape)
        return alo * (1.0 - frac) + ahi * frac

    return lerp_axis(lerp_axis(x, 2), 3).astype(dt)


# ----------------------------------------------------------------------------
# Parameters + forward (NCHW, matching the PyTorch reference)
# ----------------------------------------------------------------------------
def init_params(key, number_f):
    def conv_init(k, cin, cout):
        k1, k2 = jax.random.split(k)
        w = 0.05 * jax.random.normal(k1, (cout, cin, 3, 3), jnp.float32)
        bb = 0.05 * jax.random.normal(k2, (cout,), jnp.float32)
        return w, bb

    keys = jax.random.split(key, 7)
    return {
        'c1': conv_init(keys[0], 3, number_f),
        'c2': conv_init(keys[1], number_f, number_f),
        'c3': conv_init(keys[2], number_f, number_f),
        'c4': conv_init(keys[3], number_f, number_f),
        'c5': conv_init(keys[4], 2 * number_f, number_f),
        'c6': conv_init(keys[5], 2 * number_f, number_f),
        'c7': conv_init(keys[6], 2 * number_f, 24),
    }


def enhance_net_dce_pool_forward(params, x, img_in=None):
    """x: (N, 3, H, W) NCHW, H and W divisible by 8. Returns (enhanced, x_r)."""
    img_in = x if img_in is None else img_in

    x1 = maxpool2x2(conv3x3([x], *params['c1'], relu=True))         # H/2
    x2 = maxpool2x2(conv3x3([x1], *params['c2'], relu=True))        # H/4
    x3 = maxpool2x2(conv3x3([x2], *params['c3'], relu=True))        # H/8
    x4 = conv3x3([x3], *params['c4'], relu=True)                    # H/8
    x5 = upsample2x_bilinear_ac(conv3x3([x3, x4], *params['c5'], relu=True))   # H/4
    x6 = upsample2x_bilinear_ac(conv3x3([x2, x5], *params['c6'], relu=True))   # H/2
    x7 = upsample2x_bilinear_ac(conv3x3([x1, x6], *params['c7'], relu=False))  # H, 24ch

    # F.interpolate(x_r, img_in.shape[2:], 'bilinear') is an identity here because
    # x_r is already at img_in's spatial size after the three 2x upsamples.
    enhanced, x_r = enhance(x7, img_in)
    return enhanced, x_r


# ----------------------------------------------------------------------------
# Pure-JAX reference (f32) for a numerical sanity check
# ----------------------------------------------------------------------------
def _conv_ref(x, w, b):
    y = jax.lax.conv_general_dilated(
        x, w, window_strides=(1, 1), padding=((1, 1), (1, 1)),
        dimension_numbers=('NCHW', 'OIHW', 'NCHW'))
    return y + b.reshape(1, -1, 1, 1)


def forward_ref(params, x):
    relu = lambda v: jnp.maximum(v, 0.0)
    x1 = maxpool2x2(relu(_conv_ref(x, *params['c1'])))
    x2 = maxpool2x2(relu(_conv_ref(x1, *params['c2'])))
    x3 = maxpool2x2(relu(_conv_ref(x2, *params['c3'])))
    x4 = relu(_conv_ref(x3, *params['c4']))
    x5 = upsample2x_bilinear_ac(relu(_conv_ref(jnp.concatenate([x3, x4], 1), *params['c5'])))
    x6 = upsample2x_bilinear_ac(relu(_conv_ref(jnp.concatenate([x2, x5], 1), *params['c6'])))
    x7 = upsample2x_bilinear_ac(_conv_ref(jnp.concatenate([x1, x6], 1), *params['c7']))
    xr = jnp.tanh(x7)
    img = x
    for i in range(8):
        r = xr[:, 3 * i:3 * (i + 1)]
        img = img + r * (img * img - img)
    return img, xr


# ----------------------------------------------------------------------------
# Demo
# ----------------------------------------------------------------------------
if __name__ == "__main__":
    key = jax.random.PRNGKey(0)
    kp, kx = jax.random.split(key)

    number_f = 8
    N, H, W = 2, 16, 16

    params = init_params(kp, number_f)
    x = jax.random.uniform(kx, (N, 3, H, W), dtype=jnp.float32)

    fwd = jax.jit(enhance_net_dce_pool_forward)
    enhanced, x_r = fwd(params, x)
    jax.block_until_ready((enhanced, x_r))

    assert enhanced.shape == (N, 3, H, W)
    assert x_r.shape == (N, 24, H, W)
    assert bool(jnp.all(jnp.isfinite(enhanced))) and bool(jnp.all(jnp.isfinite(x_r)))

    # Loose tolerance: kernels ship activations/weights as bf16 (f32 accumulation).
    ref_enh, ref_xr = jax.jit(forward_ref)(params, x)
    err_e = float(jnp.max(jnp.abs(enhanced - ref_enh)))
    err_r = float(jnp.max(jnp.abs(x_r.astype(jnp.float32) - ref_xr)))
    assert err_e < 0.1 and err_r < 0.1, (err_e, err_r)

    print("KERNEL_OK")
</pallas_src>

<mosaic_0001>
module attributes {stable_mosaic.version = 11 : i64} {
  func.func @_conv3x3_kernel(%arg0: i32, %arg1: i32, %arg2: memref<1x16x2048xbf16, #tpu.memory_space<vmem>>, %arg3: memref<1x16x256xbf16, #tpu.memory_space<vmem>>, %arg4: memref<8x144xbf16, #tpu.memory_space<vmem>>, %arg5: memref<8x1xf32, #tpu.memory_space<vmem>>, %arg6: memref<1x8x2048xbf16, #tpu.memory_space<vmem>>, %arg7: memref<144x2048xbf16, #tpu.memory_space<vmem>>, %arg8: memref<16x2432xbf16, #tpu.memory_space<vmem>>) attributes {dimension_semantics = [#tpu.dimension_semantics<parallel>, #tpu.dimension_semantics<parallel>], iteration_bounds = array<i64: 2, 1>, scalar_prefetch = 0 : i64, scratch_operands = 2 : i64, tpu.core_type = #tpu.core_type<tc>, window_params = [{transform_indices = @transform_0, window_bounds = array<i64: 1, 16, 2048>}, {transform_indices = @transform_1, window_bounds = array<i64: 1, 16, 256>}, {pipeline_mode = #tpu.pipeline_mode<synchronous>, transform_indices = @transform_2, window_bounds = array<i64: 8, 144>}, {pipeline_mode = #tpu.pipeline_mode<synchronous>, transform_indices = @transform_3, window_bounds = array<i64: 8, 1>}, {transform_indices = @transform_4, window_bounds = array<i64: 1, 8, 2048>}]} {
    %c0 = arith.constant 0 : index
    %c0_0 = arith.constant 0 : index
    %c0_1 = arith.constant 0 : index
    %0 = vector.load %arg2[%c0, %c0_0, %c0_1] : memref<1x16x2048xbf16, #tpu.memory_space<vmem>>, vector<1x16x2048xbf16>
    %1 = vector.shape_cast %0 : vector<1x16x2048xbf16> to vector<16x2048xbf16>
    %c0_2 = arith.constant 0 : index
    %c0_3 = arith.constant 0 : index
    %2 = vector.load %arg8[%c0_2, %c0_3] : memref<16x2432xbf16, #tpu.memory_space<vmem>>, vector<16x2048xbf16>
    tpu.vector_store %arg8[%c0_2, %c0_3], %1 {strides = array<i32>} : memref<16x2432xbf16, #tpu.memory_space<vmem>>, vector<16x2048xbf16>,
    %c0_4 = arith.constant 0 : index
    %c0_5 = arith.constant 0 : index
    %c0_6 = arith.constant 0 : index
    %3 = vector.load %arg3[%c0_4, %c0_5, %c0_6] : memref<1x16x256xbf16, #tpu.memory_space<vmem>>, vector<1x16x256xbf16>
    %4 = vector.shape_cast %3 : vector<1x16x256xbf16> to vector<16x256xbf16>
    %c0_7 = arith.constant 0 : index
    %c2048 = arith.constant 2048 : index
    %5 = vector.load %arg8[%c0_7, %c2048] : memref<16x2432xbf16, #tpu.memory_space<vmem>>, vector<16x256xbf16>
    tpu.vector_store %arg8[%c0_7, %c2048], %4 {strides = array<i32>} : memref<16x2432xbf16, #tpu.memory_space<vmem>>, vector<16x256xbf16>,
    %cst = arith.constant 0.000000e+00 : bf16
    %6 = vector.broadcast %cst : bf16 to vector<16x128xbf16>
    %c0_8 = arith.constant 0 : index
    %c2304 = arith.constant 2304 : index
    %7 = vector.load %arg8[%c0_8, %c2304] : memref<16x2432xbf16, #tpu.memory_space<vmem>>, vector<16x128xbf16>
    tpu.vector_store %arg8[%c0_8, %c2304], %6 {strides = array<i32>} : memref<16x2432xbf16, #tpu.memory_space<vmem>>, vector<16x128xbf16>,
    %c0_9 = arith.constant 0 : index
    %c0_10 = arith.constant 0 : index
    %8 = vector.load %arg8[%c0_9, %c0_10] : memref<16x2432xbf16, #tpu.memory_space<vmem>>, vector<16x2048xbf16>
    %c0_11 = arith.constant 0 : index
    %c0_12 = arith.constant 0 : index
    %9 = vector.load %arg7[%c0_11, %c0_12] : memref<144x2048xbf16, #tpu.memory_space<vmem>>, vector<16x2048xbf16>
    tpu.vector_store %arg7[%c0_11, %c0_12], %8 {strides = array<i32>} : memref<144x2048xbf16, #tpu.memory_space<vmem>>, vector<16x2048xbf16>,
    %c0_13 = arith.constant 0 : index
    %c128 = arith.constant 128 : index
    %10 = vector.load %arg8[%c0_13, %c128] : memref<16x2432xbf16, #tpu.memory_space<vmem>>, vector<16x2048xbf16>
    %c16 = arith.constant 16 : index
    %c0_14 = arith.constant 0 : index
    %11 = vector.load %arg7[%c16, %c0_14] : memref<144x2048xbf16, #tpu.memory_space<vmem>>, vector<16x2048xbf16>
    tpu.vector_store %arg7[%c16, %c0_14], %10 {strides = array<i32>} : memref<144x2048xbf16, #tpu.memory_space<vmem>>, vector<16x2048xbf16>,
    %c0_15 = arith.constant 0 : index
    %c256 = arith.constant 256 : index
    %12 = vector.load %arg8[%c0_15, %c256] : memref<16x2432xbf16, #tpu.memory_space<vmem>>, vector<16x2048xbf16>
    %c32 = arith.constant 32 : index
    %c0_16 = arith.constant 0 : index
    %13 = vector.load %arg7[%c32, %c0_16] : memref<144x2048xbf16, #tpu.memory_space<vmem>>, vector<16x2048xbf16>
    tpu.vector_store %arg7[%c32, %c0_16], %12 {strides = array<i32>} : memref<144x2048xbf16, #tpu.memory_space<vmem>>, vector<16x2048xbf16>,
    %c0_17 = arith.constant 0 : index
    %c1 = arith.constant 1 : index
    %14 = vector.load %arg8[%c0_17, %c1] : memref<16x2432xbf16, #tpu.memory_space<vmem>>, vector<16x2304xbf16>
    %15 = vector.extract_strided_slice %14 {offsets = [0, 0], sizes = [16, 2048], strides = [1, 1]} : vector<16x2304xbf16> to vector<16x2048xbf16>
    %c48 = arith.constant 48 : index
    %c0_18 = arith.constant 0 : index
    %16 = vector.load %arg7[%c48, %c0_18] : memref<144x2048xbf16, #tpu.memory_space<vmem>>, vector<16x2048xbf16>
    tpu.vector_store %arg7[%c48, %c0_18], %15 {strides = array<i32>} : memref<144x2048xbf16, #tpu.memory_space<vmem>>, vector<16x2048xbf16>,
    %17 = vector.extract_strided_slice %14 {offsets = [0, 128], sizes = [16, 2048], strides = [1, 1]} : vector<16x2304xbf16> to vector<16x2048xbf16>
    %c64 = arith.constant 64 : index
    %c0_19 = arith.constant 0 : index
    %18 = vector.load %arg7[%c64, %c0_19] : memref<144x2048xbf16, #tpu.memory_space<vmem>>, vector<16x2048xbf16>
    tpu.vector_store %arg7[%c64, %c0_19], %17 {strides = array<i32>} : memref<144x2048xbf16, #tpu.memory_space<vmem>>, vector<16x2048xbf16>,
    %19 = vector.extract_strided_slice %14 {offsets = [0, 256], sizes = [16, 2048], strides = [1, 1]} : vector<16x2304xbf16> to vector<16x2048xbf16>
    %c80 = arith.constant 80 : index
    %c0_20 = arith.constant 0 : index
    %20 = vector.load %arg7[%c80, %c0_20] : memref<144x2048xbf16, #tpu.memory_space<vmem>>, vector<16x2048xbf16>
    tpu.vector_store %arg7[%c80, %c0_20], %19 {strides = array<i32>} : memref<144x2048xbf16, #tpu.memory_space<vmem>>, vector<16x2048xbf16>,
    %c0_21 = arith.constant 0 : index
    %c2 = arith.constant 2 : index
    %21 = vector.load %arg8[%c0_21, %c2] : memref<16x2432xbf16, #tpu.memory_space<vmem>>, vector<16x2304xbf16>
    %22 = vector.extract_strided_slice %21 {offsets = [0, 0], sizes = [16, 2048], strides = [1, 1]} : vector<16x2304xbf16> to vector<16x2048xbf16>
    %c96 = arith.constant 96 : index
    %c0_22 = arith.constant 0 : index
    %23 = vector.load %arg7[%c96, %c0_22] : memref<144x2048xbf16, #tpu.memory_space<vmem>>, vector<16x2048xbf16>
    tpu.vector_store %arg7[%c96, %c0_22], %22 {strides = array<i32>} : memref<144x2048xbf16, #tpu.memory_space<vmem>>, vector<16x2048xbf16>,
    %24 = vector.extract_strided_slice %21 {offsets = [0, 128], sizes = [16, 2048], strides = [1, 1]} : vector<16x2304xbf16> to vector<16x2048xbf16>
    %c112 = arith.constant 112 : index
    %c0_23 = arith.constant 0 : index
    %25 = vector.load %arg7[%c112, %c0_23] : memref<144x2048xbf16, #tpu.memory_space<vmem>>, vector<16x2048xbf16>
    tpu.vector_store %arg7[%c112, %c0_23], %24 {strides = array<i32>} : memref<144x2048xbf16, #tpu.memory_space<vmem>>, vector<16x2048xbf16>,
    %26 = vector.extract_strided_slice %21 {offsets = [0, 256], sizes = [16, 2048], strides = [1, 1]} : vector<16x2304xbf16> to vector<16x2048xbf16>
    %c128_24 = arith.constant 128 : index
    %c0_25 = arith.constant 0 : index
    %27 = vector.load %arg7[%c128_24, %c0_25] : memref<144x2048xbf16, #tpu.memory_space<vmem>>, vector<16x2048xbf16>
    tpu.vector_store %arg7[%c128_24, %c0_25], %26 {strides = array<i32>} : memref<144x2048xbf16, #tpu.memory_space<vmem>>, vector<16x2048xbf16>,
    %c0_26 = arith.constant 0 : index
    %c0_27 = arith.constant 0 : index
    %28 = vector.load %arg4[%c0_26, %c0_27] : memref<8x144xbf16, #tpu.memory_space<vmem>>, vector<8x144xbf16>
    %c0_28 = arith.constant 0 : index
    %c0_29 = arith.constant 0 : index
    %29 = vector.load %arg7[%c0_28, %c0_29] : memref<144x2048xbf16, #tpu.memory_space<vmem>>, vector<144x2048xbf16>
    %cst_30 = arith.constant dense<0.000000e+00> : vector<8x2048xf32>
    %30 = tpu.matmul %28, %29, %cst_30 {dimension_numbers = #tpu.dot_dimension_numbers<[1], [0], [0], [1], [0, 0, 1, 1], [], []>} : vector<8x144xbf16>, vector<144x2048xbf16>, vector<8x2048xf32> -> vector<8x2048xf32>
    %c0_31 = arith.constant 0 : index
    %c0_32 = arith.constant 0 : index
    %31 = vector.load %arg5[%c0_31, %c0_32] : memref<8x1xf32, #tpu.memory_space<vmem>>, vector<8x1xf32>
    %32 = vector.broadcast %31 : vector<8x1xf32> to vector<8x2048xf32>
    %33 = arith.addf %30, %32 : vector<8x2048xf32>
    %cst_33 = arith.constant 0.000000e+00 : f32
    %34 = vector.broadcast %cst_33 : f32 to vector<8x2048xf32>
    %35 = arith.maximumf %33, %34 : vector<8x2048xf32>
    %36 = arith.truncf %35 : vector<8x2048xf32> to vector<8x2048xbf16>
    %c0_34 = arith.constant 0 : index
    %c0_35 = arith.constant 0 : index
    %c0_36 = arith.constant 0 : index
    %37 = vector.load %arg6[%c0_34, %c0_35, %c0_36] : memref<1x8x2048xbf16, #tpu.memory_space<vmem>>, vector<1x8x2048xbf16>
    %38 = vector.shape_cast %37 : vector<1x8x2048xbf16> to vector<8x2048xbf16>
    %39 = vector.shape_cast %36 : vector<8x2048xbf16> to vector<1x8x2048xbf16>
    tpu.vector_store %arg6[%c0_34, %c0_35, %c0_36], %39 {strides = array<i32>} : memref<1x8x2048xbf16, #tpu.memory_space<vmem>>, vector<1x8x2048xbf16>,
    return
  }
  func.func @transform_0(%arg0: i32, %arg1: i32) -> (i32, i32, i32) {
    %c0_i32 = arith.constant 0 : i32
    %c0_i32_0 = arith.constant 0 : i32
    return %arg0, %c0_i32, %arg1 : i32, i32, i32
  }
  func.func @transform_1(%arg0: i32, %arg1: i32) -> (i32, i32, i32) {
    %c1_i32 = arith.constant 1 : i32
    %0 = arith.addi %arg1, %c1_i32 : i32
    %c8_i32 = arith.constant 8 : i32
    %1 = arith.muli %0, %c8_i32 : i32
    %c0_i32 = arith.constant 0 : i32
    %c0_i32_0 = arith.constant 0 : i32
    return %arg0, %c0_i32, %1 : i32, i32, i32
  }
  func.func @transform_2(%arg0: i32, %arg1: i32) -> (i32, i32) {
    %c0_i32 = arith.constant 0 : i32
    %c0_i32_0 = arith.constant 0 : i32
    %c0_i32_1 = arith.constant 0 : i32
    return %c0_i32, %c0_i32_0 : i32, i32
  }
  func.func @transform_3(%arg0: i32, %arg1: i32) -> (i32, i32) {
    %c0_i32 = arith.constant 0 : i32
    %c0_i32_0 = arith.constant 0 : i32
    %c0_i32_1 = arith.constant 0 : i32
    return %c0_i32, %c0_i32_0 : i32, i32
  }
  func.func @transform_4(%arg0: i32, %arg1: i32) -> (i32, i32, i32) {
    %c0_i32 = arith.constant 0 : i32
    %c0_i32_0 = arith.constant 0 : i32
    return %arg0, %c0_i32, %arg1 : i32, i32, i32
  }
}

module attributes {stable_mosaic.version = 11 : i64} {
  func.func @_conv3x3_kernel(%arg0: i32, %arg1: i32, %arg2: memref<1x16x1024xbf16, #tpu.memory_space<vmem>>, %arg3: memref<1x16x256xbf16, #tpu.memory_space<vmem>>, %arg4: memref<8x144xbf16, #tpu.memory_space<vmem>>, %arg5: memref<8x1xf32, #tpu.memory_space<vmem>>, %arg6: memref<1x8x1024xbf16, #tpu.memory_space<vmem>>, %arg7: memref<144x1024xbf16, #tpu.memory_space<vmem>>, %arg8: memref<16x1408xbf16, #tpu.memory_space<vmem>>) attributes {dimension_semantics = [#tpu.dimension_semantics<parallel>, #tpu.dimension_semantics<parallel>], iteration_bounds = array<i64: 2, 1>, scalar_prefetch = 0 : i64, scratch_operands = 2 : i64, tpu.core_type = #tpu.core_type<tc>, window_params = [{transform_indices = @transform_0, window_bounds = array<i64: 1, 16, 1024>}, {transform_indices = @transform_1, window_bounds = array<i64: 1, 16, 256>}, {pipeline_mode = #tpu.pipeline_mode<synchronous>, transform_indices = @transform_2, window_bounds = array<i64: 8, 144>}, {pipeline_mode = #tpu.pipeline_mode<synchronous>, transform_indices = @transform_3, window_bounds = array<i64: 8, 1>}, {transform_indices = @transform_4, window_bounds = array<i64: 1, 8, 1024>}]} {
    %c0 = arith.constant 0 : index
    %c0_0 = arith.constant 0 : index
    %c0_1 = arith.constant 0 : index
    %0 = vector.load %arg2[%c0, %c0_0, %c0_1] : memref<1x16x1024xbf16, #tpu.memory_space<vmem>>, vector<1x16x1024xbf16>
    %1 = vector.shape_cast %0 : vector<1x16x1024xbf16> to vector<16x1024xbf16>
    %c0_2 = arith.constant 0 : index
    %c0_3 = arith.constant 0 : index
    %2 = vector.load %arg8[%c0_2, %c0_3] : memref<16x1408xbf16, #tpu.memory_space<vmem>>, vector<16x1024xbf16>
    tpu.vector_store %arg8[%c0_2, %c0_3], %1 {strides = array<i32>} : memref<16x1408xbf16, #tpu.memory_space<vmem>>, vector<16x1024xbf16>,
    %c0_4 = arith.constant 0 : index
    %c0_5 = arith.constant 0 : index
    %c0_6 = arith.constant 0 : index
    %3 = vector.load %arg3[%c0_4, %c0_5, %c0_6] : memref<1x16x256xbf16, #tpu.memory_space<vmem>>, vector<1x16x256xbf16>
    %4 = vector.shape_cast %3 : vector<1x16x256xbf16> to vector<16x256xbf16>
    %c0_7 = arith.constant 0 : index
    %c1024 = arith.constant 1024 : index
    %5 = vector.load %arg8[%c0_7, %c1024] : memref<16x1408xbf16, #tpu.memory_space<vmem>>, vector<16x256xbf16>
    tpu.vector_store %arg8[%c0_7, %c1024], %4 {strides = array<i32>} : memref<16x1408xbf16, #tpu.memory_space<vmem>>, vector<16x256xbf16>,
    %cst = arith.constant 0.000000e+00 : bf16
    %6 = vector.broadcast %cst : bf16 to vector<16x128xbf16>
    %c0_8 = arith.constant 0 : index
    %c1280 = arith.constant 1280 : index
    %7 = vector.load %arg8[%c0_8, %c1280] : memref<16x1408xbf16, #tpu.memory_space<vmem>>, vector<16x128xbf16>
    tpu.vector_store %arg8[%c0_8, %c1280], %6 {strides = array<i32>} : memref<16x1408xbf16, #tpu.memory_space<vmem>>, vector<16x128xbf16>,
    %c0_9 = arith.constant 0 : index
    %c0_10 = arith.constant 0 : index
    %8 = vector.load %arg8[%c0_9, %c0_10] : memref<16x1408xbf16, #tpu.memory_space<vmem>>, vector<16x1024xbf16>
    %c0_11 = arith.constant 0 : index
    %c0_12 = arith.constant 0 : index
    %9 = vector.load %arg7[%c0_11, %c0_12] : memref<144x1024xbf16, #tpu.memory_space<vmem>>, vector<16x1024xbf16>
    tpu.vector_store %arg7[%c0_11, %c0_12], %8 {strides = array<i32>} : memref<144x1024xbf16, #tpu.memory_space<vmem>>, vector<16x1024xbf16>,
    %c0_13 = arith.constant 0 : index
    %c128 = arith.constant 128 : index
    %10 = vector.load %arg8[%c0_13, %c128] : memref<16x1408xbf16, #tpu.memory_space<vmem>>, vector<16x1024xbf16>
    %c16 = arith.constant 16 : index
    %c0_14 = arith.constant 0 : index
    %11 = vector.load %arg7[%c16, %c0_14] : memref<144x1024xbf16, #tpu.memory_space<vmem>>, vector<16x1024xbf16>
    tpu.vector_store %arg7[%c16, %c0_14], %10 {strides = array<i32>} : memref<144x1024xbf16, #tpu.memory_space<vmem>>, vector<16x1024xbf16>,
    %c0_15 = arith.constant 0 : index
    %c256 = arith.constant 256 : index
    %12 = vector.load %arg8[%c0_15, %c256] : memref<16x1408xbf16, #tpu.memory_space<vmem>>, vector<16x1024xbf16>
    %c32 = arith.constant 32 : index
    %c0_16 = arith.constant 0 : index
    %13 = vector.load %arg7[%c32, %c0_16] : memref<144x1024xbf16, #tpu.memory_space<vmem>>, vector<16x1024xbf16>
    tpu.vector_store %arg7[%c32, %c0_16], %12 {strides = array<i32>} : memref<144x1024xbf16, #tpu.memory_space<vmem>>, vector<16x1024xbf16>,
    %c0_17 = arith.constant 0 : index
    %c1 = arith.constant 1 : index
    %14 = vector.load %arg8[%c0_17, %c1] : memref<16x1408xbf16, #tpu.memory_space<vmem>>, vector<16x1280xbf16>
    %15 = vector.extract_strided_slice %14 {offsets = [0, 0], sizes = [16, 1024], strides = [1, 1]} : vector<16x1280xbf16> to vector<16x1024xbf16>
    %c48 = arith.constant 48 : index
    %c0_18 = arith.constant 0 : index
    %16 = vector.load %arg7[%c48, %c0_18] : memref<144x1024xbf16, #tpu.memory_space<vmem>>, vector<16x1024xbf16>
    tpu.vector_store %arg7[%c48, %c0_18], %15 {strides = array<i32>} : memref<144x1024xbf16, #tpu.memory_space<vmem>>, vector<16x1024xbf16>,
    %17 = vector.extract_strided_slice %14 {offsets = [0, 128], sizes = [16, 1024], strides = [1, 1]} : vector<16x1280xbf16> to vector<16x1024xbf16>
    %c64 = arith.constant 64 : index
    %c0_19 = arith.constant 0 : index
    %18 = vector.load %arg7[%c64, %c0_19] : memref<144x1024xbf16, #tpu.memory_space<vmem>>, vector<16x1024xbf16>
    tpu.vector_store %arg7[%c64, %c0_19], %17 {strides = array<i32>} : memref<144x1024xbf16, #tpu.memory_space<vmem>>, vector<16x1024xbf16>,
    %19 = vector.extract_strided_slice %14 {offsets = [0, 256], sizes = [16, 1024], strides = [1, 1]} : vector<16x1280xbf16> to vector<16x1024xbf16>
    %c80 = arith.constant 80 : index
    %c0_20 = arith.constant 0 : index
    %20 = vector.load %arg7[%c80, %c0_20] : memref<144x1024xbf16, #tpu.memory_space<vmem>>, vector<16x1024xbf16>
    tpu.vector_store %arg7[%c80, %c0_20], %19 {strides = array<i32>} : memref<144x1024xbf16, #tpu.memory_space<vmem>>, vector<16x1024xbf16>,
    %c0_21 = arith.constant 0 : index
    %c2 = arith.constant 2 : index
    %21 = vector.load %arg8[%c0_21, %c2] : memref<16x1408xbf16, #tpu.memory_space<vmem>>, vector<16x1280xbf16>
    %22 = vector.extract_strided_slice %21 {offsets = [0, 0], sizes = [16, 1024], strides = [1, 1]} : vector<16x1280xbf16> to vector<16x1024xbf16>
    %c96 = arith.constant 96 : index
    %c0_22 = arith.constant 0 : index
    %23 = vector.load %arg7[%c96, %c0_22] : memref<144x1024xbf16, #tpu.memory_space<vmem>>, vector<16x1024xbf16>
    tpu.vector_store %arg7[%c96, %c0_22], %22 {strides = array<i32>} : memref<144x1024xbf16, #tpu.memory_space<vmem>>, vector<16x1024xbf16>,
    %24 = vector.extract_strided_slice %21 {offsets = [0, 128], sizes = [16, 1024], strides = [1, 1]} : vector<16x1280xbf16> to vector<16x1024xbf16>
    %c112 = arith.constant 112 : index
    %c0_23 = arith.constant 0 : index
    %25 = vector.load %arg7[%c112, %c0_23] : memref<144x1024xbf16, #tpu.memory_space<vmem>>, vector<16x1024xbf16>
    tpu.vector_store %arg7[%c112, %c0_23], %24 {strides = array<i32>} : memref<144x1024xbf16, #tpu.memory_space<vmem>>, vector<16x1024xbf16>,
    %26 = vector.extract_strided_slice %21 {offsets = [0, 256], sizes = [16, 1024], strides = [1, 1]} : vector<16x1280xbf16> to vector<16x1024xbf16>
    %c128_24 = arith.constant 128 : index
    %c0_25 = arith.constant 0 : index
    %27 = vector.load %arg7[%c128_24, %c0_25] : memref<144x1024xbf16, #tpu.memory_space<vmem>>, vector<16x1024xbf16>
    tpu.vector_store %arg7[%c128_24, %c0_25], %26 {strides = array<i32>} : memref<144x1024xbf16, #tpu.memory_space<vmem>>, vector<16x1024xbf16>,
    %c0_26 = arith.constant 0 : index
    %c0_27 = arith.constant 0 : index
    %28 = vector.load %arg4[%c0_26, %c0_27] : memref<8x144xbf16, #tpu.memory_space<vmem>>, vector<8x144xbf16>
    %c0_28 = arith.constant 0 : index
    %c0_29 = arith.constant 0 : index
    %29 = vector.load %arg7[%c0_28, %c0_29] : memref<144x1024xbf16, #tpu.memory_space<vmem>>, vector<144x1024xbf16>
    %cst_30 = arith.constant dense<0.000000e+00> : vector<8x1024xf32>
    %30 = tpu.matmul %28, %29, %cst_30 {dimension_numbers = #tpu.dot_dimension_numbers<[1], [0], [0], [1], [0, 0, 1, 1], [], []>} : vector<8x144xbf16>, vector<144x1024xbf16>, vector<8x1024xf32> -> vector<8x1024xf32>
    %c0_31 = arith.constant 0 : index
    %c0_32 = arith.constant 0 : index
    %31 = vector.load %arg5[%c0_31, %c0_32] : memref<8x1xf32, #tpu.memory_space<vmem>>, vector<8x1xf32>
    %32 = vector.broadcast %31 : vector<8x1xf32> to vector<8x1024xf32>
    %33 = arith.addf %30, %32 : vector<8x1024xf32>
    %cst_33 = arith.constant 0.000000e+00 : f32
    %34 = vector.broadcast %cst_33 : f32 to vector<8x1024xf32>
    %35 = arith.maximumf %33, %34 : vector<8x1024xf32>
    %36 = arith.truncf %35 : vector<8x1024xf32> to vector<8x1024xbf16>
    %c0_34 = arith.constant 0 : index
    %c0_35 = arith.constant 0 : index
    %c0_36 = arith.constant 0 : index
    %37 = vector.load %arg6[%c0_34, %c0_35, %c0_36] : memref<1x8x1024xbf16, #tpu.memory_space<vmem>>, vector<1x8x1024xbf16>
    %38 = vector.shape_cast %37 : vector<1x8x1024xbf16> to vector<8x1024xbf16>
    %39 = vector.shape_cast %36 : vector<8x1024xbf16> to vector<1x8x1024xbf16>
    tpu.vector_store %arg6[%c0_34, %c0_35, %c0_36], %39 {strides = array<i32>} : memref<1x8x1024xbf16, #tpu.memory_space<vmem>>, vector<1x8x1024xbf16>,
    return
  }
  func.func @transform_0(%arg0: i32, %arg1: i32) -> (i32, i32, i32) {
    %c0_i32 = arith.constant 0 : i32
    %c0_i32_0 = arith.constant 0 : i32
    return %arg0, %c0_i32, %arg1 : i32, i32, i32
  }
  func.func @transform_1(%arg0: i32, %arg1: i32) -> (i32, i32, i32) {
    %c1_i32 = arith.constant 1 : i32
    %0 = arith.addi %arg1, %c1_i32 : i32
    %c4_i32 = arith.constant 4 : i32
    %1 = arith.muli %0, %c4_i32 : i32
    %c0_i32 = arith.constant 0 : i32
    %c0_i32_0 = arith.constant 0 : i32
    return %arg0, %c0_i32, %1 : i32, i32, i32
  }
  func.func @transform_2(%arg0: i32, %arg1: i32) -> (i32, i32) {
    %c0_i32 = arith.constant 0 : i32
    %c0_i32_0 = arith.constant 0 : i32
    %c0_i32_1 = arith.constant 0 : i32
    return %c0_i32, %c0_i32_0 : i32, i32
  }
  func.func @transform_3(%arg0: i32, %arg1: i32) -> (i32, i32) {
    %c0_i32 = arith.constant 0 : i32
    %c0_i32_0 = arith.constant 0 : i32
    %c0_i32_1 = arith.constant 0 : i32
    return %c0_i32, %c0_i32_0 : i32, i32
  }
  func.func @transform_4(%arg0: i32, %arg1: i32) -> (i32, i32, i32) {
    %c0_i32 = arith.constant 0 : i32
    %c0_i32_0 = arith.constant 0 : i32
    return %arg0, %c0_i32, %arg1 : i32, i32, i32
  }
}

module attributes {stable_mosaic.version = 11 : i64} {
  func.func @_conv3x3_kernel(%arg0: i32, %arg1: i32, %arg2: memref<1x16x512xbf16, #tpu.memory_space<vmem>>, %arg3: memref<1x16x256xbf16, #tpu.memory_space<vmem>>, %arg4: memref<8x144xbf16, #tpu.memory_space<vmem>>, %arg5: memref<8x1xf32, #tpu.memory_space<vmem>>, %arg6: memref<1x8x512xbf16, #tpu.memory_space<vmem>>, %arg7: memref<144x512xbf16, #tpu.memory_space<vmem>>, %arg8: memref<16x896xbf16, #tpu.memory_space<vmem>>) attributes {dimension_semantics = [#tpu.dimension_semantics<parallel>, #tpu.dimension_semantics<parallel>], iteration_bounds = array<i64: 2, 1>, scalar_prefetch = 0 : i64, scratch_operands = 2 : i64, tpu.core_type = #tpu.core_type<tc>, window_params = [{transform_indices = @transform_0, window_bounds = array<i64: 1, 16, 512>}, {transform_indices = @transform_1, window_bounds = array<i64: 1, 16, 256>}, {pipeline_mode = #tpu.pipeline_mode<synchronous>, transform_indices = @transform_2, window_bounds = array<i64: 8, 144>}, {pipeline_mode = #tpu.pipeline_mode<synchronous>, transform_indices = @transform_3, window_bounds = array<i64: 8, 1>}, {transform_indices = @transform_4, window_bounds = array<i64: 1, 8, 512>}]} {
    %c0 = arith.constant 0 : index
    %c0_0 = arith.constant 0 : index
    %c0_1 = arith.constant 0 : index
    %0 = vector.load %arg2[%c0, %c0_0, %c0_1] : memref<1x16x512xbf16, #tpu.memory_space<vmem>>, vector<1x16x512xbf16>
    %1 = vector.shape_cast %0 : vector<1x16x512xbf16> to vector<16x512xbf16>
    %c0_2 = arith.constant 0 : index
    %c0_3 = arith.constant 0 : index
    %2 = vector.load %arg8[%c0_2, %c0_3] : memref<16x896xbf16, #tpu.memory_space<vmem>>, vector<16x512xbf16>
    tpu.vector_store %arg8[%c0_2, %c0_3], %1 {strides = array<i32>} : memref<16x896xbf16, #tpu.memory_space<vmem>>, vector<16x512xbf16>,
    %c0_4 = arith.constant 0 : index
    %c0_5 = arith.constant 0 : index
    %c0_6 = arith.constant 0 : index
    %3 = vector.load %arg3[%c0_4, %c0_5, %c0_6] : memref<1x16x256xbf16, #tpu.memory_space<vmem>>, vector<1x16x256xbf16>
    %4 = vector.shape_cast %3 : vector<1x16x256xbf16> to vector<16x256xbf16>
    %c0_7 = arith.constant 0 : index
    %c512 = arith.constant 512 : index
    %5 = vector.load %arg8[%c0_7, %c512] : memref<16x896xbf16, #tpu.memory_space<vmem>>, vector<16x256xbf16>
    tpu.vector_store %arg8[%c0_7, %c512], %4 {strides = array<i32>} : memref<16x896xbf16, #tpu.memory_space<vmem>>, vector<16x256xbf16>,
    %cst = arith.constant 0.000000e+00 : bf16
    %6 = vector.broadcast %cst : bf16 to vector<16x128xbf16>
    %c0_8 = arith.constant 0 : index
    %c768 = arith.constant 768 : index
    %7 = vector.load %arg8[%c0_8, %c768] : memref<16x896xbf16, #tpu.memory_space<vmem>>, vector<16x128xbf16>
    tpu.vector_store %arg8[%c0_8, %c768], %6 {strides = array<i32>} : memref<16x896xbf16, #tpu.memory_space<vmem>>, vector<16x128xbf16>,
    %c0_9 = arith.constant 0 : index
    %c0_10 = arith.constant 0 : index
    %8 = vector.load %arg8[%c0_9, %c0_10] : memref<16x896xbf16, #tpu.memory_space<vmem>>, vector<16x512xbf16>
    %c0_11 = arith.constant 0 : index
    %c0_12 = arith.constant 0 : index
    %9 = vector.load %arg7[%c0_11, %c0_12] : memref<144x512xbf16, #tpu.memory_space<vmem>>, vector<16x512xbf16>
    tpu.vector_store %arg7[%c0_11, %c0_12], %8 {strides = array<i32>} : memref<144x512xbf16, #tpu.memory_space<vmem>>, vector<16x512xbf16>,
    %c0_13 = arith.constant 0 : index
    %c128 = arith.constant 128 : index
    %10 = vector.load %arg8[%c0_13, %c128] : memref<16x896xbf16, #tpu.memory_space<vmem>>, vector<16x512xbf16>
    %c16 = arith.constant 16 : index
    %c0_14 = arith.constant 0 : index
    %11 = vector.load %arg7[%c16, %c0_14] : memref<144x512xbf16, #tpu.memory_space<vmem>>, vector<16x512xbf16>
    tpu.vector_store %arg7[%c16, %c0_14], %10 {strides = array<i32>} : memref<144x512xbf16, #tpu.memory_space<vmem>>, vector<16x512xbf16>,
    %c0_15 = arith.constant 0 : index
    %c256 = arith.constant 256 : index
    %12 = vector.load %arg8[%c0_15, %c256] : memref<16x896xbf16, #tpu.memory_space<vmem>>, vector<16x512xbf16>
    %c32 = arith.constant 32 : index
    %c0_16 = arith.constant 0 : index
    %13 = vector.load %arg7[%c32, %c0_16] : memref<144x512xbf16, #tpu.memory_space<vmem>>, vector<16x512xbf16>
    tpu.vector_store %arg7[%c32, %c0_16], %12 {strides = array<i32>} : memref<144x512xbf16, #tpu.memory_space<vmem>>, vector<16x512xbf16>,
    %c0_17 = arith.constant 0 : index
    %c1 = arith.constant 1 : index
    %14 = vector.load %arg8[%c0_17, %c1] : memref<16x896xbf16, #tpu.memory_space<vmem>>, vector<16x768xbf16>
    %15 = vector.extract_strided_slice %14 {offsets = [0, 0], sizes = [16, 512], strides = [1, 1]} : vector<16x768xbf16> to vector<16x512xbf16>
    %c48 = arith.constant 48 : index
    %c0_18 = arith.constant 0 : index
    %16 = vector.load %arg7[%c48, %c0_18] : memref<144x512xbf16, #tpu.memory_space<vmem>>, vector<16x512xbf16>
    tpu.vector_store %arg7[%c48, %c0_18], %15 {strides = array<i32>} : memref<144x512xbf16, #tpu.memory_space<vmem>>, vector<16x512xbf16>,
    %17 = vector.extract_strided_slice %14 {offsets = [0, 128], sizes = [16, 512], strides = [1, 1]} : vector<16x768xbf16> to vector<16x512xbf16>
    %c64 = arith.constant 64 : index
    %c0_19 = arith.constant 0 : index
    %18 = vector.load %arg7[%c64, %c0_19] : memref<144x512xbf16, #tpu.memory_space<vmem>>, vector<16x512xbf16>
    tpu.vector_store %arg7[%c64, %c0_19], %17 {strides = array<i32>} : memref<144x512xbf16, #tpu.memory_space<vmem>>, vector<16x512xbf16>,
    %19 = vector.extract_strided_slice %14 {offsets = [0, 256], sizes = [16, 512], strides = [1, 1]} : vector<16x768xbf16> to vector<16x512xbf16>
    %c80 = arith.constant 80 : index
    %c0_20 = arith.constant 0 : index
    %20 = vector.load %arg7[%c80, %c0_20] : memref<144x512xbf16, #tpu.memory_space<vmem>>, vector<16x512xbf16>
    tpu.vector_store %arg7[%c80, %c0_20], %19 {strides = array<i32>} : memref<144x512xbf16, #tpu.memory_space<vmem>>, vector<16x512xbf16>,
    %c0_21 = arith.constant 0 : index
    %c2 = arith.constant 2 : index
    %21 = vector.load %arg8[%c0_21, %c2] : memref<16x896xbf16, #tpu.memory_space<vmem>>, vector<16x768xbf16>
    %22 = vector.extract_strided_slice %21 {offsets = [0, 0], sizes = [16, 512], strides = [1, 1]} : vector<16x768xbf16> to vector<16x512xbf16>
    %c96 = arith.constant 96 : index
    %c0_22 = arith.constant 0 : index
    %23 = vector.load %arg7[%c96, %c0_22] : memref<144x512xbf16, #tpu.memory_space<vmem>>, vector<16x512xbf16>
    tpu.vector_store %arg7[%c96, %c0_22], %22 {strides = array<i32>} : memref<144x512xbf16, #tpu.memory_space<vmem>>, vector<16x512xbf16>,
    %24 = vector.extract_strided_slice %21 {offsets = [0, 128], sizes = [16, 512], strides = [1, 1]} : vector<16x768xbf16> to vector<16x512xbf16>
    %c112 = arith.constant 112 : index
    %c0_23 = arith.constant 0 : index
    %25 = vector.load %arg7[%c112, %c0_23] : memref<144x512xbf16, #tpu.memory_space<vmem>>, vector<16x512xbf16>
    tpu.vector_store %arg7[%c112, %c0_23], %24 {strides = array<i32>} : memref<144x512xbf16, #tpu.memory_space<vmem>>, vector<16x512xbf16>,
    %26 = vector.extract_strided_slice %21 {offsets = [0, 256], sizes = [16, 512], strides = [1, 1]} : vector<16x768xbf16> to vector<16x512xbf16>
    %c128_24 = arith.constant 128 : index
    %c0_25 = arith.constant 0 : index
    %27 = vector.load %arg7[%c128_24, %c0_25] : memref<144x512xbf16, #tpu.memory_space<vmem>>, vector<16x512xbf16>
    tpu.vector_store %arg7[%c128_24, %c0_25], %26 {strides = array<i32>} : memref<144x512xbf16, #tpu.memory_space<vmem>>, vector<16x512xbf16>,
    %c0_26 = arith.constant 0 : index
    %c0_27 = arith.constant 0 : index
    %28 = vector.load %arg4[%c0_26, %c0_27] : memref<8x144xbf16, #tpu.memory_space<vmem>>, vector<8x144xbf16>
    %c0_28 = arith.constant 0 : index
    %c0_29 = arith.constant 0 : index
    %29 = vector.load %arg7[%c0_28, %c0_29] : memref<144x512xbf16, #tpu.memory_space<vmem>>, vector<144x512xbf16>
    %cst_30 = arith.constant dense<0.000000e+00> : vector<8x512xf32>
    %30 = tpu.matmul %28, %29, %cst_30 {dimension_numbers = #tpu.dot_dimension_numbers<[1], [0], [0], [1], [0, 0, 1, 1], [], []>} : vector<8x144xbf16>, vector<144x512xbf16>, vector<8x512xf32> -> vector<8x512xf32>
    %c0_31 = arith.constant 0 : index
    %c0_32 = arith.constant 0 : index
    %31 = vector.load %arg5[%c0_31, %c0_32] : memref<8x1xf32, #tpu.memory_space<vmem>>, vector<8x1xf32>
    %32 = vector.broadcast %31 : vector<8x1xf32> to vector<8x512xf32>
    %33 = arith.addf %30, %32 : vector<8x512xf32>
    %cst_33 = arith.constant 0.000000e+00 : f32
    %34 = vector.broadcast %cst_33 : f32 to vector<8x512xf32>
    %35 = arith.maximumf %33, %34 : vector<8x512xf32>
    %36 = arith.truncf %35 : vector<8x512xf32> to vector<8x512xbf16>
    %c0_34 = arith.constant 0 : index
    %c0_35 = arith.constant 0 : index
    %c0_36 = arith.constant 0 : index
    %37 = vector.load %arg6[%c0_34, %c0_35, %c0_36] : memref<1x8x512xbf16, #tpu.memory_space<vmem>>, vector<1x8x512xbf16>
    %38 = vector.shape_cast %37 : vector<1x8x512xbf16> to vector<8x512xbf16>
    %39 = vector.shape_cast %36 : vector<8x512xbf16> to vector<1x8x512xbf16>
    tpu.vector_store %arg6[%c0_34, %c0_35, %c0_36], %39 {strides = array<i32>} : memref<1x8x512xbf16, #tpu.memory_space<vmem>>, vector<1x8x512xbf16>,
    return
  }
  func.func @transform_0(%arg0: i32, %arg1: i32) -> (i32, i32, i32) {
    %c0_i32 = arith.constant 0 : i32
    %c0_i32_0 = arith.constant 0 : i32
    return %arg0, %c0_i32, %arg1 : i32, i32, i32
  }
  func.func @transform_1(%arg0: i32, %arg1: i32) -> (i32, i32, i32) {
    %c1_i32 = arith.constant 1 : i32
    %0 = arith.addi %arg1, %c1_i32 : i32
    %c2_i32 = arith.constant 2 : i32
    %1 = arith.muli %0, %c2_i32 : i32
    %c0_i32 = arith.constant 0 : i32
    %c0_i32_0 = arith.constant 0 : i32
    return %arg0, %c0_i32, %1 : i32, i32, i32
  }
  func.func @transform_2(%arg0: i32, %arg1: i32) -> (i32, i32) {
    %c0_i32 = arith.constant 0 : i32
    %c0_i32_0 = arith.constant 0 : i32
    %c0_i32_1 = arith.constant 0 : i32
    return %c0_i32, %c0_i32_0 : i32, i32
  }
  func.func @transform_3(%arg0: i32, %arg1: i32) -> (i32, i32) {
    %c0_i32 = arith.constant 0 : i32
    %c0_i32_0 = arith.constant 0 : i32
    %c0_i32_1 = arith.constant 0 : i32
    return %c0_i32, %c0_i32_0 : i32, i32
  }
  func.func @transform_4(%arg0: i32, %arg1: i32) -> (i32, i32, i32) {
    %c0_i32 = arith.constant 0 : i32
    %c0_i32_0 = arith.constant 0 : i32
    return %arg0, %c0_i32, %arg1 : i32, i32, i32
  }
}

module attributes {stable_mosaic.version = 11 : i64} {
  func.func @_conv3x3_kernel(%arg0: i32, %arg1: i32, %arg2: memref<1x16x256xbf16, #tpu.memory_space<vmem>>, %arg3: memref<1x16x256xbf16, #tpu.memory_space<vmem>>, %arg4: memref<8x144xbf16, #tpu.memory_space<vmem>>, %arg5: memref<8x1xf32, #tpu.memory_space<vmem>>, %arg6: memref<1x8x256xbf16, #tpu.memory_space<vmem>>, %arg7: memref<144x256xbf16, #tpu.memory_space<vmem>>, %arg8: memref<16x640xbf16, #tpu.memory_space<vmem>>) attributes {dimension_semantics = [#tpu.dimension_semantics<parallel>, #tpu.dimension_semantics<parallel>], iteration_bounds = array<i64: 2, 1>, scalar_prefetch = 0 : i64, scratch_operands = 2 : i64, tpu.core_type = #tpu.core_type<tc>, window_params = [{transform_indices = @transform_0, window_bounds = array<i64: 1, 16, 256>}, {transform_indices = @transform_1, window_bounds = array<i64: 1, 16, 256>}, {pipeline_mode = #tpu.pipeline_mode<synchronous>, transform_indices = @transform_2, window_bounds = array<i64: 8, 144>}, {pipeline_mode = #tpu.pipeline_mode<synchronous>, transform_indices = @transform_3, window_bounds = array<i64: 8, 1>}, {transform_indices = @transform_4, window_bounds = array<i64: 1, 8, 256>}]} {
    %c0 = arith.constant 0 : index
    %c0_0 = arith.constant 0 : index
    %c0_1 = arith.constant 0 : index
    %0 = vector.load %arg2[%c0, %c0_0, %c0_1] : memref<1x16x256xbf16, #tpu.memory_space<vmem>>, vector<1x16x256xbf16>
    %1 = vector.shape_cast %0 : vector<1x16x256xbf16> to vector<16x256xbf16>
    %c0_2 = arith.constant 0 : index
    %c0_3 = arith.constant 0 : index
    %2 = vector.load %arg8[%c0_2, %c0_3] : memref<16x640xbf16, #tpu.memory_space<vmem>>, vector<16x256xbf16>
    tpu.vector_store %arg8[%c0_2, %c0_3], %1 {strides = array<i32>} : memref<16x640xbf16, #tpu.memory_space<vmem>>, vector<16x256xbf16>,
    %c0_4 = arith.constant 0 : index
    %c0_5 = arith.constant 0 : index
    %c0_6 = arith.constant 0 : index
    %3 = vector.load %arg3[%c0_4, %c0_5, %c0_6] : memref<1x16x256xbf16, #tpu.memory_space<vmem>>, vector<1x16x256xbf16>
    %4 = vector.shape_cast %3 : vector<1x16x256xbf16> to vector<16x256xbf16>
    %c0_7 = arith.constant 0 : index
    %c256 = arith.constant 256 : index
    %5 = vector.load %arg8[%c0_7, %c256] : memref<16x640xbf16, #tpu.memory_space<vmem>>, vector<16x256xbf16>
    tpu.vector_store %arg8[%c0_7, %c256], %4 {strides = array<i32>} : memref<16x640xbf16, #tpu.memory_space<vmem>>, vector<16x256xbf16>,
    %cst = arith.constant 0.000000e+00 : bf16
    %6 = vector.broadcast %cst : bf16 to vector<16x128xbf16>
    %c0_8 = arith.constant 0 : index
    %c512 = arith.constant 512 : index
    %7 = vector.load %arg8[%c0_8, %c512] : memref<16x640xbf16, #tpu.memory_space<vmem>>, vector<16x128xbf16>
    tpu.vector_store %arg8[%c0_8, %c512], %6 {strides = array<i32>} : memref<16x640xbf16, #tpu.memory_space<vmem>>, vector<16x128xbf16>,
    %c0_9 = arith.constant 0 : index
    %c0_10 = arith.constant 0 : index
    %8 = vector.load %arg8[%c0_9, %c0_10] : memref<16x640xbf16, #tpu.memory_space<vmem>>, vector<16x256xbf16>
    %c0_11 = arith.constant 0 : index
    %c0_12 = arith.constant 0 : index
    %9 = vector.load %arg7[%c0_11, %c0_12] : memref<144x256xbf16, #tpu.memory_space<vmem>>, vector<16x256xbf16>
    tpu.vector_store %arg7[%c0_11, %c0_12], %8 {strides = array<i32>} : memref<144x256xbf16, #tpu.memory_space<vmem>>, vector<16x256xbf16>,
    %c0_13 = arith.constant 0 : index
    %c128 = arith.constant 128 : index
    %10 = vector.load %arg8[%c0_13, %c128] : memref<16x640xbf16, #tpu.memory_space<vmem>>, vector<16x256xbf16>
    %c16 = arith.constant 16 : index
    %c0_14 = arith.constant 0 : index
    %11 = vector.load %arg7[%c16, %c0_14] : memref<144x256xbf16, #tpu.memory_space<vmem>>, vector<16x256xbf16>
    tpu.vector_store %arg7[%c16, %c0_14], %10 {strides = array<i32>} : memref<144x256xbf16, #tpu.memory_space<vmem>>, vector<16x256xbf16>,
    %c0_15 = arith.constant 0 : index
    %c256_16 = arith.constant 256 : index
    %12 = vector.load %arg8[%c0_15, %c256_16] : memref<16x640xbf16, #tpu.memory_space<vmem>>, vector<16x256xbf16>
    %c32 = arith.constant 32 : index
    %c0_17 = arith.constant 0 : index
    %13 = vector.load %arg7[%c32, %c0_17] : memref<144x256xbf16, #tpu.memory_space<vmem>>, vector<16x256xbf16>
    tpu.vector_store %arg7[%c32, %c0_17], %12 {strides = array<i32>} : memref<144x256xbf16, #tpu.memory_space<vmem>>, vector<16x256xbf16>,
    %c0_18 = arith.constant 0 : index
    %c1 = arith.constant 1 : index
    %14 = vector.load %arg8[%c0_18, %c1] : memref<16x640xbf16, #tpu.memory_space<vmem>>, vector<16x512xbf16>
    %15 = vector.extract_strided_slice %14 {offsets = [0, 0], sizes = [16, 256], strides = [1, 1]} : vector<16x512xbf16> to vector<16x256xbf16>
    %c48 = arith.constant 48 : index
    %c0_19 = arith.constant 0 : index
    %16 = vector.load %arg7[%c48, %c0_19] : memref<144x256xbf16, #tpu.memory_space<vmem>>, vector<16x256xbf16>
    tpu.vector_store %arg7[%c48, %c0_19], %15 {strides = array<i32>} : memref<144x256xbf16, #tpu.memory_space<vmem>>, vector<16x256xbf16>,
    %17 = vector.extract_strided_slice %14 {offsets = [0, 128], sizes = [16, 256], strides = [1, 1]} : vector<16x512xbf16> to vector<16x256xbf16>
    %c64 = arith.constant 64 : index
    %c0_20 = arith.constant 0 : index
    %18 = vector.load %arg7[%c64, %c0_20] : memref<144x256xbf16, #tpu.memory_space<vmem>>, vector<16x256xbf16>
    tpu.vector_store %arg7[%c64, %c0_20], %17 {strides = array<i32>} : memref<144x256xbf16, #tpu.memory_space<vmem>>, vector<16x256xbf16>,
    %19 = vector.extract_strided_slice %14 {offsets = [0, 256], sizes = [16, 256], strides = [1, 1]} : vector<16x512xbf16> to vector<16x256xbf16>
    %c80 = arith.constant 80 : index
    %c0_21 = arith.constant 0 : index
    %20 = vector.load %arg7[%c80, %c0_21] : memref<144x256xbf16, #tpu.memory_space<vmem>>, vector<16x256xbf16>
    tpu.vector_store %arg7[%c80, %c0_21], %19 {strides = array<i32>} : memref<144x256xbf16, #tpu.memory_space<vmem>>, vector<16x256xbf16>,
    %c0_22 = arith.constant 0 : index
    %c2 = arith.constant 2 : index
    %21 = vector.load %arg8[%c0_22, %c2] : memref<16x640xbf16, #tpu.memory_space<vmem>>, vector<16x512xbf16>
    %22 = vector.extract_strided_slice %21 {offsets = [0, 0], sizes = [16, 256], strides = [1, 1]} : vector<16x512xbf16> to vector<16x256xbf16>
    %c96 = arith.constant 96 : index
    %c0_23 = arith.constant 0 : index
    %23 = vector.load %arg7[%c96, %c0_23] : memref<144x256xbf16, #tpu.memory_space<vmem>>, vector<16x256xbf16>
    tpu.vector_store %arg7[%c96, %c0_23], %22 {strides = array<i32>} : memref<144x256xbf16, #tpu.memory_space<vmem>>, vector<16x256xbf16>,
    %24 = vector.extract_strided_slice %21 {offsets = [0, 128], sizes = [16, 256], strides = [1, 1]} : vector<16x512xbf16> to vector<16x256xbf16>
    %c112 = arith.constant 112 : index
    %c0_24 = arith.constant 0 : index
    %25 = vector.load %arg7[%c112, %c0_24] : memref<144x256xbf16, #tpu.memory_space<vmem>>, vector<16x256xbf16>
    tpu.vector_store %arg7[%c112, %c0_24], %24 {strides = array<i32>} : memref<144x256xbf16, #tpu.memory_space<vmem>>, vector<16x256xbf16>,
    %26 = vector.extract_strided_slice %21 {offsets = [0, 256], sizes = [16, 256], strides = [1, 1]} : vector<16x512xbf16> to vector<16x256xbf16>
    %c128_25 = arith.constant 128 : index
    %c0_26 = arith.constant 0 : index
    %27 = vector.load %arg7[%c128_25, %c0_26] : memref<144x256xbf16, #tpu.memory_space<vmem>>, vector<16x256xbf16>
    tpu.vector_store %arg7[%c128_25, %c0_26], %26 {strides = array<i32>} : memref<144x256xbf16, #tpu.memory_space<vmem>>, vector<16x256xbf16>,
    %c0_27 = arith.constant 0 : index
    %c0_28 = arith.constant 0 : index
    %28 = vector.load %arg4[%c0_27, %c0_28] : memref<8x144xbf16, #tpu.memory_space<vmem>>, vector<8x144xbf16>
    %c0_29 = arith.constant 0 : index
    %c0_30 = arith.constant 0 : index
    %29 = vector.load %arg7[%c0_29, %c0_30] : memref<144x256xbf16, #tpu.memory_space<vmem>>, vector<144x256xbf16>
    %cst_31 = arith.constant dense<0.000000e+00> : vector<8x256xf32>
    %30 = tpu.matmul %28, %29, %cst_31 {dimension_numbers = #tpu.dot_dimension_numbers<[1], [0], [0], [1], [0, 0, 1, 1], [], []>} : vector<8x144xbf16>, vector<144x256xbf16>, vector<8x256xf32> -> vector<8x256xf32>
    %c0_32 = arith.constant 0 : index
    %c0_33 = arith.constant 0 : index
    %31 = vector.load %arg5[%c0_32, %c0_33] : memref<8x1xf32, #tpu.memory_space<vmem>>, vector<8x1xf32>
    %32 = vector.broadcast %31 : vector<8x1xf32> to vector<8x256xf32>
    %33 = arith.addf %30, %32 : vector<8x256xf32>
    %cst_34 = arith.constant 0.000000e+00 : f32
    %34 = vector.broadcast %cst_34 : f32 to vector<8x256xf32>
    %35 = arith.maximumf %33, %34 : vector<8x256xf32>
    %36 = arith.truncf %35 : vector<8x256xf32> to vector<8x256xbf16>
    %c0_35 = arith.constant 0 : index
    %c0_36 = arith.constant 0 : index
    %c0_37 = arith.constant 0 : index
    %37 = vector.load %arg6[%c0_35, %c0_36, %c0_37] : memref<1x8x256xbf16, #tpu.memory_space<vmem>>, vector<1x8x256xbf16>
    %38 = vector.shape_cast %37 : vector<1x8x256xbf16> to vector<8x256xbf16>
    %39 = vector.shape_cast %36 : vector<8x256xbf16> to vector<1x8x256xbf16>
    tpu.vector_store %arg6[%c0_35, %c0_36, %c0_37], %39 {strides = array<i32>} : memref<1x8x256xbf16, #tpu.memory_space<vmem>>, vector<1x8x256xbf16>,
    return
  }
  func.func @transform_0(%arg0: i32, %arg1: i32) -> (i32, i32, i32) {
    %c0_i32 = arith.constant 0 : i32
    %c0_i32_0 = arith.constant 0 : i32
    return %arg0, %c0_i32, %arg1 : i32, i32, i32
  }
  func.func @transform_1(%arg0: i32, %arg1: i32) -> (i32, i32, i32) {
    %c1_i32 = arith.constant 1 : i32
    %0 = arith.addi %arg1, %c1_i32 : i32
    %c1_i32_0 = arith.constant 1 : i32
    %1 = arith.muli %0, %c1_i32_0 : i32
    %c0_i32 = arith.constant 0 : i32
    %c0_i32_1 = arith.constant 0 : i32
    return %arg0, %c0_i32, %1 : i32, i32, i32
  }
  func.func @transform_2(%arg0: i32, %arg1: i32) -> (i32, i32) {
    %c0_i32 = arith.constant 0 : i32
    %c0_i32_0 = arith.constant 0 : i32
    %c0_i32_1 = arith.constant 0 : i32
    return %c0_i32, %c0_i32_0 : i32, i32
  }
  func.func @transform_3(%arg0: i32, %arg1: i32) -> (i32, i32) {
    %c0_i32 = arith.constant 0 : i32
    %c0_i32_0 = arith.constant 0 : i32
    %c0_i32_1 = arith.constant 0 : i32
    return %c0_i32, %c0_i32_0 : i32, i32
  }
  func.func @transform_4(%arg0: i32, %arg1: i32) -> (i32, i32, i32) {
    %c0_i32 = arith.constant 0 : i32
    %c0_i32_0 = arith.constant 0 : i32
    return %arg0, %c0_i32, %arg1 : i32, i32, i32
  }
}

module attributes {stable_mosaic.version = 11 : i64} {
  func.func @_conv3x3_kernel(%arg0: i32, %arg1: i32, %arg2: memref<1x16x256xbf16, #tpu.memory_space<vmem>>, %arg3: memref<1x16x256xbf16, #tpu.memory_space<vmem>>, %arg4: memref<1x16x256xbf16, #tpu.memory_space<vmem>>, %arg5: memref<1x16x256xbf16, #tpu.memory_space<vmem>>, %arg6: memref<8x288xbf16, #tpu.memory_space<vmem>>, %arg7: memref<8x1xf32, #tpu.memory_space<vmem>>, %arg8: memref<1x8x256xbf16, #tpu.memory_space<vmem>>, %arg9: memref<288x256xbf16, #tpu.memory_space<vmem>>, %arg10: memref<16x640xbf16, #tpu.memory_space<vmem>>, %arg11: memref<16x640xbf16, #tpu.memory_space<vmem>>) attributes {dimension_semantics = [#tpu.dimension_semantics<parallel>, #tpu.dimension_semantics<parallel>], iteration_bounds = array<i64: 2, 1>, scalar_prefetch = 0 : i64, scratch_operands = 3 : i64, tpu.core_type = #tpu.core_type<tc>, window_params = [{transform_indices = @transform_0, window_bounds = array<i64: 1, 16, 256>}, {transform_indices = @transform_1, window_bounds = array<i64: 1, 16, 256>}, {transform_indices = @transform_2, window_bounds = array<i64: 1, 16, 256>}, {transform_indices = @transform_3, window_bounds = array<i64: 1, 16, 256>}, {pipeline_mode = #tpu.pipeline_mode<synchronous>, transform_indices = @transform_4, window_bounds = array<i64: 8, 288>}, {pipeline_mode = #tpu.pipeline_mode<synchronous>, transform_indices = @transform_5, window_bounds = array<i64: 8, 1>}, {transform_indices = @transform_6, window_bounds = array<i64: 1, 8, 256>}]} {
    %c0 = arith.constant 0 : index
    %c0_0 = arith.constant 0 : index
    %c0_1 = arith.constant 0 : index
    %0 = vector.load %arg2[%c0, %c0_0, %c0_1] : memref<1x16x256xbf16, #tpu.memory_space<vmem>>, vector<1x16x256xbf16>
    %1 = vector.shape_cast %0 : vector<1x16x256xbf16> to vector<16x256xbf16>
    %c0_2 = arith.constant 0 : index
    %c0_3 = arith.constant 0 : index
    %2 = vector.load %arg10[%c0_2, %c0_3] : memref<16x640xbf16, #tpu.memory_space<vmem>>, vector<16x256xbf16>
    tpu.vector_store %arg10[%c0_2, %c0_3], %1 {strides = array<i32>} : memref<16x640xbf16, #tpu.memory_space<vmem>>, vector<16x256xbf16>,
    %c0_4 = arith.constant 0 : index
    %c0_5 = arith.constant 0 : index
    %c0_6 = arith.constant 0 : index
    %3 = vector.load %arg3[%c0_4, %c0_5, %c0_6] : memref<1x16x256xbf16, #tpu.memory_space<vmem>>, vector<1x16x256xbf16>
    %4 = vector.shape_cast %3 : vector<1x16x256xbf16> to vector<16x256xbf16>
    %c0_7 = arith.constant 0 : index
    %c256 = arith.constant 256 : index
    %5 = vector.load %arg10[%c0_7, %c256] : memref<16x640xbf16, #tpu.memory_space<vmem>>, vector<16x256xbf16>
    tpu.vector_store %arg10[%c0_7, %c256], %4 {strides = array<i32>} : memref<16x640xbf16, #tpu.memory_space<vmem>>, vector<16x256xbf16>,
    %cst = arith.constant 0.000000e+00 : bf16
    %6 = vector.broadcast %cst : bf16 to vector<16x128xbf16>
    %c0_8 = arith.constant 0 : index
    %c512 = arith.constant 512 : index
    %7 = vector.load %arg10[%c0_8, %c512] : memref<16x640xbf16, #tpu.memory_space<vmem>>, vector<16x128xbf16>
    tpu.vector_store %arg10[%c0_8, %c512], %6 {strides = array<i32>} : memref<16x640xbf16, #tpu.memory_space<vmem>>, vector<16x128xbf16>,
    %c0_9 = arith.constant 0 : index
    %c0_10 = arith.constant 0 : index
    %8 = vector.load %arg10[%c0_9, %c0_10] : memref<16x640xbf16, #tpu.memory_space<vmem>>, vector<16x256xbf16>
    %c0_11 = arith.constant 0 : index
    %c0_12 = arith.constant 0 : index
    %9 = vector.load %arg9[%c0_11, %c0_12] : memref<288x256xbf16, #tpu.memory_space<vmem>>, vector<16x256xbf16>
    tpu.vector_store %arg9[%c0_11, %c0_12], %8 {strides = array<i32>} : memref<288x256xbf16, #tpu.memory_space<vmem>>, vector<16x256xbf16>,
    %c0_13 = arith.constant 0 : index
    %c128 = arith.constant 128 : index
    %10 = vector.load %arg10[%c0_13, %c128] : memref<16x640xbf16, #tpu.memory_space<vmem>>, vector<16x256xbf16>
    %c16 = arith.constant 16 : index
    %c0_14 = arith.constant 0 : index
    %11 = vector.load %arg9[%c16, %c0_14] : memref<288x256xbf16, #tpu.memory_space<vmem>>, vector<16x256xbf16>
    tpu.vector_store %arg9[%c16, %c0_14], %10 {strides = array<i32>} : memref<288x256xbf16, #tpu.memory_space<vmem>>, vector<16x256xbf16>,
    %c0_15 = arith.constant 0 : index
    %c256_16 = arith.constant 256 : index
    %12 = vector.load %arg10[%c0_15, %c256_16] : memref<16x640xbf16, #tpu.memory_space<vmem>>, vector<16x256xbf16>
    %c32 = arith.constant 32 : index
    %c0_17 = arith.constant 0 : index
    %13 = vector.load %arg9[%c32, %c0_17] : memref<288x256xbf16, #tpu.memory_space<vmem>>, vector<16x256xbf16>
    tpu.vector_store %arg9[%c32, %c0_17], %12 {strides = array<i32>} : memref<288x256xbf16, #tpu.memory_space<vmem>>, vector<16x256xbf16>,
    %c0_18 = arith.constant 0 : index
    %c1 = arith.constant 1 : index
    %14 = vector.load %arg10[%c0_18, %c1] : memref<16x640xbf16, #tpu.memory_space<vmem>>, vector<16x512xbf16>
    %15 = vector.extract_strided_slice %14 {offsets = [0, 0], sizes = [16, 256], strides = [1, 1]} : vector<16x512xbf16> to vector<16x256xbf16>
    %c48 = arith.constant 48 : index
    %c0_19 = arith.constant 0 : index
    %16 = vector.load %arg9[%c48, %c0_19] : memref<288x256xbf16, #tpu.memory_space<vmem>>, vector<16x256xbf16>
    tpu.vector_store %arg9[%c48, %c0_19], %15 {strides = array<i32>} : memref<288x256xbf16, #tpu.memory_space<vmem>>, vector<16x256xbf16>,
    %17 = vector.extract_strided_slice %14 {offsets = [0, 128], sizes = [16, 256], strides = [1, 1]} : vector<16x512xbf16> to vector<16x256xbf16>
    %c64 = arith.constant 64 : index
    %c0_20 = arith.constant 0 : index
    %18 = vector.load %arg9[%c64, %c0_20] : memref<288x256xbf16, #tpu.memory_space<vmem>>, vector<16x256xbf16>
    tpu.vector_store %arg9[%c64, %c0_20], %17 {strides = array<i32>} : memref<288x256xbf16, #tpu.memory_space<vmem>>, vector<16x256xbf16>,
    %19 = vector.extract_strided_slice %14 {offsets = [0, 256], sizes = [16, 256], strides = [1, 1]} : vector<16x512xbf16> to vector<16x256xbf16>
    %c80 = arith.constant 80 : index
    %c0_21 = arith.constant 0 : index
    %20 = vector.load %arg9[%c80, %c0_21] : memref<288x256xbf16, #tpu.memory_space<vmem>>, vector<16x256xbf16>
    tpu.vector_store %arg9[%c80, %c0_21], %19 {strides = array<i32>} : memref<288x256xbf16, #tpu.memory_space<vmem>>, vector<16x256xbf16>,
    %c0_22 = arith.constant 0 : index
    %c2 = arith.constant 2 : index
    %21 = vector.load %arg10[%c0_22, %c2] : memref<16x640xbf16, #tpu.memory_space<vmem>>, vector<16x512xbf16>
    %22 = vector.extract_strided_slice %21 {offsets = [0, 0], sizes = [16, 256], strides = [1, 1]} : vector<16x512xbf16> to vector<16x256xbf16>
    %c96 = arith.constant 96 : index
    %c0_23 = arith.constant 0 : index
    %23 = vector.load %arg9[%c96, %c0_23] : memref<288x256xbf16, #tpu.memory_space<vmem>>, vector<16x256xbf16>
    tpu.vector_store %arg9[%c96, %c0_23], %22 {strides = array<i32>} : memref<288x256xbf16, #tpu.memory_space<vmem>>, vector<16x256xbf16>,
    %24 = vector.extract_strided_slice %21 {offsets = [0, 128], sizes = [16, 256], strides = [1, 1]} : vector<16x512xbf16> to vector<16x256xbf16>
    %c112 = arith.constant 112 : index
    %c0_24 = arith.constant 0 : index
    %25 = vector.load %arg9[%c112, %c0_24] : memref<288x256xbf16, #tpu.memory_space<vmem>>, vector<16x256xbf16>
    tpu.vector_store %arg9[%c112, %c0_24], %24 {strides = array<i32>} : memref<288x256xbf16, #tpu.memory_space<vmem>>, vector<16x256xbf16>,
    %26 = vector.extract_strided_slice %21 {offsets = [0, 256], sizes = [16, 256], strides = [1, 1]} : vector<16x512xbf16> to vector<16x256xbf16>
    %c128_25 = arith.constant 128 : index
    %c0_26 = arith.constant 0 : index
    %27 = vector.load %arg9[%c128_25, %c0_26] : memref<288x256xbf16, #tpu.memory_space<vmem>>, vector<16x256xbf16>
    tpu.vector_store %arg9[%c128_25, %c0_26], %26 {strides = array<i32>} : memref<288x256xbf16, #tpu.memory_space<vmem>>, vector<16x256xbf16>,
    %c0_27 = arith.constant 0 : index
    %c0_28 = arith.constant 0 : index
    %c0_29 = arith.constant 0 : index
    %28 = vector.load %arg4[%c0_27, %c0_28, %c0_29] : memref<1x16x256xbf16, #tpu.memory_space<vmem>>, vector<1x16x256xbf16>
    %29 = vector.shape_cast %28 : vector<1x16x256xbf16> to vector<16x256xbf16>
    %c0_30 = arith.constant 0 : index
    %c0_31 = arith.constant 0 : index
    %30 = vector.load %arg11[%c0_30, %c0_31] : memref<16x640xbf16, #tpu.memory_space<vmem>>, vector<16x256xbf16>
    tpu.vector_store %arg11[%c0_30, %c0_31], %29 {strides = array<i32>} : memref<16x640xbf16, #tpu.memory_space<vmem>>, vector<16x256xbf16>,
    %c0_32 = arith.constant 0 : index
    %c0_33 = arith.constant 0 : index
    %c0_34 = arith.constant 0 : index
    %31 = vector.load %arg5[%c0_32, %c0_33, %c0_34] : memref<1x16x256xbf16, #tpu.memory_space<vmem>>, vector<1x16x256xbf16>
    %32 = vector.shape_cast %31 : vector<1x16x256xbf16> to vector<16x256xbf16>
    %c0_35 = arith.constant 0 : index
    %c256_36 = arith.constant 256 : index
    %33 = vector.load %arg11[%c0_35, %c256_36] : memref<16x640xbf16, #tpu.memory_space<vmem>>, vector<16x256xbf16>
    tpu.vector_store %arg11[%c0_35, %c256_36], %32 {strides = array<i32>} : memref<16x640xbf16, #tpu.memory_space<vmem>>, vector<16x256xbf16>,
    %cst_37 = arith.constant 0.000000e+00 : bf16
    %34 = vector.broadcast %cst_37 : bf16 to vector<16x128xbf16>
    %c0_38 = arith.constant 0 : index
    %c512_39 = arith.constant 512 : index
    %35 = vector.load %arg11[%c0_38, %c512_39] : memref<16x640xbf16, #tpu.memory_space<vmem>>, vector<16x128xbf16>
    tpu.vector_store %arg11[%c0_38, %c512_39], %34 {strides = array<i32>} : memref<16x640xbf16, #tpu.memory_space<vmem>>, vector<16x128xbf16>,
    %c0_40 = arith.constant 0 : index
    %c0_41 = arith.constant 0 : index
    %36 = vector.load %arg11[%c0_40, %c0_41] : memref<16x640xbf16, #tpu.memory_space<vmem>>, vector<16x256xbf16>
    %c144 = arith.constant 144 : index
    %c0_42 = arith.constant 0 : index
    %37 = vector.load %arg9[%c144, %c0_42] : memref<288x256xbf16, #tpu.memory_space<vmem>>, vector<16x256xbf16>
    tpu.vector_store %arg9[%c144, %c0_42], %36 {strides = array<i32>} : memref<288x256xbf16, #tpu.memory_space<vmem>>, vector<16x256xbf16>,
    %c0_43 = arith.constant 0 : index
    %c128_44 = arith.constant 128 : index
    %38 = vector.load %arg11[%c0_43, %c128_44] : memref<16x640xbf16, #tpu.memory_space<vmem>>, vector<16x256xbf16>
    %c160 = arith.constant 160 : index
    %c0_45 = arith.constant 0 : index
    %39 = vector.load %arg9[%c160, %c0_45] : memref<288x256xbf16, #tpu.memory_space<vmem>>, vector<16x256xbf16>
    tpu.vector_store %arg9[%c160, %c0_45], %38 {strides = array<i32>} : memref<288x256xbf16, #tpu.memory_space<vmem>>, vector<16x256xbf16>,
    %c0_46 = arith.constant 0 : index
    %c256_47 = arith.constant 256 : index
    %40 = vector.load %arg11[%c0_46, %c256_47] : memref<16x640xbf16, #tpu.memory_space<vmem>>, vector<16x256xbf16>
    %c176 = arith.constant 176 : index
    %c0_48 = arith.constant 0 : index
    %41 = vector.load %arg9[%c176, %c0_48] : memref<288x256xbf16, #tpu.memory_space<vmem>>, vector<16x256xbf16>
    tpu.vector_store %arg9[%c176, %c0_48], %40 {strides = array<i32>} : memref<288x256xbf16, #tpu.memory_space<vmem>>, vector<16x256xbf16>,
    %c0_49 = arith.constant 0 : index
    %c1_50 = arith.constant 1 : index
    %42 = vector.load %arg11[%c0_49, %c1_50] : memref<16x640xbf16, #tpu.memory_space<vmem>>, vector<16x512xbf16>
    %43 = vector.extract_strided_slice %42 {offsets = [0, 0], sizes = [16, 256], strides = [1, 1]} : vector<16x512xbf16> to vector<16x256xbf16>
    %c192 = arith.constant 192 : index
    %c0_51 = arith.constant 0 : index
    %44 = vector.load %arg9[%c192, %c0_51] : memref<288x256xbf16, #tpu.memory_space<vmem>>, vector<16x256xbf16>
    tpu.vector_store %arg9[%c192, %c0_51], %43 {strides = array<i32>} : memref<288x256xbf16, #tpu.memory_space<vmem>>, vector<16x256xbf16>,
    %45 = vector.extract_strided_slice %42 {offsets = [0, 128], sizes = [16, 256], strides = [1, 1]} : vector<16x512xbf16> to vector<16x256xbf16>
    %c208 = arith.constant 208 : index
    %c0_52 = arith.constant 0 : index
    %46 = vector.load %arg9[%c208, %c0_52] : memref<288x256xbf16, #tpu.memory_space<vmem>>, vector<16x256xbf16>
    tpu.vector_store %arg9[%c208, %c0_52], %45 {strides = array<i32>} : memref<288x256xbf16, #tpu.memory_space<vmem>>, vector<16x256xbf16>,
    %47 = vector.extract_strided_slice %42 {offsets = [0, 256], sizes = [16, 256], strides = [1, 1]} : vector<16x512xbf16> to vector<16x256xbf16>
    %c224 = arith.constant 224 : index
    %c0_53 = arith.constant 0 : index
    %48 = vector.load %arg9[%c224, %c0_53] : memref<288x256xbf16, #tpu.memory_space<vmem>>, vector<16x256xbf16>
    tpu.vector_store %arg9[%c224, %c0_53], %47 {strides = array<i32>} : memref<288x256xbf16, #tpu.memory_space<vmem>>, vector<16x256xbf16>,
    %c0_54 = arith.constant 0 : index
    %c2_55 = arith.constant 2 : index
    %49 = vector.load %arg11[%c0_54, %c2_55] : memref<16x640xbf16, #tpu.memory_space<vmem>>, vector<16x512xbf16>
    %50 = vector.extract_strided_slice %49 {offsets = [0, 0], sizes = [16, 256], strides = [1, 1]} : vector<16x512xbf16> to vector<16x256xbf16>
    %c240 = arith.constant 240 : index
    %c0_56 = arith.constant 0 : index
    %51 = vector.load %arg9[%c240, %c0_56] : memref<288x256xbf16, #tpu.memory_space<vmem>>, vector<16x256xbf16>
    tpu.vector_store %arg9[%c240, %c0_56], %50 {strides = array<i32>} : memref<288x256xbf16, #tpu.memory_space<vmem>>, vector<16x256xbf16>,
    %52 = vector.extract_strided_slice %49 {offsets = [0, 128], sizes = [16, 256], strides = [1, 1]} : vector<16x512xbf16> to vector<16x256xbf16>
    %c256_57 = arith.constant 256 : index
    %c0_58 = arith.constant 0 : index
    %53 = vector.load %arg9[%c256_57, %c0_58] : memref<288x256xbf16, #tpu.memory_space<vmem>>, vector<16x256xbf16>
    tpu.vector_store %arg9[%c256_57, %c0_58], %52 {strides = array<i32>} : memref<288x256xbf16, #tpu.memory_space<vmem>>, vector<16x256xbf16>,
    %54 = vector.extract_strided_slice %49 {offsets = [0, 256], sizes = [16, 256], strides = [1, 1]} : vector<16x512xbf16> to vector<16x256xbf16>
    %c272 = arith.constant 272 : index
    %c0_59 = arith.constant 0 : index
    %55 = vector.load %arg9[%c272, %c0_59] : memref<288x256xbf16, #tpu.memory_space<vmem>>, vector<16x256xbf16>
    tpu.vector_store %arg9[%c272, %c0_59], %54 {strides = array<i32>} : memref<288x256xbf16, #tpu.memory_space<vmem>>, vector<16x256xbf16>,
    %c0_60 = arith.constant 0 : index
    %c0_61 = arith.constant 0 : index
    %56 = vector.load %arg6[%c0_60, %c0_61] : memref<8x288xbf16, #tpu.memory_space<vmem>>, vector<8x288xbf16>
    %c0_62 = arith.constant 0 : index
    %c0_63 = arith.constant 0 : index
    %57 = vector.load %arg9[%c0_62, %c0_63] : memref<288x256xbf16, #tpu.memory_space<vmem>>, vector<288x256xbf16>
    %cst_64 = arith.constant dense<0.000000e+00> : vector<8x256xf32>
    %58 = tpu.matmul %56, %57, %cst_64 {dimension_numbers = #tpu.dot_dimension_numbers<[1], [0], [0], [1], [0, 0, 1, 1], [], []>} : vector<8x288xbf16>, vector<288x256xbf16>, vector<8x256xf32> -> vector<8x256xf32>
    %c0_65 = arith.constant 0 : index
    %c0_66 = arith.constant 0 : index
    %59 = vector.load %arg7[%c0_65, %c0_66] : memref<8x1xf32, #tpu.memory_space<vmem>>, vector<8x1xf32>
    %60 = vector.broadcast %59 : vector<8x1xf32> to vector<8x256xf32>
    %61 = arith.addf %58, %60 : vector<8x256xf32>
    %cst_67 = arith.constant 0.000000e+00 : f32
    %62 = vector.broadcast %cst_67 : f32 to vector<8x256xf32>
    %63 = arith.maximumf %61, %62 : vector<8x256xf32>
    %64 = arith.truncf %63 : vector<8x256xf32> to vector<8x256xbf16>
    %c0_68 = arith.constant 0 : index
    %c0_69 = arith.constant 0 : index
    %c0_70 = arith.constant 0 : index
    %65 = vector.load %arg8[%c0_68, %c0_69, %c0_70] : memref<1x8x256xbf16, #tpu.memory_space<vmem>>, vector<1x8x256xbf16>
    %66 = vector.shape_cast %65 : vector<1x8x256xbf16> to vector<8x256xbf16>
    %67 = vector.shape_cast %64 : vector<8x256xbf16> to vector<1x8x256xbf16>
    tpu.vector_store %arg8[%c0_68, %c0_69, %c0_70], %67 {strides = array<i32>} : memref<1x8x256xbf16, #tpu.memory_space<vmem>>, vector<1x8x256xbf16>,
    return
  }
  func.func @transform_0(%arg0: i32, %arg1: i32) -> (i32, i32, i32) {
    %c0_i32 = arith.constant 0 : i32
    %c0_i32_0 = arith.constant 0 : i32
    return %arg0, %c0_i32, %arg1 : i32, i32, i32
  }
  func.func @transform_1(%arg0: i32, %arg1: i32) -> (i32, i32, i32) {
    %c1_i32 = arith.constant 1 : i32
    %0 = arith.addi %arg1, %c1_i32 : i32
    %c1_i32_0 = arith.constant 1 : i32
    %1 = arith.muli %0, %c1_i32_0 : i32
    %c0_i32 = arith.constant 0 : i32
    %c0_i32_1 = arith.constant 0 : i32
    return %arg0, %c0_i32, %1 : i32, i32, i32
  }
  func.func @transform_2(%arg0: i32, %arg1: i32) -> (i32, i32, i32) {
    %c0_i32 = arith.constant 0 : i32
    %c0_i32_0 = arith.constant 0 : i32
    return %arg0, %c0_i32, %arg1 : i32, i32, i32
  }
  func.func @transform_3(%arg0: i32, %arg1: i32) -> (i32, i32, i32) {
    %c1_i32 = arith.constant 1 : i32
    %0 = arith.addi %arg1, %c1_i32 : i32
    %c1_i32_0 = arith.constant 1 : i32
    %1 = arith.muli %0, %c1_i32_0 : i32
    %c0_i32 = arith.constant 0 : i32
    %c0_i32_1 = arith.constant 0 : i32
    return %arg0, %c0_i32, %1 : i32, i32, i32
  }
  func.func @transform_4(%arg0: i32, %arg1: i32) -> (i32, i32) {
    %c0_i32 = arith.constant 0 : i32
    %c0_i32_0 = arith.constant 0 : i32
    %c0_i32_1 = arith.constant 0 : i32
    return %c0_i32, %c0_i32_0 : i32, i32
  }
  func.func @transform_5(%arg0: i32, %arg1: i32) -> (i32, i32) {
    %c0_i32 = arith.constant 0 : i32
    %c0_i32_0 = arith.constant 0 : i32
    %c0_i32_1 = arith.constant 0 : i32
    return %c0_i32, %c0_i32_0 : i32, i32
  }
  func.func @transform_6(%arg0: i32, %arg1: i32) -> (i32, i32, i32) {
    %c0_i32 = arith.constant 0 : i32
    %c0_i32_0 = arith.constant 0 : i32
    return %arg0, %c0_i32, %arg1 : i32, i32, i32
  }
}

module attributes {stable_mosaic.version = 11 : i64} {
  func.func @_conv3x3_kernel(%arg0: i32, %arg1: i32, %arg2: memref<1x16x512xbf16, #tpu.memory_space<vmem>>, %arg3: memref<1x16x256xbf16, #tpu.memory_space<vmem>>, %arg4: memref<1x16x512xbf16, #tpu.memory_space<vmem>>, %arg5: memref<1x16x256xbf16, #tpu.memory_space<vmem>>, %arg6: memref<8x288xbf16, #tpu.memory_space<vmem>>, %arg7: memref<8x1xf32, #tpu.memory_space<vmem>>, %arg8: memref<1x8x512xbf16, #tpu.memory_space<vmem>>, %arg9: memref<288x512xbf16, #tpu.memory_space<vmem>>, %arg10: memref<16x896xbf16, #tpu.memory_space<vmem>>, %arg11: memref<16x896xbf16, #tpu.memory_space<vmem>>) attributes {dimension_semantics = [#tpu.dimension_semantics<parallel>, #tpu.dimension_semantics<parallel>], iteration_bounds = array<i64: 2, 1>, scalar_prefetch = 0 : i64, scratch_operands = 3 : i64, tpu.core_type = #tpu.core_type<tc>, window_params = [{transform_indices = @transform_0, window_bounds = array<i64: 1, 16, 512>}, {transform_indices = @transform_1, window_bounds = array<i64: 1, 16, 256>}, {transform_indices = @transform_2, window_bounds = array<i64: 1, 16, 512>}, {transform_indices = @transform_3, window_bounds = array<i64: 1, 16, 256>}, {pipeline_mode = #tpu.pipeline_mode<synchronous>, transform_indices = @transform_4, window_bounds = array<i64: 8, 288>}, {pipeline_mode = #tpu.pipeline_mode<synchronous>, transform_indices = @transform_5, window_bounds = array<i64: 8, 1>}, {transform_indices = @transform_6, window_bounds = array<i64: 1, 8, 512>}]} {
    %c0 = arith.constant 0 : index
    %c0_0 = arith.constant 0 : index
    %c0_1 = arith.constant 0 : index
    %0 = vector.load %arg2[%c0, %c0_0, %c0_1] : memref<1x16x512xbf16, #tpu.memory_space<vmem>>, vector<1x16x512xbf16>
    %1 = vector.shape_cast %0 : vector<1x16x512xbf16> to vector<16x512xbf16>
    %c0_2 = arith.constant 0 : index
    %c0_3 = arith.constant 0 : index
    %2 = vector.load %arg10[%c0_2, %c0_3] : memref<16x896xbf16, #tpu.memory_space<vmem>>, vector<16x512xbf16>
    tpu.vector_store %arg10[%c0_2, %c0_3], %1 {strides = array<i32>} : memref<16x896xbf16, #tpu.memory_space<vmem>>, vector<16x512xbf16>,
    %c0_4 = arith.constant 0 : index
    %c0_5 = arith.constant 0 : index
    %c0_6 = arith.constant 0 : index
    %3 = vector.load %arg3[%c0_4, %c0_5, %c0_6] : memref<1x16x256xbf16, #tpu.memory_space<vmem>>, vector<1x16x256xbf16>
    %4 = vector.shape_cast %3 : vector<1x16x256xbf16> to vector<16x256xbf16>
    %c0_7 = arith.constant 0 : index
    %c512 = arith.constant 512 : index
    %5 = vector.load %arg10[%c0_7, %c512] : memref<16x896xbf16, #tpu.memory_space<vmem>>, vector<16x256xbf16>
    tpu.vector_store %arg10[%c0_7, %c512], %4 {strides = array<i32>} : memref<16x896xbf16, #tpu.memory_space<vmem>>, vector<16x256xbf16>,
    %cst = arith.constant 0.000000e+00 : bf16
    %6 = vector.broadcast %cst : bf16 to vector<16x128xbf16>
    %c0_8 = arith.constant 0 : index
    %c768 = arith.constant 768 : index
    %7 = vector.load %arg10[%c0_8, %c768] : memref<16x896xbf16, #tpu.memory_space<vmem>>, vector<16x128xbf16>
    tpu.vector_store %arg10[%c0_8, %c768], %6 {strides = array<i32>} : memref<16x896xbf16, #tpu.memory_space<vmem>>, vector<16x128xbf16>,
    %c0_9 = arith.constant 0 : index
    %c0_10 = arith.constant 0 : index
    %8 = vector.load %arg10[%c0_9, %c0_10] : memref<16x896xbf16, #tpu.memory_space<vmem>>, vector<16x512xbf16>
    %c0_11 = arith.constant 0 : index
    %c0_12 = arith.constant 0 : index
    %9 = vector.load %arg9[%c0_11, %c0_12] : memref<288x512xbf16, #tpu.memory_space<vmem>>, vector<16x512xbf16>
    tpu.vector_store %arg9[%c0_11, %c0_12], %8 {strides = array<i32>} : memref<288x512xbf16, #tpu.memory_space<vmem>>, vector<16x512xbf16>,
    %c0_13 = arith.constant 0 : index
    %c128 = arith.constant 128 : index
    %10 = vector.load %arg10[%c0_13, %c128] : memref<16x896xbf16, #tpu.memory_space<vmem>>, vector<16x512xbf16>
    %c16 = arith.constant 16 : index
    %c0_14 = arith.constant 0 : index
    %11 = vector.load %arg9[%c16, %c0_14] : memref<288x512xbf16, #tpu.memory_space<vmem>>, vector<16x512xbf16>
    tpu.vector_store %arg9[%c16, %c0_14], %10 {strides = array<i32>} : memref<288x512xbf16, #tpu.memory_space<vmem>>, vector<16x512xbf16>,
    %c0_15 = arith.constant 0 : index
    %c256 = arith.constant 256 : index
    %12 = vector.load %arg10[%c0_15, %c256] : memref<16x896xbf16, #tpu.memory_space<vmem>>, vector<16x512xbf16>
    %c32 = arith.constant 32 : index
    %c0_16 = arith.constant 0 : index
    %13 = vector.load %arg9[%c32, %c0_16] : memref<288x512xbf16, #tpu.memory_space<vmem>>, vector<16x512xbf16>
    tpu.vector_store %arg9[%c32, %c0_16], %12 {strides = array<i32>} : memref<288x512xbf16, #tpu.memory_space<vmem>>, vector<16x512xbf16>,
    %c0_17 = arith.constant 0 : index
    %c1 = arith.constant 1 : index
    %14 = vector.load %arg10[%c0_17, %c1] : memref<16x896xbf16, #tpu.memory_space<vmem>>, vector<16x768xbf16>
    %15 = vector.extract_strided_slice %14 {offsets = [0, 0], sizes = [16, 512], strides = [1, 1]} : vector<16x768xbf16> to vector<16x512xbf16>
    %c48 = arith.constant 48 : index
    %c0_18 = arith.constant 0 : index
    %16 = vector.load %arg9[%c48, %c0_18] : memref<288x512xbf16, #tpu.memory_space<vmem>>, vector<16x512xbf16>
    tpu.vector_store %arg9[%c48, %c0_18], %15 {strides = array<i32>} : memref<288x512xbf16, #tpu.memory_space<vmem>>, vector<16x512xbf16>,
    %17 = vector.extract_strided_slice %14 {offsets = [0, 128], sizes = [16, 512], strides = [1, 1]} : vector<16x768xbf16> to vector<16x512xbf16>
    %c64 = arith.constant 64 : index
    %c0_19 = arith.constant 0 : index
    %18 = vector.load %arg9[%c64, %c0_19] : memref<288x512xbf16, #tpu.memory_space<vmem>>, vector<16x512xbf16>
    tpu.vector_store %arg9[%c64, %c0_19], %17 {strides = array<i32>} : memref<288x512xbf16, #tpu.memory_space<vmem>>, vector<16x512xbf16>,
    %19 = vector.extract_strided_slice %14 {offsets = [0, 256], sizes = [16, 512], strides = [1, 1]} : vector<16x768xbf16> to vector<16x512xbf16>
    %c80 = arith.constant 80 : index
    %c0_20 = arith.constant 0 : index
    %20 = vector.load %arg9[%c80, %c0_20] : memref<288x512xbf16, #tpu.memory_space<vmem>>, vector<16x512xbf16>
    tpu.vector_store %arg9[%c80, %c0_20], %19 {strides = array<i32>} : memref<288x512xbf16, #tpu.memory_space<vmem>>, vector<16x512xbf16>,
    %c0_21 = arith.constant 0 : index
    %c2 = arith.constant 2 : index
    %21 = vector.load %arg10[%c0_21, %c2] : memref<16x896xbf16, #tpu.memory_space<vmem>>, vector<16x768xbf16>
    %22 = vector.extract_strided_slice %21 {offsets = [0, 0], sizes = [16, 512], strides = [1, 1]} : vector<16x768xbf16> to vector<16x512xbf16>
    %c96 = arith.constant 96 : index
    %c0_22 = arith.constant 0 : index
    %23 = vector.load %arg9[%c96, %c0_22] : memref<288x512xbf16, #tpu.memory_space<vmem>>, vector<16x512xbf16>
    tpu.vector_store %arg9[%c96, %c0_22], %22 {strides = array<i32>} : memref<288x512xbf16, #tpu.memory_space<vmem>>, vector<16x512xbf16>,
    %24 = vector.extract_strided_slice %21 {offsets = [0, 128], sizes = [16, 512], strides = [1, 1]} : vector<16x768xbf16> to vector<16x512xbf16>
    %c112 = arith.constant 112 : index
    %c0_23 = arith.constant 0 : index
    %25 = vector.load %arg9[%c112, %c0_23] : memref<288x512xbf16, #tpu.memory_space<vmem>>, vector<16x512xbf16>
    tpu.vector_store %arg9[%c112, %c0_23], %24 {strides = array<i32>} : memref<288x512xbf16, #tpu.memory_space<vmem>>, vector<16x512xbf16>,
    %26 = vector.extract_strided_slice %21 {offsets = [0, 256], sizes = [16, 512], strides = [1, 1]} : vector<16x768xbf16> to vector<16x512xbf16>
    %c128_24 = arith.constant 128 : index
    %c0_25 = arith.constant 0 : index
    %27 = vector.load %arg9[%c128_24, %c0_25] : memref<288x512xbf16, #tpu.memory_space<vmem>>, vector<16x512xbf16>
    tpu.vector_store %arg9[%c128_24, %c0_25], %26 {strides = array<i32>} : memref<288x512xbf16, #tpu.memory_space<vmem>>, vector<16x512xbf16>,
    %c0_26 = arith.constant 0 : index
    %c0_27 = arith.constant 0 : index
    %c0_28 = arith.constant 0 : index
    %28 = vector.load %arg4[%c0_26, %c0_27, %c0_28] : memref<1x16x512xbf16, #tpu.memory_space<vmem>>, vector<1x16x512xbf16>
    %29 = vector.shape_cast %28 : vector<1x16x512xbf16> to vector<16x512xbf16>
    %c0_29 = arith.constant 0 : index
    %c0_30 = arith.constant 0 : index
    %30 = vector.load %arg11[%c0_29, %c0_30] : memref<16x896xbf16, #tpu.memory_space<vmem>>, vector<16x512xbf16>
    tpu.vector_store %arg11[%c0_29, %c0_30], %29 {strides = array<i32>} : memref<16x896xbf16, #tpu.memory_space<vmem>>, vector<16x512xbf16>,
    %c0_31 = arith.constant 0 : index
    %c0_32 = arith.constant 0 : index
    %c0_33 = arith.constant 0 : index
    %31 = vector.load %arg5[%c0_31, %c0_32, %c0_33] : memref<1x16x256xbf16, #tpu.memory_space<vmem>>, vector<1x16x256xbf16>
    %32 = vector.shape_cast %31 : vector<1x16x256xbf16> to vector<16x256xbf16>
    %c0_34 = arith.constant 0 : index
    %c512_35 = arith.constant 512 : index
    %33 = vector.load %arg11[%c0_34, %c512_35] : memref<16x896xbf16, #tpu.memory_space<vmem>>, vector<16x256xbf16>
    tpu.vector_store %arg11[%c0_34, %c512_35], %32 {strides = array<i32>} : memref<16x896xbf16, #tpu.memory_space<vmem>>, vector<16x256xbf16>,
    %cst_36 = arith.constant 0.000000e+00 : bf16
    %34 = vector.broadcast %cst_36 : bf16 to vector<16x128xbf16>
    %c0_37 = arith.constant 0 : index
    %c768_38 = arith.constant 768 : index
    %35 = vector.load %arg11[%c0_37, %c768_38] : memref<16x896xbf16, #tpu.memory_space<vmem>>, vector<16x128xbf16>
    tpu.vector_store %arg11[%c0_37, %c768_38], %34 {strides = array<i32>} : memref<16x896xbf16, #tpu.memory_space<vmem>>, vector<16x128xbf16>,
    %c0_39 = arith.constant 0 : index
    %c0_40 = arith.constant 0 : index
    %36 = vector.load %arg11[%c0_39, %c0_40] : memref<16x896xbf16, #tpu.memory_space<vmem>>, vector<16x512xbf16>
    %c144 = arith.constant 144 : index
    %c0_41 = arith.constant 0 : index
    %37 = vector.load %arg9[%c144, %c0_41] : memref<288x512xbf16, #tpu.memory_space<vmem>>, vector<16x512xbf16>
    tpu.vector_store %arg9[%c144, %c0_41], %36 {strides = array<i32>} : memref<288x512xbf16, #tpu.memory_space<vmem>>, vector<16x512xbf16>,
    %c0_42 = arith.constant 0 : index
    %c128_43 = arith.constant 128 : index
    %38 = vector.load %arg11[%c0_42, %c128_43] : memref<16x896xbf16, #tpu.memory_space<vmem>>, vector<16x512xbf16>
    %c160 = arith.constant 160 : index
    %c0_44 = arith.constant 0 : index
    %39 = vector.load %arg9[%c160, %c0_44] : memref<288x512xbf16, #tpu.memory_space<vmem>>, vector<16x512xbf16>
    tpu.vector_store %arg9[%c160, %c0_44], %38 {strides = array<i32>} : memref<288x512xbf16, #tpu.memory_space<vmem>>, vector<16x512xbf16>,
    %c0_45 = arith.constant 0 : index
    %c256_46 = arith.constant 256 : index
    %40 = vector.load %arg11[%c0_45, %c256_46] : memref<16x896xbf16, #tpu.memory_space<vmem>>, vector<16x512xbf16>
    %c176 = arith.constant 176 : index
    %c0_47 = arith.constant 0 : index
    %41 = vector.load %arg9[%c176, %c0_47] : memref<288x512xbf16, #tpu.memory_space<vmem>>, vector<16x512xbf16>
    tpu.vector_store %arg9[%c176, %c0_47], %40 {strides = array<i32>} : memref<288x512xbf16, #tpu.memory_space<vmem>>, vector<16x512xbf16>,
    %c0_48 = arith.constant 0 : index
    %c1_49 = arith.constant 1 : index
    %42 = vector.load %arg11[%c0_48, %c1_49] : memref<16x896xbf16, #tpu.memory_space<vmem>>, vector<16x768xbf16>
    %43 = vector.extract_strided_slice %42 {offsets = [0, 0], sizes = [16, 512], strides = [1, 1]} : vector<16x768xbf16> to vector<16x512xbf16>
    %c192 = arith.constant 192 : index
    %c0_50 = arith.constant 0 : index
    %44 = vector.load %arg9[%c192, %c0_50] : memref<288x512xbf16, #tpu.memory_space<vmem>>, vector<16x512xbf16>
    tpu.vector_store %arg9[%c192, %c0_50], %43 {strides = array<i32>} : memref<288x512xbf16, #tpu.memory_space<vmem>>, vector<16x512xbf16>,
    %45 = vector.extract_strided_slice %42 {offsets = [0, 128], sizes = [16, 512], strides = [1, 1]} : vector<16x768xbf16> to vector<16x512xbf16>
    %c208 = arith.constant 208 : index
    %c0_51 = arith.constant 0 : index
    %46 = vector.load %arg9[%c208, %c0_51] : memref<288x512xbf16, #tpu.memory_space<vmem>>, vector<16x512xbf16>
    tpu.vector_store %arg9[%c208, %c0_51], %45 {strides = array<i32>} : memref<288x512xbf16, #tpu.memory_space<vmem>>, vector<16x512xbf16>,
    %47 = vector.extract_strided_slice %42 {offsets = [0, 256], sizes = [16, 512], strides = [1, 1]} : vector<16x768xbf16> to vector<16x512xbf16>
    %c224 = arith.constant 224 : index
    %c0_52 = arith.constant 0 : index
    %48 = vector.load %arg9[%c224, %c0_52] : memref<288x512xbf16, #tpu.memory_space<vmem>>, vector<16x512xbf16>
    tpu.vector_store %arg9[%c224, %c0_52], %47 {strides = array<i32>} : memref<288x512xbf16, #tpu.memory_space<vmem>>, vector<16x512xbf16>,
    %c0_53 = arith.constant 0 : index
    %c2_54 = arith.constant 2 : index
    %49 = vector.load %arg11[%c0_53, %c2_54] : memref<16x896xbf16, #tpu.memory_space<vmem>>, vector<16x768xbf16>
    %50 = vector.extract_strided_slice %49 {offsets = [0, 0], sizes = [16, 512], strides = [1, 1]} : vector<16x768xbf16> to vector<16x512xbf16>
    %c240 = arith.constant 240 : index
    %c0_55 = arith.constant 0 : index
    %51 = vector.load %arg9[%c240, %c0_55] : memref<288x512xbf16, #tpu.memory_space<vmem>>, vector<16x512xbf16>
    tpu.vector_store %arg9[%c240, %c0_55], %50 {strides = array<i32>} : memref<288x512xbf16, #tpu.memory_space<vmem>>, vector<16x512xbf16>,
    %52 = vector.extract_strided_slice %49 {offsets = [0, 128], sizes = [16, 512], strides = [1, 1]} : vector<16x768xbf16> to vector<16x512xbf16>
    %c256_56 = arith.constant 256 : index
    %c0_57 = arith.constant 0 : index
    %53 = vector.load %arg9[%c256_56, %c0_57] : memref<288x512xbf16, #tpu.memory_space<vmem>>, vector<16x512xbf16>
    tpu.vector_store %arg9[%c256_56, %c0_57], %52 {strides = array<i32>} : memref<288x512xbf16, #tpu.memory_space<vmem>>, vector<16x512xbf16>,
    %54 = vector.extract_strided_slice %49 {offsets = [0, 256], sizes = [16, 512], strides = [1, 1]} : vector<16x768xbf16> to vector<16x512xbf16>
    %c272 = arith.constant 272 : index
    %c0_58 = arith.constant 0 : index
    %55 = vector.load %arg9[%c272, %c0_58] : memref<288x512xbf16, #tpu.memory_space<vmem>>, vector<16x512xbf16>
    tpu.vector_store %arg9[%c272, %c0_58], %54 {strides = array<i32>} : memref<288x512xbf16, #tpu.memory_space<vmem>>, vector<16x512xbf16>,
    %c0_59 = arith.constant 0 : index
    %c0_60 = arith.constant 0 : index
    %56 = vector.load %arg6[%c0_59, %c0_60] : memref<8x288xbf16, #tpu.memory_space<vmem>>, vector<8x288xbf16>
    %c0_61 = arith.constant 0 : index
    %c0_62 = arith.constant 0 : index
    %57 = vector.load %arg9[%c0_61, %c0_62] : memref<288x512xbf16, #tpu.memory_space<vmem>>, vector<288x512xbf16>
    %cst_63 = arith.constant dense<0.000000e+00> : vector<8x512xf32>
    %58 = tpu.matmul %56, %57, %cst_63 {dimension_numbers = #tpu.dot_dimension_numbers<[1], [0], [0], [1], [0, 0, 1, 1], [], []>} : vector<8x288xbf16>, vector<288x512xbf16>, vector<8x512xf32> -> vector<8x512xf32>
    %c0_64 = arith.constant 0 : index
    %c0_65 = arith.constant 0 : index
    %59 = vector.load %arg7[%c0_64, %c0_65] : memref<8x1xf32, #tpu.memory_space<vmem>>, vector<8x1xf32>
    %60 = vector.broadcast %59 : vector<8x1xf32> to vector<8x512xf32>
    %61 = arith.addf %58, %60 : vector<8x512xf32>
    %cst_66 = arith.constant 0.000000e+00 : f32
    %62 = vector.broadcast %cst_66 : f32 to vector<8x512xf32>
    %63 = arith.maximumf %61, %62 : vector<8x512xf32>
    %64 = arith.truncf %63 : vector<8x512xf32> to vector<8x512xbf16>
    %c0_67 = arith.constant 0 : index
    %c0_68 = arith.constant 0 : index
    %c0_69 = arith.constant 0 : index
    %65 = vector.load %arg8[%c0_67, %c0_68, %c0_69] : memref<1x8x512xbf16, #tpu.memory_space<vmem>>, vector<1x8x512xbf16>
    %66 = vector.shape_cast %65 : vector<1x8x512xbf16> to vector<8x512xbf16>
    %67 = vector.shape_cast %64 : vector<8x512xbf16> to vector<1x8x512xbf16>
    tpu.vector_store %arg8[%c0_67, %c0_68, %c0_69], %67 {strides = array<i32>} : memref<1x8x512xbf16, #tpu.memory_space<vmem>>, vector<1x8x512xbf16>,
    return
  }
  func.func @transform_0(%arg0: i32, %arg1: i32) -> (i32, i32, i32) {
    %c0_i32 = arith.constant 0 : i32
    %c0_i32_0 = arith.constant 0 : i32
    return %arg0, %c0_i32, %arg1 : i32, i32, i32
  }
  func.func @transform_1(%arg0: i32, %arg1: i32) -> (i32, i32, i32) {
    %c1_i32 = arith.constant 1 : i32
    %0 = arith.addi %arg1, %c1_i32 : i32
    %c2_i32 = arith.constant 2 : i32
    %1 = arith.muli %0, %c2_i32 : i32
    %c0_i32 = arith.constant 0 : i32
    %c0_i32_0 = arith.constant 0 : i32
    return %arg0, %c0_i32, %1 : i32, i32, i32
  }
  func.func @transform_2(%arg0: i32, %arg1: i32) -> (i32, i32, i32) {
    %c0_i32 = arith.constant 0 : i32
    %c0_i32_0 = arith.constant 0 : i32
    return %arg0, %c0_i32, %arg1 : i32, i32, i32
  }
  func.func @transform_3(%arg0: i32, %arg1: i32) -> (i32, i32, i32) {
    %c1_i32 = arith.constant 1 : i32
    %0 = arith.addi %arg1, %c1_i32 : i32
    %c2_i32 = arith.constant 2 : i32
    %1 = arith.muli %0, %c2_i32 : i32
    %c0_i32 = arith.constant 0 : i32
    %c0_i32_0 = arith.constant 0 : i32
    return %arg0, %c0_i32, %1 : i32, i32, i32
  }
  func.func @transform_4(%arg0: i32, %arg1: i32) -> (i32, i32) {
    %c0_i32 = arith.constant 0 : i32
    %c0_i32_0 = arith.constant 0 : i32
    %c0_i32_1 = arith.constant 0 : i32
    return %c0_i32, %c0_i32_0 : i32, i32
  }
  func.func @transform_5(%arg0: i32, %arg1: i32) -> (i32, i32) {
    %c0_i32 = arith.constant 0 : i32
    %c0_i32_0 = arith.constant 0 : i32
    %c0_i32_1 = arith.constant 0 : i32
    return %c0_i32, %c0_i32_0 : i32, i32
  }
  func.func @transform_6(%arg0: i32, %arg1: i32) -> (i32, i32, i32) {
    %c0_i32 = arith.constant 0 : i32
    %c0_i32_0 = arith.constant 0 : i32
    return %arg0, %c0_i32, %arg1 : i32, i32, i32
  }
}

module attributes {stable_mosaic.version = 11 : i64} {
  func.func @_conv3x3_kernel(%arg0: i32, %arg1: i32, %arg2: memref<1x16x1024xbf16, #tpu.memory_space<vmem>>, %arg3: memref<1x16x256xbf16, #tpu.memory_space<vmem>>, %arg4: memref<1x16x1024xbf16, #tpu.memory_space<vmem>>, %arg5: memref<1x16x256xbf16, #tpu.memory_space<vmem>>, %arg6: memref<24x288xbf16, #tpu.memory_space<vmem>>, %arg7: memref<24x1xf32, #tpu.memory_space<vmem>>, %arg8: memref<1x24x1024xbf16, #tpu.memory_space<vmem>>, %arg9: memref<288x1024xbf16, #tpu.memory_space<vmem>>, %arg10: memref<16x1408xbf16, #tpu.memory_space<vmem>>, %arg11: memref<16x1408xbf16, #tpu.memory_space<vmem>>) attributes {dimension_semantics = [#tpu.dimension_semantics<parallel>, #tpu.dimension_semantics<parallel>], iteration_bounds = array<i64: 2, 1>, scalar_prefetch = 0 : i64, scratch_operands = 3 : i64, tpu.core_type = #tpu.core_type<tc>, window_params = [{transform_indices = @transform_0, window_bounds = array<i64: 1, 16, 1024>}, {transform_indices = @transform_1, window_bounds = array<i64: 1, 16, 256>}, {transform_indices = @transform_2, window_bounds = array<i64: 1, 16, 1024>}, {transform_indices = @transform_3, window_bounds = array<i64: 1, 16, 256>}, {pipeline_mode = #tpu.pipeline_mode<synchronous>, transform_indices = @transform_4, window_bounds = array<i64: 24, 288>}, {pipeline_mode = #tpu.pipeline_mode<synchronous>, transform_indices = @transform_5, window_bounds = array<i64: 24, 1>}, {transform_indices = @transform_6, window_bounds = array<i64: 1, 24, 1024>}]} {
    %c0 = arith.constant 0 : index
    %c0_0 = arith.constant 0 : index
    %c0_1 = arith.constant 0 : index
    %0 = vector.load %arg2[%c0, %c0_0, %c0_1] : memref<1x16x1024xbf16, #tpu.memory_space<vmem>>, vector<1x16x1024xbf16>
    %1 = vector.shape_cast %0 : vector<1x16x1024xbf16> to vector<16x1024xbf16>
    %c0_2 = arith.constant 0 : index
    %c0_3 = arith.constant 0 : index
    %2 = vector.load %arg10[%c0_2, %c0_3] : memref<16x1408xbf16, #tpu.memory_space<vmem>>, vector<16x1024xbf16>
    tpu.vector_store %arg10[%c0_2, %c0_3], %1 {strides = array<i32>} : memref<16x1408xbf16, #tpu.memory_space<vmem>>, vector<16x1024xbf16>,
    %c0_4 = arith.constant 0 : index
    %c0_5 = arith.constant 0 : index
    %c0_6 = arith.constant 0 : index
    %3 = vector.load %arg3[%c0_4, %c0_5, %c0_6] : memref<1x16x256xbf16, #tpu.memory_space<vmem>>, vector<1x16x256xbf16>
    %4 = vector.shape_cast %3 : vector<1x16x256xbf16> to vector<16x256xbf16>
    %c0_7 = arith.constant 0 : index
    %c1024 = arith.constant 1024 : index
    %5 = vector.load %arg10[%c0_7, %c1024] : memref<16x1408xbf16, #tpu.memory_space<vmem>>, vector<16x256xbf16>
    tpu.vector_store %arg10[%c0_7, %c1024], %4 {strides = array<i32>} : memref<16x1408xbf16, #tpu.memory_space<vmem>>, vector<16x256xbf16>,
    %cst = arith.constant 0.000000e+00 : bf16
    %6 = vector.broadcast %cst : bf16 to vector<16x128xbf16>
    %c0_8 = arith.constant 0 : index
    %c1280 = arith.constant 1280 : index
    %7 = vector.load %arg10[%c0_8, %c1280] : memref<16x1408xbf16, #tpu.memory_space<vmem>>, vector<16x128xbf16>
    tpu.vector_store %arg10[%c0_8, %c1280], %6 {strides = array<i32>} : memref<16x1408xbf16, #tpu.memory_space<vmem>>, vector<16x128xbf16>,
    %c0_9 = arith.constant 0 : index
    %c0_10 = arith.constant 0 : index
    %8 = vector.load %arg10[%c0_9, %c0_10] : memref<16x1408xbf16, #tpu.memory_space<vmem>>, vector<16x1024xbf16>
    %c0_11 = arith.constant 0 : index
    %c0_12 = arith.constant 0 : index
    %9 = vector.load %arg9[%c0_11, %c0_12] : memref<288x1024xbf16, #tpu.memory_space<vmem>>, vector<16x1024xbf16>
    tpu.vector_store %arg9[%c0_11, %c0_12], %8 {strides = array<i32>} : memref<288x1024xbf16, #tpu.memory_space<vmem>>, vector<16x1024xbf16>,
    %c0_13 = arith.constant 0 : index
    %c128 = arith.constant 128 : index
    %10 = vector.load %arg10[%c0_13, %c128] : memref<16x1408xbf16, #tpu.memory_space<vmem>>, vector<16x1024xbf16>
    %c16 = arith.constant 16 : index
    %c0_14 = arith.constant 0 : index
    %11 = vector.load %arg9[%c16, %c0_14] : memref<288x1024xbf16, #tpu.memory_space<vmem>>, vector<16x1024xbf16>
    tpu.vector_store %arg9[%c16, %c0_14], %10 {strides = array<i32>} : memref<288x1024xbf16, #tpu.memory_space<vmem>>, vector<16x1024xbf16>,
    %c0_15 = arith.constant 0 : index
    %c256 = arith.constant 256 : index
    %12 = vector.load %arg10[%c0_15, %c256] : memref<16x1408xbf16, #tpu.memory_space<vmem>>, vector<16x1024xbf16>
    %c32 = arith.constant 32 : index
    %c0_16 = arith.constant 0 : index
    %13 = vector.load %arg9[%c32, %c0_16] : memref<288x1024xbf16, #tpu.memory_space<vmem>>, vector<16x1024xbf16>
    tpu.vector_store %arg9[%c32, %c0_16], %12 {strides = array<i32>} : memref<288x1024xbf16, #tpu.memory_space<vmem>>, vector<16x1024xbf16>,
    %c0_17 = arith.constant 0 : index
    %c1 = arith.constant 1 : index
    %14 = vector.load %arg10[%c0_17, %c1] : memref<16x1408xbf16, #tpu.memory_space<vmem>>, vector<16x1280xbf16>
    %15 = vector.extract_strided_slice %14 {offsets = [0, 0], sizes = [16, 1024], strides = [1, 1]} : vector<16x1280xbf16> to vector<16x1024xbf16>
    %c48 = arith.constant 48 : index
    %c0_18 = arith.constant 0 : index
    %16 = vector.load %arg9[%c48, %c0_18] : memref<288x1024xbf16, #tpu.memory_space<vmem>>, vector<16x1024xbf16>
    tpu.vector_store %arg9[%c48, %c0_18], %15 {strides = array<i32>} : memref<288x1024xbf16, #tpu.memory_space<vmem>>, vector<16x1024xbf16>,
    %17 = vector.extract_strided_slice %14 {offsets = [0, 128], sizes = [16, 1024], strides = [1, 1]} : vector<16x1280xbf16> to vector<16x1024xbf16>
    %c64 = arith.constant 64 : index
    %c0_19 = arith.constant 0 : index
    %18 = vector.load %arg9[%c64, %c0_19] : memref<288x1024xbf16, #tpu.memory_space<vmem>>, vector<16x1024xbf16>
    tpu.vector_store %arg9[%c64, %c0_19], %17 {strides = array<i32>} : memref<288x1024xbf16, #tpu.memory_space<vmem>>, vector<16x1024xbf16>,
    %19 = vector.extract_strided_slice %14 {offsets = [0, 256], sizes = [16, 1024], strides = [1, 1]} : vector<16x1280xbf16> to vector<16x1024xbf16>
    %c80 = arith.constant 80 : index
    %c0_20 = arith.constant 0 : index
    %20 = vector.load %arg9[%c80, %c0_20] : memref<288x1024xbf16, #tpu.memory_space<vmem>>, vector<16x1024xbf16>
    tpu.vector_store %arg9[%c80, %c0_20], %19 {strides = array<i32>} : memref<288x1024xbf16, #tpu.memory_space<vmem>>, vector<16x1024xbf16>,
    %c0_21 = arith.constant 0 : index
    %c2 = arith.constant 2 : index
    %21 = vector.load %arg10[%c0_21, %c2] : memref<16x1408xbf16, #tpu.memory_space<vmem>>, vector<16x1280xbf16>
    %22 = vector.extract_strided_slice %21 {offsets = [0, 0], sizes = [16, 1024], strides = [1, 1]} : vector<16x1280xbf16> to vector<16x1024xbf16>
    %c96 = arith.constant 96 : index
    %c0_22 = arith.constant 0 : index
    %23 = vector.load %arg9[%c96, %c0_22] : memref<288x1024xbf16, #tpu.memory_space<vmem>>, vector<16x1024xbf16>
    tpu.vector_store %arg9[%c96, %c0_22], %22 {strides = array<i32>} : memref<288x1024xbf16, #tpu.memory_space<vmem>>, vector<16x1024xbf16>,
    %24 = vector.extract_strided_slice %21 {offsets = [0, 128], sizes = [16, 1024], strides = [1, 1]} : vector<16x1280xbf16> to vector<16x1024xbf16>
    %c112 = arith.constant 112 : index
    %c0_23 = arith.constant 0 : index
    %25 = vector.load %arg9[%c112, %c0_23] : memref<288x1024xbf16, #tpu.memory_space<vmem>>, vector<16x1024xbf16>
    tpu.vector_store %arg9[%c112, %c0_23], %24 {strides = array<i32>} : memref<288x1024xbf16, #tpu.memory_space<vmem>>, vector<16x1024xbf16>,
    %26 = vector.extract_strided_slice %21 {offsets = [0, 256], sizes = [16, 1024], strides = [1, 1]} : vector<16x1280xbf16> to vector<16x1024xbf16>
    %c128_24 = arith.constant 128 : index
    %c0_25 = arith.constant 0 : index
    %27 = vector.load %arg9[%c128_24, %c0_25] : memref<288x1024xbf16, #tpu.memory_space<vmem>>, vector<16x1024xbf16>
    tpu.vector_store %arg9[%c128_24, %c0_25], %26 {strides = array<i32>} : memref<288x1024xbf16, #tpu.memory_space<vmem>>, vector<16x1024xbf16>,
    %c0_26 = arith.constant 0 : index
    %c0_27 = arith.constant 0 : index
    %c0_28 = arith.constant 0 : index
    %28 = vector.load %arg4[%c0_26, %c0_27, %c0_28] : memref<1x16x1024xbf16, #tpu.memory_space<vmem>>, vector<1x16x1024xbf16>
    %29 = vector.shape_cast %28 : vector<1x16x1024xbf16> to vector<16x1024xbf16>
    %c0_29 = arith.constant 0 : index
    %c0_30 = arith.constant 0 : index
    %30 = vector.load %arg11[%c0_29, %c0_30] : memref<16x1408xbf16, #tpu.memory_space<vmem>>, vector<16x1024xbf16>
    tpu.vector_store %arg11[%c0_29, %c0_30], %29 {strides = array<i32>} : memref<16x1408xbf16, #tpu.memory_space<vmem>>, vector<16x1024xbf16>,
    %c0_31 = arith.constant 0 : index
    %c0_32 = arith.constant 0 : index
    %c0_33 = arith.constant 0 : index
    %31 = vector.load %arg5[%c0_31, %c0_32, %c0_33] : memref<1x16x256xbf16, #tpu.memory_space<vmem>>, vector<1x16x256xbf16>
    %32 = vector.shape_cast %31 : vector<1x16x256xbf16> to vector<16x256xbf16>
    %c0_34 = arith.constant 0 : index
    %c1024_35 = arith.constant 1024 : index
    %33 = vector.load %arg11[%c0_34, %c1024_35] : memref<16x1408xbf16, #tpu.memory_space<vmem>>, vector<16x256xbf16>
    tpu.vector_store %arg11[%c0_34, %c1024_35], %32 {strides = array<i32>} : memref<16x1408xbf16, #tpu.memory_space<vmem>>, vector<16x256xbf16>,
    %cst_36 = arith.constant 0.000000e+00 : bf16
    %34 = vector.broadcast %cst_36 : bf16 to vector<16x128xbf16>
    %c0_37 = arith.constant 0 : index
    %c1280_38 = arith.constant 1280 : index
    %35 = vector.load %arg11[%c0_37, %c1280_38] : memref<16x1408xbf16, #tpu.memory_space<vmem>>, vector<16x128xbf16>
    tpu.vector_store %arg11[%c0_37, %c1280_38], %34 {strides = array<i32>} : memref<16x1408xbf16, #tpu.memory_space<vmem>>, vector<16x128xbf16>,
    %c0_39 = arith.constant 0 : index
    %c0_40 = arith.constant 0 : index
    %36 = vector.load %arg11[%c0_39, %c0_40] : memref<16x1408xbf16, #tpu.memory_space<vmem>>, vector<16x1024xbf16>
    %c144 = arith.constant 144 : index
    %c0_41 = arith.constant 0 : index
    %37 = vector.load %arg9[%c144, %c0_41] : memref<288x1024xbf16, #tpu.memory_space<vmem>>, vector<16x1024xbf16>
    tpu.vector_store %arg9[%c144, %c0_41], %36 {strides = array<i32>} : memref<288x1024xbf16, #tpu.memory_space<vmem>>, vector<16x1024xbf16>,
    %c0_42 = arith.constant 0 : index
    %c128_43 = arith.constant 128 : index
    %38 = vector.load %arg11[%c0_42, %c128_43] : memref<16x1408xbf16, #tpu.memory_space<vmem>>, vector<16x1024xbf16>
    %c160 = arith.constant 160 : index
    %c0_44 = arith.constant 0 : index
    %39 = vector.load %arg9[%c160, %c0_44] : memref<288x1024xbf16, #tpu.memory_space<vmem>>, vector<16x1024xbf16>
    tpu.vector_store %arg9[%c160, %c0_44], %38 {strides = array<i32>} : memref<288x1024xbf16, #tpu.memory_space<vmem>>, vector<16x1024xbf16>,
    %c0_45 = arith.constant 0 : index
    %c256_46 = arith.constant 256 : index
    %40 = vector.load %arg11[%c0_45, %c256_46] : memref<16x1408xbf16, #tpu.memory_space<vmem>>, vector<16x1024xbf16>
    %c176 = arith.constant 176 : index
    %c0_47 = arith.constant 0 : index
    %41 = vector.load %arg9[%c176, %c0_47] : memref<288x1024xbf16, #tpu.memory_space<vmem>>, vector<16x1024xbf16>
    tpu.vector_store %arg9[%c176, %c0_47], %40 {strides = array<i32>} : memref<288x1024xbf16, #tpu.memory_space<vmem>>, vector<16x1024xbf16>,
    %c0_48 = arith.constant 0 : index
    %c1_49 = arith.constant 1 : index
    %42 = vector.load %arg11[%c0_48, %c1_49] : memref<16x1408xbf16, #tpu.memory_space<vmem>>, vector<16x1280xbf16>
    %43 = vector.extract_strided_slice %42 {offsets = [0, 0], sizes = [16, 1024], strides = [1, 1]} : vector<16x1280xbf16> to vector<16x1024xbf16>
    %c192 = arith.constant 192 : index
    %c0_50 = arith.constant 0 : index
    %44 = vector.load %arg9[%c192, %c0_50] : memref<288x1024xbf16, #tpu.memory_space<vmem>>, vector<16x1024xbf16>
    tpu.vector_store %arg9[%c192, %c0_50], %43 {strides = array<i32>} : memref<288x1024xbf16, #tpu.memory_space<vmem>>, vector<16x1024xbf16>,
    %45 = vector.extract_strided_slice %42 {offsets = [0, 128], sizes = [16, 1024], strides = [1, 1]} : vector<16x1280xbf16> to vector<16x1024xbf16>
    %c208 = arith.constant 208 : index
    %c0_51 = arith.constant 0 : index
    %46 = vector.load %arg9[%c208, %c0_51] : memref<288x1024xbf16, #tpu.memory_space<vmem>>, vector<16x1024xbf16>
    tpu.vector_store %arg9[%c208, %c0_51], %45 {strides = array<i32>} : memref<288x1024xbf16, #tpu.memory_space<vmem>>, vector<16x1024xbf16>,
    %47 = vector.extract_strided_slice %42 {offsets = [0, 256], sizes = [16, 1024], strides = [1, 1]} : vector<16x1280xbf16> to vector<16x1024xbf16>
    %c224 = arith.constant 224 : index
    %c0_52 = arith.constant 0 : index
    %48 = vector.load %arg9[%c224, %c0_52] : memref<288x1024xbf16, #tpu.memory_space<vmem>>, vector<16x1024xbf16>
    tpu.vector_store %arg9[%c224, %c0_52], %47 {strides = array<i32>} : memref<288x1024xbf16, #tpu.memory_space<vmem>>, vector<16x1024xbf16>,
    %c0_53 = arith.constant 0 : index
    %c2_54 = arith.constant 2 : index
    %49 = vector.load %arg11[%c0_53, %c2_54] : memref<16x1408xbf16, #tpu.memory_space<vmem>>, vector<16x1280xbf16>
    %50 = vector.extract_strided_slice %49 {offsets = [0, 0], sizes = [16, 1024], strides = [1, 1]} : vector<16x1280xbf16> to vector<16x1024xbf16>
    %c240 = arith.constant 240 : index
    %c0_55 = arith.constant 0 : index
    %51 = vector.load %arg9[%c240, %c0_55] : memref<288x1024xbf16, #tpu.memory_space<vmem>>, vector<16x1024xbf16>
    tpu.vector_store %arg9[%c240, %c0_55], %50 {strides = array<i32>} : memref<288x1024xbf16, #tpu.memory_space<vmem>>, vector<16x1024xbf16>,
    %52 = vector.extract_strided_slice %49 {offsets = [0, 128], sizes = [16, 1024], strides = [1, 1]} : vector<16x1280xbf16> to vector<16x1024xbf16>
    %c256_56 = arith.constant 256 : index
    %c0_57 = arith.constant 0 : index
    %53 = vector.load %arg9[%c256_56, %c0_57] : memref<288x1024xbf16, #tpu.memory_space<vmem>>, vector<16x1024xbf16>
    tpu.vector_store %arg9[%c256_56, %c0_57], %52 {strides = array<i32>} : memref<288x1024xbf16, #tpu.memory_space<vmem>>, vector<16x1024xbf16>,
    %54 = vector.extract_strided_slice %49 {offsets = [0, 256], sizes = [16, 1024], strides = [1, 1]} : vector<16x1280xbf16> to vector<16x1024xbf16>
    %c272 = arith.constant 272 : index
    %c0_58 = arith.constant 0 : index
    %55 = vector.load %arg9[%c272, %c0_58] : memref<288x1024xbf16, #tpu.memory_space<vmem>>, vector<16x1024xbf16>
    tpu.vector_store %arg9[%c272, %c0_58], %54 {strides = array<i32>} : memref<288x1024xbf16, #tpu.memory_space<vmem>>, vector<16x1024xbf16>,
    %c0_59 = arith.constant 0 : index
    %c0_60 = arith.constant 0 : index
    %56 = vector.load %arg6[%c0_59, %c0_60] : memref<24x288xbf16, #tpu.memory_space<vmem>>, vector<24x288xbf16>
    %c0_61 = arith.constant 0 : index
    %c0_62 = arith.constant 0 : index
    %57 = vector.load %arg9[%c0_61, %c0_62] : memref<288x1024xbf16, #tpu.memory_space<vmem>>, vector<288x1024xbf16>
    %cst_63 = arith.constant dense<0.000000e+00> : vector<24x1024xf32>
    %58 = tpu.matmul %56, %57, %cst_63 {dimension_numbers = #tpu.dot_dimension_numbers<[1], [0], [0], [1], [0, 0, 1, 1], [], []>} : vector<24x288xbf16>, vector<288x1024xbf16>, vector<24x1024xf32> -> vector<24x1024xf32>
    %c0_64 = arith.constant 0 : index
    %c0_65 = arith.constant 0 : index
    %59 = vector.load %arg7[%c0_64, %c0_65] : memref<24x1xf32, #tpu.memory_space<vmem>>, vector<24x1xf32>
    %60 = vector.broadcast %59 : vector<24x1xf32> to vector<24x1024xf32>
    %61 = arith.addf %58, %60 : vector<24x1024xf32>
    %62 = arith.truncf %61 : vector<24x1024xf32> to vector<24x1024xbf16>
    %c0_66 = arith.constant 0 : index
    %c0_67 = arith.constant 0 : index
    %c0_68 = arith.constant 0 : index
    %63 = vector.load %arg8[%c0_66, %c0_67, %c0_68] : memref<1x24x1024xbf16, #tpu.memory_space<vmem>>, vector<1x24x1024xbf16>
    %64 = vector.shape_cast %63 : vector<1x24x1024xbf16> to vector<24x1024xbf16>
    %65 = vector.shape_cast %62 : vector<24x1024xbf16> to vector<1x24x1024xbf16>
    tpu.vector_store %arg8[%c0_66, %c0_67, %c0_68], %65 {strides = array<i32>} : memref<1x24x1024xbf16, #tpu.memory_space<vmem>>, vector<1x24x1024xbf16>,
    return
  }
  func.func @transform_0(%arg0: i32, %arg1: i32) -> (i32, i32, i32) {
    %c0_i32 = arith.constant 0 : i32
    %c0_i32_0 = arith.constant 0 : i32
    return %arg0, %c0_i32, %arg1 : i32, i32, i32
  }
  func.func @transform_1(%arg0: i32, %arg1: i32) -> (i32, i32, i32) {
    %c1_i32 = arith.constant 1 : i32
    %0 = arith.addi %arg1, %c1_i32 : i32
    %c4_i32 = arith.constant 4 : i32
    %1 = arith.muli %0, %c4_i32 : i32
    %c0_i32 = arith.constant 0 : i32
    %c0_i32_0 = arith.constant 0 : i32
    return %arg0, %c0_i32, %1 : i32, i32, i32
  }
  func.func @transform_2(%arg0: i32, %arg1: i32) -> (i32, i32, i32) {
    %c0_i32 = arith.constant 0 : i32
    %c0_i32_0 = arith.constant 0 : i32
    return %arg0, %c0_i32, %arg1 : i32, i32, i32
  }
  func.func @transform_3(%arg0: i32, %arg1: i32) -> (i32, i32, i32) {
    %c1_i32 = arith.constant 1 : i32
    %0 = arith.addi %arg1, %c1_i32 : i32
    %c4_i32 = arith.constant 4 : i32
    %1 = arith.muli %0, %c4_i32 : i32
    %c0_i32 = arith.constant 0 : i32
    %c0_i32_0 = arith.constant 0 : i32
    return %arg0, %c0_i32, %1 : i32, i32, i32
  }
  func.func @transform_4(%arg0: i32, %arg1: i32) -> (i32, i32) {
    %c0_i32 = arith.constant 0 : i32
    %c0_i32_0 = arith.constant 0 : i32
    %c0_i32_1 = arith.constant 0 : i32
    return %c0_i32, %c0_i32_0 : i32, i32
  }
  func.func @transform_5(%arg0: i32, %arg1: i32) -> (i32, i32) {
    %c0_i32 = arith.constant 0 : i32
    %c0_i32_0 = arith.constant 0 : i32
    %c0_i32_1 = arith.constant 0 : i32
    return %c0_i32, %c0_i32_0 : i32, i32
  }
  func.func @transform_6(%arg0: i32, %arg1: i32) -> (i32, i32, i32) {
    %c0_i32 = arith.constant 0 : i32
    %c0_i32_0 = arith.constant 0 : i32
    return %arg0, %c0_i32, %arg1 : i32, i32, i32
  }
}

module attributes {stable_mosaic.version = 11 : i64} {
  func.func @_enhance_kernel(%arg0: i32, %arg1: i32, %arg2: memref<1x24x256xbf16, #tpu.memory_space<vmem>>, %arg3: memref<1x3x256xf32, #tpu.memory_space<vmem>>, %arg4: memref<1x3x256xf32, #tpu.memory_space<vmem>>, %arg5: memref<1x24x256xbf16, #tpu.memory_space<vmem>>) attributes {dimension_semantics = [#tpu.dimension_semantics<parallel>, #tpu.dimension_semantics<parallel>], iteration_bounds = array<i64: 2, 1>, scalar_prefetch = 0 : i64, scratch_operands = 0 : i64, tpu.core_type = #tpu.core_type<tc>, window_params = [{transform_indices = @transform_0, window_bounds = array<i64: 1, 24, 256>}, {transform_indices = @transform_1, window_bounds = array<i64: 1, 3, 256>}, {transform_indices = @transform_2, window_bounds = array<i64: 1, 3, 256>}, {transform_indices = @transform_3, window_bounds = array<i64: 1, 24, 256>}]} {
    %c0 = arith.constant 0 : index
    %c0_0 = arith.constant 0 : index
    %c0_1 = arith.constant 0 : index
    %0 = vector.load %arg2[%c0, %c0_0, %c0_1] : memref<1x24x256xbf16, #tpu.memory_space<vmem>>, vector<1x24x256xbf16>
    %1 = vector.shape_cast %0 : vector<1x24x256xbf16> to vector<24x256xbf16>
    %2 = arith.extf %1 : vector<24x256xbf16> to vector<24x256xf32>
    %3 = math.tanh %2 : vector<24x256xf32>
    %4 = arith.truncf %3 : vector<24x256xf32> to vector<24x256xbf16>
    %c0_2 = arith.constant 0 : index
    %c0_3 = arith.constant 0 : index
    %c0_4 = arith.constant 0 : index
    %5 = vector.load %arg5[%c0_2, %c0_3, %c0_4] : memref<1x24x256xbf16, #tpu.memory_space<vmem>>, vector<1x24x256xbf16>
    %6 = vector.shape_cast %5 : vector<1x24x256xbf16> to vector<24x256xbf16>
    %7 = vector.shape_cast %4 : vector<24x256xbf16> to vector<1x24x256xbf16>
    tpu.vector_store %arg5[%c0_2, %c0_3, %c0_4], %7 {strides = array<i32>} : memref<1x24x256xbf16, #tpu.memory_space<vmem>>, vector<1x24x256xbf16>,
    %c0_5 = arith.constant 0 : index
    %c0_6 = arith.constant 0 : index
    %c0_7 = arith.constant 0 : index
    %8 = vector.load %arg3[%c0_5, %c0_6, %c0_7] : memref<1x3x256xf32, #tpu.memory_space<vmem>>, vector<1x3x256xf32>
    %9 = vector.shape_cast %8 : vector<1x3x256xf32> to vector<3x256xf32>
    %10 = vector.extract_strided_slice %3 {offsets = [0, 0], sizes = [3, 256], strides = [1, 1]} : vector<24x256xf32> to vector<3x256xf32>
    %11 = arith.mulf %9, %9 : vector<3x256xf32>
    %12 = arith.subf %11, %9 : vector<3x256xf32>
    %13 = arith.mulf %10, %12 : vector<3x256xf32>
    %14 = arith.addf %9, %13 : vector<3x256xf32>
    %15 = vector.extract_strided_slice %3 {offsets = [3, 0], sizes = [3, 256], strides = [1, 1]} : vector<24x256xf32> to vector<3x256xf32>
    %16 = arith.mulf %14, %14 : vector<3x256xf32>
    %17 = arith.subf %16, %14 : vector<3x256xf32>
    %18 = arith.mulf %15, %17 : vector<3x256xf32>
    %19 = arith.addf %14, %18 : vector<3x256xf32>
    %20 = vector.extract_strided_slice %3 {offsets = [6, 0], sizes = [3, 256], strides = [1, 1]} : vector<24x256xf32> to vector<3x256xf32>
    %21 = arith.mulf %19, %19 : vector<3x256xf32>
    %22 = arith.subf %21, %19 : vector<3x256xf32>
    %23 = arith.mulf %20, %22 : vector<3x256xf32>
    %24 = arith.addf %19, %23 : vector<3x256xf32>
    %25 = vector.extract_strided_slice %3 {offsets = [9, 0], sizes = [3, 256], strides = [1, 1]} : vector<24x256xf32> to vector<3x256xf32>
    %26 = arith.mulf %24, %24 : vector<3x256xf32>
    %27 = arith.subf %26, %24 : vector<3x256xf32>
    %28 = arith.mulf %25, %27 : vector<3x256xf32>
    %29 = arith.addf %24, %28 : vector<3x256xf32>
    %30 = vector.extract_strided_slice %3 {offsets = [12, 0], sizes = [3, 256], strides = [1, 1]} : vector<24x256xf32> to vector<3x256xf32>
    %31 = arith.mulf %29, %29 : vector<3x256xf32>
    %32 = arith.subf %31, %29 : vector<3x256xf32>
    %33 = arith.mulf %30, %32 : vector<3x256xf32>
    %34 = arith.addf %29, %33 : vector<3x256xf32>
    %35 = vector.extract_strided_slice %3 {offsets = [15, 0], sizes = [3, 256], strides = [1, 1]} : vector<24x256xf32> to vector<3x256xf32>
    %36 = arith.mulf %34, %34 : vector<3x256xf32>
    %37 = arith.subf %36, %34 : vector<3x256xf32>
    %38 = arith.mulf %35, %37 : vector<3x256xf32>
    %39 = arith.addf %34, %38 : vector<3x256xf32>
    %40 = vector.extract_strided_slice %3 {offsets = [18, 0], sizes = [3, 256], strides = [1, 1]} : vector<24x256xf32> to vector<3x256xf32>
    %41 = arith.mulf %39, %39 : vector<3x256xf32>
    %42 = arith.subf %41, %39 : vector<3x256xf32>
    %43 = arith.mulf %40, %42 : vector<3x256xf32>
    %44 = arith.addf %39, %43 : vector<3x256xf32>
    %45 = vector.extract_strided_slice %3 {offsets = [21, 0], sizes = [3, 256], strides = [1, 1]} : vector<24x256xf32> to vector<3x256xf32>
    %46 = arith.mulf %44, %44 : vector<3x256xf32>
    %47 = arith.subf %46, %44 : vector<3x256xf32>
    %48 = arith.mulf %45, %47 : vector<3x256xf32>
    %49 = arith.addf %44, %48 : vector<3x256xf32>
    %c0_8 = arith.constant 0 : index
    %c0_9 = arith.constant 0 : index
    %c0_10 = arith.constant 0 : index
    %50 = vector.load %arg4[%c0_8, %c0_9, %c0_10] : memref<1x3x256xf32, #tpu.memory_space<vmem>>, vector<1x3x256xf32>
    %51 = vector.shape_cast %50 : vector<1x3x256xf32> to vector<3x256xf32>
    %52 = vector.shape_cast %49 : vector<3x256xf32> to vector<1x3x256xf32>
    tpu.vector_store %arg4[%c0_8, %c0_9, %c0_10], %52 {strides = array<i32>} : memref<1x3x256xf32, #tpu.memory_space<vmem>>, vector<1x3x256xf32>,
    return
  }
  func.func @transform_0(%arg0: i32, %arg1: i32) -> (i32, i32, i32) {
    %c0_i32 = arith.constant 0 : i32
    %c0_i32_0 = arith.constant 0 : i32
    return %arg0, %c0_i32, %arg1 : i32, i32, i32
  }
  func.func @transform_1(%arg0: i32, %arg1: i32) -> (i32, i32, i32) {
    %c0_i32 = arith.constant 0 : i32
    %c0_i32_0 = arith.constant 0 : i32
    return %arg0, %c0_i32, %arg1 : i32, i32, i32
  }
  func.func @transform_2(%arg0: i32, %arg1: i32) -> (i32, i32, i32) {
    %c0_i32 = arith.constant 0 : i32
    %c0_i32_0 = arith.constant 0 : i32
    return %arg0, %c0_i32, %arg1 : i32, i32, i32
  }
  func.func @transform_3(%arg0: i32, %arg1: i32) -> (i32, i32, i32) {
    %c0_i32 = arith.constant 0 : i32
    %c0_i32_0 = arith.constant 0 : i32
    return %arg0, %c0_i32, %arg1 : i32, i32, i32
  }
}

</mosaic_0001>

<bundles_post_ra>
// kernel: enhance_net_dce_pool_forward.8
= control target key start
LH: loop header
LB: loop body
LE: loop exit
PB: predicated region body
PF: predicated region fallthrough
CT: control target
= control target key end

     0   :  { %s3238_s15 = smov 0   ;;  %s3240_s16 = smov 0   ;;  %s3915_s0 = inlined_call_operand.vmem [shape: bf16[2,16,2304], index: 0, kind: input, shape index: {}, may-alias: {0,1}]   ;;  %s3916_s1 = inlined_call_operand.vmem [shape: bf16[2,16,2304], index: 1, kind: input, shape index: {}, may-alias: {0,1}]   ;;  %s3917_s2 = inlined_call_operand.vmem [shape: bf16[8,144], index: 2, kind: input, shape index: {}]   ;;  %s3918_s3 = inlined_call_operand.vmem [shape: f32[8,1], index: 3, kind: input, shape index: {}]   ;;  %s3919_s4 = inlined_call_operand.vmem [shape: bf16[2,8,2048], index: 4, kind: output, shape index: {}]  }
   0x1   :  { %s3242_s17 = smov 0   ;;  %s3244_s18 = smov 0  }
   0x2   :  { %s3246_s19 = smov 0  }
   0x3 LB: > { %s26_s20 = sadd.s32 1, %s3188_s18  ;;  %p42_p1 = scmp.ne.s32.totalorder %s3180_s16, %s3176_s15  ;;  %s3192_s19 = sphi %s3246_s19, %s14_s19   ;;  %s3188_s18 = sphi %s3244_s18, %s3924_s18   ;;  %s3184_s17 = sphi %s3242_s17, %s3923_s17   ;;  %s3180_s16 = sphi %s3240_s16, %s3922_s16   ;;  %s3176_s15 = sphi %s3238_s15, %s3921_s15  }
   0x4   : > { %p28_p0 = scmp.ge.s32.totalorder %s26_s20, 2  ;;  %p43_p2 = scmp.eq.s32.totalorder %s3192_s19, 0 }
   0x5   : > { %s35_s23 = sadd.s32 1, %s3180_s16  ;;  %p2822_p5 = scmp.ge.s32.totalorder %s3192_s19, 2 }
   0x6   : > { %s3926_s20 = smov (%p28_p0, %s26_s20), 0  ;;  %p3269_p3 = por %p43_p2, %p42_p1 }
   0x7   : > { %s30_s22 = ssub.s32 %s3188_s18, %s3926_s20  ;;  %176 = sbr.rel (%p2822_p5) target bundleno = 31 (0x1f), region = 24 }
   0x8   : > { %p33_p4 = scmp.eq.s32.totalorder %s30_s22, 0 }
   0xa   : > { %s3277_s24 = scalar_select %p33_p4, %s3180_s16, %s35_s23  }
   0xc   : > { %179 = sbr.rel (!%p3269_p3) target bundleno = 25 (0x19), region = 28  ;;  %s181_s25 = sand.u32 (%p3269_p3), 1, %s3180_s16  }
   0xd   : > { %s3017_s26 = smul.u32 (%p3269_p3), 144, %s3188_s18  ;;  %s2823_s27 = sshll.u32 (%p3269_p3), %s181_s25, 7 }
   0xe   : > { %s183_s5 = scalar_lea.vmem (%p3269_p3), [#allocation4], %s2823_s27   ;;  %s3202_s8 = smov (%p3269_p3), 0  }
   0xf   : > { %s193_s30 = scalar_lea.vmem (%p3269_p3), %s3915_s0, %s3017_s26   ;;  %s3194_s6 = smov (%p3269_p3), %s183_s5  }
  0x10   : > { %s3198_s7 = smov (%p3269_p3), %s193_s30   ;;  %s3206_s9 = smov (%p3269_p3), 0  }
  0x11 LB: >> { %v392_v0 = vld [vmem:[%s3200_s7] sm:$0xff]  ;;  %v394_v1 = vld [vmem:[%s3200_s7 + $0x48] sm:$0xff]  ;;  %s396_s10 = sadd.s32 1, %s3204_s8  ;;  %s386_s9 = sadd.s32 1, %s3208_s9   ;;  %s3208_s9 = sphi %s3206_s9, %s386_s9   ;;  %s3204_s8 = sphi %s3202_s8, %s3203_s8   ;;  %s3200_s7 = sphi %s3198_s7, %s401_s7   ;;  %s3196_s6 = sphi %s3194_s6, %s402_s6  }
  0x12   : >> { %393 = vst [vmem:[%s3196_s6] sm:$0xff] %v392_v0  ;;  %395 = vst [vmem:[%s3196_s6 + $0x40] sm:$0xff] %v394_v1  ;;  %p397_p6 = scmp.ge.s32.totalorder %s396_s10, 8  ;;  %p385_p7 = scmp.ge.s32.totalorder %s386_s9, 8 }
  0x14   : >> { %s3928_s10 = smov (%p397_p6, %s396_s10), 0  ;;  %388 = sbr.rel (!%p385_p7) target bundleno = 17 (0x11), region = 212 }
  0x15   : >> { %s2827_s11 = sshll.u32 %s3928_s10, 3  ;;  %s3203_s8 = smov %s3928_s10  }
  0x16   : >> { %s401_s7 = scalar_lea.vmem %s193_s30, %s2827_s11   ;;  %s402_s6 = scalar_lea.vmem %s183_s5, %s2827_s11 [#allocation4]  }
  0x19 PF: > { %607 = sbr.rel (!%p3269_p3) target bundleno = 31 (0x1f), region = 94  ;;  %s609_s12 = sand.u32 (%p3269_p3), 1, %s3180_s16  }
  0x1a   : > { %s2836_s13 = smul.u32 (%p3269_p3), 144, %s3188_s18  ;;  %s2835_s14 = sshll.u32 (%p3269_p3), %s609_s12, 4 }
  0x1b   : > { %s611_s26 = scalar_lea.vmem (%p3269_p3), [#allocation5], %s2835_s14 }
  0x1c   : > { %s2690_s25 = scalar_lea.vmem (%p3269_p3), %s3916_s1, %s2836_s13 }
  0x1d   : > { %v2837_v2 = vld [vmem:[%s2690_s25 + $0x40] sm:$0xff] (%p3269_p3)  ;;  %v2838_v3 = vld [vmem:[%s2690_s25 + $0x88] sm:$0xff] (%p3269_p3) }
  0x1e   : > { %650 = vst [vmem:[%s611_s26] sm:$0xff] %v2837_v2  ;;  %652 = vst [vmem:[%s611_s26 + $0x8] sm:$0xff] %v2838_v3 }
  0x1f PF: > { %p2839_p8 = scmp.ge.s32.totalorder %s3192_s19, 1  ;;  %p657_p9 = scmp.lt.s32.totalorder %s3192_s19, 3 }
  0x21   : > { %p658_p10 = pnand %p2839_p8, %p657_p9 }
  0x22   : > { %s664_s21 = sand.u32 (!%p658_p10), 1, %s3176_s15   ;;  %s3211_s29 = smov (!%p658_p10), 126  }
  0x23   : > { %661 = sbr.rel (%p658_p10) target bundleno = 523 (0x20b), region = 132  ;;  %s2840_s27 = sshll.u32 (!%p658_p10), %s664_s21, 7 }
  0x24   : > { %s3297_s28 = scalar_lea.vmem (!%p658_p10), [#allocation4], %s2840_s27  ;;  %s3306_s15 = sshll.u32 (!%p658_p10), %s664_s21, 4 }
  0x25   : > { %s673_s30 = scalar_lea.vmem (!%p658_p10), [#allocation5], %s3306_s15  ;;  %s3212_s5 = smov (!%p658_p10), 127  }
  0x26   : > { %p713_p11 = scmp.lt.s32.totalorder (!%p658_p10), %s3184_s17, 1 }
  0x28   : > { %v3210_v4 = vmov 0   ;;  %v725_v5 = vld [vmem:[%s3297_s28 + $0x10] sm:$0xff]  ;;  %v3301_v6 = vld [vmem:[%s3297_s28] sm:$0xff]  ;;  %v724_v8 = vld [vmem:[%s3297_s28 + $0x8] sm:$0xff]  ;;  %vm2205_vm0 = vcmask 130048   ;;  %vm949_vm1 = vcmask 1043456  }
  0x29   : > { %759 = vst [vmem:[#allocation3 + $0x48] sm:$0xf] %v3210_v4  ;;  %760 = vst [vmem:[#allocation3 + $0x94] sm:$0xf] %v3210_v4  ;;  %3103 = vset.pattern.permute.xlu0 %v3210_v4  ;;  %v3304_v7 = vld [vmem:[%s3297_s28 + $0x40] sm:$0xff]  ;;  %1135 = vrot.lane.b32.xlu1 %v725_v5, %s3211_s29  ;;  %v733_v9 = vld [vmem:[%s3297_s28 + $0x50] sm:$0xff] }
  0x2a   : > { %741 = vst [vmem:[#allocation3 + $0x10] sm:$0xff] %v725_v5  ;;  %739 = vst [vmem:[#allocation3] sm:$0xff] %v3301_v6  ;;  %1131 = vrot.lane.b32.xlu0 %v3301_v6, %s3211_s29  ;;  %v732_v10 = vld [vmem:[%s3297_s28 + $0x48] sm:$0xff]  ;;  %v3317_v11 = vld [vmem:[%s3297_s28 + $0x18] sm:$0xff]  ;;  %v3382_v24 = vcombine.high %v725_v5, %v733_v9  ;;  %v3386_v26 = vcombine.low %v725_v5, %v733_v9  ;;  %v2847_v27 = vcombine.high %v3301_v6, %v3304_v7  ;;  %vm1186_vm2 = vcmask 1031168   ;;  %s3930_s17 = smov (!%p713_p11, %s3184_s17), 1 }
  0x2b   : > { %747 = vst [vmem:[#allocation3 + $0x4c] sm:$0xff] %v3304_v7  ;;  %740 = vst [vmem:[#allocation3 + $0x8] sm:$0xff] %v724_v8  ;;  %v3320_v12 = vld [vmem:[%s3297_s28 + $0x58] sm:$0xff]  ;;  %v3325_v13 = vld [vmem:[%s3297_s28 + $0x20] sm:$0xff]  ;;  %v3380_v23 = vcombine.high %v724_v8, %v732_v10  ;;  %v3384_v25 = vcombine.low %v724_v8, %v732_v10  ;;  %v2846_v28 = vcombine.low %v3301_v6, %v3304_v7  ;;  %vm951_vm3 = vcmask 1039360   ;;  %s3008_s10 = sshll.u32 %s3930_s17, 6 }
  0x2c   : > { %749 = vst [vmem:[#allocation3 + $0x5c] sm:$0xff] %v733_v9  ;;  %748 = vst [vmem:[#allocation3 + $0x54] sm:$0xff] %v732_v10  ;;  %v3328_v14 = vld [vmem:[%s3297_s28 + $0x60] sm:$0xff]  ;;  %v3331_v15 = vld [vmem:[%s3297_s28 + $0x28] sm:$0xff]  ;;  %v3443_v31 = vcombine.low %v3317_v11, %v3320_v12  ;;  %v3447_v32 = vcombine.high %v3317_v11, %v3320_v12  ;;  %s3878_s13 = scalar_lea.vmem %s3919_s4, %s3008_s10 }
  0x2d   : > { %742 = vst [vmem:[#allocation3 + $0x18] sm:$0xff] %v3317_v11  ;;  %750 = vst [vmem:[#allocation3 + $0x64] sm:$0xff] %v3320_v12  ;;  %v3337_v16 = vld [vmem:[%s3297_s28 + $0x68] sm:$0xff]  ;;  %v3340_v17 = vld [vmem:[%s3297_s28 + $0x30] sm:$0xff]  ;;  %1149 = vrot.lane.b32.xlu1 %v3304_v7, %s3211_s29  ;;  %v3451_v33 = vcombine.low %v3325_v13, %v3328_v14  ;;  %v3455_v34 = vcombine.high %v3325_v13, %v3328_v14 }
  0x2e   : > { %743 = vst [vmem:[#allocation3 + $0x20] sm:$0xff] %v3325_v13  ;;  %751 = vst [vmem:[#allocation3 + $0x6c] sm:$0xff] %v3328_v14  ;;  %v3343_v18 = vld [vmem:[%s3297_s28 + $0x70] sm:$0xff]  ;;  %1133 = vrot.lane.b32.xlu0 %v724_v8, %s3211_s29  ;;  %v3352_v19 = vld [vmem:[%s3297_s28 + $0x38] sm:$0xff] }
  0x2f   : > { %744 = vst [vmem:[#allocation3 + $0x28] sm:$0xff] %v3331_v15  ;;  %752 = vst [vmem:[#allocation3 + $0x74] sm:$0xff] %v3337_v16  ;;  %v3355_v20 = vld [vmem:[%s3297_s28 + $0x78] sm:$0xff]  ;;  %v3362_v22 = vld [vmem:[%s673_s30] sm:$0xff] }
  0x30   : > { %745 = vst [vmem:[#allocation3 + $0x30] sm:$0xff] %v3340_v17  ;;  %753 = vst [vmem:[#allocation3 + $0x7c] sm:$0xff] %v3343_v18  ;;  %v3360_v21 = vld [vmem:[%s673_s30 + $0x8] sm:$0xff]  ;;  %v1102_v35 = vld [vmem:[#allocation3 + $0x48] sm:$0xf] }
  0x31   : > { %746 = vst [vmem:[#allocation3 + $0x38] sm:$0xff] %v3352_v19  ;;  %754 = vst [vmem:[#allocation3 + $0x84] sm:$0xff] %v3355_v20  ;;  %1153 = vrot.lane.b32.xlu1 %v733_v9, %s3211_s29  ;;  %v3407_v29 = vld [vmem:[%s3917_s2] sm:$0xff]  ;;  %v1112_v36 = vld [vmem:[#allocation3 + $0x94] sm:$0xf] }
  0x32   : > { %758 = vst [vmem:[#allocation3 + $0x8c] sm:$0xff] %v3360_v21  ;;  %757 = vst [vmem:[#allocation3 + $0x40] sm:$0xff] %v3362_v22  ;;  %1151 = vrot.lane.b32.xlu0 %v732_v10, %s3211_s29  ;;  %v3415_v30 = vcombine.high %v3407_v29, %v3407_v29  ;;  %v866_v37 = vld [vmem:[#allocation3 + $0x48] sm:$0xf]  ;;  %v876_v38 = vld [vmem:[#allocation3 + $0x94] sm:$0xf]  ;;  %v3098_v39 = vpack.i.bf16 %v1112_v36, %v1102_v35 }
  0x33   : > { %v3093_v40 = vpack.i.bf16 %v876_v38, %v866_v37  ;;  %v1473_v41 = vld [vmem:[%s3918_s3] sm:$0xff] }
  0x34   : > { %2990 = vmatprep.mubr.msk.bf16.mxu0 %vm2205_vm0, %v3415_v30  ;;  %2991 = vmatprep.mubr.msk.bf16.mxu1 %vm2205_vm0, %v3415_v30 }
  0x35   : > { %899 = vrot.lane.b32.xlu1 %v725_v5, %s3212_s5 }
  0x36   : > { %897 = vrot.lane.b32.xlu0 %v724_v8, %s3212_s5 }
  0x39   : > { %915 = vrot.lane.b32.xlu1 %v732_v10, %s3212_s5 }
  0x3a   : > { %901 = vrot.lane.b32.xlu0 %v3317_v11, %s3212_s5 }
  0x3d   : > { %919 = vrot.lane.b32.xlu1 %v3320_v12, %s3212_s5 }
  0x3e   : > { %917 = vrot.lane.b32.xlu0 %v733_v9, %s3212_s5 }
  0x41   : > { %913 = vrot.lane.b32.xlu1 %v3304_v7, %s3212_s5 }
  0x42   : > { %895 = vrot.lane.b32.xlu0 %v3301_v6, %s3212_s5 }
  0x45   : > { %1155 = vrot.lane.b32.xlu1 %v3320_v12, %s3211_s29 }
  0x46   : > { %1137 = vrot.lane.b32.xlu0 %v3317_v11, %s3211_s29 }
  0x49   : > { %1157 = vrot.lane.b32.xlu1 %v3328_v14, %s3211_s29 }
  0x4a   : > { %1139 = vrot.lane.b32.xlu0 %v3325_v13, %s3211_s29 }
  0x4d   : > { %905 = vrot.lane.b32.xlu1 %v3331_v15, %s3212_s5 }
  0x4e   : > { %903 = vrot.lane.b32.xlu0 %v3325_v13, %s3212_s5 }
  0x51   : > { %923 = vrot.lane.b32.xlu1 %v3337_v16, %s3212_s5 }
  0x52   : > { %921 = vrot.lane.b32.xlu0 %v3328_v14, %s3212_s5 }
  0x55   : > { %1159 = vrot.lane.b32.xlu1 %v3337_v16, %s3211_s29 }
  0x56   : > { %1141 = vrot.lane.b32.xlu0 %v3331_v15, %s3211_s29 }
  0x59   : > { %1161 = vrot.lane.b32.xlu1 %v3343_v18, %s3211_s29 }
  0x5a   : > { %1143 = vrot.lane.b32.xlu0 %v3340_v17, %s3211_s29 }
  0x5d   : > { %909 = vrot.lane.b32.xlu1 %v3352_v19, %s3212_s5 }
  0x5e   : > { %907 = vrot.lane.b32.xlu0 %v3340_v17, %s3212_s5 }
  0x61   : > { %927 = vrot.lane.b32.xlu1 %v3355_v20, %s3212_s5 }
  0x62   : > { %925 = vrot.lane.b32.xlu0 %v3343_v18, %s3212_s5 }
  0x65   : > { %1163 = vrot.lane.b32.xlu1 %v3355_v20, %s3211_s29 }
  0x66   : > { %1145 = vrot.lane.b32.xlu0 %v3352_v19, %s3211_s29 }
  0x69   : > { %1165 = vrot.lane.b32.xlu1 %v3360_v21, %s3211_s29 }
  0x6a   : > { %1147 = vrot.lane.b32.xlu0 %v3362_v22, %s3211_s29 }
  0x6d   : > { %929 = vrot.lane.b32.xlu1 %v3360_v21, %s3212_s5 }
  0x6e   : > { %911 = vrot.lane.b32.xlu0 %v3362_v22, %s3212_s5 }
  0x71   : > { %3099 = vrot.lane.b32.xlu1 %v3098_v39, %s3211_s29 }
  0x72   : > { %3094 = vrot.lane.b32.xlu0 %v3093_v40, %s3212_s5 }
  0x76   : > { %1476 = vperm.xlu0 %3103, %v1473_v41  }
  0x9b   : > { %v3470_v42 = vpop.permute.xlu1 %1135 }
  0x9c   : > { %v1132_v43 = vpop.permute.xlu0 %1131  ;;  %v1169_v47 = vrot.slane %v3470_v42, 4 }
  0x9d   : > { %v1167_v48 = vrot.slane %v1132_v43, 4 }
  0x9f   : > { %v1150_v44 = vpop.permute.xlu1 %1149 }
  0xa0   : > { %v1134_v45 = vpop.permute.xlu0 %1133  ;;  %v1176_v53 = vrot.slane %v1150_v44, 4 }
  0xa1   : > { %v1168_v46 = vrot.slane %v1134_v45, 4 }
  0xa3   : > { %v3473_v49 = vpop.permute.xlu1 %1153  ;;  %v1185_v51 = vsel %vm949_vm1, %v1167_v48, %v1168_v46  ;;  %v1188_v52 = vsel %vm949_vm1, %v1168_v46, %v1169_v47 }
  0xa4   : > { %v1152_v50 = vpop.permute.xlu0 %1151  ;;  %v1178_v54 = vrot.slane %v3473_v49, 4  ;;  %v1250_v57 = vsel %vm1186_vm2, %v1185_v51, %v1134_v45  ;;  %v1251_v59 = vsel %vm1186_vm2, %v1188_v52, %v3470_v42  ;;  %v1187_v8 = vsel %vm1186_vm2, %v1132_v43, %v1185_v51 }
  0xa5   : > { %v1177_v55 = vrot.slane %v1152_v50, 4  ;;  %v1189_v9 = vsel %vm1186_vm2, %v1134_v45, %v1188_v52 }
  0xa7   : > { %v1202_v56 = vsel %vm949_vm1, %v1176_v53, %v1177_v55  ;;  %v1204_v58 = vsel %vm949_vm1, %v1177_v55, %v1178_v54  ;;  %v900_v60 = vpop.permute.xlu1 %899 }
  0xa8   : > { %v898_v61 = vpop.permute.xlu0 %897  ;;  %v1258_v62 = vsel %vm1186_vm2, %v1202_v56, %v1152_v50  ;;  %v1259_v63 = vsel %vm1186_vm2, %v1204_v58, %v3473_v49  ;;  %v1203_v0 = vsel %vm1186_vm2, %v1150_v44, %v1202_v56  ;;  %v1205_v1 = vsel %vm1186_vm2, %v1152_v50, %v1204_v58 }
  0xa9   : > { %v2959_v2 = vcombine.high %v1250_v57, %v1258_v62  ;;  %v2961_v3 = vcombine.high %v1251_v59, %v1259_v63  ;;  %v2958_v4 = vcombine.low %v1250_v57, %v1258_v62  ;;  %v2960_v5 = vcombine.low %v1251_v59, %v1259_v63 }
  0xaa   : > { %v2943_v10 = vcombine.high %v1187_v8, %v1203_v0  ;;  %v3494_v11 = vcombine.high %v1189_v9, %v1205_v1  ;;  %v933_v12 = vrot.slane %v900_v60, 4  ;;  %v932_v13 = vrot.slane %v898_v61, 4 }
  0xab   : > { %2209 = vmatprep.subr.bf16.mxu0 %v2959_v2  ;;  %2250 = vmatprep.subr.bf16.mxu1 %v2961_v3  ;;  %v916_v14 = vpop.permute.xlu1 %915  ;;  %v2942_v37 = vcombine.low %v1187_v8, %v1203_v0  ;;  %v3500_v38 = vcombine.low %v1189_v9, %v1205_v1 }
  0xac   : > { %2210 = vmatpush1.bf16.msra.mxu0 %v2958_v4  ;;  %2251 = vmatpush1.bf16.msra.mxu1 %v2960_v5  ;;  %v3496_v35 = vpop.permute.xlu0 %901  ;;  %v953_v39 = vsel %vm949_vm1, %v932_v13, %v933_v12  ;;  %v941_v43 = vrot.slane %v916_v14, 4 }
  0xad   : > { %v934_v36 = vrot.slane %v3496_v35, 4  ;;  %2211 = vmatprep.subr.bf16.mxu0 %v2943_v10  ;;  %2252 = vmatprep.subr.bf16.mxu1 %v3494_v11  ;;  %v954_v48 = vsel %vm951_vm3, %v898_v61, %v953_v39  ;;  %v1016_v3 = vsel %vm951_vm3, %v953_v39, %v900_v60 }
  0xaf   : > { %v3503_v40 = vpop.permute.xlu1 %919  ;;  %v3509_v44 = vsel %vm949_vm1, %v933_v12, %v934_v36 }
  0xb0   : > { %2212 = vmatpush1.bf16.msra.mxu0 %v2942_v37  ;;  %2253 = vmatpush1.bf16.msra.mxu1 %v3500_v38  ;;  %v918_v41 = vpop.permute.xlu0 %917  ;;  %v943_v45 = vrot.slane %v3503_v40, 4  ;;  %v956_v58 = vsel %vm951_vm3, %v900_v60, %v3509_v44 }
  0xb1   : > { %v942_v46 = vrot.slane %v918_v41, 4 }
  0xb3   : > { %v969_v50 = vsel %vm949_vm1, %v941_v43, %v942_v46  ;;  %v3517_v51 = vsel %vm949_vm1, %v942_v46, %v943_v45  ;;  %v914_v55 = vpop.permute.xlu1 %913 }
  0xb4   : > { %v972_v52 = vsel %vm951_vm3, %v918_v41, %v3517_v51  ;;  %v1024_v53 = vsel %vm951_vm3, %v969_v50, %v918_v41  ;;  %v896_v56 = vpop.permute.xlu0 %895  ;;  %v970_v57 = vsel %vm951_vm3, %v916_v14, %v969_v50  ;;  %v940_v59 = vrot.slane %v914_v55, 4 }
  0xb5   : > { %v931_v62 = vrot.slane %v896_v56, 4  ;;  %v2897_v63 = vcombine.high %v954_v48, %v970_v57  ;;  %v3525_v0 = vcombine.high %v956_v58, %v972_v52  ;;  %v2896_v1 = vcombine.low %v954_v48, %v970_v57 }
  0xb6   : > { %v3527_v2 = vcombine.low %v956_v58, %v972_v52  ;;  %v967_v4 = vsel %vm949_vm1, %v940_v59, %v941_v43  ;;  %v2913_v8 = vcombine.high %v1016_v3, %v1024_v53 }
  0xb7   : > { %v950_v5 = vsel %vm949_vm1, %v931_v62, %v932_v13  ;;  %2213 = vmatprep.subr.bf16.mxu0 %v2897_v63  ;;  %2254 = vmatprep.subr.bf16.mxu1 %v3525_v0  ;;  %v968_v10 = vsel %vm951_vm3, %v914_v55, %v967_v4  ;;  %v3537_v37 = vpop.permute.xlu1 %1155  ;;  %v1023_v39 = vsel %vm951_vm3, %v967_v4, %v916_v14  ;;  %v3106_v14 = vld [vmem:[#allocation3 + $0x10] ss:$76 sps:$4 sm:$0xff]  }
  0xb8   : > { %2214 = vmatpush1.bf16.msra.mxu0 %v2896_v1  ;;  %2255 = vmatpush1.bf16.msra.mxu1 %v3527_v2  ;;  %v1015_v9 = vsel %vm951_vm3, %v950_v5, %v898_v61  ;;  %v952_v12 = vsel %vm951_vm3, %v896_v56, %v950_v5  ;;  %v1138_v60 = vpop.permute.xlu0 %1137  ;;  %v2912_v13 = vcombine.low %v1016_v3, %v1024_v53  ;;  %v1179_v52 = vrot.slane %v3537_v37, 4  ;;  %v3104_v53 = vld [vmem:[#allocation3 + $0x8] ss:$76 sps:$4 sm:$0xff]   ;;  %v3108_v56 = vld [vmem:[#allocation3 + $0xc] ss:$76 sps:$4 sm:$0xff]  }
  0xb9   : > { %2256 = vmatprep.subr.bf16.mxu1 %v2913_v8  ;;  %v2911_v41 = vcombine.high %v1015_v9, %v1023_v39  ;;  %v2910_v43 = vcombine.low %v1015_v9, %v1023_v39  ;;  %v2895_v46 = vcombine.high %v952_v12, %v968_v10  ;;  %v2894_v61 = vcombine.low %v952_v12, %v968_v10 }
  0xba   : > { %v1170_v55 = vrot.slane %v1138_v60, 4  ;;  %v1206_v57 = vsel %vm949_vm1, %v1178_v54, %v1179_v52 }
  0xbb   : > { %2215 = vmatprep.subr.bf16.mxu0 %v2911_v41  ;;  %v3542_v50 = vpop.permute.xlu1 %1157 }
  0xbc   : > { %2257 = vmatpush1.bf16.msra.mxu1 %v2912_v13  ;;  %2216 = vmatpush1.bf16.msra.mxu0 %v2910_v43  ;;  %v3540_v48 = vpop.permute.xlu0 %1139  ;;  %v1190_v58 = vsel %vm949_vm1, %v1169_v47, %v1170_v55  ;;  %v1180_v3 = vrot.slane %v3542_v50, 4  ;;  %v1207_v47 = vsel %vm1186_vm2, %v3473_v49, %v1206_v57 }
  0xbd   : > { %2258 = vmatprep.subr.bf16.mxu1 %v2897_v63  ;;  %2217 = vmatprep.subr.bf16.mxu0 %v2895_v46  ;;  %v3109_v63 = vld [vmem:[#allocation3 + $0x4] ss:$76 sps:$4 sm:$0xff]   ;;  %v1191_v54 = vsel %vm1186_vm2, %v3470_v42, %v1190_v58  ;;  %v1252_v39 = vsel %vm1186_vm2, %v1190_v58, %v1138_v60  ;;  %v3594_v46 = vcombine.low %v3407_v29, %v3407_v29 }
  0xbe   : > { %v1208_v5 = vsel %vm949_vm1, %v1179_v52, %v1180_v3  ;;  %v2947_v8 = vcombine.high %v1191_v54, %v1207_v47  ;;  %v2946_v13 = vcombine.low %v1191_v54, %v1207_v47  ;;  %v1025_v47 = vsel %vm951_vm3, %v3517_v51, %v3503_v40 }
  0xbf   : > { %v3556_v62 = vpop.permute.xlu1 %905  ;;  %v1209_v52 = vsel %vm1186_vm2, %v3537_v37, %v1208_v5 }
  0xc0   : > { %2259 = vmatpush1.bf16.msra.mxu1 %v2896_v1  ;;  %2218 = vmatpush1.bf16.msra.mxu0 %v2894_v61  ;;  %v3554_v59 = vpop.permute.xlu0 %903  ;;  %v1171_v1 = vrot.slane %v3540_v48, 4  ;;  %v936_v10 = vrot.slane %v3556_v62, 4 }
  0xc1   : > { %2260 = vmatprep.subr.bf16.mxu1 %v3382_v24  ;;  %2219 = vmatprep.subr.bf16.mxu0 %v3380_v23  ;;  %v935_v41 = vrot.slane %v3554_v59, 4 }
  0xc2   : > { %v1192_v4 = vsel %vm949_vm1, %v1170_v55, %v1171_v1 }
  0xc3   : > { %v1253_v42 = vsel %vm1186_vm2, %v1192_v4, %v3540_v48  ;;  %v3579_v9 = vpop.permute.xlu1 %923  ;;  %v1193_v61 = vsel %vm1186_vm2, %v1138_v60, %v1192_v4  ;;  %v3602_v6 = vsel %vm949_vm1, %v935_v41, %v936_v10 }
  0xc4   : > { %2261 = vmatpush1.bf16.msra.mxu1 %v3386_v26  ;;  %2220 = vmatpush1.bf16.msra.mxu0 %v3384_v25  ;;  %v922_v49 = vpop.permute.xlu0 %921  ;;  %v945_v12 = vrot.slane %v3579_v9, 4  ;;  %v960_v55 = vsel %vm951_vm3, %v3554_v59, %v3602_v6 }
  0xc5   : > { %2262 = vmatprep.subr.bf16.mxu1 %v3106_v14  ;;  %2221 = vmatprep.subr.bf16.mxu0 %v3104_v53  ;;  %v944_v43 = vrot.slane %v922_v49, 4 }
  0xc7   : > { %v3607_v7 = vsel %vm949_vm1, %v944_v43, %v945_v12 }
  0xc8   : > { %2263 = vmatpush1.bf16.msra.mxu1 %v3108_v56  ;;  %2222 = vmatpush1.bf16.msra.mxu0 %v3109_v63  ;;  %v976_v14 = vsel %vm951_vm3, %v922_v49, %v3607_v7 }
  0xc9   : > { %2264 = vmatprep.subr.bf16.mxu1 %v3380_v23  ;;  %2223 = vmatprep.subr.bf16.mxu0 %v2847_v27  ;;  %v1261_v23 = vsel %vm1186_vm2, %v1208_v5, %v3542_v50  ;;  %v1260_v27 = vsel %vm1186_vm2, %v1206_v57, %v3537_v37  ;;  %v3614_v37 = vcombine.high %v1193_v61, %v1209_v52 }
  0xca   : > { %v2964_v29 = vcombine.low %v1253_v42, %v1261_v23  ;;  %v2962_v60 = vcombine.low %v1252_v39, %v1260_v27  ;;  %v3634_v56 = vcombine.high %v960_v55, %v976_v14  ;;  %v3643_v54 = vcombine.low %v960_v55, %v976_v14 }
  0xcb   : > { %v1017_v5 = vsel %vm951_vm3, %v3509_v44, %v3496_v35 }
  0xcc   : > { %2265 = vmatpush1.bf16.msra.mxu1 %v3384_v25  ;;  %2224 = vmatpush1.bf16.msra.mxu0 %v2846_v28  ;;  %v2965_v25 = vcombine.high %v1253_v42, %v1261_v23  ;;  %v2963_v28 = vcombine.high %v1252_v39, %v1260_v27  ;;  %v2915_v42 = vcombine.high %v1017_v5, %v1025_v47  ;;  %v3117_v39 = vld [vmem:[#allocation3 + $0x20] ss:$76 sps:$4 sm:$0xff]  }
  0xcd   : > { %2280 = vmatprep.subr.bf16.mxu1 %v2947_v8  ;;  %2239 = vmatprep.subr.bf16.mxu0 %v3494_v11  ;;  %v973_v11 = vsel %vm949_vm1, %v943_v45, %v944_v43  ;;  %v3628_v45 = vcombine.low %v1193_v61, %v1209_v52  ;;  %v2914_v27 = vcombine.low %v1017_v5, %v1025_v47 }
  0xce   : > { %v974_v53 = vsel %vm951_vm3, %v3503_v40, %v973_v11  ;;  %v1026_v57 = vsel %vm951_vm3, %v973_v11, %v922_v49  ;;  %v1160_v49 = vpop.permute.xlu1 %1159 }
  0xcf   : > { %v1181_v44 = vrot.slane %v1160_v49, 4 }
  0xd0   : > { %2281 = vmatpush2.bf16.msra.mxu1 %v2946_v13  ;;  %2240 = vmatpush2.bf16.msra.mxu0 %v3500_v38  ;;  %v957_v38 = vsel %vm949_vm1, %v934_v36, %v935_v41  ;;  %v3115_v41 = vld [vmem:[#allocation3 + $0x1c] ss:$76 sps:$4 sm:$0xff]  }
  0xd1   : > { %2332 = vmatprep.subr.bf16.mxu1 %v2965_v25  ;;  %2291 = vmatprep.subr.bf16.mxu0 %v2963_v28  ;;  %v958_v36 = vsel %vm951_vm3, %v3496_v35, %v957_v38  ;;  %v1018_v63 = vsel %vm951_vm3, %v957_v38, %v3554_v59  ;;  %v1142_v59 = vpop.permute.xlu0 %1141  ;;  %v1210_v43 = vsel %vm949_vm1, %v1180_v3, %v1181_v44 }
  0xd2   : > { %v2901_v58 = vcombine.high %v958_v36, %v974_v53  ;;  %v2917_v4 = vcombine.high %v1018_v63, %v1026_v57  ;;  %v2916_v23 = vcombine.low %v1018_v63, %v1026_v57  ;;  %v3655_v51 = vpop.permute.xlu1 %1161  ;;  %v1172_v35 = vrot.slane %v1142_v59, 4 }
  0xd3   : > { %2283 = vmatmul.mubr.bf16.vlgmr.msra.gmra.mxu1 %v3594_v46  ;;  %2242 = vmatmul.mubr.bf16.vlgmr.msra.gmra.mxu0 %v3594_v46  ;;  %v1182_v28 = vrot.slane %v3655_v51, 4  ;;  %v1211_v3 = vsel %vm1186_vm2, %v3542_v50, %v1210_v43 }
  0xd4   : > { %2333 = vmatpush1.bf16.msra.mxu1 %v2964_v29  ;;  %2993 = vmatprep.mubr.msk.bf16.mxu1 %vm2205_vm0, %v3415_v30 }
  0xd5   : > { %2334 = vmatprep.subr.bf16.mxu1 %v3614_v37  ;;  %2292 = vmatpush1.bf16.msra.mxu0 %v2962_v60  ;;  %v3653_v40 = vpop.permute.xlu0 %1143  ;;  %v1212_v11 = vsel %vm949_vm1, %v1181_v44, %v1182_v28 }
  0xd6   : > { %2992 = vmatprep.mubr.msk.bf16.mxu0 %vm2205_vm0, %v3415_v30  ;;  %2293 = vmatprep.subr.bf16.mxu0 %v2947_v8  ;;  %v2900_v8 = vcombine.low %v958_v36, %v974_v53  ;;  %v3669_v61 = vpop.permute.xlu1 %909  ;;  %v1173_v52 = vrot.slane %v3653_v40, 4  ;;  %v1263_v50 = vsel %vm1186_vm2, %v1212_v11, %v3655_v51  ;;  %v1213_v47 = vsel %vm1186_vm2, %v1160_v49, %v1212_v11 }
  0xd7   : > { %v938_v14 = vrot.slane %v3669_v61, 4 }
  0xd8   : > { %2335 = vmatpush1.bf16.msra.mxu1 %v3628_v45  ;;  %v1196_v29 = vsel %vm949_vm1, %v1172_v35, %v1173_v52 }
  0xd9   : > { %2336 = vmatprep.subr.bf16.mxu1 %v3634_v56  ;;  %2294 = vmatpush1.bf16.msra.mxu0 %v2946_v13  ;;  %v3114_v13 = vld [vmem:[#allocation3 + $0x18] ss:$76 sps:$4 sm:$0xff]   ;;  %v3667_v25 = vpop.permute.xlu0 %907 }
  0xda   : > { %2295 = vmatprep.subr.bf16.mxu0 %v2901_v58  ;;  %v937_v36 = vrot.slane %v3667_v25, 4 }
  0xdc   : > { %2337 = vmatpush1.bf16.msra.mxu1 %v3643_v54 }
  0xdd   : > { %2338 = vmatprep.subr.bf16.mxu1 %v2917_v4  ;;  %2296 = vmatpush1.bf16.msra.mxu0 %v2900_v8  ;;  %v926_v55 = vpop.permute.xlu0 %925  ;;  %v3705_v4 = vsel %vm949_vm1, %v937_v36, %v938_v14 }
  0xde   : > { %2297 = vmatprep.subr.bf16.mxu0 %v2915_v42 }
  0xe0   : > { %2339 = vmatpush1.bf16.msra.mxu1 %v2916_v23 }
  0xe1   : > { %2340 = vmatprep.subr.bf16.mxu1 %v2901_v58  ;;  %2298 = vmatpush1.bf16.msra.mxu0 %v2914_v27  ;;  %v946_v58 = vrot.slane %v926_v55, 4 }
  0xe2   : > { %2299 = vmatprep.subr.bf16.mxu0 %v3525_v0  ;;  %v1194_v0 = vsel %vm949_vm1, %v1171_v1, %v1172_v35 }
  0xe3   : > { %v1195_v1 = vsel %vm1186_vm2, %v3540_v48, %v1194_v0  ;;  %v1255_v48 = vsel %vm1186_vm2, %v1196_v29, %v3653_v40  ;;  %v1254_v53 = vsel %vm1186_vm2, %v1194_v0, %v1142_v59 }
  0xe4   : > { %2341 = vmatpush1.bf16.msra.mxu1 %v2900_v8  ;;  %v2951_v60 = vcombine.high %v1195_v1, %v1211_v3  ;;  %v2950_v57 = vcombine.low %v1195_v1, %v1211_v3  ;;  %v2969_v63 = vcombine.high %v1255_v48, %v1263_v50  ;;  %v2968_v8 = vcombine.low %v1255_v48, %v1263_v50  ;;  %v3123_v50 = vld [vmem:[#allocation3 + $0x30] ss:$76 sps:$4 sm:$0xff]  }
  0xe5   : > { %2342 = vmatprep.subr.bf16.mxu1 %v3455_v34  ;;  %2300 = vmatpush1.bf16.msra.mxu0 %v3527_v2  ;;  %v3112_v2 = vld [vmem:[#allocation3 + $0x14] ss:$76 sps:$4 sm:$0xff]  }
  0xe6   : > { %2301 = vmatprep.subr.bf16.mxu0 %v3447_v32 }
  0xe8   : > { %2343 = vmatpush1.bf16.msra.mxu1 %v3451_v33 }
  0xe9   : > { %2344 = vmatprep.subr.bf16.mxu1 %v3117_v39  ;;  %2302 = vmatpush1.bf16.msra.mxu0 %v3443_v31 }
  0xea   : > { %2303 = vmatprep.subr.bf16.mxu0 %v3114_v13  ;;  %v1019_v13 = vsel %vm951_vm3, %v3602_v6, %v3556_v62 }
  0xec   : > { %2345 = vmatpush1.bf16.msra.mxu1 %v3115_v41  ;;  %v1027_v41 = vsel %vm951_vm3, %v3607_v7, %v3579_v9  ;;  %v2889_v7 = vcombine.high %v3340_v17, %v3343_v18 }
  0xed   : > { %2346 = vmatprep.subr.bf16.mxu1 %v3447_v32  ;;  %2304 = vmatpush1.bf16.msra.mxu0 %v3112_v2  ;;  %v3690_v32 = vpop.permute.xlu1 %927  ;;  %v2918_v6 = vcombine.low %v1019_v13, %v1027_v41 }
  0xee   : > { %2305 = vmatprep.subr.bf16.mxu0 %v3382_v24  ;;  %v947_v38 = vrot.slane %v3690_v32, 4  ;;  %v1262_v24 = vsel %vm1186_vm2, %v1210_v43, %v1160_v49  ;;  %v3752_v43 = vpop.permute.xlu0 %1145 }
  0xef   : > { %v2967_v5 = vcombine.high %v1254_v53, %v1262_v24  ;;  %v2966_v23 = vcombine.low %v1254_v53, %v1262_v24  ;;  %v3120_v24 = vld [vmem:[#allocation3 + $0x28] ss:$76 sps:$4 sm:$0xff]  }
  0xf0   : > { %2347 = vmatpush1.bf16.msra.mxu1 %v3443_v31  ;;  %v1197_v31 = vsel %vm1186_vm2, %v1142_v59, %v1196_v29  ;;  %v964_v59 = vsel %vm951_vm3, %v3667_v25, %v3705_v4  ;;  %v2919_v29 = vcombine.high %v1019_v13, %v1027_v41 }
  0xf1   : > { %2362 = vmatprep.subr.bf16.mxu1 %v2951_v60  ;;  %2306 = vmatpush1.bf16.msra.mxu0 %v3386_v26  ;;  %v3710_v26 = vsel %vm949_vm1, %v946_v58, %v947_v38  ;;  %v3717_v42 = vcombine.high %v1197_v31, %v1213_v47  ;;  %v1164_v11 = vpop.permute.xlu1 %1163 }
  0xf2   : > { %2321 = vmatprep.subr.bf16.mxu0 %v3614_v37  ;;  %v977_v37 = vsel %vm949_vm1, %v945_v12, %v946_v58  ;;  %v980_v49 = vsel %vm951_vm3, %v926_v55, %v3710_v26  ;;  %v961_v12 = vsel %vm949_vm1, %v936_v10, %v937_v36  ;;  %v1183_v48 = vrot.slane %v1164_v11, 4 }
  0xf3   : > { %v978_v27 = vsel %vm951_vm3, %v3579_v9, %v977_v37  ;;  %v3737_v35 = vcombine.high %v964_v59, %v980_v49  ;;  %v1028_v44 = vsel %vm951_vm3, %v977_v37, %v926_v55  ;;  %v962_v10 = vsel %vm951_vm3, %v3556_v62, %v961_v12  ;;  %v3757_v9 = vpop.permute.xlu0 %1147 }
  0xf4   : > { %2363 = vmatpush2.bf16.msra.mxu1 %v2950_v57  ;;  %v2905_v39 = vcombine.high %v962_v10, %v978_v27  ;;  %v1020_v0 = vsel %vm951_vm3, %v961_v12, %v3667_v25  ;;  %v3754_v2 = vcombine.low %v964_v59, %v980_v49  ;;  %v2904_v3 = vcombine.low %v962_v10, %v978_v27 }
  0xf5   : > { %2414 = vmatprep.subr.bf16.mxu1 %v2969_v63  ;;  %2322 = vmatpush2.bf16.msra.mxu0 %v3628_v45  ;;  %v3731_v45 = vcombine.low %v1197_v31, %v1213_v47  ;;  %v2921_v1 = vcombine.high %v1020_v0, %v1028_v44  ;;  %v2920_v62 = vcombine.low %v1020_v0, %v1028_v44  ;;  %v1174_v55 = vrot.slane %v3752_v43, 4  ;;  %v3778_v36 = vpop.permute.xlu1 %1165 }
  0xf6   : > { %2373 = vmatprep.subr.bf16.mxu0 %v2967_v5  ;;  %v2887_v25 = vcombine.high %v3331_v15, %v3337_v16 }
  0xf7   : > { %2365 = vmatmul.mubr.bf16.vlgmr.msra.gmra.mxu1 %v3594_v46  ;;  %v3767_v53 = vpop.permute.xlu0 %911 }
  0xf8   : > { %2415 = vmatpush1.bf16.msra.mxu1 %v2968_v8  ;;  %2995 = vmatprep.mubr.msk.bf16.mxu1 %vm2205_vm0, %v3415_v30  ;;  %v939_v44 = vrot.slane %v3767_v53, 4 }
  0xf9   : > { %2324 = vmatmul.mubr.bf16.vlgmr.msra.gmra.mxu0 %v3594_v46  ;;  %2416 = vmatprep.subr.bf16.mxu1 %v3717_v42  ;;  %v930_v37 = vpop.permute.xlu1 %929 }
  0xfa   : > { %2374 = vmatpush1.bf16.msra.mxu0 %v2966_v23  ;;  %2994 = vmatprep.mubr.msk.bf16.mxu0 %vm2205_vm0, %v3415_v30  ;;  %v948_v27 = vrot.slane %v930_v37, 4 }
  0xfb   : > { %2375 = vmatprep.subr.bf16.mxu0 %v2951_v60  ;;  %v2888_v60 = vcombine.low %v3340_v17, %v3343_v18  ;;  %v1214_v17 = vsel %vm949_vm1, %v1182_v28, %v1183_v48  ;;  %v1198_v18 = vsel %vm949_vm1, %v1173_v52, %v1174_v55  ;;  %v3095_v58 = vpop.permute.xlu0 %3094 }
  0xfc   : > { %2417 = vmatpush1.bf16.msra.mxu1 %v3731_v45  ;;  %v1199_v63 = vsel %vm1186_vm2, %v3653_v40, %v1198_v18  ;;  %v1215_v28 = vsel %vm1186_vm2, %v3655_v51, %v1214_v17  ;;  %v3097_v31 = vunpack.i.h.bf16 %v3095_v58  ;;  %v3096_v52 = vunpack.i.l.bf16 %v3095_v58 }
  0xfd   : > { %2418 = vmatprep.subr.bf16.mxu1 %v3737_v35  ;;  %v2955_v8 = vcombine.high %v1199_v63, %v1215_v28  ;;  %v1264_v49 = vsel %vm1186_vm2, %v1214_v17, %v1164_v11  ;;  %v1256_v12 = vsel %vm1186_vm2, %v1198_v18, %v3752_v43 }
  0xfe   : > { %2376 = vmatpush1.bf16.msra.mxu0 %v2950_v57  ;;  %v3121_v57 = vld [vmem:[#allocation3 + $0x2c] ss:$76 sps:$4 sm:$0xff]   ;;  %v1070_v23 = vrot.slane %v3097_v31, 4  ;;  %v1069_v59 = vrot.slane %v3096_v52, 4 }
  0xff   : > { %2377 = vmatprep.subr.bf16.mxu0 %v2905_v39  ;;  %v3128_v31 = vld [vmem:[#allocation3 + $0x38] ss:$76 sps:$4 sm:$0xff]  }
 0x100   : > { %2419 = vmatpush1.bf16.msra.mxu1 %v3754_v2  ;;  %v1073_v41 = vsel %vm949_vm1, %v948_v27, %v1070_v23  ;;  %v1071_v0 = vsel %vm949_vm1, %v939_v44, %v1069_v59 }
 0x101   : > { %2420 = vmatprep.subr.bf16.mxu1 %v2921_v1  ;;  %v2971_v1 = vcombine.high %v1256_v12, %v1264_v49 }
 0x102   : > { %2378 = vmatpush1.bf16.msra.mxu0 %v2904_v3 }
 0x103   : > { %2379 = vmatprep.subr.bf16.mxu0 %v2919_v29  ;;  %v2970_v29 = vcombine.low %v1256_v12, %v1264_v49 }
 0x104   : > { %2421 = vmatpush1.bf16.msra.mxu1 %v2920_v62  ;;  %v1072_v62 = vsel %vm951_vm3, %v3767_v53, %v1071_v0 }
 0x105   : > { %2422 = vmatprep.subr.bf16.mxu1 %v2905_v39 }
 0x106   : > { %2380 = vmatpush1.bf16.msra.mxu0 %v2918_v6 }
 0x107   : > { %2381 = vmatprep.subr.bf16.mxu0 %v3634_v56  ;;  %v2886_v56 = vcombine.low %v3331_v15, %v3337_v16  ;;  %v1184_v15 = vrot.slane %v3778_v36, 4  ;;  %v1175_v16 = vrot.slane %v3757_v9, 4 }
 0x108   : > { %2423 = vmatpush1.bf16.msra.mxu1 %v2904_v3  ;;  %v965_v3 = vsel %vm949_vm1, %v938_v14, %v939_v44 }
 0x109   : > { %2424 = vmatprep.subr.bf16.mxu1 %v2889_v7  ;;  %v1216_v47 = vsel %vm949_vm1, %v1183_v48, %v1184_v15  ;;  %v1200_v5 = vsel %vm949_vm1, %v1174_v55, %v1175_v16  ;;  %v1021_v48 = vsel %vm951_vm3, %v3705_v4, %v3669_v61  ;;  %v1029_v55 = vsel %vm951_vm3, %v3710_v26, %v3690_v32 }
 0x10a   : > { %2382 = vmatpush1.bf16.msra.mxu0 %v3643_v54  ;;  %v3118_v54 = vld [vmem:[#allocation3 + $0x24] ss:$76 sps:$4 sm:$0xff]   ;;  %v1265_v40 = vsel %vm1186_vm2, %v1216_v47, %v3778_v36  ;;  %v1257_v51 = vsel %vm1186_vm2, %v1200_v5, %v3757_v9  ;;  %v1201_v39 = vsel %vm1186_vm2, %v3752_v43, %v1200_v5  ;;  %v1217_v13 = vsel %vm1186_vm2, %v1164_v11, %v1216_v47  ;;  %v3126_v47 = vld [vmem:[#allocation3 + $0x34] ss:$76 sps:$4 sm:$0xff]  }
 0x10b   : > { %2383 = vmatprep.subr.bf16.mxu0 %v2887_v25  ;;  %v2973_v10 = vcombine.high %v1257_v51, %v1265_v40  ;;  %v3816_v43 = vcombine.high %v1201_v39, %v1217_v13  ;;  %v3825_v14 = vcombine.low %v1201_v39, %v1217_v13  ;;  %v1022_v11 = vsel %vm951_vm3, %v965_v3, %v3767_v53 }
 0x10c   : > { %2425 = vmatpush1.bf16.msra.mxu1 %v2888_v60  ;;  %v2922_v17 = vcombine.low %v1021_v48, %v1029_v55  ;;  %v2891_v4 = vcombine.high %v3352_v19, %v3355_v20  ;;  %v2892_v26 = vcombine.low %v3362_v22, %v3360_v21 }
 0x10d   : > { %2426 = vmatprep.subr.bf16.mxu1 %v3123_v50 }
 0x10e   : > { %2384 = vmatpush1.bf16.msra.mxu0 %v2886_v56 }
 0x10f   : > { %2385 = vmatprep.subr.bf16.mxu0 %v3120_v24  ;;  %v2923_v24 = vcombine.high %v1021_v48, %v1029_v55 }
 0x110   : > { %2427 = vmatpush1.bf16.msra.mxu1 %v3121_v57  ;;  %v3100_v57 = vpop.permute.xlu1 %3099 }
 0x111   : > { %2428 = vmatprep.subr.bf16.mxu1 %v2887_v25  ;;  %v3102_v18 = vunpack.i.h.bf16 %v3100_v57 }
 0x112   : > { %2386 = vmatpush1.bf16.msra.mxu0 %v3118_v54 }
 0x113   : > { %2387 = vmatprep.subr.bf16.mxu0 %v3455_v34  ;;  %v2954_v34 = vcombine.low %v1199_v63, %v1215_v28  ;;  %v1305_v54 = vrot.slane %v3102_v18, 4  ;;  %v3131_v63 = vld [vmem:[#allocation3 + $0x40] ss:$76 sps:$4 sm:$0xff]   ;;  %v2890_v28 = vcombine.low %v3352_v19, %v3355_v20  ;;  %v3135_v19 = vld [vmem:[#allocation3 + $0x38] ss:$76 sps:$4 sm:$0xff]  }
 0x114   : > { %2429 = vmatpush1.bf16.msra.mxu1 %v2886_v56 }
 0x115   : > { %2444 = vmatprep.subr.bf16.mxu1 %v2955_v8  ;;  %v1308_v52 = vsel %vm949_vm1, %v1184_v15, %v1305_v54  ;;  %v3132_v15 = vld [vmem:[#allocation3 + $0x30] ss:$76 sps:$4 sm:$0xff]  }
 0x116   : > { %2388 = vmatpush1.bf16.msra.mxu0 %v3451_v33  ;;  %v2972_v33 = vcombine.low %v1257_v51, %v1265_v40  ;;  %v1309_v5 = vsel %vm1186_vm2, %v3778_v36, %v1308_v52 }
 0x117   : > { %2403 = vmatprep.subr.bf16.mxu0 %v3717_v42  ;;  %v981_v42 = vsel %vm949_vm1, %v947_v38, %v948_v27  ;;  %v966_v38 = vsel %vm951_vm3, %v3669_v61, %v965_v3  ;;  %v3101_v61 = vunpack.i.l.bf16 %v3100_v57 }
 0x118   : > { %2445 = vmatpush2.bf16.msra.mxu1 %v2954_v34  ;;  %v982_v6 = vsel %vm951_vm3, %v3690_v32, %v981_v42  ;;  %v1030_v25 = vsel %vm951_vm3, %v981_v42, %v930_v37  ;;  %v2893_v32 = vcombine.high %v3362_v22, %v3360_v21  ;;  %v3137_v22 = vld [vmem:[#allocation3 + $0x3c] ss:$76 sps:$4 sm:$0xff]  }
 0x119   : > { %2496 = vmatprep.subr.bf16.mxu1 %v2973_v10  ;;  %v2909_v60 = vcombine.high %v966_v38, %v982_v6  ;;  %v2925_v50 = vcombine.high %v1022_v11, %v1030_v25  ;;  %v2908_v56 = vcombine.low %v966_v38, %v982_v6  ;;  %v2924_v53 = vcombine.low %v1022_v11, %v1030_v25 }
 0x11a   : > { %2404 = vmatpush2.bf16.msra.mxu0 %v3731_v45  ;;  %v1074_v45 = vsel %vm951_vm3, %v930_v37, %v1073_v41  ;;  %v1304_v58 = vrot.slane %v3101_v61, 4 }
 0x11b   : > { %2455 = vmatprep.subr.bf16.mxu0 %v2971_v1  ;;  %2447 = vmatmul.mubr.bf16.vlgmr.msra.gmra.mxu1 %v3594_v46  ;;  %v2941_v7 = vcombine.high %v1072_v62, %v1074_v45 }
 0x11c   : > { %2497 = vmatpush1.bf16.msra.mxu1 %v2972_v33  ;;  %2997 = vmatprep.mubr.msk.bf16.mxu1 %vm2205_vm0, %v3415_v30  ;;  %v1306_v21 = vsel %vm949_vm1, %v1175_v16, %v1304_v58 }
 0x11d   : > { %2406 = vmatmul.mubr.bf16.vlgmr.msra.gmra.mxu0 %v3594_v46  ;;  %2498 = vmatprep.subr.bf16.mxu1 %v3816_v43  ;;  %v1307_v20 = vsel %vm1186_vm2, %v3757_v9, %v1306_v21  ;;  %v3868_v9 = vpop.permute.xlu0 %1476 }
 0x11e   : > { %2456 = vmatpush1.bf16.msra.mxu0 %v2970_v29  ;;  %2996 = vmatprep.mubr.msk.bf16.mxu0 %vm2205_vm0, %v3415_v30  ;;  %v2940_v30 = vcombine.low %v1072_v62, %v1074_v45  ;;  %v2989_v16 = vcombine.high %v1307_v20, %v1309_v5 }
 0x11f   : > { %2457 = vmatprep.subr.bf16.mxu0 %v2955_v8  ;;  %v2988_v8 = vcombine.low %v1307_v20, %v1309_v5 }
 0x120   : > { %2499 = vmatpush1.bf16.msra.mxu1 %v3825_v14 }
 0x121   : > { %2500 = vmatprep.subr.bf16.mxu1 %v2941_v7 }
 0x122   : > { %2458 = vmatpush1.bf16.msra.mxu0 %v2954_v34 }
 0x123   : > { %2459 = vmatprep.subr.bf16.mxu0 %v2909_v60 }
 0x124   : > { %2501 = vmatpush1.bf16.msra.mxu1 %v2940_v30 }
 0x125   : > { %2502 = vmatprep.subr.bf16.mxu1 %v2925_v50 }
 0x126   : > { %2460 = vmatpush1.bf16.msra.mxu0 %v2908_v56 }
 0x127   : > { %2461 = vmatprep.subr.bf16.mxu0 %v2923_v24 }
 0x128   : > { %2503 = vmatpush1.bf16.msra.mxu1 %v2924_v53 }
 0x129   : > { %2504 = vmatprep.subr.bf16.mxu1 %v2909_v60 }
 0x12a   : > { %2462 = vmatpush1.bf16.msra.mxu0 %v2922_v17 }
 0x12b   : > { %2463 = vmatprep.subr.bf16.mxu0 %v3737_v35  ;;  %v3129_v35 = vld [vmem:[#allocation3 + $0x3c] ss:$76 sps:$4 sm:$0xff]  }
 0x12c   : > { %2505 = vmatpush1.bf16.msra.mxu1 %v2908_v56 }
 0x12d   : > { %2506 = vmatprep.subr.bf16.mxu1 %v2893_v32 }
 0x12e   : > { %2464 = vmatpush1.bf16.msra.mxu0 %v3754_v2  ;;  %v3134_v2 = vld [vmem:[#allocation3 + $0x34] ss:$76 sps:$4 sm:$0xff]  }
 0x12f   : > { %2465 = vmatprep.subr.bf16.mxu0 %v2891_v4 }
 0x130   : > { %2507 = vmatpush1.bf16.msra.mxu1 %v2892_v26 }
 0x131   : > { %2508 = vmatprep.subr.bf16.mxu1 %v3131_v63 }
 0x132   : > { %2466 = vmatpush1.bf16.msra.mxu0 %v2890_v28 }
 0x133   : > { %2467 = vmatprep.subr.bf16.mxu0 %v3128_v31 }
 0x134   : > { %2509 = vmatpush1.bf16.msra.mxu1 %v3129_v35 }
 0x135   : > { %2510 = vmatprep.subr.bf16.mxu1 %v3137_v22 }
 0x136   : > { %2468 = vmatpush1.bf16.msra.mxu0 %v3126_v47 }
 0x137   : > { %2469 = vmatprep.subr.bf16.mxu0 %v3134_v2 }
 0x138   : > { %2511 = vmatpush1.bf16.msra.mxu1 %v3135_v19 }
 0x139   : > { %2526 = vmatprep.subr.bf16.mxu1 %v2989_v16 }
 0x13a   : > { %2470 = vmatpush1.bf16.msra.mxu0 %v3132_v15 }
 0x13b   : > { %2485 = vmatprep.subr.bf16.mxu0 %v3816_v43 }
 0x13c   : > { %2527 = vmatpush2.bf16.msra.mxu1 %v2988_v8 }
 0x13e   : > { %2486 = vmatpush2.bf16.msra.mxu0 %v3825_v14 }
 0x13f   : > { %2529 = vmatmul.mubr.bf16.vlgmr.msra.gmra.mxu1 %v3594_v46 }
 0x141   : > { %2488 = vmatmul.mubr.bf16.vlgmr.msra.gmra.mxu0 %v3594_v46 }
 0x193   : > { %v2284_v36 = vpop.f32.mrf.mxu1  ;;  %v2243_v51 = vpop.f32.mrf.mxu0 }
 0x194   : > { %v2285_v40 = vadd.f32 %v2284_v36, %v3868_v9  ;;  %v2244_v23 = vadd.f32 %v2243_v51, %v3868_v9 }
 0x195   : > { %v2286_v37 = vpop.f32.mrf.mxu1  ;;  %v2245_v12 = vpop.f32.mrf.mxu0 }
 0x196   : > { %v2287_v59 = vadd.f32 %v2286_v37, %v3868_v9  ;;  %v2539_v49 = vmax.f32 %v2285_v40, 0.0  ;;  %v2246_v27 = vadd.f32 %v2245_v12, %v3868_v9  ;;  %v2537_v46 = vmax.f32 %v2244_v23, 0.0 }
 0x197   : > { %v2288_v34 = vpop.f32.mrf.mxu1  ;;  %v2247_v10 = vpop.f32.mrf.mxu0 }
 0x198   : > { %v2540_v44 = vmax.f32 %v2287_v59, 0.0  ;;  %v2538_v13 = vmax.f32 %v2246_v27, 0.0 }
 0x199   : > { %v2289_v39 = vpop.f32.mrf.mxu1  ;;  %v2248_v0 = vpop.f32.mrf.mxu0 }
 0x19a   : > { %v3010_v41 = vpack.c.bf16 %v2540_v44, %v2539_v49  ;;  %v3009_v1 = vpack.c.bf16 %v2538_v13, %v2537_v46 }
 0x19c   : > { %2618 = vst [vmem:[%s3878_s13 + $0x8] sm:$0xff] %v3010_v41  ;;  %2617 = vst [vmem:[%s3878_s13] sm:$0xff] %v3009_v1 }
 0x1b7   : > { %v2366_v33 = vpop.f32.mrf.mxu1 }
 0x1b8   : > { %v2367_v42 = vadd.f32 %v2366_v33, %v3868_v9 }
 0x1b9   : > { %v2325_v3 = vpop.f32.mrf.mxu0  ;;  %v2368_v43 = vpop.f32.mrf.mxu1 }
 0x1ba   : > { %v2326_v29 = vadd.f32 %v2325_v3, %v3868_v9  ;;  %v2543_v62 = vmax.f32 %v2367_v42, 0.0  ;;  %v2369_v45 = vadd.f32 %v2368_v43, %v3868_v9 }
 0x1bb   : > { %v2327_v14 = vpop.f32.mrf.mxu0  ;;  %v2370_v38 = vpop.f32.mrf.mxu1 }
 0x1bc   : > { %v2541_v6 = vmax.f32 %v2326_v29, 0.0  ;;  %v2328_v7 = vadd.f32 %v2327_v14, %v3868_v9  ;;  %v2544_v25 = vmax.f32 %v2369_v45, 0.0 }
 0x1bd   : > { %v2329_v11 = vpop.f32.mrf.mxu0  ;;  %v2371_v60 = vpop.f32.mrf.mxu1 }
 0x1be   : > { %v2542_v48 = vmax.f32 %v2328_v7, 0.0  ;;  %v3012_v55 = vpack.c.bf16 %v2544_v25, %v2543_v62 }
 0x1bf   : > { %v2330_v30 = vpop.f32.mrf.mxu0 }
 0x1c0   : > { %v3011_v50 = vpack.c.bf16 %v2542_v48, %v2541_v6  ;;  %2620 = vst [vmem:[%s3878_s13 + $0x18] sm:$0xff] %v3012_v55 }
 0x1c2   : > { %2619 = vst [vmem:[%s3878_s13 + $0x10] sm:$0xff] %v3011_v50 }
 0x1db   : > { %v2448_v56 = vpop.f32.mrf.mxu1 }
 0x1dc   : > { %v2449_v24 = vadd.f32 %v2448_v56, %v3868_v9 }
 0x1dd   : > { %v2407_v53 = vpop.f32.mrf.mxu0  ;;  %v2450_v57 = vpop.f32.mrf.mxu1 }
 0x1de   : > { %v2408_v17 = vadd.f32 %v2407_v53, %v3868_v9  ;;  %v2547_v18 = vmax.f32 %v2449_v24, 0.0  ;;  %v2451_v61 = vadd.f32 %v2450_v57, %v3868_v9 }
 0x1df   : > { %v2409_v32 = vpop.f32.mrf.mxu0  ;;  %v2452_v4 = vpop.f32.mrf.mxu1 }
 0x1e0   : > { %v2545_v26 = vmax.f32 %v2408_v17, 0.0  ;;  %v2410_v54 = vadd.f32 %v2409_v32, %v3868_v9  ;;  %v2548_v58 = vmax.f32 %v2451_v61, 0.0 }
 0x1e1   : > { %v2411_v63 = vpop.f32.mrf.mxu0  ;;  %v2453_v28 = vpop.f32.mrf.mxu1 }
 0x1e2   : > { %v2546_v31 = vmax.f32 %v2410_v54, 0.0  ;;  %v3014_v35 = vpack.c.bf16 %v2548_v58, %v2547_v18 }
 0x1e3   : > { %v2412_v52 = vpop.f32.mrf.mxu0 }
 0x1e4   : > { %v3013_v21 = vpack.c.bf16 %v2546_v31, %v2545_v26  ;;  %2622 = vst [vmem:[%s3878_s13 + $0x28] sm:$0xff] %v3014_v35 }
 0x1e6   : > { %2621 = vst [vmem:[%s3878_s13 + $0x20] sm:$0xff] %v3013_v21 }
 0x1ff   : > { %v2530_v22 = vpop.f32.mrf.mxu1 }
 0x200   : > { %v2531_v47 = vadd.f32 %v2530_v22, %v3868_v9 }
 0x201   : > { %v2489_v2 = vpop.f32.mrf.mxu0  ;;  %v2532_v19 = vpop.f32.mrf.mxu1 }
 0x202   : > { %v2490_v20 = vadd.f32 %v2489_v2, %v3868_v9  ;;  %v2533_v5 = vadd.f32 %v2532_v19, %v3868_v9  ;;  %v2551_v8 = vmax.f32 %v2531_v47, 0.0 }
 0x203   : > { %v2491_v15 = vpop.f32.mrf.mxu0  ;;  %v2534_v16 = vpop.f32.mrf.mxu1 }
 0x204   : > { %v2492_v36 = vadd.f32 %v2491_v15, %v3868_v9  ;;  %v2552_v40 = vmax.f32 %v2533_v5, 0.0  ;;  %v2549_v23 = vmax.f32 %v2490_v20, 0.0 }
 0x205   : > { %v2493_v51 = vpop.f32.mrf.mxu0  ;;  %v2535_v37 = vpop.f32.mrf.mxu1 }
 0x206   : > { %v2550_v59 = vmax.f32 %v2492_v36, 0.0  ;;  %v3016_v49 = vpack.c.bf16 %v2552_v40, %v2551_v8 }
 0x207   : > { %v2494_v12 = vpop.f32.mrf.mxu0 }
 0x208   : > { %v3015_v34 = vpack.c.bf16 %v2550_v59, %v2549_v23  ;;  %2624 = vst [vmem:[%s3878_s13 + $0x38] sm:$0xff] %v3016_v49 }
 0x20a   : > { %2623 = vst [vmem:[%s3878_s13 + $0x30] sm:$0xff] %v3015_v34 }
 0x20b PF: > { %s14_s19 = sadd.s32 1, %s3192_s19   ;;  %s3921_s15 = smov %s3180_s16 }
 0x20c   : > { %p11_p12 = scmp.ge.s32.totalorder %s14_s19, 4   ;;  %s3922_s16 = smov %s3277_s24 }
 0x20d   : > { %s3923_s17 = smov %s3188_s18  ;;  %s3924_s18 = smov %s3926_s20 }
 0x20e   :  { %13 = sbr.rel (!%p11_p12) target bundleno = 3 (0x3), region = 245 }

// kernel: enhance_net_dce_pool_forward.9
= control target key start
LH: loop header
LB: loop body
LE: loop exit
PB: predicated region body
PF: predicated region fallthrough
CT: control target
= control target key end

     0   :  { %s2224_s15 = smov 0   ;;  %s2226_s16 = smov 0   ;;  %s2556_s0 = inlined_call_operand.vmem [shape: bf16[2,16,1280], index: 0, kind: input, shape index: {}, may-alias: {0,1}]   ;;  %s2557_s1 = inlined_call_operand.vmem [shape: bf16[2,16,1280], index: 1, kind: input, shape index: {}, may-alias: {0,1}]   ;;  %s2558_s2 = inlined_call_operand.vmem [shape: bf16[8,144], index: 2, kind: input, shape index: {}]   ;;  %s2559_s3 = inlined_call_operand.vmem [shape: f32[8,1], index: 3, kind: input, shape index: {}]   ;;  %s2560_s4 = inlined_call_operand.vmem [shape: bf16[2,8,1024], index: 4, kind: output, shape index: {}]  }
   0x1   :  { %s2228_s17 = smov 0   ;;  %s2230_s18 = smov 0  }
   0x2   :  { %s2232_s19 = smov 0  }
   0x3 LB: > { %s26_s20 = sadd.s32 1, %s2174_s18  ;;  %p42_p1 = scmp.ne.s32.totalorder %s2166_s16, %s2162_s15  ;;  %s2178_s19 = sphi %s2232_s19, %s14_s19   ;;  %s2174_s18 = sphi %s2230_s18, %s2565_s18   ;;  %s2170_s17 = sphi %s2228_s17, %s2564_s17   ;;  %s2166_s16 = sphi %s2226_s16, %s2563_s16   ;;  %s2162_s15 = sphi %s2224_s15, %s2562_s15  }
   0x4   : > { %p28_p0 = scmp.ge.s32.totalorder %s26_s20, 2  ;;  %p43_p2 = scmp.eq.s32.totalorder %s2178_s19, 0 }
   0x5   : > { %s35_s23 = sadd.s32 1, %s2166_s16  ;;  %p1910_p5 = scmp.ge.s32.totalorder %s2178_s19, 2 }
   0x6   : > { %s2567_s20 = smov (%p28_p0, %s26_s20), 0  ;;  %p2255_p3 = por %p43_p2, %p42_p1 }
   0x7   : > { %s30_s22 = ssub.s32 %s2174_s18, %s2567_s20  ;;  %176 = sbr.rel (%p1910_p5) target bundleno = 31 (0x1f), region = 24 }
   0x8   : > { %p33_p4 = scmp.eq.s32.totalorder %s30_s22, 0 }
   0xa   : > { %s2263_s24 = scalar_select %p33_p4, %s2166_s16, %s35_s23  }
   0xc   : > { %179 = sbr.rel (!%p2255_p3) target bundleno = 25 (0x19), region = 28  ;;  %s181_s25 = sand.u32 (%p2255_p3), 1, %s2166_s16  }
   0xd   : > { %s2021_s26 = smul.u32 (%p2255_p3), 80, %s2174_s18  ;;  %s1911_s27 = sshll.u32 (%p2255_p3), %s181_s25, 6 }
   0xe   : > { %s183_s5 = scalar_lea.vmem (%p2255_p3), [#allocation4], %s1911_s27   ;;  %s2188_s8 = smov (%p2255_p3), 0  }
   0xf   : > { %s193_s30 = scalar_lea.vmem (%p2255_p3), %s2556_s0, %s2021_s26   ;;  %s2180_s6 = smov (%p2255_p3), %s183_s5  }
  0x10   : > { %s2184_s7 = smov (%p2255_p3), %s193_s30   ;;  %s2192_s9 = smov (%p2255_p3), 0  }
  0x11 LB: >> { %v392_v0 = vld [vmem:[%s2186_s7] sm:$0xff]  ;;  %v394_v1 = vld [vmem:[%s2186_s7 + $0x28] sm:$0xff]  ;;  %s396_s10 = sadd.s32 1, %s2190_s8  ;;  %s386_s9 = sadd.s32 1, %s2194_s9   ;;  %s2194_s9 = sphi %s2192_s9, %s386_s9   ;;  %s2190_s8 = sphi %s2188_s8, %s2189_s8   ;;  %s2186_s7 = sphi %s2184_s7, %s401_s7   ;;  %s2182_s6 = sphi %s2180_s6, %s402_s6  }
  0x12   : >> { %393 = vst [vmem:[%s2182_s6] sm:$0xff] %v392_v0  ;;  %395 = vst [vmem:[%s2182_s6 + $0x20] sm:$0xff] %v394_v1  ;;  %p397_p6 = scmp.ge.s32.totalorder %s396_s10, 4  ;;  %p385_p7 = scmp.ge.s32.totalorder %s386_s9, 4 }
  0x14   : >> { %s2569_s10 = smov (%p397_p6, %s396_s10), 0  ;;  %388 = sbr.rel (!%p385_p7) target bundleno = 17 (0x11), region = 212 }
  0x15   : >> { %s1915_s11 = sshll.u32 %s2569_s10, 3  ;;  %s2189_s8 = smov %s2569_s10  }
  0x16   : >> { %s401_s7 = scalar_lea.vmem %s193_s30, %s1915_s11   ;;  %s402_s6 = scalar_lea.vmem %s183_s5, %s1915_s11 [#allocation4]  }
  0x19 PF: > { %607 = sbr.rel (!%p2255_p3) target bundleno = 31 (0x1f), region = 94  ;;  %s609_s12 = sand.u32 (%p2255_p3), 1, %s2166_s16  }
  0x1a   : > { %s1924_s13 = smul.u32 (%p2255_p3), 80, %s2174_s18  ;;  %s1923_s14 = sshll.u32 (%p2255_p3), %s609_s12, 4 }
  0x1b   : > { %s611_s26 = scalar_lea.vmem (%p2255_p3), [#allocation5], %s1923_s14 }
  0x1c   : > { %s1778_s25 = scalar_lea.vmem (%p2255_p3), %s2557_s1, %s1924_s13 }
  0x1d   : > { %v1925_v2 = vld [vmem:[%s1778_s25 + $0x20] sm:$0xff] (%p2255_p3)  ;;  %v1926_v3 = vld [vmem:[%s1778_s25 + $0x48] sm:$0xff] (%p2255_p3) }
  0x1e   : > { %650 = vst [vmem:[%s611_s26] sm:$0xff] %v1925_v2  ;;  %652 = vst [vmem:[%s611_s26 + $0x8] sm:$0xff] %v1926_v3 }
  0x1f PF: > { %p1927_p8 = scmp.ge.s32.totalorder %s2178_s19, 1  ;;  %p657_p9 = scmp.lt.s32.totalorder %s2178_s19, 3 }
  0x21   : > { %p658_p10 = pnand %p1927_p8, %p657_p9 }
  0x22   : > { %s664_s21 = sand.u32 (!%p658_p10), 1, %s2162_s15   ;;  %s2197_s30 = smov (!%p658_p10), 126  }
  0x23   : > { %661 = sbr.rel (%p658_p10) target bundleno = 450 (0x1c2), region = 132  ;;  %s1928_s27 = sshll.u32 (!%p658_p10), %s664_s21, 6 }
  0x24   : > { %s1929_s28 = sshll.u32 (!%p658_p10), %s664_s21, 4  ;;  %s666_s29 = scalar_lea.vmem (!%p658_p10), [#allocation4], %s1928_s27 }
  0x25   : > { %s673_s15 = scalar_lea.vmem (!%p658_p10), [#allocation5], %s1929_s28  ;;  %s2198_s5 = smov (!%p658_p10), 127  }
  0x26   : > { %p713_p11 = scmp.lt.s32.totalorder (!%p658_p10), %s2170_s17, 1 }
  0x28   : > { %v2196_v4 = vmov 0   ;;  %v725_v5 = vld [vmem:[%s666_s29 + $0x10] sm:$0xff]  ;;  %v2283_v6 = vld [vmem:[%s666_s29] sm:$0xff]  ;;  %v724_v8 = vld [vmem:[%s666_s29 + $0x8] sm:$0xff]  ;;  %vm1501_vm0 = vcmask 130048   ;;  %vm845_vm1 = vcmask 1043456  }
  0x29   : > { %743 = vst [vmem:[#allocation3 + $0x28] sm:$0xf] %v2196_v4  ;;  %744 = vst [vmem:[#allocation3 + $0x54] sm:$0xf] %v2196_v4  ;;  %2107 = vset.pattern.permute.xlu0 %v2196_v4  ;;  %v2285_v7 = vld [vmem:[%s666_s29 + $0x20] sm:$0xff]  ;;  %951 = vrot.lane.b32.xlu1 %v725_v5, %s2197_s30  ;;  %v729_v9 = vld [vmem:[%s666_s29 + $0x30] sm:$0xff] }
  0x2a   : > { %733 = vst [vmem:[#allocation3 + $0x10] sm:$0xff] %v725_v5  ;;  %731 = vst [vmem:[#allocation3] sm:$0xff] %v2283_v6  ;;  %947 = vrot.lane.b32.xlu0 %v2283_v6, %s2197_s30  ;;  %v728_v10 = vld [vmem:[%s666_s29 + $0x28] sm:$0xff]  ;;  %v726_v11 = vld [vmem:[%s666_s29 + $0x18] sm:$0xff]  ;;  %v2307_v16 = vcombine.high %v725_v5, %v729_v9  ;;  %v2311_v18 = vcombine.low %v725_v5, %v729_v9  ;;  %v1935_v20 = vcombine.high %v2283_v6, %v2285_v7  ;;  %vm978_vm2 = vcmask 1031168   ;;  %s2571_s17 = smov (!%p713_p11, %s2170_s17), 1 }
  0x2b   : > { %735 = vst [vmem:[#allocation3 + $0x2c] sm:$0xff] %v2285_v7  ;;  %732 = vst [vmem:[#allocation3 + $0x8] sm:$0xff] %v724_v8  ;;  %v730_v12 = vld [vmem:[%s666_s29 + $0x38] sm:$0xff]  ;;  %v2294_v14 = vld [vmem:[%s673_s15] sm:$0xff]  ;;  %v2305_v15 = vcombine.high %v724_v8, %v728_v10  ;;  %v2309_v17 = vcombine.low %v724_v8, %v728_v10  ;;  %v1934_v24 = vcombine.low %v2283_v6, %v2285_v7  ;;  %vm847_vm3 = vcmask 1039360   ;;  %s2016_s10 = sshll.u32 %s2571_s17, 5 }
  0x2c   : > { %737 = vst [vmem:[#allocation3 + $0x3c] sm:$0xff] %v729_v9  ;;  %736 = vst [vmem:[#allocation3 + $0x34] sm:$0xff] %v728_v10  ;;  %v2292_v13 = vld [vmem:[%s673_s15 + $0x8] sm:$0xff]  ;;  %v2339_v29 = vcombine.low %v726_v11, %v730_v12  ;;  %v2341_v30 = vcombine.high %v726_v11, %v730_v12  ;;  %s720_s13 = scalar_lea.vmem %s2560_s4, %s2016_s10 }
  0x2d   : > { %734 = vst [vmem:[#allocation3 + $0x18] sm:$0xff] %v726_v11  ;;  %738 = vst [vmem:[#allocation3 + $0x44] sm:$0xff] %v730_v12  ;;  %957 = vrot.lane.b32.xlu1 %v2285_v7, %s2197_s30  ;;  %v2328_v27 = vld [vmem:[%s2558_s2] sm:$0xff]  ;;  %v1956_v31 = vcombine.low %v2294_v14, %v2292_v13  ;;  %v1957_v32 = vcombine.high %v2294_v14, %v2292_v13 }
  0x2e   : > { %742 = vst [vmem:[#allocation3 + $0x4c] sm:$0xff] %v2292_v13  ;;  %741 = vst [vmem:[#allocation3 + $0x20] sm:$0xff] %v2294_v14  ;;  %949 = vrot.lane.b32.xlu0 %v724_v8, %s2197_s30  ;;  %v2333_v28 = vcombine.high %v2328_v27, %v2328_v27  ;;  %v1129_v33 = vld [vmem:[%s2559_s3] sm:$0xff] }
  0x30   : > { %v930_v19 = vld [vmem:[#allocation3 + $0x28] sm:$0xf]  ;;  %v936_v21 = vld [vmem:[#allocation3 + $0x54] sm:$0xf]  ;;  %2006 = vmatprep.mubr.msk.bf16.mxu0 %vm1501_vm0, %v2333_v28  ;;  %2007 = vmatprep.mubr.msk.bf16.mxu1 %vm1501_vm0, %v2333_v28 }
  0x31   : > { %961 = vrot.lane.b32.xlu1 %v729_v9, %s2197_s30  ;;  %v798_v22 = vld [vmem:[#allocation3 + $0x28] sm:$0xf]  ;;  %v804_v23 = vld [vmem:[#allocation3 + $0x54] sm:$0xf]  ;;  %v2102_v25 = vpack.i.bf16 %v936_v21, %v930_v19 }
  0x32   : > { %959 = vrot.lane.b32.xlu0 %v728_v10, %s2197_s30  ;;  %v2097_v26 = vpack.i.bf16 %v804_v23, %v798_v22 }
  0x35   : > { %819 = vrot.lane.b32.xlu1 %v725_v5, %s2198_s5 }
  0x36   : > { %817 = vrot.lane.b32.xlu0 %v724_v8, %s2198_s5 }
  0x39   : > { %827 = vrot.lane.b32.xlu1 %v728_v10, %s2198_s5 }
  0x3a   : > { %821 = vrot.lane.b32.xlu0 %v726_v11, %s2198_s5 }
  0x3d   : > { %831 = vrot.lane.b32.xlu1 %v730_v12, %s2198_s5 }
  0x3e   : > { %829 = vrot.lane.b32.xlu0 %v729_v9, %s2198_s5 }
  0x41   : > { %825 = vrot.lane.b32.xlu1 %v2285_v7, %s2198_s5 }
  0x42   : > { %815 = vrot.lane.b32.xlu0 %v2283_v6, %s2198_s5 }
  0x45   : > { %963 = vrot.lane.b32.xlu1 %v730_v12, %s2197_s30 }
  0x46   : > { %953 = vrot.lane.b32.xlu0 %v726_v11, %s2197_s30 }
  0x49   : > { %965 = vrot.lane.b32.xlu1 %v2292_v13, %s2197_s30 }
  0x4a   : > { %955 = vrot.lane.b32.xlu0 %v2294_v14, %s2197_s30 }
  0x4d   : > { %833 = vrot.lane.b32.xlu1 %v2292_v13, %s2198_s5 }
  0x4e   : > { %823 = vrot.lane.b32.xlu0 %v2294_v14, %s2198_s5 }
  0x51   : > { %2103 = vrot.lane.b32.xlu1 %v2102_v25, %s2197_s30 }
  0x52   : > { %2098 = vrot.lane.b32.xlu0 %v2097_v26, %s2198_s5 }
  0x56   : > { %1132 = vperm.xlu0 %2107, %v1129_v33  }
  0x9b   : > { %v2350_v34 = vpop.permute.xlu1 %951 }
  0x9c   : > { %v948_v35 = vpop.permute.xlu0 %947  ;;  %v969_v39 = vrot.slane %v2350_v34, 4 }
  0x9d   : > { %v967_v40 = vrot.slane %v948_v35, 4 }
  0x9f   : > { %v958_v36 = vpop.permute.xlu1 %957 }
  0xa0   : > { %v950_v37 = vpop.permute.xlu0 %949  ;;  %v972_v45 = vrot.slane %v958_v36, 4 }
  0xa1   : > { %v968_v38 = vrot.slane %v950_v37, 4 }
  0xa3   : > { %v2353_v41 = vpop.permute.xlu1 %961  ;;  %v977_v43 = vsel %vm845_vm1, %v967_v40, %v968_v38  ;;  %v980_v44 = vsel %vm845_vm1, %v968_v38, %v969_v39 }
  0xa4   : > { %v960_v42 = vpop.permute.xlu0 %959  ;;  %v974_v46 = vrot.slane %v2353_v41, 4  ;;  %v1010_v49 = vsel %vm978_vm2, %v977_v43, %v950_v37  ;;  %v1011_v51 = vsel %vm978_vm2, %v980_v44, %v2350_v34  ;;  %v979_v62 = vsel %vm978_vm2, %v948_v35, %v977_v43 }
  0xa5   : > { %v973_v47 = vrot.slane %v960_v42, 4  ;;  %v981_v63 = vsel %vm978_vm2, %v950_v37, %v980_v44 }
  0xa7   : > { %v986_v48 = vsel %vm845_vm1, %v972_v45, %v973_v47  ;;  %v988_v50 = vsel %vm845_vm1, %v973_v47, %v974_v46  ;;  %v820_v52 = vpop.permute.xlu1 %819 }
  0xa8   : > { %v818_v53 = vpop.permute.xlu0 %817  ;;  %v1014_v54 = vsel %vm978_vm2, %v986_v48, %v960_v42  ;;  %v1015_v55 = vsel %vm978_vm2, %v988_v50, %v2353_v41  ;;  %v987_v56 = vsel %vm978_vm2, %v958_v36, %v986_v48  ;;  %v989_v57 = vsel %vm978_vm2, %v960_v42, %v988_v50 }
  0xa9   : > { %v1991_v58 = vcombine.high %v1010_v49, %v1014_v54  ;;  %v1993_v59 = vcombine.high %v1011_v51, %v1015_v55  ;;  %v1990_v60 = vcombine.low %v1010_v49, %v1014_v54  ;;  %v1992_v61 = vcombine.low %v1011_v51, %v1015_v55 }
  0xaa   : > { %v1983_v0 = vcombine.high %v979_v62, %v987_v56  ;;  %v2374_v1 = vcombine.high %v981_v63, %v989_v57  ;;  %v837_v2 = vrot.slane %v820_v52, 4  ;;  %v836_v3 = vrot.slane %v818_v53, 4 }
  0xab   : > { %1505 = vmatprep.subr.bf16.mxu0 %v1991_v58  ;;  %1546 = vmatprep.subr.bf16.mxu1 %v1993_v59  ;;  %v828_v4 = vpop.permute.xlu1 %827  ;;  %v1982_v9 = vcombine.low %v979_v62, %v987_v56  ;;  %v2380_v10 = vcombine.low %v981_v63, %v989_v57 }
  0xac   : > { %1506 = vmatpush1.bf16.msra.mxu0 %v1990_v60  ;;  %1547 = vmatpush1.bf16.msra.mxu1 %v1992_v61  ;;  %v2376_v5 = vpop.permute.xlu0 %821  ;;  %v849_v11 = vsel %vm845_vm1, %v836_v3, %v837_v2  ;;  %v841_v21 = vrot.slane %v828_v4, 4 }
  0xad   : > { %v838_v8 = vrot.slane %v2376_v5, 4  ;;  %1507 = vmatprep.subr.bf16.mxu0 %v1983_v0  ;;  %1548 = vmatprep.subr.bf16.mxu1 %v2374_v1  ;;  %v850_v26 = vsel %vm847_vm3, %v818_v53, %v849_v11  ;;  %v880_v51 = vsel %vm847_vm3, %v849_v11, %v820_v52 }
  0xaf   : > { %v2383_v12 = vpop.permute.xlu1 %831  ;;  %v2389_v22 = vsel %vm845_vm1, %v837_v2, %v838_v8 }
  0xb0   : > { %1508 = vmatpush1.bf16.msra.mxu0 %v1982_v9  ;;  %1549 = vmatpush1.bf16.msra.mxu1 %v2380_v10  ;;  %v830_v19 = vpop.permute.xlu0 %829  ;;  %v843_v23 = vrot.slane %v2383_v12, 4  ;;  %v852_v43 = vsel %vm847_vm3, %v820_v52, %v2389_v22 }
  0xb1   : > { %v842_v25 = vrot.slane %v830_v19, 4 }
  0xb3   : > { %v857_v33 = vsel %vm845_vm1, %v841_v21, %v842_v25  ;;  %v2397_v35 = vsel %vm845_vm1, %v842_v25, %v843_v23  ;;  %v826_v38 = vpop.permute.xlu1 %825 }
  0xb4   : > { %v860_v36 = vsel %vm847_vm3, %v830_v19, %v2397_v35  ;;  %v884_v37 = vsel %vm847_vm3, %v857_v33, %v830_v19  ;;  %v816_v40 = vpop.permute.xlu0 %815  ;;  %v858_v42 = vsel %vm847_vm3, %v828_v4, %v857_v33  ;;  %v840_v44 = vrot.slane %v826_v38, 4 }
  0xb5   : > { %v835_v45 = vrot.slane %v816_v40, 4  ;;  %v1961_v47 = vcombine.high %v850_v26, %v858_v42  ;;  %v2405_v48 = vcombine.high %v852_v43, %v860_v36  ;;  %v1960_v49 = vcombine.low %v850_v26, %v858_v42 }
  0xb6   : > { %v2407_v50 = vcombine.low %v852_v43, %v860_v36  ;;  %v855_v54 = vsel %vm845_vm1, %v840_v44, %v841_v21  ;;  %v1969_v56 = vcombine.high %v880_v51, %v884_v37  ;;  %v1968_v62 = vcombine.low %v880_v51, %v884_v37  ;;  %v2108_v36 = vld [vmem:[#allocation3 + $0x8] ss:$44 sps:$4 sm:$0xff]   ;;  %v2112_v43 = vld [vmem:[#allocation3 + $0x4] ss:$44 sps:$4 sm:$0xff]  }
  0xb7   : > { %v846_v55 = vsel %vm845_vm1, %v835_v45, %v836_v3  ;;  %1509 = vmatprep.subr.bf16.mxu0 %v1961_v47  ;;  %1550 = vmatprep.subr.bf16.mxu1 %v2405_v48  ;;  %v2413_v57 = vpop.permute.xlu1 %963  ;;  %v856_v52 = vsel %vm847_vm3, %v826_v38, %v855_v54  ;;  %v883_v61 = vsel %vm847_vm3, %v855_v54, %v828_v4  ;;  %v2110_v4 = vld [vmem:[#allocation3 + $0x10] ss:$44 sps:$4 sm:$0xff]   ;;  %v2113_v38 = vld [vmem:[#allocation3 + $0xc] ss:$44 sps:$4 sm:$0xff]  }
  0xb8   : > { %1510 = vmatpush1.bf16.msra.mxu0 %v1960_v49  ;;  %1551 = vmatpush1.bf16.msra.mxu1 %v2407_v50  ;;  %v2416_v58 = vpop.permute.xlu0 %953  ;;  %v879_v59 = vsel %vm847_vm3, %v846_v55, %v818_v53  ;;  %v848_v60 = vsel %vm847_vm3, %v816_v40, %v846_v55  ;;  %v975_v11 = vrot.slane %v2413_v57, 4 }
  0xb9   : > { %1552 = vmatprep.subr.bf16.mxu1 %v1969_v56  ;;  %v1967_v63 = vcombine.high %v879_v59, %v883_v61  ;;  %v1966_v0 = vcombine.low %v879_v59, %v883_v61  ;;  %v1959_v9 = vcombine.high %v848_v60, %v856_v52  ;;  %v970_v53 = vrot.slane %v2416_v58, 4 }
  0xba   : > { %v1958_v19 = vcombine.low %v848_v60, %v856_v52  ;;  %v990_v26 = vsel %vm845_vm1, %v974_v46, %v975_v11 }
  0xbb   : > { %v966_v2 = vpop.permute.xlu1 %965  ;;  %1511 = vmatprep.subr.bf16.mxu0 %v1967_v63  ;;  %v982_v33 = vsel %vm845_vm1, %v969_v39, %v970_v53  ;;  %v991_v39 = vsel %vm978_vm2, %v2353_v41, %v990_v26 }
  0xbc   : > { %1553 = vmatpush1.bf16.msra.mxu1 %v1968_v62  ;;  %v956_v3 = vpop.permute.xlu0 %955  ;;  %1512 = vmatpush1.bf16.msra.mxu0 %v1966_v0  ;;  %v983_v46 = vsel %vm978_vm2, %v2350_v34, %v982_v33  ;;  %v976_v45 = vrot.slane %v966_v2, 4 }
  0xbd   : > { %1554 = vmatprep.subr.bf16.mxu1 %v1961_v47  ;;  %1513 = vmatprep.subr.bf16.mxu0 %v1959_v9  ;;  %v971_v47 = vrot.slane %v956_v3, 4  ;;  %v1987_v52 = vcombine.high %v983_v46, %v991_v39 }
  0xbe   : > { %v992_v60 = vsel %vm845_vm1, %v975_v11, %v976_v45 }
  0xbf   : > { %v2424_v21 = vpop.permute.xlu1 %833  ;;  %v984_v61 = vsel %vm845_vm1, %v970_v53, %v971_v47  ;;  %v1017_v63 = vsel %vm978_vm2, %v992_v60, %v966_v2  ;;  %v1016_v53 = vsel %vm978_vm2, %v990_v26, %v2413_v57  ;;  %v993_v6 = vsel %vm978_vm2, %v2413_v57, %v992_v60 }
  0xc0   : > { %1555 = vmatpush1.bf16.msra.mxu1 %v1960_v49  ;;  %1514 = vmatpush1.bf16.msra.mxu0 %v1958_v19  ;;  %v2427_v25 = vpop.permute.xlu0 %823  ;;  %v1013_v0 = vsel %vm978_vm2, %v984_v61, %v956_v3  ;;  %v1986_v19 = vcombine.low %v983_v46, %v991_v39  ;;  %v985_v26 = vsel %vm978_vm2, %v2416_v58, %v984_v61 }
  0xc1   : > { %1556 = vmatprep.subr.bf16.mxu1 %v2307_v16  ;;  %1515 = vmatprep.subr.bf16.mxu0 %v2305_v15  ;;  %v1989_v57 = vcombine.high %v985_v26, %v993_v6  ;;  %v885_v39 = vsel %vm847_vm3, %v2397_v35, %v2383_v12  ;;  %v2118_v35 = vld [vmem:[#allocation3 + $0x14] ss:$44 sps:$4 sm:$0xff]  }
  0xc3   : > { %v2104_v37 = vpop.permute.xlu1 %2103 }
  0xc4   : > { %1557 = vmatpush1.bf16.msra.mxu1 %v2311_v18  ;;  %v2106_v40 = vunpack.i.h.bf16 %v2104_v37  ;;  %v2105_v42 = vunpack.i.l.bf16 %v2104_v37  ;;  %1516 = vmatpush1.bf16.msra.mxu0 %v2309_v17  ;;  %v2099_v44 = vpop.permute.xlu0 %2098 }
  0xc5   : > { %1558 = vmatprep.subr.bf16.mxu1 %v2110_v4  ;;  %1517 = vmatprep.subr.bf16.mxu0 %v2108_v36  ;;  %v2101_v56 = vunpack.i.h.bf16 %v2099_v44  ;;  %v2100_v59 = vunpack.i.l.bf16 %v2099_v44  ;;  %v2475_v4 = vcombine.low %v2328_v27, %v2328_v27  ;;  %v1996_v36 = vcombine.low %v1013_v0, %v1017_v63 }
  0xc6   : > { %v1041_v49 = vrot.slane %v2106_v40, 4  ;;  %v1040_v51 = vrot.slane %v2105_v42, 4 }
  0xc7   : > { %v910_v9 = vrot.slane %v2101_v56, 4  ;;  %v909_v11 = vrot.slane %v2100_v59, 4 }
  0xc8   : > { %1559 = vmatpush1.bf16.msra.mxu1 %v2113_v38  ;;  %v1044_v54 = vsel %vm845_vm1, %v976_v45, %v1041_v49  ;;  %v1042_v55 = vsel %vm845_vm1, %v971_v47, %v1040_v51  ;;  %1518 = vmatpush1.bf16.msra.mxu0 %v2112_v43 }
  0xc9   : > { %1560 = vmatprep.subr.bf16.mxu1 %v2305_v15  ;;  %v2446_v34 = vsel %vm978_vm2, %v956_v3, %v1042_v55  ;;  %v2449_v41 = vsel %vm978_vm2, %v966_v2, %v1044_v54  ;;  %1519 = vmatprep.subr.bf16.mxu0 %v1935_v20  ;;  %v1012_v20 = vsel %vm978_vm2, %v982_v33, %v2416_v58  ;;  %v844_v2 = vrot.slane %v2424_v21, 4 }
  0xca   : > { %v2004_v62 = vcombine.low %v2446_v34, %v2449_v41  ;;  %v2005_v15 = vcombine.high %v2446_v34, %v2449_v41  ;;  %v839_v3 = vrot.slane %v2427_v25, 4  ;;  %v1995_v33 = vcombine.high %v1012_v20, %v1016_v53 }
  0xcb   : > { %v913_v7 = vsel %vm845_vm1, %v844_v2, %v910_v9  ;;  %v861_v27 = vsel %vm845_vm1, %v843_v23, %v844_v2  ;;  %v1994_v58 = vcombine.low %v1012_v20, %v1016_v53 }
  0xcc   : > { %1561 = vmatpush1.bf16.msra.mxu1 %v2309_v17  ;;  %1520 = vmatpush1.bf16.msra.mxu0 %v1934_v24  ;;  %v1997_v17 = vcombine.high %v1013_v0, %v1017_v63  ;;  %v911_v24 = vsel %vm845_vm1, %v839_v3, %v909_v11  ;;  %v862_v38 = vsel %vm847_vm3, %v2383_v12, %v861_v27  ;;  %v2123_v12 = vld [vmem:[#allocation3 + $0x20] ss:$44 sps:$4 sm:$0xff]  }
  0xcd   : > { %1576 = vmatprep.subr.bf16.mxu1 %v1987_v52  ;;  %1535 = vmatprep.subr.bf16.mxu0 %v2374_v1  ;;  %v853_v1 = vsel %vm845_vm1, %v838_v8, %v839_v3  ;;  %v912_v37 = vsel %vm847_vm3, %v2427_v25, %v911_v24  ;;  %v1988_v8 = vcombine.low %v985_v26, %v993_v6 }
  0xce   : > { %v854_v23 = vsel %vm847_vm3, %v2376_v5, %v853_v1  ;;  %v886_v42 = vsel %vm847_vm3, %v861_v27, %v2424_v21  ;;  %v882_v43 = vsel %vm847_vm3, %v853_v1, %v2427_v25 }
  0xcf   : > { %v1965_v44 = vcombine.high %v854_v23, %v862_v38  ;;  %v1973_v45 = vcombine.high %v882_v43, %v886_v42  ;;  %v1964_v47 = vcombine.low %v854_v23, %v862_v38  ;;  %v1972_v25 = vcombine.low %v882_v43, %v886_v42 }
  0xd0   : > { %1577 = vmatpush2.bf16.msra.mxu1 %v1986_v19  ;;  %1536 = vmatpush2.bf16.msra.mxu0 %v2380_v10  ;;  %v914_v10 = vsel %vm847_vm3, %v2424_v21, %v913_v7 }
  0xd1   : > { %1628 = vmatprep.subr.bf16.mxu1 %v1997_v17  ;;  %1587 = vmatprep.subr.bf16.mxu0 %v1995_v33  ;;  %v1981_v40 = vcombine.high %v912_v37, %v914_v10  ;;  %v1980_v46 = vcombine.low %v912_v37, %v914_v10  ;;  %v1133_v13 = vpop.permute.xlu0 %1132 }
  0xd3   : > { %1579 = vmatmul.mubr.bf16.vlgmr.msra.gmra.mxu1 %v2475_v4  ;;  %1538 = vmatmul.mubr.bf16.vlgmr.msra.gmra.mxu0 %v2475_v4 }
  0xd4   : > { %1629 = vmatpush1.bf16.msra.mxu1 %v1996_v36  ;;  %2009 = vmatprep.mubr.msk.bf16.mxu1 %vm1501_vm0, %v2333_v28 }
  0xd5   : > { %1630 = vmatprep.subr.bf16.mxu1 %v1989_v57  ;;  %1588 = vmatpush1.bf16.msra.mxu0 %v1994_v58 }
  0xd6   : > { %2008 = vmatprep.mubr.msk.bf16.mxu0 %vm1501_vm0, %v2333_v28  ;;  %1589 = vmatprep.subr.bf16.mxu0 %v1987_v52  ;;  %v881_v28 = vsel %vm847_vm3, %v2389_v22, %v2376_v5  ;;  %v2120_v5 = vld [vmem:[#allocation3 + $0x18] ss:$44 sps:$4 sm:$0xff]   ;;  %v2121_v22 = vld [vmem:[#allocation3 + $0x1c] ss:$44 sps:$4 sm:$0xff]  }
  0xd7   : > { %v1971_v21 = vcombine.high %v881_v28, %v885_v39  ;;  %v1970_v49 = vcombine.low %v881_v28, %v885_v39 }
  0xd8   : > { %1631 = vmatpush1.bf16.msra.mxu1 %v1988_v8 }
  0xd9   : > { %1632 = vmatprep.subr.bf16.mxu1 %v1981_v40  ;;  %1590 = vmatpush1.bf16.msra.mxu0 %v1986_v19 }
  0xda   : > { %1591 = vmatprep.subr.bf16.mxu0 %v1965_v44 }
  0xdc   : > { %1633 = vmatpush1.bf16.msra.mxu1 %v1980_v46 }
  0xdd   : > { %1634 = vmatprep.subr.bf16.mxu1 %v1973_v45  ;;  %1592 = vmatpush1.bf16.msra.mxu0 %v1964_v47 }
  0xde   : > { %1593 = vmatprep.subr.bf16.mxu0 %v1971_v21 }
  0xe0   : > { %1635 = vmatpush1.bf16.msra.mxu1 %v1972_v25 }
  0xe1   : > { %1636 = vmatprep.subr.bf16.mxu1 %v1965_v44  ;;  %1594 = vmatpush1.bf16.msra.mxu0 %v1970_v49 }
  0xe2   : > { %1595 = vmatprep.subr.bf16.mxu0 %v2405_v48 }
  0xe4   : > { %1637 = vmatpush1.bf16.msra.mxu1 %v1964_v47 }
  0xe5   : > { %1638 = vmatprep.subr.bf16.mxu1 %v1957_v32  ;;  %1596 = vmatpush1.bf16.msra.mxu0 %v2407_v50 }
  0xe6   : > { %1597 = vmatprep.subr.bf16.mxu0 %v2341_v30 }
  0xe8   : > { %1639 = vmatpush1.bf16.msra.mxu1 %v1956_v31 }
  0xe9   : > { %1640 = vmatprep.subr.bf16.mxu1 %v2123_v12  ;;  %1598 = vmatpush1.bf16.msra.mxu0 %v2339_v29 }
  0xea   : > { %1599 = vmatprep.subr.bf16.mxu0 %v2120_v5 }
  0xec   : > { %1641 = vmatpush1.bf16.msra.mxu1 %v2121_v22 }
  0xed   : > { %1642 = vmatprep.subr.bf16.mxu1 %v2341_v30  ;;  %1600 = vmatpush1.bf16.msra.mxu0 %v2118_v35 }
  0xee   : > { %1601 = vmatprep.subr.bf16.mxu0 %v2307_v16 }
  0xf0   : > { %1643 = vmatpush1.bf16.msra.mxu1 %v2339_v29 }
  0xf1   : > { %1658 = vmatprep.subr.bf16.mxu1 %v2005_v15  ;;  %1602 = vmatpush1.bf16.msra.mxu0 %v2311_v18 }
  0xf2   : > { %1617 = vmatprep.subr.bf16.mxu0 %v1989_v57 }
  0xf4   : > { %1659 = vmatpush2.bf16.msra.mxu1 %v2004_v62 }
  0xf5   : > { %1618 = vmatpush2.bf16.msra.mxu0 %v1988_v8 }
  0xf7   : > { %1661 = vmatmul.mubr.bf16.vlgmr.msra.gmra.mxu1 %v2475_v4 }
  0xf8   : > { %1620 = vmatmul.mubr.bf16.vlgmr.msra.gmra.mxu0 %v2475_v4 }
 0x193   : > { %v1580_v14 = vpop.f32.mrf.mxu1  ;;  %v1539_v29 = vpop.f32.mrf.mxu0 }
 0x194   : > { %v1581_v16 = vadd.f32 %v1580_v14, %v1133_v13  ;;  %v1540_v31 = vadd.f32 %v1539_v29, %v1133_v13 }
 0x195   : > { %v1582_v30 = vpop.f32.mrf.mxu1  ;;  %v1541_v48 = vpop.f32.mrf.mxu0 }
 0x196   : > { %v1583_v18 = vadd.f32 %v1582_v30, %v1133_v13  ;;  %v1671_v32 = vmax.f32 %v1581_v16, 0.0  ;;  %v1542_v51 = vadd.f32 %v1541_v48, %v1133_v13  ;;  %v1669_v54 = vmax.f32 %v1540_v31, 0.0 }
 0x197   : > { %v1584_v50 = vpop.f32.mrf.mxu1  ;;  %v1543_v56 = vpop.f32.mrf.mxu0 }
 0x198   : > { %v1672_v55 = vmax.f32 %v1583_v18, 0.0  ;;  %v1670_v52 = vmax.f32 %v1542_v51, 0.0 }
 0x199   : > { %v1585_v59 = vpop.f32.mrf.mxu1  ;;  %v1544_v41 = vpop.f32.mrf.mxu0 }
 0x19a   : > { %v2018_v34 = vpack.c.bf16 %v1672_v55, %v1671_v32  ;;  %v2017_v60 = vpack.c.bf16 %v1670_v52, %v1669_v54 }
 0x19c   : > { %1710 = vst [vmem:[%s720_s13 + $0x8] sm:$0xff] %v2018_v34  ;;  %1709 = vst [vmem:[%s720_s13] sm:$0xff] %v2017_v60 }
 0x1b7   : > { %v1662_v61 = vpop.f32.mrf.mxu1 }
 0x1b8   : > { %v1663_v62 = vadd.f32 %v1662_v61, %v1133_v13  ;;  %v1621_v15 = vpop.f32.mrf.mxu0 }
 0x1b9   : > { %v1664_v63 = vpop.f32.mrf.mxu1  ;;  %v1622_v0 = vadd.f32 %v1621_v15, %v1133_v13 }
 0x1ba   : > { %v1665_v9 = vadd.f32 %v1664_v63, %v1133_v13  ;;  %v1623_v11 = vpop.f32.mrf.mxu0  ;;  %v1675_v20 = vmax.f32 %v1663_v62, 0.0 }
 0x1bb   : > { %v1666_v53 = vpop.f32.mrf.mxu1  ;;  %v1624_v19 = vadd.f32 %v1623_v11, %v1133_v13  ;;  %v1673_v4 = vmax.f32 %v1622_v0, 0.0 }
 0x1bc   : > { %v1676_v2 = vmax.f32 %v1665_v9, 0.0  ;;  %v1625_v3 = vpop.f32.mrf.mxu0 }
 0x1bd   : > { %v1667_v17 = vpop.f32.mrf.mxu1  ;;  %v1674_v26 = vmax.f32 %v1624_v19, 0.0 }
 0x1be   : > { %v2020_v6 = vpack.c.bf16 %v1676_v2, %v1675_v20  ;;  %v1626_v7 = vpop.f32.mrf.mxu0 }
 0x1bf   : > { %v2019_v24 = vpack.c.bf16 %v1674_v26, %v1673_v4 }
 0x1c0   : > { %1712 = vst [vmem:[%s720_s13 + $0x18] sm:$0xff] %v2020_v6 }
 0x1c1   : > { %1711 = vst [vmem:[%s720_s13 + $0x10] sm:$0xff] %v2019_v24 }
 0x1c2 PF: > { %s14_s19 = sadd.s32 1, %s2178_s19   ;;  %s2562_s15 = smov %s2166_s16 }
 0x1c3   : > { %p11_p12 = scmp.ge.s32.totalorder %s14_s19, 4   ;;  %s2563_s16 = smov %s2263_s24 }
 0x1c4   : > { %s2564_s17 = smov %s2174_s18  ;;  %s2565_s18 = smov %s2567_s20 }
 0x1c5   :  { %13 = sbr.rel (!%p11_p12) target bundleno = 3 (0x3), region = 245 }

// kernel: enhance_net_dce_pool_forward.10
= control target key start
LH: loop header
LB: loop body
LE: loop exit
PB: predicated region body
PF: predicated region fallthrough
CT: control target
= control target key end

     0   :  { %s1724_s15 = smov 0   ;;  %s1726_s16 = smov 0   ;;  %s1921_s0 = inlined_call_operand.vmem [shape: bf16[2,16,768], index: 0, kind: input, shape index: {}, may-alias: {0,1}]   ;;  %s1922_s1 = inlined_call_operand.vmem [shape: bf16[2,16,768], index: 1, kind: input, shape index: {}, may-alias: {0,1}]   ;;  %s1923_s2 = inlined_call_operand.vmem [shape: bf16[8,144], index: 2, kind: input, shape index: {}]   ;;  %s1924_s3 = inlined_call_operand.vmem [shape: f32[8,1], index: 3, kind: input, shape index: {}]   ;;  %s1925_s4 = inlined_call_operand.vmem [shape: bf16[2,8,512], index: 4, kind: output, shape index: {}]  }
   0x1   :  { %s1728_s17 = smov 0   ;;  %s1730_s18 = smov 0  }
   0x2   :  { %s1732_s19 = smov 0  }
   0x3 LB: > { %s26_s20 = sadd.s32 1, %s1674_s18  ;;  %p42_p1 = scmp.ne.s32.totalorder %s1666_s16, %s1662_s15  ;;  %s1678_s19 = sphi %s1732_s19, %s14_s19   ;;  %s1674_s18 = sphi %s1730_s18, %s1930_s18   ;;  %s1670_s17 = sphi %s1728_s17, %s1929_s17   ;;  %s1666_s16 = sphi %s1726_s16, %s1928_s16   ;;  %s1662_s15 = sphi %s1724_s15, %s1927_s15  }
   0x4   : > { %p28_p0 = scmp.ge.s32.totalorder %s26_s20, 2  ;;  %p43_p2 = scmp.eq.s32.totalorder %s1678_s19, 0 }
   0x5   : > { %s35_s23 = sadd.s32 1, %s1666_s16  ;;  %p1454_p5 = scmp.ge.s32.totalorder %s1678_s19, 2 }
   0x6   : > { %s1932_s20 = smov (%p28_p0, %s26_s20), 0  ;;  %p1755_p3 = por %p43_p2, %p42_p1 }
   0x7   : > { %s30_s22 = ssub.s32 %s1674_s18, %s1932_s20  ;;  %176 = sbr.rel (%p1454_p5) target bundleno = 31 (0x1f), region = 24 }
   0x8   : > { %p33_p4 = scmp.eq.s32.totalorder %s30_s22, 0 }
   0xa   : > { %s1763_s24 = scalar_select %p33_p4, %s1666_s16, %s35_s23  }
   0xc   : > { %179 = sbr.rel (!%p1755_p3) target bundleno = 25 (0x19), region = 28  ;;  %s181_s25 = sand.u32 (%p1755_p3), 1, %s1666_s16  }
   0xd   : > { %s1523_s26 = smul.u32 (%p1755_p3), 48, %s1674_s18  ;;  %s1455_s27 = sshll.u32 (%p1755_p3), %s181_s25, 5 }
   0xe   : > { %s183_s5 = scalar_lea.vmem (%p1755_p3), [#allocation4], %s1455_s27   ;;  %s1688_s8 = smov (%p1755_p3), 0  }
   0xf   : > { %s193_s30 = scalar_lea.vmem (%p1755_p3), %s1921_s0, %s1523_s26   ;;  %s1680_s6 = smov (%p1755_p3), %s183_s5  }
  0x10   : > { %s1684_s7 = smov (%p1755_p3), %s193_s30   ;;  %s1692_s9 = smov (%p1755_p3), 0  }
  0x11 LB: >> { %v392_v0 = vld [vmem:[%s1686_s7] sm:$0xff]  ;;  %v394_v1 = vld [vmem:[%s1686_s7 + $0x18] sm:$0xff]  ;;  %s396_s10 = sadd.s32 1, %s1690_s8  ;;  %s386_s9 = sadd.s32 1, %s1694_s9   ;;  %s1694_s9 = sphi %s1692_s9, %s386_s9   ;;  %s1690_s8 = sphi %s1688_s8, %s1689_s8   ;;  %s1686_s7 = sphi %s1684_s7, %s401_s7   ;;  %s1682_s6 = sphi %s1680_s6, %s402_s6  }
  0x12   : >> { %393 = vst [vmem:[%s1682_s6] sm:$0xff] %v392_v0  ;;  %395 = vst [vmem:[%s1682_s6 + $0x10] sm:$0xff] %v394_v1  ;;  %p397_p6 = scmp.ge.s32.totalorder %s396_s10, 2  ;;  %p385_p7 = scmp.ge.s32.totalorder %s386_s9, 2 }
  0x14   : >> { %s1934_s10 = smov (%p397_p6, %s396_s10), 0  ;;  %388 = sbr.rel (!%p385_p7) target bundleno = 17 (0x11), region = 212 }
  0x15   : >> { %s1459_s11 = sshll.u32 %s1934_s10, 3  ;;  %s1689_s8 = smov %s1934_s10  }
  0x16   : >> { %s401_s7 = scalar_lea.vmem %s193_s30, %s1459_s11   ;;  %s402_s6 = scalar_lea.vmem %s183_s5, %s1459_s11 [#allocation4]  }
  0x19 PF: > { %607 = sbr.rel (!%p1755_p3) target bundleno = 31 (0x1f), region = 94  ;;  %s609_s12 = sand.u32 (%p1755_p3), 1, %s1666_s16  }
  0x1a   : > { %s1468_s13 = smul.u32 (%p1755_p3), 48, %s1674_s18  ;;  %s1467_s14 = sshll.u32 (%p1755_p3), %s609_s12, 4 }
  0x1b   : > { %s611_s26 = scalar_lea.vmem (%p1755_p3), [#allocation5], %s1467_s14 }
  0x1c   : > { %s1322_s25 = scalar_lea.vmem (%p1755_p3), %s1922_s1, %s1468_s13 }
  0x1d   : > { %v1469_v2 = vld [vmem:[%s1322_s25 + $0x10] sm:$0xff] (%p1755_p3)  ;;  %v1470_v3 = vld [vmem:[%s1322_s25 + $0x28] sm:$0xff] (%p1755_p3) }
  0x1e   : > { %650 = vst [vmem:[%s611_s26] sm:$0xff] %v1469_v2  ;;  %652 = vst [vmem:[%s611_s26 + $0x8] sm:$0xff] %v1470_v3 }
  0x1f PF: > { %p1471_p8 = scmp.ge.s32.totalorder %s1678_s19, 1  ;;  %p657_p9 = scmp.lt.s32.totalorder %s1678_s19, 3 }
  0x21   : > { %p658_p10 = pnand %p1471_p8, %p657_p9 }
  0x22   : > { %s664_s21 = sand.u32 (!%p658_p10), 1, %s1662_s15   ;;  %s1697_s5 = smov (!%p658_p10), 126  }
  0x23   : > { %661 = sbr.rel (%p658_p10) target bundleno = 415 (0x19f), region = 132  ;;  %s1473_s27 = sshll.u32 (!%p658_p10), %s664_s21, 4 }
  0x24   : > { %s1472_s28 = sshll.u32 (!%p658_p10), %s664_s21, 5  ;;  %s673_s29 = scalar_lea.vmem (!%p658_p10), [#allocation5], %s1473_s27 }
  0x25   : > { %s666_s30 = scalar_lea.vmem (!%p658_p10), [#allocation4], %s1472_s28  ;;  %s1698_s15 = smov (!%p658_p10), 127  }
  0x26   : > { %p713_p11 = scmp.lt.s32.totalorder (!%p658_p10), %s1670_s17, 1 }
  0x28   : > { %v1696_v4 = vmov 0   ;;  %v1783_v5 = vld [vmem:[%s673_s29] sm:$0xff]  ;;  %v724_v8 = vld [vmem:[%s666_s30 + $0x8] sm:$0xff]  ;;  %v726_v10 = vld [vmem:[%s666_s30 + $0x18] sm:$0xff]  ;;  %vm1149_vm0 = vcmask 130048   ;;  %vm793_vm1 = vcmask 1043456  }
  0x29   : > { %735 = vst [vmem:[#allocation3 + $0x18] sm:$0xf] %v1696_v4  ;;  %736 = vst [vmem:[#allocation3 + $0x34] sm:$0xf] %v1696_v4  ;;  %1609 = vset.pattern.permute.xlu0 %v1696_v4  ;;  %v1785_v6 = vld [vmem:[%s666_s30] sm:$0xff]  ;;  %v1787_v7 = vld [vmem:[%s666_s30 + $0x10] sm:$0xff]  ;;  %859 = vrot.lane.b32.xlu1 %v1783_v5, %s1697_s5  ;;  %v1803_v17 = vcombine.high %v724_v8, %v726_v10  ;;  %v1805_v18 = vcombine.low %v724_v8, %v726_v10 }
  0x2a   : > { %733 = vst [vmem:[#allocation3 + $0x10] sm:$0xff] %v1783_v5  ;;  %727 = vst [vmem:[#allocation3] sm:$0xff] %v1785_v6  ;;  %855 = vrot.lane.b32.xlu0 %v1785_v6, %s1697_s5  ;;  %v1794_v9 = vld [vmem:[%s673_s29 + $0x8] sm:$0xff]  ;;  %v1479_v21 = vcombine.high %v1785_v6, %v1787_v7  ;;  %v1478_v22 = vcombine.low %v1785_v6, %v1787_v7  ;;  %vm874_vm2 = vcmask 1031168   ;;  %vm795_vm3 = vcmask 1039360   ;;  %s1936_s17 = smov (!%p713_p11, %s1670_s17), 1 }
  0x2b   : > { %729 = vst [vmem:[#allocation3 + $0x1c] sm:$0xff] %v1787_v7  ;;  %728 = vst [vmem:[#allocation3 + $0x8] sm:$0xff] %v724_v8  ;;  %v1489_v19 = vcombine.high %v1783_v5, %v1794_v9  ;;  %v1488_v20 = vcombine.low %v1783_v5, %v1794_v9  ;;  %v1818_v23 = vld [vmem:[%s1923_s2] sm:$0xff]  ;;  %s1520_s10 = sshll.u32 %s1936_s17, 4 }
  0x2c   : > { %734 = vst [vmem:[#allocation3 + $0x2c] sm:$0xff] %v1794_v9  ;;  %730 = vst [vmem:[#allocation3 + $0x24] sm:$0xff] %v726_v10  ;;  %v1477_v24 = vcombine.high %v1818_v23, %v1818_v23  ;;  %v957_v25 = vld [vmem:[%s1924_s3] sm:$0xff]  ;;  %s720_s13 = scalar_lea.vmem %s1925_s4, %s1520_s10 }
  0x2d   : > { %861 = vrot.lane.b32.xlu1 %v1787_v7, %s1697_s5 }
  0x2e   : > { %857 = vrot.lane.b32.xlu0 %v724_v8, %s1697_s5  ;;  %1514 = vmatprep.mubr.msk.bf16.mxu0 %vm1149_vm0, %v1477_v24 }
  0x2f   : > { %1515 = vmatprep.mubr.msk.bf16.mxu1 %vm1149_vm0, %v1477_v24 }
  0x30   : > { %v764_v11 = vld [vmem:[#allocation3 + $0x18] sm:$0xf]  ;;  %v768_v12 = vld [vmem:[#allocation3 + $0x34] sm:$0xf] }
  0x31   : > { %865 = vrot.lane.b32.xlu1 %v1794_v9, %s1697_s5  ;;  %v1599_v13 = vpack.i.bf16 %v768_v12, %v764_v11  ;;  %v844_v14 = vld [vmem:[#allocation3 + $0x18] sm:$0xf]  ;;  %v848_v15 = vld [vmem:[#allocation3 + $0x34] sm:$0xf] }
  0x32   : > { %863 = vrot.lane.b32.xlu0 %v726_v10, %s1697_s5  ;;  %v1604_v16 = vpack.i.bf16 %v848_v15, %v844_v14 }
  0x35   : > { %779 = vrot.lane.b32.xlu1 %v1783_v5, %s1698_s15 }
  0x36   : > { %777 = vrot.lane.b32.xlu0 %v724_v8, %s1698_s15 }
  0x39   : > { %785 = vrot.lane.b32.xlu1 %v1794_v9, %s1698_s15 }
  0x3a   : > { %783 = vrot.lane.b32.xlu0 %v726_v10, %s1698_s15 }
  0x3d   : > { %775 = vrot.lane.b32.xlu1 %v1785_v6, %s1698_s15 }
  0x3e   : > { %1600 = vrot.lane.b32.xlu0 %v1599_v13, %s1698_s15 }
  0x41   : > { %1605 = vrot.lane.b32.xlu1 %v1604_v16, %s1697_s5 }
  0x42   : > { %781 = vrot.lane.b32.xlu0 %v1787_v7, %s1698_s15 }
  0x46   : > { %960 = vperm.xlu0 %1609, %v957_v25  }
  0x9b   : > { %v1825_v26 = vpop.permute.xlu1 %859 }
  0x9c   : > { %v856_v27 = vpop.permute.xlu0 %855  ;;  %v869_v28 = vrot.slane %v1825_v26, 4 }
  0x9d   : > { %v867_v32 = vrot.slane %v856_v27, 4 }
  0x9f   : > { %v862_v29 = vpop.permute.xlu1 %861 }
  0xa0   : > { %v858_v30 = vpop.permute.xlu0 %857  ;;  %v870_v33 = vrot.slane %v862_v29, 4 }
  0xa1   : > { %v868_v31 = vrot.slane %v858_v30, 4 }
  0xa3   : > { %v1828_v34 = vpop.permute.xlu1 %865  ;;  %v873_v36 = vsel %vm793_vm1, %v867_v32, %v868_v31  ;;  %v876_v37 = vsel %vm793_vm1, %v868_v31, %v869_v28 }
  0xa4   : > { %v864_v35 = vpop.permute.xlu0 %863  ;;  %v872_v38 = vrot.slane %v1828_v34, 4  ;;  %v890_v41 = vsel %vm874_vm2, %v873_v36, %v858_v30  ;;  %v891_v43 = vsel %vm874_vm2, %v876_v37, %v1825_v26  ;;  %v875_v56 = vsel %vm874_vm2, %v856_v27, %v873_v36 }
  0xa5   : > { %v871_v39 = vrot.slane %v864_v35, 4  ;;  %v877_v57 = vsel %vm874_vm2, %v858_v30, %v876_v37 }
  0xa7   : > { %v878_v40 = vsel %vm793_vm1, %v870_v33, %v871_v39  ;;  %v880_v42 = vsel %vm793_vm1, %v871_v39, %v872_v38  ;;  %v780_v44 = vpop.permute.xlu1 %779 }
  0xa8   : > { %v778_v45 = vpop.permute.xlu0 %777  ;;  %v892_v46 = vsel %vm874_vm2, %v878_v40, %v864_v35  ;;  %v893_v47 = vsel %vm874_vm2, %v880_v42, %v1828_v34  ;;  %v879_v48 = vsel %vm874_vm2, %v862_v29, %v878_v40  ;;  %v881_v49 = vsel %vm874_vm2, %v864_v35, %v880_v42 }
  0xa9   : > { %v789_v50 = vrot.slane %v780_v44, 4  ;;  %v788_v51 = vrot.slane %v778_v45, 4  ;;  %v1507_v52 = vcombine.high %v890_v41, %v892_v46  ;;  %v1509_v53 = vcombine.high %v891_v43, %v893_v47 }
  0xaa   : > { %v1506_v54 = vcombine.low %v890_v41, %v892_v46  ;;  %v1508_v55 = vcombine.low %v891_v43, %v893_v47  ;;  %v1503_v58 = vcombine.high %v875_v56, %v879_v48  ;;  %v1849_v59 = vcombine.high %v877_v57, %v881_v49 }
  0xab   : > { %1153 = vmatprep.subr.bf16.mxu0 %v1507_v52  ;;  %1194 = vmatprep.subr.bf16.mxu1 %v1509_v53  ;;  %v786_v60 = vpop.permute.xlu1 %785  ;;  %v797_v62 = vsel %vm793_vm1, %v788_v51, %v789_v50  ;;  %v1502_v1 = vcombine.low %v875_v56, %v879_v48  ;;  %v1853_v2 = vcombine.low %v877_v57, %v881_v49 }
  0xac   : > { %1154 = vmatpush1.bf16.msra.mxu0 %v1506_v54  ;;  %1195 = vmatpush1.bf16.msra.mxu1 %v1508_v55  ;;  %v784_v61 = vpop.permute.xlu0 %783  ;;  %v792_v63 = vrot.slane %v786_v60, 4  ;;  %v798_v4 = vsel %vm795_vm3, %v778_v45, %v797_v62  ;;  %v812_v46 = vsel %vm795_vm3, %v797_v62, %v780_v44 }
  0xad   : > { %v791_v0 = vrot.slane %v784_v61, 4  ;;  %1155 = vmatprep.subr.bf16.mxu0 %v1503_v58  ;;  %1196 = vmatprep.subr.bf16.mxu1 %v1849_v59  ;;  %v1617_v58 = vld [vmem:[#allocation3 + $0x10] ss:$28 sps:$4 sm:$0xff]  }
  0xaf   : > { %v801_v3 = vsel %vm793_vm1, %v791_v0, %v792_v63  ;;  %v776_v11 = vpop.permute.xlu1 %775 }
  0xb0   : > { %v802_v8 = vsel %vm795_vm3, %v784_v61, %v801_v3  ;;  %1156 = vmatpush1.bf16.msra.mxu0 %v1502_v1  ;;  %1197 = vmatpush1.bf16.msra.mxu1 %v1853_v2  ;;  %v1601_v10 = vpop.permute.xlu0 %1600  ;;  %v787_v14 = vrot.slane %v776_v11, 4  ;;  %v814_v36 = vsel %vm795_vm3, %v801_v3, %v786_v60 }
  0xb1   : > { %v1603_v12 = vunpack.i.h.bf16 %v1601_v10  ;;  %v1602_v13 = vunpack.i.l.bf16 %v1601_v10  ;;  %v1493_v15 = vcombine.high %v798_v4, %v802_v8  ;;  %v1492_v16 = vcombine.low %v798_v4, %v802_v8 }
  0xb2   : > { %v794_v31 = vsel %vm793_vm1, %v787_v14, %v788_v51  ;;  %v1497_v48 = vcombine.high %v812_v46, %v814_v36  ;;  %v1496_v53 = vcombine.low %v812_v46, %v814_v36 }
  0xb3   : > { %v830_v24 = vrot.slane %v1603_v12, 4  ;;  %v829_v25 = vrot.slane %v1602_v13, 4  ;;  %1157 = vmatprep.subr.bf16.mxu0 %v1493_v15  ;;  %v811_v42 = vsel %vm795_vm3, %v794_v31, %v778_v45  ;;  %v796_v49 = vsel %vm795_vm3, %v776_v11, %v794_v31  ;;  %v1606_v52 = vpop.permute.xlu1 %1605 }
  0xb4   : > { %1158 = vmatpush1.bf16.msra.mxu0 %v1492_v16  ;;  %v782_v27 = vpop.permute.xlu0 %781  ;;  %v1608_v45 = vunpack.i.h.bf16 %v1606_v52  ;;  %v1607_v55 = vunpack.i.l.bf16 %v1606_v52 }
  0xb5   : > { %v833_v29 = vsel %vm793_vm1, %v792_v63, %v830_v24  ;;  %v831_v30 = vsel %vm793_vm1, %v789_v50, %v829_v25  ;;  %v790_v32 = vrot.slane %v782_v27, 4 }
  0xb6   : > { %v832_v33 = vsel %vm795_vm3, %v780_v44, %v831_v30  ;;  %v834_v35 = vsel %vm795_vm3, %v786_v60, %v833_v29  ;;  %v1614_v44 = vld [vmem:[#allocation3 + $0x8] ss:$28 sps:$4 sm:$0xff]   ;;  %v909_v56 = vrot.slane %v1608_v45, 4  ;;  %v908_v57 = vrot.slane %v1607_v55, 4 }
  0xb7   : > { %v799_v37 = vsel %vm793_vm1, %v790_v32, %v791_v0  ;;  %v1501_v39 = vcombine.high %v832_v33, %v834_v35  ;;  %v1500_v40 = vcombine.low %v832_v33, %v834_v35  ;;  %v1616_v60 = vld [vmem:[#allocation3 + $0x4] ss:$28 sps:$4 sm:$0xff]  }
  0xb8   : > { %v800_v41 = vsel %vm795_vm3, %v782_v27, %v799_v37  ;;  %v813_v43 = vsel %vm795_vm3, %v799_v37, %v784_v61  ;;  %v1619_v61 = vld [vmem:[#allocation3 + $0xc] ss:$28 sps:$4 sm:$0xff]   ;;  %v912_v62 = vsel %vm793_vm1, %v872_v38, %v909_v56  ;;  %v910_v63 = vsel %vm793_vm1, %v869_v28, %v908_v57 }
  0xb9   : > { %1198 = vmatprep.subr.bf16.mxu1 %v1501_v39  ;;  %v1495_v47 = vcombine.high %v811_v42, %v813_v43  ;;  %v1494_v50 = vcombine.low %v811_v42, %v813_v43  ;;  %v1491_v51 = vcombine.high %v796_v49, %v800_v41  ;;  %v1490_v54 = vcombine.low %v796_v49, %v800_v41 }
  0xba   : > { %1199 = vmatpush1.bf16.msra.mxu1 %v1500_v40  ;;  %v911_v5 = vsel %vm874_vm2, %v1825_v26, %v910_v63  ;;  %v913_v9 = vsel %vm874_vm2, %v1828_v34, %v912_v62 }
  0xbb   : > { %1159 = vmatprep.subr.bf16.mxu0 %v1495_v47  ;;  %1200 = vmatprep.subr.bf16.mxu1 %v1497_v48 }
  0xbc   : > { %1160 = vmatpush1.bf16.msra.mxu0 %v1494_v50 }
  0xbd   : > { %1161 = vmatprep.subr.bf16.mxu0 %v1491_v51 }
  0xbe   : > { %1201 = vmatpush1.bf16.msra.mxu1 %v1496_v53 }
  0xbf   : > { %1202 = vmatprep.subr.bf16.mxu1 %v1493_v15 }
  0xc0   : > { %1162 = vmatpush1.bf16.msra.mxu0 %v1490_v54 }
  0xc1   : > { %1163 = vmatprep.subr.bf16.mxu0 %v1803_v17 }
  0xc2   : > { %1203 = vmatpush1.bf16.msra.mxu1 %v1492_v16 }
  0xc3   : > { %1204 = vmatprep.subr.bf16.mxu1 %v1489_v19  ;;  %v1513_v19 = vcombine.high %v911_v5, %v913_v9 }
  0xc4   : > { %1164 = vmatpush1.bf16.msra.mxu0 %v1805_v18 }
  0xc5   : > { %1165 = vmatprep.subr.bf16.mxu0 %v1614_v44 }
  0xc6   : > { %1205 = vmatpush1.bf16.msra.mxu1 %v1488_v20  ;;  %v1476_v20 = vcombine.low %v1818_v23, %v1818_v23 }
  0xc7   : > { %1206 = vmatprep.subr.bf16.mxu1 %v1617_v58 }
  0xc8   : > { %1166 = vmatpush1.bf16.msra.mxu0 %v1616_v60 }
  0xc9   : > { %1167 = vmatprep.subr.bf16.mxu0 %v1479_v21  ;;  %v1512_v21 = vcombine.low %v911_v5, %v913_v9 }
  0xca   : > { %1207 = vmatpush1.bf16.msra.mxu1 %v1619_v61 }
  0xcb   : > { %1208 = vmatprep.subr.bf16.mxu1 %v1803_v17  ;;  %v961_v17 = vpop.permute.xlu0 %960 }
  0xcc   : > { %1168 = vmatpush1.bf16.msra.mxu0 %v1478_v22 }
  0xcd   : > { %1183 = vmatprep.subr.bf16.mxu0 %v1849_v59 }
  0xce   : > { %1209 = vmatpush1.bf16.msra.mxu1 %v1805_v18 }
  0xcf   : > { %1224 = vmatprep.subr.bf16.mxu1 %v1513_v19 }
  0xd0   : > { %1184 = vmatpush2.bf16.msra.mxu0 %v1853_v2 }
  0xd2   : > { %1225 = vmatpush2.bf16.msra.mxu1 %v1512_v21 }
  0xd3   : > { %1186 = vmatmul.mubr.bf16.vlgmr.msra.gmra.mxu0 %v1476_v20 }
  0xd5   : > { %1227 = vmatmul.mubr.bf16.vlgmr.msra.gmra.mxu1 %v1476_v20 }
 0x193   : > { %v1187_v6 = vpop.f32.mrf.mxu0 }
 0x194   : > { %v1188_v7 = vadd.f32 %v1187_v6, %v961_v17 }
 0x195   : > { %v1189_v22 = vpop.f32.mrf.mxu0  ;;  %v1228_v26 = vpop.f32.mrf.mxu1 }
 0x196   : > { %v1235_v28 = vmax.f32 %v1188_v7, 0.0  ;;  %v1190_v18 = vadd.f32 %v1189_v22, %v961_v17  ;;  %v1229_v34 = vadd.f32 %v1228_v26, %v961_v17 }
 0x197   : > { %v1191_v38 = vpop.f32.mrf.mxu0  ;;  %v1230_v59 = vpop.f32.mrf.mxu1 }
 0x198   : > { %v1236_v23 = vmax.f32 %v1190_v18, 0.0  ;;  %v1231_v0 = vadd.f32 %v1230_v59, %v961_v17  ;;  %v1237_v4 = vmax.f32 %v1229_v34, 0.0 }
 0x199   : > { %v1192_v1 = vpop.f32.mrf.mxu0  ;;  %v1232_v2 = vpop.f32.mrf.mxu1 }
 0x19a   : > { %v1521_v3 = vpack.c.bf16 %v1236_v23, %v1235_v28  ;;  %v1238_v8 = vmax.f32 %v1231_v0, 0.0 }
 0x19b   : > { %v1233_v10 = vpop.f32.mrf.mxu1 }
 0x19c   : > { %1255 = vst [vmem:[%s720_s13] sm:$0xff] %v1521_v3  ;;  %v1522_v11 = vpack.c.bf16 %v1238_v8, %v1237_v4 }
 0x19e   : > { %1256 = vst [vmem:[%s720_s13 + $0x8] sm:$0xff] %v1522_v11 }
 0x19f PF: > { %s14_s19 = sadd.s32 1, %s1678_s19   ;;  %s1927_s15 = smov %s1666_s16 }
 0x1a0   : > { %p11_p12 = scmp.ge.s32.totalorder %s14_s19, 4   ;;  %s1928_s16 = smov %s1763_s24 }
 0x1a1   : > { %s1929_s17 = smov %s1674_s18  ;;  %s1930_s18 = smov %s1932_s20 }
 0x1a2   :  { %13 = sbr.rel (!%p11_p12) target bundleno = 3 (0x3), region = 245 }

// kernel: enhance_net_dce_pool_forward.11
= control target key start
LH: loop header
LB: loop body
LE: loop exit
PB: predicated region body
PF: predicated region fallthrough
CT: control target
= control target key end

     0   :  { %s930_s15 = smov 0   ;;  %s932_s16 = smov 0   ;;  %s1091_s0 = inlined_call_operand.vmem [shape: bf16[2,16,512], index: 0, kind: input, shape index: {}, may-alias: {0,1}]   ;;  %s1092_s1 = inlined_call_operand.vmem [shape: bf16[2,16,512], index: 1, kind: input, shape index: {}, may-alias: {0,1}]   ;;  %s1093_s2 = inlined_call_operand.vmem [shape: bf16[8,144], index: 2, kind: input, shape index: {}]   ;;  %s1094_s3 = inlined_call_operand.vmem [shape: f32[8,1], index: 3, kind: input, shape index: {}]   ;;  %s1095_s4 = inlined_call_operand.vmem [shape: bf16[2,8,256], index: 4, kind: output, shape index: {}]  }
   0x1   :  { %s934_s17 = smov 0   ;;  %s936_s18 = smov 0  }
   0x2   :  { %s938_s19 = smov 0  }
   0x3 LB: > { %s26_s20 = sadd.s32 1, %s896_s18  ;;  %p42_p1 = scmp.ne.s32.totalorder %s888_s16, %s884_s15  ;;  %s900_s19 = sphi %s938_s19, %s14_s19   ;;  %s896_s18 = sphi %s936_s18, %s1100_s18   ;;  %s892_s17 = sphi %s934_s17, %s1099_s17   ;;  %s888_s16 = sphi %s932_s16, %s1098_s16   ;;  %s884_s15 = sphi %s930_s15, %s1097_s15  }
   0x4   : > { %p28_p0 = scmp.ge.s32.totalorder %s26_s20, 2  ;;  %p43_p2 = scmp.eq.s32.totalorder %s900_s19, 0 }
   0x5   : > { %s35_s23 = sadd.s32 1, %s888_s16  ;;  %p757_p5 = scmp.ge.s32.totalorder %s900_s19, 2 }
   0x6   : > { %s1102_s20 = smov (%p28_p0, %s26_s20), 0  ;;  %p961_p3 = por %p43_p2, %p42_p1 }
   0x7   : > { %s30_s22 = ssub.s32 %s896_s18, %s1102_s20  ;;  %174 = sbr.rel (%p757_p5) target bundleno = 22 (0x16), region = 24 }
   0x8   : > { %p33_p4 = scmp.eq.s32.totalorder %s30_s22, 0 }
   0xa   : > { %s969_s24 = scalar_select %p33_p4, %s888_s16, %s35_s23  }
   0xc   : > { %177 = sbr.rel (!%p961_p3) target bundleno = 17 (0x11), region = 28  ;;  %s179_s25 = sand.u32 (%p961_p3), 1, %s888_s16  }
   0xd   : > { %s795_s26 = sshll.u32 (%p961_p3), %s896_s18, 5  ;;  %s758_s27 = sshll.u32 (%p961_p3), %s179_s25, 4 }
   0xe   : > { %s186_s30 = scalar_lea.vmem (%p961_p3), %s1091_s0, %s795_s26  ;;  %s181_s5 = scalar_lea.vmem (%p961_p3), [#allocation4], %s758_s27 }
   0xf   : > { %v217_v0 = vld [vmem:[%s186_s30] sm:$0xff] (%p961_p3)  ;;  %v219_v1 = vld [vmem:[%s186_s30 + $0x10] sm:$0xff] (%p961_p3) }
  0x10   : > { %218 = vst [vmem:[%s181_s5] sm:$0xff] (%p961_p3), %v217_v0  ;;  %220 = vst [vmem:[%s181_s5 + $0x8] sm:$0xff] (%p961_p3), %v219_v1 }
  0x11 PF: > { %226 = sbr.rel (!%p961_p3) target bundleno = 22 (0x16), region = 66  ;;  %s228_s6 = sand.u32 (%p961_p3), 1, %s888_s16  }
  0x12   : > { %s796_s7 = sshll.u32 (%p961_p3), %s896_s18, 5  ;;  %s761_s8 = sshll.u32 (%p961_p3), %s228_s6, 4 }
  0x13   : > { %s685_s11 = scalar_lea.vmem (%p961_p3), %s1092_s1, %s796_s7  ;;  %s230_s12 = scalar_lea.vmem (%p961_p3), [#allocation5], %s761_s8 }
  0x14   : > { %v764_v2 = vld [vmem:[%s685_s11 + $0x8] sm:$0xff] (%p961_p3)  ;;  %v765_v3 = vld [vmem:[%s685_s11 + $0x18] sm:$0xff] (%p961_p3) }
  0x15   : > { %268 = vst [vmem:[%s230_s12] sm:$0xff] (%p961_p3), %v764_v2  ;;  %270 = vst [vmem:[%s230_s12 + $0x8] sm:$0xff] (%p961_p3), %v765_v3 }
  0x16 PF: > { %p766_p6 = scmp.ge.s32.totalorder %s900_s19, 1  ;;  %p275_p7 = scmp.lt.s32.totalorder %s900_s19, 3 }
  0x18   : > { %p276_p8 = pnand %p766_p6, %p275_p7 }
  0x19   : > { %s282_s13 = sand.u32 (!%p276_p8), 1, %s884_s15   ;;  %s903_s23 = smov (!%p276_p8), 126  }
  0x1a   : > { %279 = sbr.rel (%p276_p8) target bundleno = 397 (0x18d), region = 104  ;;  %s767_s14 = sshll.u32 (!%p276_p8), %s282_s13, 4 }
  0x1b   : > { %s284_s21 = scalar_lea.vmem (!%p276_p8), [#allocation4], %s767_s14  ;;  %s291_s22 = scalar_lea.vmem (!%p276_p8), [#allocation5], %s767_s14 }
  0x1c   : > { %s904_s15 = smov (!%p276_p8), 127   ;;  %p326_p9 = scmp.lt.s32.totalorder (!%p276_p8), %s892_s17, 1 }
  0x1f   : > { %v902_v4 = vmov 0   ;;  %v989_v5 = vld [vmem:[%s284_s21 + $0x8] sm:$0xff]  ;;  %v991_v6 = vld [vmem:[%s284_s21] sm:$0xff]  ;;  %vm586_vm0 = vcmask 130048   ;;  %vm380_vm1 = vcmask 1043456   ;;  %vm435_vm2 = vcmask 1031168  }
  0x20   : > { %344 = vst [vmem:[#allocation3 + $0x10] sm:$0xf] %v902_v4  ;;  %345 = vst [vmem:[#allocation3 + $0x24] sm:$0xf] %v902_v4  ;;  %852 = vset.pattern.permute.xlu0 %v902_v4  ;;  %v993_v7 = vld [vmem:[%s291_s22 + $0x8] sm:$0xff]  ;;  %426 = vrot.lane.b32.xlu1 %v989_v5, %s903_s23  ;;  %v1000_v8 = vld [vmem:[%s291_s22] sm:$0xff]  ;;  %v774_v17 = vcombine.high %v991_v6, %v989_v5  ;;  %v773_v18 = vcombine.low %v991_v6, %v989_v5 }
  0x21   : > { %339 = vst [vmem:[#allocation3 + $0x14] sm:$0xff] %v989_v5  ;;  %338 = vst [vmem:[#allocation3] sm:$0xff] %v991_v6  ;;  %422 = vrot.lane.b32.xlu0 %v991_v6, %s903_s23  ;;  %v778_v15 = vcombine.high %v1000_v8, %v993_v7  ;;  %v777_v16 = vcombine.low %v1000_v8, %v993_v7  ;;  %v1020_v19 = vld [vmem:[%s1093_s2] sm:$0xff]  ;;  %vm382_vm3 = vcmask 1039360   ;;  %s1104_s17 = smov (!%p326_p9, %s892_s17), 1 }
  0x22   : > { %343 = vst [vmem:[#allocation3 + $0x1c] sm:$0xff] %v993_v7  ;;  %342 = vst [vmem:[#allocation3 + $0x8] sm:$0xff] %v1000_v8  ;;  %v772_v20 = vcombine.high %v1020_v19, %v1020_v19  ;;  %v484_v21 = vld [vmem:[%s1094_s3] sm:$0xff]  ;;  %s797_s29 = sshll.u32 %s1104_s17, 3 }
  0x23   : > { %s333_s6 = scalar_lea.vmem %s1095_s4, %s797_s29 }
  0x24   : > { %428 = vrot.lane.b32.xlu1 %v993_v7, %s903_s23  ;;  %791 = vmatprep.mubr.msk.bf16.mxu0 %vm586_vm0, %v772_v20 }
  0x25   : > { %424 = vrot.lane.b32.xlu0 %v1000_v8, %s903_s23 }
  0x27   : > { %v360_v9 = vld [vmem:[#allocation3 + $0x10] sm:$0xf]  ;;  %v363_v10 = vld [vmem:[#allocation3 + $0x24] sm:$0xf] }
  0x28   : > { %v842_v11 = vpack.i.bf16 %v363_v10, %v360_v9  ;;  %374 = vrot.lane.b32.xlu1 %v993_v7, %s904_s15  ;;  %v414_v12 = vld [vmem:[#allocation3 + $0x10] sm:$0xf]  ;;  %v417_v13 = vld [vmem:[#allocation3 + $0x24] sm:$0xf] }
  0x29   : > { %v847_v14 = vpack.i.bf16 %v417_v13, %v414_v12  ;;  %v857_v20 = vld [vmem:[#allocation3 + $0x4] ss:$20 sps:$4 sm:$0xff]  }
  0x2a   : > { %843 = vrot.lane.b32.xlu0 %v842_v11, %s904_s15 }
  0x2c   : > { %368 = vrot.lane.b32.xlu1 %v991_v6, %s904_s15 }
  0x2e   : > { %370 = vrot.lane.b32.xlu0 %v1000_v8, %s904_s15 }
  0x30   : > { %848 = vrot.lane.b32.xlu1 %v847_v14, %s903_s23  ;;  %v855_v14 = vld [vmem:[#allocation3 + $0x8] ss:$20 sps:$4 sm:$0xff]  }
  0x32   : > { %372 = vrot.lane.b32.xlu0 %v989_v5, %s904_s15 }
  0x36   : > { %487 = vperm.xlu0 %852, %v484_v21  }
  0x92   : > { %v427_v22 = vpop.permute.xlu1 %426 }
  0x93   : > { %v423_v23 = vpop.permute.xlu0 %422  ;;  %v432_v26 = vrot.slane %v427_v22, 4 }
  0x94   : > { %v430_v27 = vrot.slane %v423_v23, 4 }
  0x96   : > { %v1027_v24 = vpop.permute.xlu1 %428 }
  0x97   : > { %v1029_v25 = vpop.permute.xlu0 %424  ;;  %v433_v28 = vrot.slane %v1027_v24, 4 }
  0x98   : > { %v431_v29 = vrot.slane %v1029_v25, 4 }
  0x99   : > { %v437_v31 = vsel %vm380_vm1, %v432_v26, %v433_v28 }
  0x9a   : > { %v434_v30 = vsel %vm380_vm1, %v430_v27, %v431_v29  ;;  %v375_v32 = vpop.permute.xlu1 %374  ;;  %v444_v35 = vsel %vm435_vm2, %v437_v31, %v1027_v24  ;;  %v438_v37 = vsel %vm435_vm2, %v427_v22, %v437_v31 }
  0x9b   : > { %v443_v34 = vsel %vm435_vm2, %v434_v30, %v1029_v25  ;;  %v436_v36 = vsel %vm435_vm2, %v423_v23, %v434_v30  ;;  %v379_v38 = vrot.slane %v375_v32, 4 }
  0x9c   : > { %v844_v33 = vpop.permute.xlu0 %843  ;;  %v788_v41 = vcombine.high %v443_v34, %v444_v35  ;;  %v787_v42 = vcombine.low %v443_v34, %v444_v35  ;;  %v786_v44 = vcombine.high %v436_v36, %v438_v37  ;;  %v785_v51 = vcombine.low %v436_v36, %v438_v37 }
  0x9d   : > { %v846_v39 = vunpack.i.h.bf16 %v844_v33  ;;  %v845_v40 = vunpack.i.l.bf16 %v844_v33 }
  0x9e   : > { %590 = vmatprep.subr.bf16.mxu0 %v788_v41  ;;  %v369_v46 = vpop.permute.xlu1 %368 }
  0x9f   : > { %v403_v43 = vrot.slane %v846_v39, 4  ;;  %591 = vmatpush1.bf16.msra.mxu0 %v787_v42  ;;  %v402_v48 = vrot.slane %v845_v40, 4  ;;  %v376_v50 = vrot.slane %v369_v46, 4 }
  0xa0   : > { %v371_v45 = vpop.permute.xlu0 %370  ;;  %592 = vmatprep.subr.bf16.mxu0 %v786_v44 }
  0xa1   : > { %v406_v47 = vsel %vm380_vm1, %v379_v38, %v403_v43  ;;  %v377_v49 = vrot.slane %v371_v45, 4 }
  0xa2   : > { %v407_v55 = vsel %vm382_vm3, %v375_v32, %v406_v47  ;;  %v849_v3 = vpop.permute.xlu1 %848 }
  0xa3   : > { %v404_v52 = vsel %vm380_vm1, %v377_v49, %v402_v48  ;;  %593 = vmatpush1.bf16.msra.mxu0 %v785_v51  ;;  %v381_v58 = vsel %vm380_vm1, %v376_v50, %v377_v49  ;;  %v851_v9 = vunpack.i.h.bf16 %v849_v3  ;;  %v850_v10 = vunpack.i.l.bf16 %v849_v3 }
  0xa4   : > { %v405_v53 = vsel %vm382_vm3, %v371_v45, %v404_v52  ;;  %v373_v54 = vpop.permute.xlu0 %372  ;;  %v390_v63 = vsel %vm382_vm3, %v381_v58, %v371_v45  ;;  %v383_v2 = vsel %vm382_vm3, %v369_v46, %v381_v58 }
  0xa5   : > { %v378_v56 = vrot.slane %v373_v54, 4  ;;  %v784_v57 = vcombine.high %v405_v53, %v407_v55  ;;  %v783_v59 = vcombine.low %v405_v53, %v407_v55  ;;  %v456_v12 = vrot.slane %v851_v9, 4 }
  0xa6   : > { %v455_v13 = vrot.slane %v850_v10, 4 }
  0xa7   : > { %v384_v60 = vsel %vm380_vm1, %v378_v56, %v379_v38  ;;  %594 = vmatprep.subr.bf16.mxu0 %v784_v57  ;;  %v459_v21 = vsel %vm380_vm1, %v433_v28, %v456_v12 }
  0xa8   : > { %595 = vmatpush1.bf16.msra.mxu0 %v783_v59  ;;  %v391_v61 = vsel %vm382_vm3, %v384_v60, %v375_v32  ;;  %v385_v62 = vsel %vm382_vm3, %v373_v54, %v384_v60  ;;  %v457_v22 = vsel %vm380_vm1, %v431_v29, %v455_v13 }
  0xa9   : > { %v782_v0 = vcombine.high %v390_v63, %v391_v61  ;;  %v781_v1 = vcombine.low %v390_v63, %v391_v61  ;;  %v780_v4 = vcombine.high %v383_v2, %v385_v62  ;;  %v779_v11 = vcombine.low %v383_v2, %v385_v62 }
  0xaa   : > { %v458_v23 = vsel %vm435_vm2, %v1029_v25, %v457_v22 }
  0xab   : > { %596 = vmatprep.subr.bf16.mxu0 %v782_v0 }
  0xac   : > { %597 = vmatpush1.bf16.msra.mxu0 %v781_v1 }
  0xad   : > { %598 = vmatprep.subr.bf16.mxu0 %v780_v4 }
  0xb0   : > { %599 = vmatpush1.bf16.msra.mxu0 %v779_v11 }
  0xb1   : > { %600 = vmatprep.subr.bf16.mxu0 %v778_v15  ;;  %v460_v15 = vsel %vm435_vm2, %v1027_v24, %v459_v21  ;;  %v488_v25 = vpop.permute.xlu0 %487 }
  0xb2   : > { %v790_v7 = vcombine.high %v458_v23, %v460_v15  ;;  %v789_v8 = vcombine.low %v458_v23, %v460_v15 }
  0xb4   : > { %601 = vmatpush1.bf16.msra.mxu0 %v777_v16  ;;  %v771_v16 = vcombine.low %v1020_v19, %v1020_v19 }
  0xb5   : > { %602 = vmatprep.subr.bf16.mxu0 %v855_v14 }
  0xb8   : > { %603 = vmatpush1.bf16.msra.mxu0 %v857_v20 }
  0xb9   : > { %604 = vmatprep.subr.bf16.mxu0 %v774_v17 }
  0xbc   : > { %605 = vmatpush1.bf16.msra.mxu0 %v773_v18 }
  0xbd   : > { %620 = vmatprep.subr.bf16.mxu0 %v790_v7 }
  0xc0   : > { %621 = vmatpush2.bf16.msra.mxu0 %v789_v8 }
  0xc3   : > { %623 = vmatmul.mubr.bf16.vlgmr.msra.gmra.mxu0 %v771_v16 }
 0x183   : > { %v624_v24 = vpop.f32.mrf.mxu0 }
 0x184   : > { %v625_v26 = vadd.f32 %v624_v24, %v488_v25 }
 0x185   : > { %v626_v27 = vpop.f32.mrf.mxu0 }
 0x186   : > { %v627_v17 = vadd.f32 %v626_v27, %v488_v25  ;;  %v631_v29 = vmax.f32 %v625_v26, 0.0 }
 0x187   : > { %v628_v28 = vpop.f32.mrf.mxu0 }
 0x188   : > { %v632_v30 = vmax.f32 %v627_v17, 0.0 }
 0x189   : > { %v629_v5 = vpop.f32.mrf.mxu0 }
 0x18a   : > { %v798_v6 = vpack.c.bf16 %v632_v30, %v631_v29 }
 0x18c   : > { %641 = vst [vmem:[%s333_s6] sm:$0xff] %v798_v6 }
 0x18d PF: > { %s14_s19 = sadd.s32 1, %s900_s19   ;;  %s1097_s15 = smov %s888_s16 }
 0x18e   : > { %p11_p10 = scmp.ge.s32.totalorder %s14_s19, 4   ;;  %s1098_s16 = smov %s969_s24 }
 0x18f   : > { %s1099_s17 = smov %s896_s18  ;;  %s1100_s18 = smov %s1102_s20 }
 0x190   :  { %13 = sbr.rel (!%p11_p10) target bundleno = 3 (0x3), region = 155 }

// kernel: enhance_net_dce_pool_forward.12
= control target key start
LH: loop header
LB: loop body
LE: loop exit
PB: predicated region body
PF: predicated region fallthrough
CT: control target
= control target key end

     0   :  { %s1500_s21 = smov 0   ;;  %s1502_s22 = smov 0   ;;  %s1761_s0 = inlined_call_operand.vmem [shape: bf16[2,16,512], index: 0, kind: input, shape index: {}, may-alias: {0,1}]   ;;  %s1762_s1 = inlined_call_operand.vmem [shape: bf16[2,16,512], index: 1, kind: input, shape index: {}, may-alias: {0,1}]   ;;  %s1763_s2 = inlined_call_operand.vmem [shape: bf16[2,16,512], index: 2, kind: input, shape index: {}, may-alias: {2,3}]   ;;  %s1764_s3 = inlined_call_operand.vmem [shape: bf16[2,16,512], index: 3, kind: input, shape index: {}, may-alias: {2,3}]   ;;  %s1765_s4 = inlined_call_operand.vmem [shape: bf16[8,288], index: 4, kind: input, shape index: {}]   ;;  %s1766_s5 = inlined_call_operand.vmem [shape: f32[8,1], index: 5, kind: input, shape index: {}]   ;;  %s1767_s6 = inlined_call_operand.vmem [shape: bf16[2,8,256], index: 6, kind: output, shape index: {}]  }
   0x1   :  { %s1504_s23 = smov 0   ;;  %s1506_s24 = smov 0  }
   0x2   :  { %s1508_s25 = smov 0  }
   0x3 LB: > { %s28_s26 = sadd.s32 1, %s1456_s24  ;;  %p44_p1 = scmp.ne.s32.totalorder %s1448_s22, %s1444_s21  ;;  %s1460_s25 = sphi %s1508_s25, %s16_s25   ;;  %s1456_s24 = sphi %s1506_s24, %s1772_s24   ;;  %s1452_s23 = sphi %s1504_s23, %s1771_s23   ;;  %s1448_s22 = sphi %s1502_s22, %s1770_s22   ;;  %s1444_s21 = sphi %s1500_s21, %s1769_s21  }
   0x4   : > { %p30_p0 = scmp.ge.s32.totalorder %s28_s26, 2  ;;  %p45_p2 = scmp.eq.s32.totalorder %s1460_s25, 0 }
   0x5   : > { %s37_s29 = sadd.s32 1, %s1448_s22  ;;  %p1268_p5 = scmp.ge.s32.totalorder %s1460_s25, 2 }
   0x6   : > { %s1774_s26 = smov (%p30_p0, %s28_s26), 0  ;;  %p1531_p3 = por %p45_p2, %p44_p1 }
   0x7   : > { %s32_s28 = ssub.s32 %s1456_s24, %s1774_s26  ;;  %234 = sbr.rel (%p1268_p5) target bundleno = 32 (0x20), region = 24 }
   0x8   : > { %p35_p4 = scmp.eq.s32.totalorder %s32_s28, 0 }
   0xa   : > { %s1539_s30 = scalar_select %p35_p4, %s1448_s22, %s37_s29  }
   0xc   : > { %237 = sbr.rel (!%p1531_p3) target bundleno = 17 (0x11), region = 28  ;;  %s239_s7 = sand.u32 (%p1531_p3), 1, %s1448_s22  }
   0xd   : > { %s1335_s8 = sshll.u32 (%p1531_p3), %s1456_s24, 5  ;;  %s1269_s9 = sshll.u32 (%p1531_p3), %s239_s7, 4 }
   0xe   : > { %s246_s12 = scalar_lea.vmem (%p1531_p3), %s1761_s0, %s1335_s8  ;;  %s241_s13 = scalar_lea.vmem (%p1531_p3), [#allocation5], %s1269_s9 }
   0xf   : > { %v277_v0 = vld [vmem:[%s246_s12] sm:$0xff] (%p1531_p3)  ;;  %v279_v1 = vld [vmem:[%s246_s12 + $0x10] sm:$0xff] (%p1531_p3) }
  0x10   : > { %278 = vst [vmem:[%s241_s13] sm:$0xff] (%p1531_p3), %v277_v0  ;;  %280 = vst [vmem:[%s241_s13 + $0x8] sm:$0xff] (%p1531_p3), %v279_v1 }
  0x11 PF: > { %286 = sbr.rel (!%p1531_p3) target bundleno = 22 (0x16), region = 66  ;;  %s288_s14 = sand.u32 (%p1531_p3), 1, %s1448_s22  }
  0x12   : > { %s1336_s15 = sshll.u32 (%p1531_p3), %s1456_s24, 5  ;;  %s1272_s16 = sshll.u32 (%p1531_p3), %s288_s14, 4 }
  0x13   : > { %s1153_s19 = scalar_lea.vmem (%p1531_p3), %s1762_s1, %s1336_s15  ;;  %s290_s20 = scalar_lea.vmem (%p1531_p3), [#allocation6], %s1272_s16 }
  0x14   : > { %v1275_v2 = vld [vmem:[%s1153_s19 + $0x8] sm:$0xff] (%p1531_p3)  ;;  %v1276_v3 = vld [vmem:[%s1153_s19 + $0x18] sm:$0xff] (%p1531_p3) }
  0x15   : > { %328 = vst [vmem:[%s290_s20] sm:$0xff] (%p1531_p3), %v1275_v2  ;;  %330 = vst [vmem:[%s290_s20 + $0x8] sm:$0xff] (%p1531_p3), %v1276_v3 }
  0x16 PF: > { %336 = sbr.rel (!%p1531_p3) target bundleno = 27 (0x1b), region = 104  ;;  %s338_s28 = sand.u32 (%p1531_p3), 1, %s1448_s22  }
  0x17   : > { %s1337_s29 = sshll.u32 (%p1531_p3), %s1456_s24, 5  ;;  %s1277_s7 = sshll.u32 (%p1531_p3), %s338_s28, 4 }
  0x18   : > { %s345_s10 = scalar_lea.vmem (%p1531_p3), %s1763_s2, %s1337_s29  ;;  %s340_s11 = scalar_lea.vmem (%p1531_p3), [#allocation7], %s1277_s7 }
  0x19   : > { %v376_v4 = vld [vmem:[%s345_s10] sm:$0xff] (%p1531_p3)  ;;  %v378_v5 = vld [vmem:[%s345_s10 + $0x10] sm:$0xff] (%p1531_p3) }
  0x1a   : > { %377 = vst [vmem:[%s340_s11] sm:$0xff] (%p1531_p3), %v376_v4  ;;  %379 = vst [vmem:[%s340_s11 + $0x8] sm:$0xff] (%p1531_p3), %v378_v5 }
  0x1b PF: > { %385 = sbr.rel (!%p1531_p3) target bundleno = 32 (0x20), region = 142  ;;  %s387_s12 = sand.u32 (%p1531_p3), 1, %s1448_s22  }
  0x1c   : > { %s1338_s13 = sshll.u32 (%p1531_p3), %s1456_s24, 5  ;;  %s1280_s14 = sshll.u32 (%p1531_p3), %s387_s12, 4 }
  0x1d   : > { %s1168_s17 = scalar_lea.vmem (%p1531_p3), %s1764_s3, %s1338_s13  ;;  %s389_s18 = scalar_lea.vmem (%p1531_p3), [#allocation8], %s1280_s14 }
  0x1e   : > { %v1283_v6 = vld [vmem:[%s1168_s17 + $0x8] sm:$0xff] (%p1531_p3)  ;;  %v1284_v7 = vld [vmem:[%s1168_s17 + $0x18] sm:$0xff] (%p1531_p3) }
  0x1f   : > { %427 = vst [vmem:[%s389_s18] sm:$0xff] (%p1531_p3), %v1283_v6  ;;  %429 = vst [vmem:[%s389_s18 + $0x8] sm:$0xff] (%p1531_p3), %v1284_v7 }
  0x20 PF: > { %p1285_p6 = scmp.ge.s32.totalorder %s1460_s25, 1  ;;  %p434_p7 = scmp.lt.s32.totalorder %s1460_s25, 3 }
  0x22   : > { %p435_p8 = pnand %p1285_p6, %p434_p7 }
  0x23   : > { %s441_s27 = sand.u32 (!%p435_p8), 1, %s1444_s21   ;;  %s1463_s29 = smov (!%p435_p8), 126  }
  0x24   : > { %438 = sbr.rel (%p435_p8) target bundleno = 437 (0x1b5), region = 180  ;;  %s1286_s19 = sshll.u32 (!%p435_p8), %s441_s27, 4 }
  0x25   : > { %s443_s20 = scalar_lea.vmem (!%p435_p8), [#allocation5], %s1286_s19  ;;  %s450_s28 = scalar_lea.vmem (!%p435_p8), [#allocation6], %s1286_s19 }
  0x26   : > { %s457_s21 = scalar_lea.vmem (!%p435_p8), [#allocation7], %s1286_s19  ;;  %s464_s7 = scalar_lea.vmem (!%p435_p8), [#allocation8], %s1286_s19 }
  0x27   : > { %s1464_s8 = smov (!%p435_p8), 127   ;;  %p514_p9 = scmp.lt.s32.totalorder (!%p435_p8), %s1452_s23, 1 }
  0x29   : > { %v1462_v8 = vmov 0   ;;  %v1573_v9 = vld [vmem:[%s443_s20 + $0x8] sm:$0xff]  ;;  %v1575_v10 = vld [vmem:[%s443_s20] sm:$0xff]  ;;  %vm568_vm0 = vcmask 1043456   ;;  %vm623_vm1 = vcmask 1031168   ;;  %vm570_vm2 = vcmask 1039360  }
  0x2a   : > { %532 = vst [vmem:[#allocation3 + $0x10] sm:$0xf] %v1462_v8  ;;  %533 = vst [vmem:[#allocation3 + $0x24] sm:$0xf] %v1462_v8  ;;  %1090 = vmatprep.mubr.bf16.mxu1 %v1462_v8  ;;  %1404 = vset.pattern.permute.xlu0 %v1462_v8  ;;  %v1577_v11 = vld [vmem:[%s450_s28 + $0x8] sm:$0xff]  ;;  %v1586_v12 = vld [vmem:[%s450_s28] sm:$0xff]  ;;  %v1296_v25 = vcombine.high %v1575_v10, %v1573_v9  ;;  %v1295_v26 = vcombine.low %v1575_v10, %v1573_v9 }
  0x2b   : > { %661 = vst [vmem:[#allocation4 + $0x10] sm:$0xf] %v1462_v8  ;;  %662 = vst [vmem:[#allocation4 + $0x24] sm:$0xf] %v1462_v8  ;;  %614 = vrot.lane.b32.xlu1 %v1573_v9, %s1463_s29  ;;  %610 = vrot.lane.b32.xlu0 %v1575_v10, %s1463_s29  ;;  %v1588_v13 = vld [vmem:[%s457_s21] sm:$0xff]  ;;  %v1594_v15 = vld [vmem:[%s457_s21 + $0x8] sm:$0xff]  ;;  %v1300_v20 = vcombine.high %v1586_v12, %v1577_v11  ;;  %v1299_v21 = vcombine.low %v1586_v12, %v1577_v11 }
  0x2c   : > { %527 = vst [vmem:[#allocation3 + $0x14] sm:$0xff] %v1573_v9  ;;  %526 = vst [vmem:[#allocation3] sm:$0xff] %v1575_v10  ;;  %v1592_v14 = vld [vmem:[%s464_s7] sm:$0xff]  ;;  %v1596_v16 = vld [vmem:[%s464_s7 + $0x8] sm:$0xff]  ;;  %v1314_v35 = vcombine.high %v1588_v13, %v1594_v15  ;;  %v1313_v36 = vcombine.low %v1588_v13, %v1594_v15  ;;  %vm1013_vm3 = vcmask 261120   ;;  %s1776_s23 = smov (!%p514_p9, %s1452_s23), 1 }
  0x2d   : > { %531 = vst [vmem:[#allocation3 + $0x1c] sm:$0xff] %v1577_v11  ;;  %530 = vst [vmem:[#allocation3 + $0x8] sm:$0xff] %v1586_v12  ;;  %v1318_v33 = vcombine.high %v1592_v14, %v1596_v16  ;;  %v1317_v34 = vcombine.low %v1592_v14, %v1596_v16  ;;  %v1642_v37 = vld [vmem:[%s1765_s4] sm:$0xff]  ;;  %s1339_s15 = sshll.u32 %s1776_s23, 3 }
  0x2e   : > { %655 = vst [vmem:[#allocation4] sm:$0xff] %v1588_v13  ;;  %659 = vst [vmem:[#allocation4 + $0x8] sm:$0xff] %v1592_v14  ;;  %v1293_v38 = vcombine.high %v1642_v37, %v1642_v37  ;;  %v817_v39 = vld [vmem:[%s1766_s5] sm:$0xff]  ;;  %s521_s18 = scalar_lea.vmem %s1767_s6, %s1339_s15 }
  0x2f   : > { %656 = vst [vmem:[#allocation4 + $0x14] sm:$0xff] %v1594_v15  ;;  %660 = vst [vmem:[#allocation4 + $0x1c] sm:$0xff] %v1596_v16  ;;  %616 = vrot.lane.b32.xlu1 %v1577_v11, %s1463_s29  ;;  %612 = vrot.lane.b32.xlu0 %v1586_v12, %s1463_s29 }
  0x30   : > { %1049 = vmatprep.mubr.bf16.mxu0 %v1293_v38 }
  0x31   : > { %v548_v17 = vld [vmem:[#allocation3 + $0x10] sm:$0xf]  ;;  %v551_v18 = vld [vmem:[#allocation3 + $0x24] sm:$0xf] }
  0x32   : > { %v1384_v19 = vpack.i.bf16 %v551_v18, %v548_v17  ;;  %v677_v22 = vld [vmem:[#allocation4 + $0x10] sm:$0xf]  ;;  %v680_v23 = vld [vmem:[#allocation4 + $0x24] sm:$0xf]  ;;  %v602_v29 = vld [vmem:[#allocation3 + $0x10] sm:$0xf] }
  0x33   : > { %562 = vrot.lane.b32.xlu1 %v1577_v11, %s1464_s8  ;;  %v1389_v24 = vpack.i.bf16 %v680_v23, %v677_v22  ;;  %v729_v27 = vld [vmem:[#allocation4 + $0x10] sm:$0xf]  ;;  %v732_v28 = vld [vmem:[#allocation4 + $0x24] sm:$0xf]  ;;  %v605_v30 = vld [vmem:[#allocation3 + $0x24] sm:$0xf] }
  0x34   : > { %1385 = vrot.lane.b32.xlu0 %v1384_v19, %s1464_s8  ;;  %v1394_v31 = vpack.i.bf16 %v732_v28, %v729_v27  ;;  %v1399_v32 = vpack.i.bf16 %v605_v30, %v602_v29 }
  0x37   : > { %556 = vrot.lane.b32.xlu1 %v1575_v10, %s1464_s8 }
  0x38   : > { %558 = vrot.lane.b32.xlu0 %v1586_v12, %s1464_s8 }
  0x3b   : > { %737 = vrot.lane.b32.xlu1 %v1588_v13, %s1463_s29 }
  0x3c   : > { %560 = vrot.lane.b32.xlu0 %v1573_v9, %s1464_s8 }
  0x3f   : > { %741 = vrot.lane.b32.xlu1 %v1594_v15, %s1463_s29 }
  0x40   : > { %739 = vrot.lane.b32.xlu0 %v1592_v14, %s1463_s29 }
  0x43   : > { %687 = vrot.lane.b32.xlu1 %v1592_v14, %s1464_s8 }
  0x44   : > { %743 = vrot.lane.b32.xlu0 %v1596_v16, %s1463_s29 }
  0x47   : > { %1390 = vrot.lane.b32.xlu1 %v1389_v24, %s1464_s8 }
  0x48   : > { %691 = vrot.lane.b32.xlu0 %v1596_v16, %s1464_s8 }
  0x4b   : > { %689 = vrot.lane.b32.xlu1 %v1594_v15, %s1464_s8 }
  0x4c   : > { %685 = vrot.lane.b32.xlu0 %v1588_v13, %s1464_s8 }
  0x4f   : > { %1400 = vrot.lane.b32.xlu1 %v1399_v32, %s1463_s29 }
  0x50   : > { %1395 = vrot.lane.b32.xlu0 %v1394_v31, %s1463_s29 }
  0x54   : > { %820 = vperm.xlu0 %1404, %v817_v39  }
  0x9d   : > { %v615_v40 = vpop.permute.xlu1 %614  ;;  %v611_v41 = vpop.permute.xlu0 %610 }
  0x9e   : > { %v620_v44 = vrot.slane %v615_v40, 4  ;;  %v618_v45 = vrot.slane %v611_v41, 4 }
  0xa1   : > { %v1649_v42 = vpop.permute.xlu1 %616  ;;  %v1651_v43 = vpop.permute.xlu0 %612 }
  0xa2   : > { %v621_v46 = vrot.slane %v1649_v42, 4  ;;  %v619_v47 = vrot.slane %v1651_v43, 4 }
  0xa4   : > { %v622_v48 = vsel %vm568_vm0, %v618_v45, %v619_v47  ;;  %v625_v49 = vsel %vm568_vm0, %v620_v44, %v621_v46 }
  0xa5   : > { %v563_v50 = vpop.permute.xlu1 %562  ;;  %v631_v52 = vsel %vm623_vm1, %v622_v48, %v1651_v43  ;;  %v632_v53 = vsel %vm623_vm1, %v625_v49, %v1649_v42  ;;  %v624_v54 = vsel %vm623_vm1, %v611_v41, %v622_v48  ;;  %v626_v55 = vsel %vm623_vm1, %v615_v40, %v625_v49 }
  0xa6   : > { %v1386_v51 = vpop.permute.xlu0 %1385  ;;  %v567_v56 = vrot.slane %v563_v50, 4  ;;  %v1310_v59 = vcombine.high %v631_v52, %v632_v53  ;;  %v1309_v60 = vcombine.low %v631_v52, %v632_v53  ;;  %v1308_v62 = vcombine.high %v624_v54, %v626_v55 }
  0xa7   : > { %v1388_v57 = vunpack.i.h.bf16 %v1386_v51  ;;  %v1387_v58 = vunpack.i.l.bf16 %v1386_v51  ;;  %v1307_v5 = vcombine.low %v624_v54, %v626_v55 }
  0xa8   : > { %1017 = vmatprep.subr.bf16.mxu0 %v1310_v59 }
  0xa9   : > { %v591_v61 = vrot.slane %v1388_v57, 4  ;;  %1018 = vmatpush1.bf16.msra.mxu0 %v1309_v60  ;;  %v557_v0 = vpop.permute.xlu1 %556  ;;  %v590_v2 = vrot.slane %v1387_v58, 4  ;;  %v1407_v57 = vld [vmem:[#allocation3 + $0x8] ss:$20 sps:$4 sm:$0xff]  }
  0xaa   : > { %v559_v63 = vpop.permute.xlu0 %558  ;;  %1019 = vmatprep.subr.bf16.mxu0 %v1308_v62  ;;  %v564_v4 = vrot.slane %v557_v0, 4 }
  0xab   : > { %v594_v1 = vsel %vm568_vm0, %v567_v56, %v591_v61  ;;  %v565_v3 = vrot.slane %v559_v63, 4  ;;  %v1409_v61 = vld [vmem:[#allocation3 + $0x4] ss:$20 sps:$4 sm:$0xff]  }
  0xac   : > { %v595_v18 = vsel %vm570_vm2, %v563_v50, %v594_v1 }
  0xad   : > { %v592_v6 = vsel %vm568_vm0, %v565_v3, %v590_v2  ;;  %1020 = vmatpush1.bf16.msra.mxu0 %v1307_v5  ;;  %v738_v17 = vpop.permute.xlu1 %737  ;;  %v569_v24 = vsel %vm568_vm0, %v564_v4, %v565_v3 }
  0xae   : > { %v593_v7 = vsel %vm570_vm2, %v559_v63, %v592_v6  ;;  %v561_v8 = vpop.permute.xlu0 %560  ;;  %v578_v32 = vsel %vm570_vm2, %v569_v24, %v559_v63  ;;  %v571_v40 = vsel %vm570_vm2, %v557_v0, %v569_v24  ;;  %v745_v52 = vrot.slane %v738_v17, 4 }
  0xaf   : > { %v566_v19 = vrot.slane %v561_v8, 4  ;;  %v1306_v22 = vcombine.high %v593_v7, %v595_v18  ;;  %v1305_v23 = vcombine.low %v593_v7, %v595_v18 }
  0xb1   : > { %v572_v27 = vsel %vm568_vm0, %v566_v19, %v567_v56  ;;  %1021 = vmatprep.subr.bf16.mxu0 %v1306_v22  ;;  %v742_v29 = vpop.permute.xlu1 %741 }
  0xb2   : > { %v1673_v28 = vpop.permute.xlu0 %739  ;;  %1022 = vmatpush1.bf16.msra.mxu0 %v1305_v23  ;;  %v579_v30 = vsel %vm570_vm2, %v572_v27, %v563_v50  ;;  %v573_v31 = vsel %vm570_vm2, %v561_v8, %v572_v27  ;;  %v747_v53 = vrot.slane %v742_v29, 4 }
  0xb3   : > { %v1304_v38 = vcombine.high %v578_v32, %v579_v30  ;;  %v1303_v39 = vcombine.low %v578_v32, %v579_v30  ;;  %v1302_v41 = vcombine.high %v571_v40, %v573_v31  ;;  %v1301_v48 = vcombine.low %v571_v40, %v573_v31 }
  0xb4   : > { %v746_v50 = vrot.slane %v1673_v28, 4 }
  0xb5   : > { %1023 = vmatprep.subr.bf16.mxu0 %v1304_v38  ;;  %v688_v45 = vpop.permute.xlu1 %687 }
  0xb6   : > { %v744_v44 = vpop.permute.xlu0 %743  ;;  %1024 = vmatpush1.bf16.msra.mxu0 %v1303_v39  ;;  %v749_v59 = vsel %vm568_vm0, %v745_v52, %v746_v50  ;;  %v694_v60 = vrot.slane %v688_v45, 4 }
  0xb7   : > { %1025 = vmatprep.subr.bf16.mxu0 %v1302_v41  ;;  %v748_v54 = vrot.slane %v744_v44, 4  ;;  %v750_v5 = vsel %vm623_vm1, %v738_v17, %v749_v59  ;;  %v757_v19 = vsel %vm623_vm1, %v749_v59, %v1673_v28  ;;  %v1414_v59 = vld [vmem:[#allocation4 + $0x8] ss:$20 sps:$4 sm:$0xff]  }
  0xb9   : > { %v1391_v51 = vpop.permute.xlu1 %1390  ;;  %v751_v62 = vsel %vm568_vm0, %v747_v53, %v748_v54 }
  0xba   : > { %v692_v49 = vpop.permute.xlu0 %691  ;;  %1026 = vmatpush1.bf16.msra.mxu0 %v1301_v48  ;;  %v1393_v55 = vunpack.i.h.bf16 %v1391_v51  ;;  %v1392_v56 = vunpack.i.l.bf16 %v1391_v51  ;;  %v752_v6 = vsel %vm623_vm1, %v742_v29, %v751_v62  ;;  %v758_v22 = vsel %vm623_vm1, %v751_v62, %v744_v44 }
  0xbb   : > { %1027 = vmatprep.subr.bf16.mxu0 %v1300_v20  ;;  %v696_v63 = vrot.slane %v692_v49, 4  ;;  %v1326_v17 = vcombine.high %v750_v5, %v752_v6  ;;  %v1325_v9 = vcombine.low %v750_v5, %v752_v6  ;;  %v1328_v39 = vcombine.high %v757_v19, %v758_v22 }
  0xbc   : > { %v718_v0 = vrot.slane %v1393_v55, 4  ;;  %v717_v1 = vrot.slane %v1392_v56, 4  ;;  %v1327_v52 = vcombine.low %v757_v19, %v758_v22 }
  0xbd   : > { %v690_v2 = vpop.permute.xlu1 %689 }
  0xbe   : > { %v686_v58 = vpop.permute.xlu0 %685  ;;  %1028 = vmatpush1.bf16.msra.mxu0 %v1299_v21  ;;  %v721_v7 = vsel %vm568_vm0, %v696_v63, %v718_v0  ;;  %v719_v11 = vsel %vm568_vm0, %v694_v60, %v717_v1  ;;  %v695_v21 = vrot.slane %v690_v2, 4 }
  0xbf   : > { %1029 = vmatprep.subr.bf16.mxu0 %v1407_v57  ;;  %v693_v12 = vrot.slane %v686_v58, 4  ;;  %v720_v23 = vsel %vm570_vm2, %v688_v45, %v719_v11  ;;  %v722_v24 = vsel %vm570_vm2, %v692_v49, %v721_v7 }
  0xc0   : > { %v699_v30 = vsel %vm568_vm0, %v695_v21, %v696_v63  ;;  %v1324_v38 = vcombine.high %v720_v23, %v722_v24  ;;  %v1323_v48 = vcombine.low %v720_v23, %v722_v24 }
  0xc1   : > { %v697_v29 = vsel %vm568_vm0, %v693_v12, %v694_v60  ;;  %v706_v41 = vsel %vm570_vm2, %v699_v30, %v692_v49  ;;  %v1416_v60 = vld [vmem:[#allocation4 + $0x4] ss:$20 sps:$4 sm:$0xff]  }
  0xc2   : > { %v1396_v3 = vpop.permute.xlu0 %1395  ;;  %1030 = vmatpush1.bf16.msra.mxu0 %v1409_v61  ;;  %v705_v40 = vsel %vm570_vm2, %v697_v29, %v688_v45  ;;  %v1401_v45 = vpop.permute.xlu1 %1400 }
  0xc3   : > { %v1398_v4 = vunpack.i.h.bf16 %v1396_v3  ;;  %v1397_v20 = vunpack.i.l.bf16 %v1396_v3  ;;  %1031 = vmatprep.subr.bf16.mxu0 %v1296_v25  ;;  %v1322_v51 = vcombine.high %v705_v40, %v706_v41  ;;  %v1321_v49 = vcombine.low %v705_v40, %v706_v41 }
  0xc4   : > { %v1402_v55 = vunpack.i.l.bf16 %v1401_v45 }
  0xc5   : > { %v770_v8 = vrot.slane %v1398_v4, 4  ;;  %v769_v18 = vrot.slane %v1397_v20, 4 }
  0xc6   : > { %1032 = vmatpush1.bf16.msra.mxu0 %v1295_v26 }
  0xc7   : > { %v771_v27 = vsel %vm568_vm0, %v746_v50, %v769_v18  ;;  %v773_v25 = vsel %vm568_vm0, %v748_v54, %v770_v8  ;;  %1033 = vmatprep.subr.bf16.mxu0 %v1326_v17  ;;  %v1419_v50 = vld [vmem:[%s1765_s4 + $0x8] ss:$0 sps:$4 sm:$0xff]   ;;  %v1403_v54 = vunpack.i.h.bf16 %v1401_v45 }
  0xc8   : > { %v772_v31 = vsel %vm623_vm1, %v1673_v28, %v771_v27  ;;  %v774_v32 = vsel %vm623_vm1, %v744_v44, %v773_v25  ;;  %v698_v28 = vsel %vm570_vm2, %v686_v58, %v697_v29  ;;  %v700_v44 = vsel %vm570_vm2, %v690_v2, %v699_v30 }
  0xc9   : > { %v1330_v10 = vcombine.high %v772_v31, %v774_v32  ;;  %v1329_v26 = vcombine.low %v772_v31, %v774_v32  ;;  %v1320_v53 = vcombine.high %v698_v28, %v700_v44  ;;  %v1319_v56 = vcombine.low %v698_v28, %v700_v44 }
  0xca   : > { %1034 = vmatpush2.bf16.msra.mxu0 %v1325_v9  ;;  %v644_v57 = vrot.slane %v1403_v54, 4  ;;  %v643_v58 = vrot.slane %v1402_v55, 4 }
  0xcb   : > { %1070 = vmatprep.subr.bf16.mxu1 %v1330_v10  ;;  %1035 = vmatprep.subr.bf16.mxu0 %v1324_v38 }
  0xcc   : > { %1071 = vmatpush1.bf16.msra.mxu1 %v1329_v26  ;;  %v647_v61 = vsel %vm568_vm0, %v621_v46, %v644_v57  ;;  %v645_v62 = vsel %vm568_vm0, %v619_v47, %v643_v58 }
  0xcd   : > { %1072 = vmatprep.subr.bf16.mxu1 %v1328_v39  ;;  %v648_v63 = vsel %vm623_vm1, %v1649_v42, %v647_v61 }
  0xce   : > { %1036 = vmatpush2.bf16.msra.mxu0 %v1323_v48 }
  0xcf   : > { %1037 = vmatprep.subr.bf16.mxu0 %v1322_v51  ;;  %v821_v0 = vpop.permute.xlu0 %820 }
  0xd0   : > { %1073 = vmatpush1.bf16.msra.mxu1 %v1327_v52 }
  0xd2   : > { %1038 = vmatpush2.bf16.msra.mxu0 %v1321_v49 }
  0xd3   : > { %1331 = vmatmul.mubr.msk.bf16.vlgmr.msra.gmra.mxu1 %vm1013_vm3, %v1419_v50  ;;  %1039 = vmatprep.subr.bf16.mxu0 %v1320_v53 }
  0xd6   : > { %1040 = vmatpush2.bf16.msra.mxu0 %v1319_v56 }
  0xd7   : > { %1041 = vmatprep.subr.bf16.mxu0 %v1318_v33  ;;  %v646_v33 = vsel %vm623_vm1, %v1651_v43, %v645_v62 }
  0xd8   : > { %v1312_v14 = vcombine.high %v646_v33, %v648_v63  ;;  %v1311_v16 = vcombine.low %v646_v33, %v648_v63 }
  0xda   : > { %1042 = vmatpush2.bf16.msra.mxu0 %v1317_v34  ;;  %v1292_v34 = vcombine.low %v1642_v37, %v1642_v37 }
  0xdb   : > { %1043 = vmatprep.subr.bf16.mxu0 %v1414_v59 }
  0xde   : > { %1044 = vmatpush2.bf16.msra.mxu0 %v1416_v60 }
  0xdf   : > { %1045 = vmatprep.subr.bf16.mxu0 %v1314_v35 }
  0xe2   : > { %1046 = vmatpush2.bf16.msra.mxu0 %v1313_v36 }
  0xe3   : > { %1047 = vmatprep.subr.bf16.mxu0 %v1312_v14 }
  0xe6   : > { %1048 = vmatpush2.bf16.msra.mxu0 %v1311_v16 }
  0xe9   : > { %1050 = vmatmul.mubr.bf16.vlgmr.msra.gmra.mxu0 %v1292_v34 }
 0x193   : > { %v1092_v43 = vpop.f32.mrf.mxu1 }
 0x195   : > { %v1094_v46 = vpop.f32.mrf.mxu1 }
 0x197   : > { %v1096_v42 = vpop.f32.mrf.mxu1 }
 0x199   : > { %v1097_v47 = vpop.f32.mrf.mxu1 }
 0x1a9   : > { %v1051_v35 = vpop.f32.mrf.mxu0 }
 0x1aa   : > { %v1052_v1 = vadd.f32 %v1051_v35, %v821_v0 }
 0x1ab   : > { %v1053_v2 = vpop.f32.mrf.mxu0 }
 0x1ac   : > { %v1093_v3 = vadd.f32 %v1092_v43, %v1052_v1  ;;  %v1054_v13 = vadd.f32 %v1053_v2, %v821_v0 }
 0x1ad   : > { %v1055_v15 = vpop.f32.mrf.mxu0 }
 0x1ae   : > { %v1095_v36 = vadd.f32 %v1094_v46, %v1054_v13  ;;  %v1099_v20 = vmax.f32 %v1093_v3, 0.0 }
 0x1af   : > { %v1056_v4 = vpop.f32.mrf.mxu0 }
 0x1b0   : > { %v1100_v37 = vmax.f32 %v1095_v36, 0.0 }
 0x1b2   : > { %v1340_v5 = vpack.c.bf16 %v1100_v37, %v1099_v20 }
 0x1b4   : > { %1109 = vst [vmem:[%s521_s18] sm:$0xff] %v1340_v5 }
 0x1b5 PF: > { %s16_s25 = sadd.s32 1, %s1460_s25   ;;  %s1769_s21 = smov %s1448_s22 }
 0x1b6   : > { %p13_p10 = scmp.ge.s32.totalorder %s16_s25, 4   ;;  %s1770_s22 = smov %s1539_s30 }
 0x1b7   : > { %s1771_s23 = smov %s1456_s24  ;;  %s1772_s24 = smov %s1774_s26 }
 0x1b8   :  { %15 = sbr.rel (!%p13_p10) target bundleno = 3 (0x3), region = 255 }

// kernel: enhance_net_dce_pool_forward.13
= control target key start
LH: loop header
LB: loop body
LE: loop exit
PB: predicated region body
PF: predicated region fallthrough
CT: control target
= control target key end

     0   :  { %s3074_s21 = smov 0   ;;  %s3076_s22 = smov 0   ;;  %s3539_s0 = inlined_call_operand.vmem [shape: bf16[2,16,768], index: 0, kind: input, shape index: {}, may-alias: {0,1}]   ;;  %s3540_s1 = inlined_call_operand.vmem [shape: bf16[2,16,768], index: 1, kind: input, shape index: {}, may-alias: {0,1}]   ;;  %s3541_s2 = inlined_call_operand.vmem [shape: bf16[2,16,768], index: 2, kind: input, shape index: {}, may-alias: {2,3}]   ;;  %s3542_s3 = inlined_call_operand.vmem [shape: bf16[2,16,768], index: 3, kind: input, shape index: {}, may-alias: {2,3}]   ;;  %s3543_s4 = inlined_call_operand.vmem [shape: bf16[8,288], index: 4, kind: input, shape index: {}]   ;;  %s3544_s5 = inlined_call_operand.vmem [shape: f32[8,1], index: 5, kind: input, shape index: {}]   ;;  %s3545_s6 = inlined_call_operand.vmem [shape: bf16[2,8,512], index: 6, kind: output, shape index: {}]  }
   0x1   :  { %s3078_s23 = smov 0   ;;  %s3080_s24 = smov 0  }
   0x2   :  { %s3082_s25 = smov 0  }
   0x3 LB: > { %s28_s26 = sadd.s32 1, %s2998_s24  ;;  %p44_p1 = scmp.ne.s32.totalorder %s2990_s22, %s2986_s21  ;;  %s3002_s25 = sphi %s3082_s25, %s16_s25   ;;  %s2998_s24 = sphi %s3080_s24, %s3561_s24   ;;  %s2994_s23 = sphi %s3078_s23, %s3560_s23   ;;  %s2990_s22 = sphi %s3076_s22, %s3559_s22   ;;  %s2986_s21 = sphi %s3074_s21, %s3558_s21  }
   0x4   : > { %p30_p0 = scmp.ge.s32.totalorder %s28_s26, 2  ;;  %p45_p2 = scmp.eq.s32.totalorder %s3002_s25, 0 }
   0x5   : > { %s37_s29 = sadd.s32 1, %s2990_s22  ;;  %p2651_p5 = scmp.ge.s32.totalorder %s3002_s25, 2 }
   0x6   : > { %s3563_s26 = smov (%p30_p0, %s28_s26), 0  ;;  %p3105_p3 = por %p45_p2, %p44_p1 }
   0x7   : > { %s32_s28 = ssub.s32 %s2998_s24, %s3563_s26  ;;  %238 = sbr.rel (%p2651_p5) target bundleno = 50 (0x32), region = 24 }
   0x8   : > { %p35_p4 = scmp.eq.s32.totalorder %s32_s28, 0 }
   0xa   : > { %s3113_s30 = scalar_select %p35_p4, %s2990_s22, %s37_s29  }
   0xc   : > { %241 = sbr.rel (!%p3105_p3) target bundleno = 25 (0x19), region = 28  ;;  %s243_s7 = sand.u32 (%p3105_p3), 1, %s2990_s22  }
   0xd   : > { %s2775_s8 = smul.u32 (%p3105_p3), 48, %s2998_s24  ;;  %s2652_s9 = sshll.u32 (%p3105_p3), %s243_s7, 5 }
   0xe   : > { %s245_s13 = scalar_lea.vmem (%p3105_p3), [#allocation5], %s2652_s9   ;;  %s3012_s16 = smov (%p3105_p3), 0  }
   0xf   : > { %s255_s12 = scalar_lea.vmem (%p3105_p3), %s3539_s0, %s2775_s8   ;;  %s3004_s14 = smov (%p3105_p3), %s245_s13  }
  0x10   : > { %s3008_s15 = smov (%p3105_p3), %s255_s12   ;;  %s3016_s17 = smov (%p3105_p3), 0  }
  0x11 LB: >> { %v454_v0 = vld [vmem:[%s3010_s15] sm:$0xff]  ;;  %v456_v1 = vld [vmem:[%s3010_s15 + $0x18] sm:$0xff]  ;;  %s458_s18 = sadd.s32 1, %s3014_s16  ;;  %s448_s17 = sadd.s32 1, %s3018_s17   ;;  %s3018_s17 = sphi %s3016_s17, %s448_s17   ;;  %s3014_s16 = sphi %s3012_s16, %s3013_s16   ;;  %s3010_s15 = sphi %s3008_s15, %s463_s15   ;;  %s3006_s14 = sphi %s3004_s14, %s464_s14  }
  0x12   : >> { %455 = vst [vmem:[%s3006_s14] sm:$0xff] %v454_v0  ;;  %457 = vst [vmem:[%s3006_s14 + $0x10] sm:$0xff] %v456_v1  ;;  %p459_p6 = scmp.ge.s32.totalorder %s458_s18, 2  ;;  %p447_p7 = scmp.ge.s32.totalorder %s448_s17, 2 }
  0x14   : >> { %s3565_s18 = smov (%p459_p6, %s458_s18), 0  ;;  %450 = sbr.rel (!%p447_p7) target bundleno = 17 (0x11), region = 358 }
  0x15   : >> { %s2656_s19 = sshll.u32 %s3565_s18, 3  ;;  %s3013_s16 = smov %s3565_s18  }
  0x16   : >> { %s463_s15 = scalar_lea.vmem %s255_s12, %s2656_s19   ;;  %s464_s14 = scalar_lea.vmem %s245_s13, %s2656_s19 [#allocation5]  }
  0x19 PF: > { %669 = sbr.rel (!%p3105_p3) target bundleno = 31 (0x1f), region = 94  ;;  %s671_s20 = sand.u32 (%p3105_p3), 1, %s2990_s22  }
  0x1a   : > { %s2665_s28 = smul.u32 (%p3105_p3), 48, %s2998_s24  ;;  %s2664_s29 = sshll.u32 (%p3105_p3), %s671_s20, 4 }
  0x1b   : > { %s673_s10 = scalar_lea.vmem (%p3105_p3), [#allocation6], %s2664_s29 }
  0x1c   : > { %s2394_s9 = scalar_lea.vmem (%p3105_p3), %s3540_s1, %s2665_s28 }
  0x1d   : > { %v2666_v2 = vld [vmem:[%s2394_s9 + $0x10] sm:$0xff] (%p3105_p3)  ;;  %v2667_v3 = vld [vmem:[%s2394_s9 + $0x28] sm:$0xff] (%p3105_p3) }
  0x1e   : > { %712 = vst [vmem:[%s673_s10] sm:$0xff] %v2666_v2  ;;  %714 = vst [vmem:[%s673_s10 + $0x8] sm:$0xff] %v2667_v3 }
  0x1f PF: > { %720 = sbr.rel (!%p3105_p3) target bundleno = 44 (0x2c), region = 132  ;;  %s722_s11 = sand.u32 (%p3105_p3), 1, %s2990_s22  }
  0x20   : > { %s2776_s12 = smul.u32 (%p3105_p3), 48, %s2998_s24  ;;  %s2668_s13 = sshll.u32 (%p3105_p3), %s722_s11, 5 }
  0x21   : > { %s724_s17 = scalar_lea.vmem (%p3105_p3), [#allocation7], %s2668_s13   ;;  %s3028_s20 = smov (%p3105_p3), 0  }
  0x22   : > { %s734_s16 = scalar_lea.vmem (%p3105_p3), %s3541_s2, %s2776_s12   ;;  %s3020_s18 = smov (%p3105_p3), %s724_s17  }
  0x23   : > { %s3024_s19 = smov (%p3105_p3), %s734_s16   ;;  %s3032_s28 = smov (%p3105_p3), 0  }
  0x24 LB: >> { %v933_v4 = vld [vmem:[%s3026_s19] sm:$0xff]  ;;  %v935_v5 = vld [vmem:[%s3026_s19 + $0x18] sm:$0xff]  ;;  %s937_s29 = sadd.s32 1, %s3030_s20  ;;  %s927_s28 = sadd.s32 1, %s3034_s28   ;;  %s3034_s28 = sphi %s3032_s28, %s927_s28   ;;  %s3030_s20 = sphi %s3028_s20, %s3029_s20   ;;  %s3026_s19 = sphi %s3024_s19, %s942_s19   ;;  %s3022_s18 = sphi %s3020_s18, %s943_s18  }
  0x25   : >> { %934 = vst [vmem:[%s3022_s18] sm:$0xff] %v933_v4  ;;  %936 = vst [vmem:[%s3022_s18 + $0x10] sm:$0xff] %v935_v5  ;;  %p938_p8 = scmp.ge.s32.totalorder %s937_s29, 2  ;;  %p926_p9 = scmp.ge.s32.totalorder %s927_s28, 2 }
  0x27   : >> { %s3567_s29 = smov (%p938_p8, %s937_s29), 0  ;;  %929 = sbr.rel (!%p926_p9) target bundleno = 36 (0x24), region = 402 }
  0x28   : >> { %s2672_s7 = sshll.u32 %s3567_s29, 3  ;;  %s3029_s20 = smov %s3567_s29  }
  0x29   : >> { %s942_s19 = scalar_lea.vmem %s734_s16, %s2672_s7   ;;  %s943_s18 = scalar_lea.vmem %s724_s17, %s2672_s7 [#allocation7]  }
  0x2c PF: > { %1148 = sbr.rel (!%p3105_p3) target bundleno = 50 (0x32), region = 198  ;;  %s1150_s8 = sand.u32 (%p3105_p3), 1, %s2990_s22  }
  0x2d   : > { %s2681_s9 = smul.u32 (%p3105_p3), 48, %s2998_s24  ;;  %s2680_s10 = sshll.u32 (%p3105_p3), %s1150_s8, 4 }
  0x2e   : > { %s1152_s14 = scalar_lea.vmem (%p3105_p3), [#allocation8], %s2680_s10 }
  0x2f   : > { %s2431_s13 = scalar_lea.vmem (%p3105_p3), %s3542_s3, %s2681_s9 }
  0x30   : > { %v2682_v6 = vld [vmem:[%s2431_s13 + $0x10] sm:$0xff] (%p3105_p3)  ;;  %v2683_v7 = vld [vmem:[%s2431_s13 + $0x28] sm:$0xff] (%p3105_p3) }
  0x31   : > { %1191 = vst [vmem:[%s1152_s14] sm:$0xff] %v2682_v6  ;;  %1193 = vst [vmem:[%s1152_s14 + $0x8] sm:$0xff] %v2683_v7 }
  0x32 PF: > { %p2684_p10 = scmp.ge.s32.totalorder %s3002_s25, 1  ;;  %p1198_p11 = scmp.lt.s32.totalorder %s3002_s25, 3 }
  0x34   : > { %p1199_p12 = pnand %p2684_p10, %p1198_p11 }
  0x35   : > { %s1205_s27 = sand.u32 (!%p1199_p12), 1, %s2986_s21   ;;  %s3037_s18 = smov (!%p1199_p12), 126  }
  0x36   : > { %1202 = sbr.rel (%p1199_p12) target bundleno = 480 (0x1e0), region = 236  ;;  %s2685_s15 = sshll.u32 (!%p1199_p12), %s1205_s27, 5 }
  0x37   : > { %s3147_s16 = sshll.u32 (!%p1199_p12), %s1205_s27, 4  ;;  %s1221_s17 = scalar_lea.vmem (!%p1199_p12), [#allocation7], %s2685_s15 }
  0x38   : > { %s1228_s21 = scalar_lea.vmem (!%p1199_p12), [#allocation8], %s3147_s16  ;;  %s1207_s19 = scalar_lea.vmem (!%p1199_p12), [#allocation5], %s2685_s15 }
  0x39   : > { %s1214_s20 = scalar_lea.vmem (!%p1199_p12), [#allocation6], %s3147_s16  ;;  %s3038_s28 = smov (!%p1199_p12), 127  }
  0x3a   : > { %p1288_p13 = scmp.lt.s32.totalorder (!%p1199_p12), %s2994_s23, 1 }
  0x3b   : > { %v3546_v8 = vmov 0   ;;  %v3155_v9 = vld [vmem:[%s1221_s17 + $0x18] sm:$0xff]  ;;  %v3157_v10 = vld [vmem:[%s1221_s17 + $0x8] sm:$0xff]  ;;  %v3169_v12 = vld [vmem:[%s1228_s21] sm:$0xff]  ;;  %vm1368_vm0 = vcmask 1043456   ;;  %vm1449_vm1 = vcmask 1031168  }
  0x3c   : > { %1310 = vst [vmem:[#allocation3 + $0x18] sm:$0xf] %v3546_v8  ;;  %1311 = vst [vmem:[#allocation3 + $0x34] sm:$0xf] %v3546_v8  ;;  %2216 = vmatprep.mubr.bf16.mxu1 %v3546_v8  ;;  %2904 = vset.pattern.permute.xlu0 %v3546_v8  ;;  %v3160_v11 = vld [vmem:[%s1228_s21 + $0x8] sm:$0xff]  ;;  %v3172_v14 = vld [vmem:[%s1207_s19] sm:$0xff]  ;;  %v3235_v39 = vcombine.high %v3157_v10, %v3155_v9  ;;  %v3239_v40 = vcombine.low %v3157_v10, %v3155_v9 }
  0x3d   : > { %1507 = vst [vmem:[#allocation4 + $0x18] sm:$0xf] %v3546_v8  ;;  %1508 = vst [vmem:[#allocation4 + $0x34] sm:$0xf] %v3546_v8  ;;  %1633 = vrot.lane.b32.xlu1 %v3155_v9, %s3037_s18  ;;  %1627 = vrot.lane.b32.xlu0 %v3157_v10, %s3037_s18  ;;  %v1299_v13 = vld [vmem:[%s1207_s19 + $0x8] sm:$0xff]  ;;  %v1301_v15 = vld [vmem:[%s1207_s19 + $0x18] sm:$0xff] }
  0x3e   : > { %1502 = vst [vmem:[#allocation4 + $0x24] sm:$0xff] %v3155_v9  ;;  %1500 = vst [vmem:[#allocation4 + $0x8] sm:$0xff] %v3157_v10  ;;  %v3174_v16 = vld [vmem:[%s1207_s19 + $0x10] sm:$0xff]  ;;  %v3180_v18 = vld [vmem:[%s1221_s17] sm:$0xff]  ;;  %v3213_v24 = vcombine.high %v1299_v13, %v1301_v15  ;;  %v3215_v25 = vcombine.low %v1299_v13, %v1301_v15  ;;  %vm2139_vm2 = vcmask 261120   ;;  %vm1370_vm3 = vcmask 1039360  }
  0x3f   : > { %1506 = vst [vmem:[#allocation4 + $0x2c] sm:$0xff] %v3160_v11  ;;  %1505 = vst [vmem:[#allocation4 + $0x10] sm:$0xff] %v3169_v12  ;;  %v3178_v17 = vld [vmem:[%s1221_s17 + $0x10] sm:$0xff]  ;;  %v3183_v19 = vld [vmem:[%s1214_s20 + $0x8] sm:$0xff]  ;;  %v2695_v26 = vcombine.high %v3172_v14, %v3174_v16  ;;  %v2694_v29 = vcombine.low %v3172_v14, %v3174_v16  ;;  %s3569_s23 = smov (!%p1288_p13, %s2994_s23), 1 }
  0x40   : > { %1303 = vst [vmem:[#allocation3 + $0x8] sm:$0xff] %v1299_v13  ;;  %1302 = vst [vmem:[#allocation3] sm:$0xff] %v3172_v14  ;;  %v3188_v20 = vld [vmem:[%s1214_s20] sm:$0xff]  ;;  %s2772_s12 = sshll.u32 %s3569_s23, 4 }
  0x41   : > { %1305 = vst [vmem:[#allocation3 + $0x24] sm:$0xff] %v1301_v15  ;;  %1304 = vst [vmem:[#allocation3 + $0x1c] sm:$0xff] %v3174_v16  ;;  %1635 = vrot.lane.b32.xlu1 %v3160_v11, %s3037_s18  ;;  %1629 = vrot.lane.b32.xlu0 %v3169_v12, %s3037_s18  ;;  %v2705_v30 = vcombine.high %v3188_v20, %v3183_v19  ;;  %v3244_v41 = vld [vmem:[%s3543_s4] sm:$0xff]  ;;  %s1295_s27 = scalar_lea.vmem %s3545_s6, %s2772_s12 }
  0x42   : > { %1501 = vst [vmem:[#allocation4 + $0x1c] sm:$0xff] %v3178_v17  ;;  %1499 = vst [vmem:[#allocation4] sm:$0xff] %v3180_v18  ;;  %v3248_v42 = vcombine.high %v3244_v41, %v3244_v41  ;;  %v1763_v43 = vld [vmem:[%s3544_s5] sm:$0xff] }
  0x43   : > { %1309 = vst [vmem:[#allocation3 + $0x2c] sm:$0xff] %v3183_v19  ;;  %1308 = vst [vmem:[#allocation3 + $0x10] sm:$0xff] %v3188_v20  ;;  %v1339_v21 = vld [vmem:[#allocation3 + $0x18] sm:$0xf]  ;;  %v1343_v22 = vld [vmem:[#allocation3 + $0x34] sm:$0xf] }
  0x44   : > { %v2884_v23 = vpack.i.bf16 %v1343_v22, %v1339_v21  ;;  %v1536_v27 = vld [vmem:[#allocation4 + $0x18] sm:$0xf]  ;;  %v1540_v28 = vld [vmem:[#allocation4 + $0x34] sm:$0xf]  ;;  %v1419_v33 = vld [vmem:[#allocation3 + $0x18] sm:$0xf]  ;;  %2175 = vmatprep.mubr.bf16.mxu0 %v3248_v42 }
  0x45   : > { %1432 = vrot.lane.b32.xlu1 %v1299_v13, %s3037_s18  ;;  %1430 = vrot.lane.b32.xlu0 %v3172_v14, %s3037_s18  ;;  %v2889_v32 = vpack.i.bf16 %v1540_v28, %v1536_v27  ;;  %v1423_v34 = vld [vmem:[#allocation3 + $0x34] sm:$0xf]  ;;  %v1614_v35 = vld [vmem:[#allocation4 + $0x18] sm:$0xf]  ;;  %v1618_v36 = vld [vmem:[#allocation4 + $0x34] sm:$0xf] }
  0x46   : > { %v2899_v37 = vpack.i.bf16 %v1423_v34, %v1419_v33  ;;  %v2894_v38 = vpack.i.bf16 %v1618_v36, %v1614_v35 }
  0x49   : > { %1438 = vrot.lane.b32.xlu1 %v1301_v15, %s3037_s18  ;;  %1436 = vrot.lane.b32.xlu0 %v3174_v16, %s3037_s18 }
  0x4d   : > { %1631 = vrot.lane.b32.xlu1 %v3178_v17, %s3037_s18  ;;  %1625 = vrot.lane.b32.xlu0 %v3180_v18, %s3037_s18 }
  0x51   : > { %1440 = vrot.lane.b32.xlu1 %v3183_v19, %s3037_s18  ;;  %1434 = vrot.lane.b32.xlu0 %v3188_v20, %s3037_s18 }
  0x55   : > { %1354 = vrot.lane.b32.xlu1 %v3188_v20, %s3038_s28  ;;  %1352 = vrot.lane.b32.xlu0 %v1299_v13, %s3038_s28 }
  0x59   : > { %1360 = vrot.lane.b32.xlu1 %v3183_v19, %s3038_s28  ;;  %1358 = vrot.lane.b32.xlu0 %v1301_v15, %s3038_s28 }
  0x5d   : > { %1356 = vrot.lane.b32.xlu1 %v3174_v16, %s3038_s28  ;;  %1350 = vrot.lane.b32.xlu0 %v3172_v14, %s3038_s28  ;;  %v3552_v14 = vcombine.low %v3188_v20, %v3183_v19  ;;  %v2915_v16 = vld [vmem:[#allocation3 + $0xc] ss:$28 sps:$4 sm:$0xff]  }
  0x61   : > { %1549 = vrot.lane.b32.xlu1 %v3157_v10, %s3038_s28  ;;  %2885 = vrot.lane.b32.xlu0 %v2884_v23, %s3038_s28 }
  0x65   : > { %1555 = vrot.lane.b32.xlu1 %v3155_v9, %s3038_s28  ;;  %1551 = vrot.lane.b32.xlu0 %v3169_v12, %s3038_s28 }
  0x69   : > { %1547 = vrot.lane.b32.xlu1 %v3180_v18, %s3038_s28  ;;  %1557 = vrot.lane.b32.xlu0 %v3160_v11, %s3038_s28 }
  0x6d   : > { %2890 = vrot.lane.b32.xlu1 %v2889_v32, %s3038_s28  ;;  %1553 = vrot.lane.b32.xlu0 %v3178_v17, %s3038_s28 }
  0x71   : > { %2900 = vrot.lane.b32.xlu1 %v2899_v37, %s3037_s18  ;;  %2895 = vrot.lane.b32.xlu0 %v2894_v38, %s3037_s18 }
  0x75   : > { %1766 = vperm.xlu0 %2904, %v1763_v43  }
  0xaf   : > { %v1634_v44 = vpop.permute.xlu1 %1633  ;;  %v1628_v45 = vpop.permute.xlu0 %1627 }
  0xb0   : > { %v1641_v46 = vrot.slane %v1634_v44, 4  ;;  %v1638_v49 = vrot.slane %v1628_v45, 4 }
  0xb3   : > { %v3254_v47 = vpop.permute.xlu1 %1635  ;;  %v3256_v48 = vpop.permute.xlu0 %1629 }
  0xb4   : > { %v1642_v50 = vrot.slane %v3254_v47, 4  ;;  %v3549_v51 = vrot.slane %v3256_v48, 4 }
  0xb6   : > { %v1649_v52 = vsel %vm1368_vm0, %v1641_v46, %v1642_v50  ;;  %v1645_v53 = vsel %vm1368_vm0, %v1638_v49, %v3549_v51 }
  0xb7   : > { %v3268_v54 = vsel %vm1449_vm1, %v1649_v52, %v3254_v47  ;;  %v3272_v55 = vsel %vm1449_vm1, %v1645_v53, %v3256_v48  ;;  %v1433_v56 = vpop.permute.xlu1 %1432  ;;  %v1431_v57 = vpop.permute.xlu0 %1430  ;;  %v1646_v58 = vsel %vm1449_vm1, %v1628_v45, %v1645_v53  ;;  %v1650_v59 = vsel %vm1449_vm1, %v1634_v44, %v1649_v52 }
  0xb8   : > { %v3278_v61 = vcombine.high %v1646_v58, %v1650_v59  ;;  %v1443_v62 = vrot.slane %v1433_v56, 4  ;;  %v1442_v63 = vrot.slane %v1431_v57, 4  ;;  %v3280_v0 = vcombine.low %v1646_v58, %v1650_v59 }
  0xba   : > { %2196 = vmatprep.subr.bf16.mxu1 %v3278_v61  ;;  %v1448_v6 = vsel %vm1368_vm0, %v1442_v63, %v1443_v62 }
  0xbb   : > { %2197 = vmatpush1.bf16.msra.mxu1 %v3280_v0  ;;  %v1439_v2 = vpop.permute.xlu1 %1438  ;;  %v1437_v3 = vpop.permute.xlu0 %1436  ;;  %v1465_v23 = vsel %vm1449_vm1, %v1448_v6, %v1433_v56  ;;  %v1450_v32 = vsel %vm1449_vm1, %v1431_v57, %v1448_v6 }
  0xbc   : > { %v1446_v4 = vrot.slane %v1439_v2, 4  ;;  %v1445_v5 = vrot.slane %v1437_v3, 4 }
  0xbe   : > { %v1453_v7 = vsel %vm1368_vm0, %v1445_v5, %v1446_v4  ;;  %v3329_v5 = vld [vmem:[%s3543_s4 + $0x8] ss:$0 sps:$4 sm:$0xff]  }
  0xbf   : > { %v3288_v9 = vpop.permute.xlu1 %1631  ;;  %v3290_v10 = vpop.permute.xlu0 %1625  ;;  %v1467_v13 = vsel %vm1449_vm1, %v1453_v7, %v1439_v2  ;;  %v1454_v15 = vsel %vm1449_vm1, %v1437_v3, %v1453_v7 }
  0xc0   : > { %v1640_v21 = vrot.slane %v3288_v9, 4  ;;  %v1637_v22 = vrot.slane %v3290_v10, 4  ;;  %v2723_v27 = vcombine.high %v1465_v23, %v1467_v13  ;;  %v2722_v28 = vcombine.low %v1465_v23, %v1467_v13 }
  0xc1   : > { %v2719_v35 = vcombine.high %v1450_v32, %v1454_v15  ;;  %v2718_v57 = vcombine.low %v1450_v32, %v1454_v15 }
  0xc2   : > { %v3299_v33 = vsel %vm1368_vm0, %v1640_v21, %v1641_v46  ;;  %v3302_v34 = vsel %vm1368_vm0, %v1637_v22, %v1638_v49  ;;  %2143 = vmatprep.subr.bf16.mxu0 %v2723_v27 }
  0xc3   : > { %v3304_v36 = vpop.permute.xlu1 %1440  ;;  %v3306_v37 = vpop.permute.xlu0 %1434  ;;  %v1659_v38 = vsel %vm1449_vm1, %v3302_v34, %v1628_v45  ;;  %v1661_v43 = vsel %vm1449_vm1, %v3299_v33, %v1634_v44  ;;  %2144 = vmatpush1.bf16.msra.mxu0 %v2722_v28 }
  0xc4   : > { %v1447_v52 = vrot.slane %v3304_v36, 4  ;;  %v1444_v46 = vrot.slane %v3306_v37, 4  ;;  %2145 = vmatprep.subr.bf16.mxu0 %v2719_v35  ;;  %v2759_v49 = vcombine.high %v1659_v38, %v1661_v43  ;;  %v2758_v53 = vcombine.low %v1659_v38, %v1661_v43 }
  0xc6   : > { %v1455_v58 = vsel %vm1368_vm0, %v1446_v4, %v1447_v52  ;;  %v1451_v45 = vsel %vm1368_vm0, %v1443_v62, %v1444_v46  ;;  %2198 = vmatprep.subr.bf16.mxu1 %v2759_v49 }
  0xc7   : > { %v1468_v44 = vsel %vm1449_vm1, %v1455_v58, %v3304_v36  ;;  %v1466_v59 = vsel %vm1449_vm1, %v1451_v45, %v3306_v37  ;;  %v3324_v63 = vpop.permute.xlu1 %1354  ;;  %v1353_v3 = vpop.permute.xlu0 %1352  ;;  %v1452_v4 = vsel %vm1449_vm1, %v1433_v56, %v1451_v45  ;;  %v1456_v62 = vsel %vm1449_vm1, %v1439_v2, %v1455_v58  ;;  %2146 = vmatpush1.bf16.msra.mxu0 %v2718_v57 }
  0xc8   : > { %v2724_v6 = vcombine.low %v1466_v59, %v1468_v44  ;;  %v1364_v7 = vrot.slane %v3324_v63, 4  ;;  %2199 = vmatpush1.bf16.msra.mxu1 %v2758_v53  ;;  %v1363_v13 = vrot.slane %v1353_v3, 4  ;;  %v2725_v15 = vcombine.high %v1466_v59, %v1468_v44 }
  0xc9   : > { %v3336_v23 = vcombine.high %v1452_v4, %v1456_v62  ;;  %v3342_v32 = vcombine.low %v1452_v4, %v1456_v62 }
  0xca   : > { %2225 = vmatprep.subr.bf16.mxu1 %v2725_v15  ;;  %v1372_v56 = vsel %vm1368_vm0, %v1363_v13, %v1364_v7 }
  0xcb   : > { %v1361_v21 = vpop.permute.xlu1 %1360  ;;  %2766 = vmatmul.mubr.msk.bf16.vlgmr.msra.gmra.mxu1 %vm2139_vm2, %v3329_v5  ;;  %v1359_v22 = vpop.permute.xlu0 %1358  ;;  %v1373_v35 = vsel %vm1370_vm3, %v1353_v3, %v1372_v56 }
  0xcc   : > { %v1367_v27 = vrot.slane %v1361_v21, 4  ;;  %2226 = vmatpush1.bf16.msra.mxu1 %v2724_v6  ;;  %v1366_v2 = vrot.slane %v1359_v22, 4  ;;  %2257 = vmatprep.mubr.bf16.mxu1 %v3248_v42 }
  0xcd   : > { %2227 = vmatprep.subr.bf16.mxu1 %v3336_v23 }
  0xce   : > { %v1376_v28 = vsel %vm1368_vm0, %v1366_v2, %v1367_v27 }
  0xcf   : > { %v1377_v38 = vsel %vm1370_vm3, %v1359_v22, %v1376_v28  ;;  %v1357_v43 = vpop.permute.xlu1 %1356  ;;  %v1351_v49 = vpop.permute.xlu0 %1350 }
  0xd0   : > { %v1365_v53 = vrot.slane %v1357_v43, 4  ;;  %2228 = vmatpush1.bf16.msra.mxu1 %v3342_v32  ;;  %v1362_v57 = vrot.slane %v1351_v49, 4  ;;  %v2709_v58 = vcombine.high %v1373_v35, %v1377_v38  ;;  %v3347_v45 = vcombine.low %v1373_v35, %v1377_v38 }
  0xd2   : > { %v1374_v42 = vsel %vm1368_vm0, %v1365_v53, %v1366_v2  ;;  %v1369_v44 = vsel %vm1368_vm0, %v1362_v57, %v1363_v13  ;;  %2147 = vmatprep.subr.bf16.mxu0 %v2709_v58 }
  0xd3   : > { %v3351_v59 = vpop.permute.xlu1 %1549  ;;  %2148 = vmatpush1.bf16.msra.mxu0 %v3347_v45  ;;  %v2886_v4 = vpop.permute.xlu0 %2885  ;;  %v1386_v62 = vsel %vm1370_vm3, %v1369_v44, %v1353_v3  ;;  %v1388_v6 = vsel %vm1370_vm3, %v1374_v42, %v1359_v22  ;;  %v1375_v15 = vsel %vm1370_vm3, %v1357_v43, %v1374_v42  ;;  %v1371_v60 = vsel %vm1370_vm3, %v1351_v49, %v1369_v44 }
  0xd4   : > { %v2888_v35 = vunpack.i.h.bf16 %v2886_v4  ;;  %v2887_v38 = vunpack.i.l.bf16 %v2886_v4  ;;  %v2711_v1 = vcombine.high %v1386_v62, %v1388_v6  ;;  %v2710_v2 = vcombine.low %v1386_v62, %v1388_v6 }
  0xd5   : > { %v2707_v13 = vcombine.high %v1371_v60, %v1375_v15  ;;  %v2706_v49 = vcombine.low %v1371_v60, %v1375_v15  ;;  %v1389_v44 = vsel %vm1370_vm3, %v1376_v28, %v1361_v21  ;;  %v2908_v28 = vld [vmem:[#allocation3 + $0x8] ss:$28 sps:$4 sm:$0xff]  }
  0xd6   : > { %v1405_v53 = vrot.slane %v2888_v35, 4  ;;  %v1404_v57 = vrot.slane %v2887_v38, 4  ;;  %2149 = vmatprep.subr.bf16.mxu0 %v2711_v1 }
  0xd7   : > { %v3358_v8 = vpop.permute.xlu1 %1555  ;;  %v3360_v31 = vpop.permute.xlu0 %1551  ;;  %2150 = vmatpush1.bf16.msra.mxu0 %v2710_v2 }
  0xd8   : > { %v1408_v3 = vsel %vm1368_vm0, %v1367_v27, %v1405_v53  ;;  %v1406_v22 = vsel %vm1368_vm0, %v1364_v7, %v1404_v57  ;;  %2151 = vmatprep.subr.bf16.mxu0 %v2707_v13  ;;  %v1560_v27 = vrot.slane %v3351_v59, 4  ;;  %v3548_v35 = vrot.slane %v3360_v31, 4 }
  0xd9   : > { %v1409_v43 = vsel %vm1370_vm3, %v1361_v21, %v1408_v3  ;;  %v1407_v42 = vsel %vm1370_vm3, %v3324_v63, %v1406_v22  ;;  %v1387_v7 = vsel %vm1370_vm3, %v1372_v56, %v3324_v63  ;;  %v1563_v60 = vrot.slane %v3358_v8, 4  ;;  %v2910_v56 = vld [vmem:[#allocation3 + $0x4] ss:$28 sps:$4 sm:$0xff]  }
  0xda   : > { %v2716_v62 = vcombine.low %v1407_v42, %v1409_v43  ;;  %v2717_v6 = vcombine.high %v1407_v42, %v1409_v43  ;;  %v2713_v21 = vcombine.high %v1387_v7, %v1389_v44  ;;  %v3384_v53 = vsel %vm1368_vm0, %v1560_v27, %v3548_v35 }
  0xdb   : > { %v3368_v4 = vpop.permute.xlu1 %1547  ;;  %v3370_v1 = vpop.permute.xlu0 %1557  ;;  %2152 = vmatpush1.bf16.msra.mxu0 %v2706_v49  ;;  %v2712_v63 = vcombine.low %v1387_v7, %v1389_v44  ;;  %v1648_v3 = vsel %vm1449_vm1, %v3288_v9, %v3299_v33  ;;  %v1644_v22 = vsel %vm1449_vm1, %v3290_v10, %v3302_v34  ;;  %v1568_v42 = vsel %vm1370_vm3, %v3351_v59, %v3384_v53 }
  0xdc   : > { %v3547_v15 = vrot.slane %v3370_v1, 4  ;;  %2229 = vmatprep.subr.bf16.mxu1 %v2717_v6  ;;  %2153 = vmatprep.subr.bf16.mxu0 %v3213_v24  ;;  %v1559_v57 = vrot.slane %v3368_v4, 4  ;;  %v2754_v34 = vcombine.low %v1644_v22, %v1648_v3 }
  0xdd   : > { %2230 = vmatpush1.bf16.msra.mxu1 %v2716_v62 }
  0xde   : > { %2231 = vmatprep.subr.bf16.mxu1 %v2713_v21  ;;  %v3390_v13 = vsel %vm1368_vm0, %v1563_v60, %v3547_v15 }
  0xdf   : > { %v2891_v38 = vpop.permute.xlu1 %2890  ;;  %v3379_v2 = vpop.permute.xlu0 %1553  ;;  %2154 = vmatpush1.bf16.msra.mxu0 %v3215_v25  ;;  %v1572_v9 = vsel %vm1370_vm3, %v3358_v8, %v3390_v13 }
  0xe0   : > { %2155 = vmatprep.subr.bf16.mxu0 %v2908_v28  ;;  %v2893_v44 = vunpack.i.h.bf16 %v2891_v38  ;;  %v2892_v62 = vunpack.i.l.bf16 %v2891_v38  ;;  %v1562_v6 = vrot.slane %v3379_v2, 4  ;;  %v1565_v28 = vsel %vm1368_vm0, %v1559_v57, %v1560_v27 }
  0xe1   : > { %2232 = vmatpush1.bf16.msra.mxu1 %v2712_v63  ;;  %v3551_v57 = vrot.slane %v3256_v48, 4 }
  0xe2   : > { %2233 = vmatprep.subr.bf16.mxu1 %v2709_v58  ;;  %v2755_v58 = vcombine.high %v1644_v22, %v1648_v3  ;;  %v1599_v35 = vrot.slane %v2892_v62, 4  ;;  %v1569_v51 = vsel %vm1368_vm0, %v1562_v6, %v1563_v60  ;;  %v3553_v3 = vrot.slane %v3360_v31, 4 }
  0xe3   : > { %v2901_v43 = vpop.permute.xlu1 %2900  ;;  %v2896_v49 = vpop.permute.xlu0 %2895  ;;  %2156 = vmatpush1.bf16.msra.mxu0 %v2910_v56 }
  0xe4   : > { %v2903_v33 = vunpack.i.h.bf16 %v2901_v43  ;;  %v2902_v7 = vunpack.i.l.bf16 %v2901_v43  ;;  %v2898_v21 = vunpack.i.h.bf16 %v2896_v49  ;;  %v2897_v10 = vunpack.i.l.bf16 %v2896_v49  ;;  %2157 = vmatprep.subr.bf16.mxu0 %v2695_v26  ;;  %v2917_v43 = vld [vmem:[#allocation3 + $0x10] ss:$28 sps:$4 sm:$0xff]  }
  0xe5   : > { %2234 = vmatpush1.bf16.msra.mxu1 %v3347_v45  ;;  %v1600_v49 = vrot.slane %v2893_v44, 4  ;;  %v2745_v26 = vcombine.high %v1568_v42, %v1572_v9  ;;  %v1601_v22 = vsel %vm1368_vm0, %v3553_v3, %v1599_v35  ;;  %v3554_v44 = vrot.slane %v3370_v1, 4 }
  0xe6   : > { %v1484_v38 = vrot.slane %v2903_v33, 4  ;;  %v1483_v63 = vrot.slane %v2902_v7, 4  ;;  %v1678_v56 = vrot.slane %v2898_v21, 4  ;;  %v1677_v15 = vrot.slane %v2897_v10, 4  ;;  %2235 = vmatprep.subr.bf16.mxu1 %v2705_v30  ;;  %v2920_v7 = vld [vmem:[#allocation4 + $0x8] ss:$28 sps:$4 sm:$0xff]  }
  0xe7   : > { %2158 = vmatpush1.bf16.msra.mxu0 %v2694_v29  ;;  %v1603_v62 = vsel %vm1368_vm0, %v3554_v44, %v1600_v49  ;;  %v1602_v35 = vsel %vm1370_vm3, %v3360_v31, %v1601_v22  ;;  %v2929_v10 = vld [vmem:[#allocation4 + $0x10] ss:$28 sps:$4 sm:$0xff]  }
  0xe8   : > { %v1487_v45 = vsel %vm1368_vm0, %v1447_v52, %v1484_v38  ;;  %v1485_v27 = vsel %vm1368_vm0, %v1444_v46, %v1483_v63  ;;  %v1681_v30 = vsel %vm1368_vm0, %v1642_v50, %v1678_v56  ;;  %v1679_v60 = vsel %vm1368_vm0, %v3551_v57, %v1677_v15  ;;  %2159 = vmatprep.subr.bf16.mxu0 %v2755_v58 }
  0xe9   : > { %2236 = vmatpush1.bf16.msra.mxu1 %v3552_v14  ;;  %v3435_v29 = vsel %vm1449_vm1, %v3256_v48, %v1679_v60  ;;  %v3439_v52 = vsel %vm1449_vm1, %v3254_v47, %v1681_v30  ;;  %v3443_v50 = vsel %vm1449_vm1, %v3306_v37, %v1485_v27  ;;  %v3447_v46 = vsel %vm1449_vm1, %v3304_v36, %v1487_v45 }
  0xea   : > { %2237 = vmatprep.subr.bf16.mxu1 %v2917_v43  ;;  %v2764_v19 = vcombine.low %v3435_v29, %v3439_v52  ;;  %v2765_v20 = vcombine.high %v3435_v29, %v3439_v52  ;;  %v2728_v48 = vcombine.low %v3443_v50, %v3447_v46  ;;  %v2729_v47 = vcombine.high %v3443_v50, %v3447_v46 }
  0xeb   : > { %2160 = vmatpush2.bf16.msra.mxu0 %v2754_v34  ;;  %v1581_v37 = vsel %vm1370_vm3, %v1565_v28, %v3351_v59  ;;  %v1583_v36 = vsel %vm1370_vm3, %v1569_v51, %v3358_v8  ;;  %v2744_v15 = vcombine.low %v1568_v42, %v1572_v9  ;;  %v1566_v59 = vsel %vm1370_vm3, %v3368_v4, %v1565_v28  ;;  %v2927_v34 = vld [vmem:[#allocation4 + $0xc] ss:$28 sps:$4 sm:$0xff]  }
  0xec   : > { %2161 = vmatprep.subr.bf16.mxu0 %v2745_v26  ;;  %v2747_v6 = vcombine.high %v1581_v37, %v1583_v36  ;;  %v1570_v8 = vsel %vm1370_vm3, %v3379_v2, %v1569_v51  ;;  %v2746_v42 = vcombine.low %v1581_v37, %v1583_v36  ;;  %v1604_v9 = vsel %vm1370_vm3, %v3370_v1, %v1603_v62 }
  0xed   : > { %2238 = vmatpush1.bf16.msra.mxu1 %v2915_v16  ;;  %v2743_v33 = vcombine.high %v1566_v59, %v1570_v8  ;;  %v1582_v51 = vsel %vm1370_vm3, %v3384_v53, %v3360_v31  ;;  %v2742_v4 = vcombine.low %v1566_v59, %v1570_v8  ;;  %v2752_v2 = vcombine.low %v1602_v35, %v1604_v9  ;;  %v2922_v31 = vld [vmem:[#allocation4 + $0x4] ss:$28 sps:$4 sm:$0xff]  }
  0xee   : > { %2239 = vmatprep.subr.bf16.mxu1 %v3213_v24  ;;  %v2753_v24 = vcombine.high %v1602_v35, %v1604_v9  ;;  %v2730_v53 = vcombine.low %v3180_v18, %v3178_v17  ;;  %v2691_v58 = vcombine.low %v3244_v41, %v3244_v41 }
  0xef   : > { %2162 = vmatpush2.bf16.msra.mxu0 %v2744_v15 }
  0xf0   : > { %2163 = vmatprep.subr.bf16.mxu0 %v2747_v6 }
  0xf1   : > { %2240 = vmatpush1.bf16.msra.mxu1 %v3215_v25  ;;  %v1584_v25 = vsel %vm1370_vm3, %v3390_v13, %v3370_v1  ;;  %v2731_v1 = vcombine.high %v3180_v18, %v3178_v17  ;;  %v2740_v13 = vcombine.low %v3169_v12, %v3160_v11  ;;  %v3557_v17 = vcombine.low %v3272_v55, %v3268_v54 }
  0xf2   : > { %2241 = vmatprep.subr.bf16.mxu1 %v3278_v61  ;;  %v2749_v61 = vcombine.high %v1582_v51, %v1584_v25  ;;  %v2748_v21 = vcombine.low %v1582_v51, %v1584_v25 }
  0xf3   : > { %2164 = vmatpush2.bf16.msra.mxu0 %v2746_v42 }
  0xf4   : > { %2165 = vmatprep.subr.bf16.mxu0 %v2743_v33 }
  0xf5   : > { %2242 = vmatpush2.bf16.msra.mxu1 %v3280_v0  ;;  %v2741_v0 = vcombine.high %v3169_v12, %v3160_v11  ;;  %v3555_v11 = vmov 0   ;;  %v3556_v12 = vcombine.high %v3272_v55, %v3268_v54 }
  0xf6   : > { %2243 = vmatprep.subr.bf16.mxu1 %v2753_v24 }
  0xf7   : > { %2166 = vmatpush2.bf16.msra.mxu0 %v2742_v4 }
  0xf8   : > { %2167 = vmatprep.subr.bf16.mxu0 %v3235_v39 }
  0xf9   : > { %2244 = vmatpush2.bf16.msra.mxu1 %v2752_v2 }
  0xfa   : > { %2245 = vmatprep.subr.bf16.mxu1 %v2749_v61 }
  0xfb   : > { %2168 = vmatpush2.bf16.msra.mxu0 %v3239_v40 }
  0xfc   : > { %2169 = vmatprep.subr.bf16.mxu0 %v2920_v7 }
  0xfd   : > { %2246 = vmatpush2.bf16.msra.mxu1 %v2748_v21 }
  0xfe   : > { %2247 = vmatprep.subr.bf16.mxu1 %v2745_v26 }
  0xff   : > { %2170 = vmatpush2.bf16.msra.mxu0 %v2922_v31 }
 0x100   : > { %2171 = vmatprep.subr.bf16.mxu0 %v2731_v1 }
 0x101   : > { %2248 = vmatpush2.bf16.msra.mxu1 %v2744_v15 }
 0x102   : > { %2249 = vmatprep.subr.bf16.mxu1 %v2741_v0 }
 0x103   : > { %2172 = vmatpush2.bf16.msra.mxu0 %v2730_v53 }
 0x104   : > { %2173 = vmatprep.subr.bf16.mxu0 %v3336_v23  ;;  %v1767_v23 = vpop.permute.xlu0 %1766 }
 0x105   : > { %2250 = vmatpush2.bf16.msra.mxu1 %v2740_v13 }
 0x106   : > { %2251 = vmatprep.subr.bf16.mxu1 %v2929_v10 }
 0x107   : > { %2174 = vmatpush2.bf16.msra.mxu0 %v3342_v32 }
 0x108   : > { %2278 = vmatprep.subr.bf16.mxu0 %v2765_v20 }
 0x109   : > { %2252 = vmatpush2.bf16.msra.mxu1 %v2927_v34 }
 0x10a   : > { %2176 = vmatmul.mubr.bf16.vlgmr.msra.gmra.mxu0 %v2691_v58  ;;  %2253 = vmatprep.subr.bf16.mxu1 %v3235_v39 }
 0x10b   : > { %2279 = vmatpush1.bf16.msra.mxu0 %v2764_v19  ;;  %2298 = vmatprep.mubr.bf16.mxu0 %v3555_v11 }
 0x10c   : > { %2280 = vmatprep.subr.bf16.mxu0 %v3556_v12 }
 0x10d   : > { %2254 = vmatpush2.bf16.msra.mxu1 %v3239_v40 }
 0x10e   : > { %2255 = vmatprep.subr.bf16.mxu1 %v2729_v47 }
 0x10f   : > { %2281 = vmatpush1.bf16.msra.mxu0 %v3557_v17 }
 0x111   : > { %2256 = vmatpush2.bf16.msra.mxu1 %v2728_v48 }
 0x112   : > { %2767 = vmatmul.mubr.msk.bf16.vlgmr.msra.gmra.mxu0 %vm2139_vm2, %v3329_v5 }
 0x114   : > { %2258 = vmatmul.mubr.bf16.vlgmr.msra.gmra.mxu1 %v2691_v58 }
 0x18b   : > { %v2218_v18 = vpop.f32.mrf.mxu1 }
 0x18d   : > { %v2220_v39 = vpop.f32.mrf.mxu1 }
 0x18f   : > { %v2222_v41 = vpop.f32.mrf.mxu1 }
 0x191   : > { %v2223_v40 = vpop.f32.mrf.mxu1 }
 0x1ca   : > { %v2177_v32 = vpop.f32.mrf.mxu0 }
 0x1cb   : > { %v2178_v28 = vadd.f32 %v2177_v32, %v1767_v23 }
 0x1cc   : > { %v2179_v38 = vpop.f32.mrf.mxu0 }
 0x1cd   : > { %v2219_v54 = vadd.f32 %v2218_v18, %v2178_v28  ;;  %v2180_v55 = vadd.f32 %v2179_v38, %v1767_v23 }
 0x1ce   : > { %v2181_v63 = vpop.f32.mrf.mxu0 }
 0x1cf   : > { %v2221_v56 = vadd.f32 %v2220_v39, %v2180_v55  ;;  %v2307_v49 = vmax.f32 %v2219_v54, 0.0 }
 0x1d0   : > { %v2182_v43 = vpop.f32.mrf.mxu0 }
 0x1d1   : > { %v2308_v26 = vmax.f32 %v2221_v56, 0.0 }
 0x1d2   : > { %v2300_v5 = vpop.f32.mrf.mxu0 }
 0x1d3   : > { %v2773_v45 = vpack.c.bf16 %v2308_v26, %v2307_v49 }
 0x1d4   : > { %v2259_v27 = vpop.f32.mrf.mxu1  ;;  %v2302_v30 = vpop.f32.mrf.mxu0 }
 0x1d5   : > { %2327 = vst [vmem:[%s1295_s27] sm:$0xff] %v2773_v45  ;;  %v2260_v57 = vadd.f32 %v2259_v27, %v1767_v23 }
 0x1d6   : > { %v2261_v60 = vpop.f32.mrf.mxu1  ;;  %v2304_v14 = vpop.f32.mrf.mxu0 }
 0x1d7   : > { %v2301_v16 = vadd.f32 %v2300_v5, %v2260_v57  ;;  %v2262_v29 = vadd.f32 %v2261_v60, %v1767_v23 }
 0x1d8   : > { %v2263_v52 = vpop.f32.mrf.mxu1  ;;  %v2305_v50 = vpop.f32.mrf.mxu0 }
 0x1d9   : > { %v2303_v46 = vadd.f32 %v2302_v30, %v2262_v29  ;;  %v2309_v20 = vmax.f32 %v2301_v16, 0.0 }
 0x1da   : > { %v2264_v19 = vpop.f32.mrf.mxu1 }
 0x1db   : > { %v2310_v48 = vmax.f32 %v2303_v46, 0.0 }
 0x1dd   : > { %v2774_v47 = vpack.c.bf16 %v2310_v48, %v2309_v20 }
 0x1df   : > { %2328 = vst [vmem:[%s1295_s27 + $0x8] sm:$0xff] %v2774_v47 }
 0x1e0 PF: > { %s16_s25 = sadd.s32 1, %s3002_s25   ;;  %s3558_s21 = smov %s2990_s22 }
 0x1e1   : > { %p13_p0 = scmp.ge.s32.totalorder %s16_s25, 4   ;;  %s3559_s22 = smov %s3113_s30 }
 0x1e2   : > { %s3560_s23 = smov %s2998_s24  ;;  %s3561_s24 = smov %s3563_s26 }
 0x1e3   :  { %15 = sbr.rel (!%p13_p0) target bundleno = 3 (0x3), region = 435 }

// kernel: enhance_net_dce_pool_forward.14
= control target key start
LH: loop header
LB: loop body
LE: loop exit
PB: predicated region body
PF: predicated region fallthrough
CT: control target
= control target key end

     0   :  { %s4250_s21 = smov 0   ;;  %s4252_s22 = smov 0   ;;  %s5191_s0 = inlined_call_operand.vmem [shape: bf16[2,16,1280], index: 0, kind: input, shape index: {}, may-alias: {0,1}]   ;;  %s5192_s1 = inlined_call_operand.vmem [shape: bf16[2,16,1280], index: 1, kind: input, shape index: {}, may-alias: {0,1}]   ;;  %s5193_s2 = inlined_call_operand.vmem [shape: bf16[2,16,1280], index: 2, kind: input, shape index: {}, may-alias: {2,3}]   ;;  %s5194_s3 = inlined_call_operand.vmem [shape: bf16[2,16,1280], index: 3, kind: input, shape index: {}, may-alias: {2,3}]   ;;  %s5195_s4 = inlined_call_operand.vmem [shape: bf16[24,288], index: 4, kind: input, shape index: {}]   ;;  %s5196_s5 = inlined_call_operand.vmem [shape: f32[24,1], index: 5, kind: input, shape index: {}]   ;;  %s5197_s6 = inlined_call_operand.vmem [shape: bf16[2,24,1024], index: 6, kind: output, shape index: {}]  }
   0x1   :  { %s4254_s23 = smov 0   ;;  %s4256_s24 = smov 0  }
   0x2   :  { %s4258_s25 = smov 0  }
   0x3 LB: > { %s28_s26 = sadd.s32 1, %s4174_s24  ;;  %p44_p1 = scmp.ne.s32.totalorder %s4166_s22, %s4162_s21  ;;  %s4178_s25 = sphi %s4258_s25, %s16_s25   ;;  %s4174_s24 = sphi %s4256_s24, %s5265_s24   ;;  %s4170_s23 = sphi %s4254_s23, %s5264_s23   ;;  %s4166_s22 = sphi %s4252_s22, %s5263_s22   ;;  %s4162_s21 = sphi %s4250_s21, %s5262_s21  }
   0x4   : > { %p30_p0 = scmp.ge.s32.totalorder %s28_s26, 2  ;;  %p45_p2 = scmp.eq.s32.totalorder %s4178_s25, 0 }
   0x5   : > { %s37_s29 = sadd.s32 1, %s4166_s22  ;;  %p3703_p5 = scmp.ge.s32.totalorder %s4178_s25, 2 }
   0x6   : > { %s5267_s26 = smov (%p30_p0, %s28_s26), 0  ;;  %p4281_p3 = por %p45_p2, %p44_p1 }
   0x7   : > { %s32_s28 = ssub.s32 %s4174_s24, %s5267_s26  ;;  %238 = sbr.rel (%p3703_p5) target bundleno = 50 (0x32), region = 24 }
   0x8   : > { %p35_p4 = scmp.eq.s32.totalorder %s32_s28, 0 }
   0xa   : > { %s4289_s30 = scalar_select %p35_p4, %s4166_s22, %s37_s29  }
   0xc   : > { %241 = sbr.rel (!%p4281_p3) target bundleno = 25 (0x19), region = 28  ;;  %s243_s7 = sand.u32 (%p4281_p3), 1, %s4166_s22  }
   0xd   : > { %s3926_s8 = smul.u32 (%p4281_p3), 80, %s4174_s24  ;;  %s3704_s9 = sshll.u32 (%p4281_p3), %s243_s7, 6 }
   0xe   : > { %s245_s13 = scalar_lea.vmem (%p4281_p3), [#allocation5], %s3704_s9   ;;  %s4188_s16 = smov (%p4281_p3), 0  }
   0xf   : > { %s255_s12 = scalar_lea.vmem (%p4281_p3), %s5191_s0, %s3926_s8   ;;  %s4180_s14 = smov (%p4281_p3), %s245_s13  }
  0x10   : > { %s4184_s15 = smov (%p4281_p3), %s255_s12   ;;  %s4192_s17 = smov (%p4281_p3), 0  }
  0x11 LB: >> { %v454_v0 = vld [vmem:[%s4186_s15] sm:$0xff]  ;;  %v456_v1 = vld [vmem:[%s4186_s15 + $0x28] sm:$0xff]  ;;  %s458_s18 = sadd.s32 1, %s4190_s16  ;;  %s448_s17 = sadd.s32 1, %s4194_s17   ;;  %s4194_s17 = sphi %s4192_s17, %s448_s17   ;;  %s4190_s16 = sphi %s4188_s16, %s4189_s16   ;;  %s4186_s15 = sphi %s4184_s15, %s463_s15   ;;  %s4182_s14 = sphi %s4180_s14, %s464_s14  }
  0x12   : >> { %455 = vst [vmem:[%s4182_s14] sm:$0xff] %v454_v0  ;;  %457 = vst [vmem:[%s4182_s14 + $0x20] sm:$0xff] %v456_v1  ;;  %p459_p6 = scmp.ge.s32.totalorder %s458_s18, 4  ;;  %p447_p7 = scmp.ge.s32.totalorder %s448_s17, 4 }
  0x14   : >> { %s5269_s18 = smov (%p459_p6, %s458_s18), 0  ;;  %450 = sbr.rel (!%p447_p7) target bundleno = 17 (0x11), region = 358 }
  0x15   : >> { %s3708_s19 = sshll.u32 %s5269_s18, 3  ;;  %s4189_s16 = smov %s5269_s18  }
  0x16   : >> { %s463_s15 = scalar_lea.vmem %s255_s12, %s3708_s19   ;;  %s464_s14 = scalar_lea.vmem %s245_s13, %s3708_s19 [#allocation5]  }
  0x19 PF: > { %669 = sbr.rel (!%p4281_p3) target bundleno = 31 (0x1f), region = 94  ;;  %s671_s20 = sand.u32 (%p4281_p3), 1, %s4166_s22  }
  0x1a   : > { %s3717_s28 = smul.u32 (%p4281_p3), 80, %s4174_s24  ;;  %s3716_s29 = sshll.u32 (%p4281_p3), %s671_s20, 4 }
  0x1b   : > { %s673_s10 = scalar_lea.vmem (%p4281_p3), [#allocation6], %s3716_s29 }
  0x1c   : > { %s3446_s9 = scalar_lea.vmem (%p4281_p3), %s5192_s1, %s3717_s28 }
  0x1d   : > { %v3718_v2 = vld [vmem:[%s3446_s9 + $0x20] sm:$0xff] (%p4281_p3)  ;;  %v3719_v3 = vld [vmem:[%s3446_s9 + $0x48] sm:$0xff] (%p4281_p3) }
  0x1e   : > { %712 = vst [vmem:[%s673_s10] sm:$0xff] %v3718_v2  ;;  %714 = vst [vmem:[%s673_s10 + $0x8] sm:$0xff] %v3719_v3 }
  0x1f PF: > { %720 = sbr.rel (!%p4281_p3) target bundleno = 44 (0x2c), region = 132  ;;  %s722_s11 = sand.u32 (%p4281_p3), 1, %s4166_s22  }
  0x20   : > { %s3927_s12 = smul.u32 (%p4281_p3), 80, %s4174_s24  ;;  %s3720_s13 = sshll.u32 (%p4281_p3), %s722_s11, 6 }
  0x21   : > { %s724_s17 = scalar_lea.vmem (%p4281_p3), [#allocation7], %s3720_s13   ;;  %s4204_s20 = smov (%p4281_p3), 0  }
  0x22   : > { %s734_s16 = scalar_lea.vmem (%p4281_p3), %s5193_s2, %s3927_s12   ;;  %s4196_s18 = smov (%p4281_p3), %s724_s17  }
  0x23   : > { %s4200_s19 = smov (%p4281_p3), %s734_s16   ;;  %s4208_s28 = smov (%p4281_p3), 0  }
  0x24 LB: >> { %v933_v4 = vld [vmem:[%s4202_s19] sm:$0xff]  ;;  %v935_v5 = vld [vmem:[%s4202_s19 + $0x28] sm:$0xff]  ;;  %s937_s29 = sadd.s32 1, %s4206_s20  ;;  %s927_s28 = sadd.s32 1, %s4210_s28   ;;  %s4210_s28 = sphi %s4208_s28, %s927_s28   ;;  %s4206_s20 = sphi %s4204_s20, %s4205_s20   ;;  %s4202_s19 = sphi %s4200_s19, %s942_s19   ;;  %s4198_s18 = sphi %s4196_s18, %s943_s18  }
  0x25   : >> { %934 = vst [vmem:[%s4198_s18] sm:$0xff] %v933_v4  ;;  %936 = vst [vmem:[%s4198_s18 + $0x20] sm:$0xff] %v935_v5  ;;  %p938_p8 = scmp.ge.s32.totalorder %s937_s29, 4  ;;  %p926_p9 = scmp.ge.s32.totalorder %s927_s28, 4 }
  0x27   : >> { %s5271_s29 = smov (%p938_p8, %s937_s29), 0  ;;  %929 = sbr.rel (!%p926_p9) target bundleno = 36 (0x24), region = 402 }
  0x28   : >> { %s3724_s7 = sshll.u32 %s5271_s29, 3  ;;  %s4205_s20 = smov %s5271_s29  }
  0x29   : >> { %s942_s19 = scalar_lea.vmem %s734_s16, %s3724_s7   ;;  %s943_s18 = scalar_lea.vmem %s724_s17, %s3724_s7 [#allocation7]  }
  0x2c PF: > { %1148 = sbr.rel (!%p4281_p3) target bundleno = 50 (0x32), region = 198  ;;  %s1150_s8 = sand.u32 (%p4281_p3), 1, %s4166_s22  }
  0x2d   : > { %s3733_s9 = smul.u32 (%p4281_p3), 80, %s4174_s24  ;;  %s3732_s10 = sshll.u32 (%p4281_p3), %s1150_s8, 4 }
  0x2e   : > { %s1152_s14 = scalar_lea.vmem (%p4281_p3), [#allocation8], %s3732_s10 }
  0x2f   : > { %s3483_s13 = scalar_lea.vmem (%p4281_p3), %s5194_s3, %s3733_s9 }
  0x30   : > { %v3734_v6 = vld [vmem:[%s3483_s13 + $0x20] sm:$0xff] (%p4281_p3)  ;;  %v3735_v7 = vld [vmem:[%s3483_s13 + $0x48] sm:$0xff] (%p4281_p3) }
  0x31   : > { %1191 = vst [vmem:[%s1152_s14] sm:$0xff] %v3734_v6  ;;  %1193 = vst [vmem:[%s1152_s14 + $0x8] sm:$0xff] %v3735_v7 }
  0x32 PF: > { %p3736_p10 = scmp.ge.s32.totalorder %s4178_s25, 1  ;;  %p1198_p11 = scmp.lt.s32.totalorder %s4178_s25, 3 }
  0x34   : > { %p1199_p12 = pnand %p3736_p10, %p1198_p11 }
  0x36   : > { %1202 = sbr.rel (%p1199_p12) target bundleno = 569 (0x239), region = 236 }
  0x3b   : > { %s1205_s27 = sand.u32 1, %s4162_s21   ;;  %v5200_v8 = vmov 0   ;;  %s4213_s17 = smov 126   ;;  %v4442_v39 = vld [vmem:[%s5195_s4 + $0x4] ss:$12 sps:$4 sm:$0xff]   ;;  %vm1420_vm0 = vcmask 1043456  }
  0x3c   : > { %s3737_s15 = sshll.u32 %s1205_s27, 6  ;;  %1318 = vst [vmem:[#allocation3 + $0x28] sm:$0xf] %v5200_v8  ;;  %1319 = vst [vmem:[#allocation3 + $0x54] sm:$0xf] %v5200_v8  ;;  %2964 = vmatprep.mubr.bf16.mxu1 %v5200_v8  ;;  %4056 = vset.pattern.permute.xlu0 %v5200_v8  ;;  %s4334_s21 = sshll.u32 %s1205_s27, 4 }
  0x3d   : > { %1651 = vst [vmem:[#allocation4 + $0x28] sm:$0xf] %v5200_v8  ;;  %1652 = vst [vmem:[#allocation4 + $0x54] sm:$0xf] %v5200_v8  ;;  %4057 = vset.pattern.permute.xlu1 %v5200_v8  ;;  %s1207_s16 = scalar_lea.vmem [#allocation5], %s3737_s15  ;;  %s1221_s18 = scalar_lea.vmem [#allocation7], %s3737_s15  ;;  %2913 = vmatprep.mubr.bf16.mxu0 %v4442_v39 }
  0x3e   : > { %v4330_v9 = vld [vmem:[%s1207_s16 + $0x20] sm:$0xff]  ;;  %v1303_v11 = vld [vmem:[%s1207_s16 + $0x28] sm:$0xff]  ;;  %v4342_v13 = vld [vmem:[%s1207_s16 + $0x10] sm:$0xff]  ;;  %s1228_s19 = scalar_lea.vmem [#allocation8], %s4334_s21  ;;  %s1214_s20 = scalar_lea.vmem [#allocation6], %s4334_s21  ;;  %vm1553_vm1 = vcmask 1031168  }
  0x3f   : > { %v4332_v10 = vld [vmem:[%s1207_s16] sm:$0xff]  ;;  %1310 = vst [vmem:[#allocation3 + $0x2c] sm:$0xff] %v4330_v9  ;;  %1532 = vrot.lane.b32.xlu1 %v4330_v9, %s4213_s17  ;;  %1311 = vst [vmem:[#allocation3 + $0x34] sm:$0xff] %v1303_v11  ;;  %v1299_v12 = vld [vmem:[%s1207_s16 + $0x8] sm:$0xff]  ;;  %s4214_s28 = smov 127   ;;  %vm1422_vm2 = vcmask 1039360  }
  0x40   : > { %1306 = vst [vmem:[#allocation3] sm:$0xff] %v4332_v10  ;;  %1522 = vrot.lane.b32.xlu0 %v4332_v10, %s4213_s17  ;;  %1307 = vst [vmem:[#allocation3 + $0x8] sm:$0xff] %v1299_v12  ;;  %v4345_v14 = vld [vmem:[%s1207_s16 + $0x30] sm:$0xff]  ;;  %v4349_v16 = vld [vmem:[%s1221_s18 + $0x8] sm:$0xff]  ;;  %v4387_v29 = vcombine.high %v1299_v12, %v1303_v11  ;;  %v4389_v30 = vcombine.low %v1299_v12, %v1303_v11  ;;  %v3749_v31 = vcombine.high %v4332_v10, %v4330_v9  ;;  %vm2874_vm3 = vcmask 261120   ;;  %p1288_p13 = scmp.lt.s32.totalorder %s4170_s23, 1 }
  0x41   : > { %1308 = vst [vmem:[#allocation3 + $0x10] sm:$0xff] %v4342_v13  ;;  %v4347_v15 = vld [vmem:[%s1221_s18 + $0x10] sm:$0xff]  ;;  %1312 = vst [vmem:[#allocation3 + $0x3c] sm:$0xff] %v4345_v14  ;;  %v1636_v18 = vld [vmem:[%s1221_s18 + $0x28] sm:$0xff]  ;;  %v3748_v32 = vcombine.low %v4332_v10, %v4330_v9 }
  0x42   : > { %1641 = vst [vmem:[#allocation4 + $0x10] sm:$0xff] %v4347_v15  ;;  %1640 = vst [vmem:[#allocation4 + $0x8] sm:$0xff] %v4349_v16  ;;  %v4354_v17 = vld [vmem:[%s1221_s18 + $0x30] sm:$0xff]  ;;  %v4356_v19 = vld [vmem:[%s1221_s18 + $0x20] sm:$0xff]  ;;  %v4423_v35 = vcombine.high %v4349_v16, %v1636_v18  ;;  %v4426_v36 = vcombine.low %v4349_v16, %v1636_v18  ;;  %s5273_s23 = smov (!%p1288_p13, %s4170_s23), 1 }
  0x43   : > { %1645 = vst [vmem:[#allocation4 + $0x3c] sm:$0xff] %v4354_v17  ;;  %1644 = vst [vmem:[#allocation4 + $0x34] sm:$0xff] %v1636_v18  ;;  %v4360_v20 = vld [vmem:[%s1221_s18] sm:$0xff]  ;;  %v1305_v21 = vld [vmem:[%s1207_s16 + $0x38] sm:$0xff]  ;;  %1534 = vrot.lane.b32.xlu1 %v1303_v11, %s4213_s17 }
  0x44   : > { %1643 = vst [vmem:[#allocation4 + $0x2c] sm:$0xff] %v4356_v19  ;;  %v1301_v22 = vld [vmem:[%s1207_s16 + $0x18] sm:$0xff]  ;;  %1524 = vrot.lane.b32.xlu0 %v1299_v12, %s4213_s17  ;;  %1639 = vst [vmem:[#allocation4] sm:$0xff] %v4360_v20  ;;  %v1647_v26 = vld [vmem:[%s1228_s19] sm:$0xff] }
  0x45   : > { %1313 = vst [vmem:[#allocation3 + $0x44] sm:$0xff] %v1305_v21  ;;  %1309 = vst [vmem:[#allocation3 + $0x18] sm:$0xff] %v1301_v22  ;;  %v1638_v23 = vld [vmem:[%s1221_s18 + $0x38] sm:$0xff]  ;;  %v1314_v28 = vld [vmem:[%s1214_s20] sm:$0xff] }
  0x46   : > { %v1634_v24 = vld [vmem:[%s1221_s18 + $0x18] sm:$0xff]  ;;  %1646 = vst [vmem:[#allocation4 + $0x44] sm:$0xff] %v1638_v23  ;;  %1649 = vst [vmem:[#allocation4 + $0x20] sm:$0xff] %v1647_v26  ;;  %v1379_v41 = vld [vmem:[#allocation3 + $0x54] sm:$0xf] }
  0x47   : > { %1642 = vst [vmem:[#allocation4 + $0x18] sm:$0xff] %v1634_v24  ;;  %v4366_v25 = vld [vmem:[%s1228_s19 + $0x8] sm:$0xff]  ;;  %1316 = vst [vmem:[#allocation3 + $0x20] sm:$0xff] %v1314_v28  ;;  %1394 = vrot.lane.b32.xlu1 %v4342_v13, %s4214_s28  ;;  %v1706_v43 = vld [vmem:[#allocation4 + $0x28] sm:$0xf] }
  0x48   : > { %v1315_v27 = vld [vmem:[%s1214_s20 + $0x8] sm:$0xff]  ;;  %1650 = vst [vmem:[#allocation4 + $0x4c] sm:$0xff] %v4366_v25  ;;  %1392 = vrot.lane.b32.xlu0 %v1299_v12, %s4214_s28  ;;  %v1836_v45 = vld [vmem:[#allocation4 + $0x28] sm:$0xf]  ;;  %v1511_v49 = vld [vmem:[#allocation3 + $0x54] sm:$0xf] }
  0x49   : > { %1317 = vst [vmem:[#allocation3 + $0x4c] sm:$0xff] %v1315_v27  ;;  %v1373_v40 = vld [vmem:[#allocation3 + $0x28] sm:$0xf]  ;;  %v1712_v44 = vld [vmem:[#allocation4 + $0x54] sm:$0xf]  ;;  %s3928_s20 = smul.u32 96, %s5273_s23 }
  0x4a   : > { %v4036_v42 = vpack.i.bf16 %v1379_v41, %v1373_v40  ;;  %v4041_v46 = vpack.i.bf16 %v1712_v44, %v1706_v43  ;;  %v1842_v47 = vld [vmem:[#allocation4 + $0x54] sm:$0xf]  ;;  %v1505_v48 = vld [vmem:[#allocation3 + $0x28] sm:$0xf] }
  0x4b   : > { %1404 = vrot.lane.b32.xlu1 %v4345_v14, %s4214_s28  ;;  %v4046_v50 = vpack.i.bf16 %v1842_v47, %v1836_v45  ;;  %v4051_v51 = vpack.i.bf16 %v1511_v49, %v1505_v48  ;;  %s5139_s7 = scalar_lea.vmem %s5197_s6, %s3928_s20 }
  0x4c   : > { %1402 = vrot.lane.b32.xlu0 %v1303_v11, %s4214_s28 }
  0x4f   : > { %1857 = vrot.lane.b32.xlu1 %v4347_v15, %s4213_s17 }
  0x50   : > { %1855 = vrot.lane.b32.xlu0 %v4349_v16, %s4213_s17 }
  0x53   : > { %1867 = vrot.lane.b32.xlu1 %v4354_v17, %s4213_s17 }
  0x54   : > { %1865 = vrot.lane.b32.xlu0 %v1636_v18, %s4213_s17 }
  0x57   : > { %1400 = vrot.lane.b32.xlu1 %v4330_v9, %s4214_s28 }
  0x58   : > { %1390 = vrot.lane.b32.xlu0 %v4332_v10, %s4214_s28 }
  0x5b   : > { %1863 = vrot.lane.b32.xlu1 %v4356_v19, %s4213_s17 }
  0x5c   : > { %1853 = vrot.lane.b32.xlu0 %v4360_v20, %s4213_s17 }
  0x5f   : > { %1536 = vrot.lane.b32.xlu1 %v4345_v14, %s4213_s17 }
  0x60   : > { %1526 = vrot.lane.b32.xlu0 %v4342_v13, %s4213_s17 }
  0x63   : > { %1406 = vrot.lane.b32.xlu1 %v1305_v21, %s4214_s28 }
  0x64   : > { %1396 = vrot.lane.b32.xlu0 %v1301_v22, %s4214_s28 }
  0x67   : > { %1727 = vrot.lane.b32.xlu1 %v4347_v15, %s4214_s28 }
  0x68   : > { %1725 = vrot.lane.b32.xlu0 %v4349_v16, %s4214_s28 }
  0x6b   : > { %1737 = vrot.lane.b32.xlu1 %v4354_v17, %s4214_s28 }
  0x6c   : > { %1735 = vrot.lane.b32.xlu0 %v1636_v18, %s4214_s28 }
  0x6f   : > { %1733 = vrot.lane.b32.xlu1 %v4356_v19, %s4214_s28 }
  0x70   : > { %1723 = vrot.lane.b32.xlu0 %v4360_v20, %s4214_s28 }
  0x73   : > { %1739 = vrot.lane.b32.xlu1 %v1638_v23, %s4214_s28 }
  0x74   : > { %1729 = vrot.lane.b32.xlu0 %v1634_v24, %s4214_s28 }
  0x77   : > { %1869 = vrot.lane.b32.xlu1 %v1638_v23, %s4213_s17 }
  0x78   : > { %1859 = vrot.lane.b32.xlu0 %v1634_v24, %s4213_s17 }
  0x7b   : > { %1538 = vrot.lane.b32.xlu1 %v1305_v21, %s4213_s17 }
  0x7c   : > { %1528 = vrot.lane.b32.xlu0 %v1301_v22, %s4213_s17 }
  0x7f   : > { %1871 = vrot.lane.b32.xlu1 %v4366_v25, %s4213_s17 }
  0x80   : > { %1861 = vrot.lane.b32.xlu0 %v1647_v26, %s4213_s17 }
  0x83   : > { %1408 = vrot.lane.b32.xlu1 %v1315_v27, %s4214_s28 }
  0x84   : > { %1398 = vrot.lane.b32.xlu0 %v1314_v28, %s4214_s28 }
  0x87   : > { %1540 = vrot.lane.b32.xlu1 %v1315_v27, %s4213_s17 }
  0x88   : > { %1530 = vrot.lane.b32.xlu0 %v1314_v28, %s4213_s17 }
  0x8b   : > { %1731 = vrot.lane.b32.xlu1 %v1647_v26, %s4214_s28 }
  0x8c   : > { %4037 = vrot.lane.b32.xlu0 %v4036_v42, %s4214_s28 }
  0x8f   : > { %4042 = vrot.lane.b32.xlu1 %v4041_v46, %s4214_s28 }
  0x90   : > { %1741 = vrot.lane.b32.xlu0 %v4366_v25, %s4214_s28 }
  0x93   : > { %4052 = vrot.lane.b32.xlu1 %v4051_v51, %s4213_s17 }
  0x94   : > { %4047 = vrot.lane.b32.xlu0 %v4046_v50, %s4213_s17 }
  0xb1   : > { %v1533_v52 = vpop.permute.xlu1 %1532 }
  0xb2   : > { %v1523_v53 = vpop.permute.xlu0 %1522  ;;  %v1547_v56 = vrot.slane %v1533_v52, 4 }
  0xb3   : > { %v1542_v57 = vrot.slane %v1523_v53, 4 }
  0xb5   : > { %v4456_v54 = vpop.permute.xlu1 %1534 }
  0xb6   : > { %v4458_v55 = vpop.permute.xlu0 %1524  ;;  %v1548_v58 = vrot.slane %v4456_v54, 4 }
  0xb7   : > { %v1543_v59 = vrot.slane %v4458_v55, 4 }
  0xb8   : > { %v1561_v61 = vsel %vm1420_vm0, %v1547_v56, %v1548_v58 }
  0xb9   : > { %v1552_v60 = vsel %vm1420_vm0, %v1542_v57, %v1543_v59  ;;  %v4468_v62 = vpop.permute.xlu1 %1394  ;;  %v1589_v1 = vsel %vm1553_vm1, %v1561_v61, %v4456_v54  ;;  %v1562_v3 = vsel %vm1553_vm1, %v1533_v52, %v1561_v61 }
  0xba   : > { %v1393_v63 = vpop.permute.xlu0 %1392  ;;  %v1585_v0 = vsel %vm1553_vm1, %v1552_v60, %v4458_v55  ;;  %v1554_v2 = vsel %vm1553_vm1, %v1523_v53, %v1552_v60  ;;  %v1412_v4 = vrot.slane %v4468_v62, 4 }
  0xbb   : > { %v1411_v5 = vrot.slane %v1393_v63, 4  ;;  %v3805_v6 = vcombine.high %v1585_v0, %v1589_v1  ;;  %v3804_v7 = vcombine.low %v1585_v0, %v1589_v1  ;;  %v3797_v11 = vcombine.high %v1554_v2, %v1562_v3  ;;  %v2111_v0 = vld [vmem:[%s5196_s5] sm:$0xff] }
  0xbc   : > { %v3796_v23 = vcombine.low %v1554_v2, %v1562_v3  ;;  %2116 = vperm.xlu0 %4056, %v2111_v0  }
  0xbd   : > { %2881 = vmatprep.subr.bf16.mxu0 %v3805_v6  ;;  %v4477_v12 = vpop.permute.xlu1 %1404  ;;  %v4482_v18 = vsel %vm1420_vm0, %v1411_v5, %v1412_v4 }
  0xbe   : > { %2882 = vmatpush1.bf16.msra.mxu0 %v3804_v7  ;;  %v1403_v16 = vpop.permute.xlu0 %1402  ;;  %v1417_v21 = vrot.slane %v4477_v12, 4  ;;  %v1425_v25 = vsel %vm1422_vm2, %v1393_v63, %v4482_v18 }
  0xbf   : > { %v1416_v22 = vrot.slane %v1403_v16, 4  ;;  %2883 = vmatprep.subr.bf16.mxu0 %v3797_v11 }
  0xc1   : > { %v4488_v24 = vsel %vm1420_vm0, %v1416_v22, %v1417_v21  ;;  %v4494_v27 = vpop.permute.xlu1 %1857 }
  0xc2   : > { %v1433_v26 = vsel %vm1422_vm2, %v1403_v16, %v4488_v24  ;;  %2884 = vmatpush1.bf16.msra.mxu0 %v3796_v23  ;;  %v1856_v28 = vpop.permute.xlu0 %1855  ;;  %v5202_v40 = vrot.slane %v4494_v27, 4 }
  0xc3   : > { %v1874_v41 = vrot.slane %v1856_v28, 4  ;;  %v4497_v42 = vcombine.high %v1425_v25, %v1433_v26  ;;  %v4499_v43 = vcombine.low %v1425_v25, %v1433_v26  ;;  %v2112_v26 = vld [vmem:[%s5196_s5 + $0x8] sm:$0xff] }
  0xc4   : > { %2121 = vperm.xlu1 %4057, %v2112_v26  }
  0xc5   : > { %2885 = vmatprep.subr.bf16.mxu0 %v4497_v42  ;;  %v4502_v44 = vpop.permute.xlu1 %1867  ;;  %v4509_v48 = vsel %vm1420_vm0, %v1874_v41, %v5202_v40 }
  0xc6   : > { %2886 = vmatpush1.bf16.msra.mxu0 %v4499_v43  ;;  %v1866_v45 = vpop.permute.xlu0 %1865  ;;  %v5203_v46 = vrot.slane %v4502_v44, 4  ;;  %v1886_v52 = vsel %vm1553_vm1, %v1856_v28, %v4509_v48 }
  0xc7   : > { %v1879_v47 = vrot.slane %v1866_v45, 4 }
  0xc9   : > { %v4514_v49 = vsel %vm1420_vm0, %v1879_v47, %v5203_v46  ;;  %v1401_v50 = vpop.permute.xlu1 %1400 }
  0xca   : > { %v1391_v51 = vpop.permute.xlu0 %1390  ;;  %v1894_v53 = vsel %vm1553_vm1, %v1866_v45, %v4514_v49  ;;  %v1415_v56 = vrot.slane %v1401_v50, 4 }
  0xcb   : > { %v1410_v57 = vrot.slane %v1391_v51, 4  ;;  %v4520_v60 = vcombine.high %v1886_v52, %v1894_v53  ;;  %v4522_v61 = vcombine.low %v1886_v52, %v1894_v53 }
  0xcc   : > { %v1430_v1 = vsel %vm1420_vm0, %v1415_v56, %v1416_v22 }
  0xcd   : > { %v1421_v2 = vsel %vm1420_vm0, %v1410_v57, %v1411_v5  ;;  %2944 = vmatprep.subr.bf16.mxu1 %v4520_v60  ;;  %v4530_v3 = vpop.permute.xlu1 %1863  ;;  %v1458_v11 = vsel %vm1422_vm2, %v1430_v1, %v1403_v16  ;;  %v1431_v23 = vsel %vm1422_vm2, %v1401_v50, %v1430_v1 }
  0xce   : > { %2945 = vmatpush1.bf16.msra.mxu1 %v4522_v61  ;;  %v4533_v6 = vpop.permute.xlu0 %1853  ;;  %v1454_v7 = vsel %vm1422_vm2, %v1421_v2, %v1393_v63  ;;  %v1423_v25 = vsel %vm1422_vm2, %v1391_v51, %v1421_v2  ;;  %v1878_v22 = vrot.slane %v4530_v3, 4 }
  0xcf   : > { %v1873_v5 = vrot.slane %v4533_v6, 4  ;;  %v3781_v52 = vcombine.high %v1454_v7, %v1458_v11  ;;  %v3780_v53 = vcombine.low %v1454_v7, %v1458_v11  ;;  %v3773_v16 = vcombine.high %v1423_v25, %v1431_v23  ;;  %v2113_v7 = vld [vmem:[%s5196_s5 + $0x10] sm:$0xff] }
  0xd0   : > { %v4545_v56 = vsel %vm1420_vm0, %v1878_v22, %v1879_v47  ;;  %v3772_v11 = vcombine.low %v1423_v25, %v1431_v23  ;;  %2126 = vperm.xlu1 %4057, %v2113_v7  }
  0xd1   : > { %v4548_v63 = vsel %vm1420_vm0, %v1873_v5, %v1874_v41  ;;  %2887 = vmatprep.subr.bf16.mxu0 %v3781_v52  ;;  %v4550_v50 = vpop.permute.xlu1 %1536  ;;  %v1919_v0 = vsel %vm1553_vm1, %v4545_v56, %v1866_v45 }
  0xd2   : > { %v4552_v51 = vpop.permute.xlu0 %1526  ;;  %v1915_v57 = vsel %vm1553_vm1, %v4548_v63, %v1856_v28  ;;  %v5199_v1 = vrot.slane %v4550_v50, 4  ;;  %2888 = vmatpush1.bf16.msra.mxu0 %v3780_v53 }
  0xd3   : > { %v5198_v47 = vrot.slane %v4552_v51, 4  ;;  %2889 = vmatprep.subr.bf16.mxu0 %v3773_v16  ;;  %v3877_v41 = vcombine.high %v1915_v57, %v1919_v0  ;;  %v3876_v2 = vcombine.low %v1915_v57, %v1919_v0  ;;  %v4059_v0 = vld [vmem:[#allocation3 + $0x8] ss:$44 sps:$4 sm:$0xff]  }
  0xd4   : > { %v1563_v28 = vsel %vm1420_vm0, %v1548_v58, %v5199_v1  ;;  %v4584_v58 = vld [vmem:[%s5195_s4 + $0x8] ss:$12 sps:$4 sm:$0xff]  }
  0xd5   : > { %v1555_v45 = vsel %vm1420_vm0, %v1543_v59, %v5198_v47  ;;  %v1590_v22 = vsel %vm1553_vm1, %v1563_v28, %v4550_v50  ;;  %2946 = vmatprep.subr.bf16.mxu1 %v3877_v41  ;;  %v4577_v25 = vpop.permute.xlu1 %1406  ;;  %v1564_v26 = vsel %vm1553_vm1, %v4456_v54, %v1563_v28  ;;  %v4061_v28 = vld [vmem:[#allocation3 + $0x4] ss:$44 sps:$4 sm:$0xff]  }
  0xd6   : > { %v1586_v23 = vsel %vm1553_vm1, %v1555_v45, %v4552_v51  ;;  %v4579_v5 = vpop.permute.xlu0 %1396  ;;  %v1556_v59 = vsel %vm1553_vm1, %v4458_v55, %v1555_v45  ;;  %v5205_v53 = vrot.slane %v4577_v25, 4  ;;  %2890 = vmatpush1.bf16.msra.mxu0 %v3772_v11  ;;  %2947 = vmatpush1.bf16.msra.mxu1 %v3876_v2 }
  0xd7   : > { %v3806_v52 = vcombine.low %v1586_v23, %v1590_v22  ;;  %v5204_v16 = vrot.slane %v4579_v5, 4  ;;  %v3807_v57 = vcombine.high %v1586_v23, %v1590_v22  ;;  %2891 = vmatprep.subr.bf16.mxu0 %v4387_v29  ;;  %v4615_v11 = vcombine.high %v1556_v59, %v1564_v26 }
  0xd8   : > { %v1434_v55 = vsel %vm1420_vm0, %v1417_v21, %v5205_v53 }
  0xd9   : > { %v1426_v54 = vsel %vm1420_vm0, %v1412_v4, %v5204_v16  ;;  %2983 = vmatprep.subr.bf16.mxu1 %v3807_v57  ;;  %v4605_v41 = vsel %vm1422_vm2, %v1434_v55, %v4577_v25  ;;  %3892 = vmatmul.mubr.msk.bf16.vlgmr.msra.gmra.mxu1 %vm2874_vm3, %v4584_v58  ;;  %v4613_v7 = vpop.permute.xlu1 %1727  ;;  %v1435_v22 = vsel %vm1422_vm2, %v4477_v12, %v1434_v55 }
  0xda   : > { %v4609_v2 = vsel %vm1422_vm2, %v1426_v54, %v4579_v5  ;;  %v1726_v21 = vpop.permute.xlu0 %1725  ;;  %2892 = vmatpush1.bf16.msra.mxu0 %v4389_v30  ;;  %2984 = vmatpush1.bf16.msra.mxu1 %v3806_v52  ;;  %v1427_v45 = vsel %vm1422_vm2, %v4468_v62, %v1426_v54  ;;  %v1745_v23 = vrot.slane %v4613_v7, 4  ;;  %v4628_v4 = vcombine.low %v1556_v59, %v1564_v26 }
  0xdb   : > { %v1744_v57 = vrot.slane %v1726_v21, 4  ;;  %2985 = vmatprep.subr.bf16.mxu1 %v4615_v11  ;;  %2893 = vmatprep.subr.bf16.mxu0 %v4059_v0  ;;  %v4633_v54 = vcombine.high %v1427_v45, %v1435_v22  ;;  %v1459_v55 = vsel %vm1422_vm2, %v4488_v24, %v4477_v12  ;;  %v4641_v0 = vld [vmem:[%s5195_s4 + $0x20] ss:$0 sps:$4 sm:$0xff]   ;;  %v1892_v59 = vsel %vm1553_vm1, %v4530_v3, %v4545_v56 }
  0xdc   : > { %2974 = vmatprep.mubr.bf16.mxu1 %v5200_v8  ;;  %v1884_v26 = vsel %vm1553_vm1, %v4533_v6, %v4548_v63  ;;  %v4661_v3 = vcombine.low %v1427_v45, %v1435_v22  ;;  %v1455_v6 = vsel %vm1422_vm2, %v4482_v18, %v4468_v62 }
  0xdd   : > { %v4631_v52 = vpop.permute.xlu1 %1737  ;;  %v4652_v12 = vsel %vm1420_vm0, %v1744_v57, %v1745_v23  ;;  %v3869_v56 = vcombine.high %v1884_v26, %v1892_v59  ;;  %v3783_v38 = vcombine.high %v1455_v6, %v1459_v55  ;;  %v3868_v62 = vcombine.low %v1884_v26, %v1892_v59  ;;  %v4064_v59 = vld [vmem:[#allocation3 + $0x10] ss:$44 sps:$4 sm:$0xff]  }
  0xde   : > { %v1736_v1 = vpop.permute.xlu0 %1735  ;;  %v1750_v47 = vrot.slane %v4631_v52, 4  ;;  %2986 = vmatpush1.bf16.msra.mxu1 %v4628_v4  ;;  %2894 = vmatpush1.bf16.msra.mxu0 %v4061_v28  ;;  %v1756_v37 = vsel %vm1422_vm2, %v1726_v21, %v4652_v12  ;;  %v3782_v46 = vcombine.low %v1455_v6, %v1459_v55  ;;  %v5228_v26 = vrot.slane %v4579_v5, 4 }
  0xdf   : > { %v1749_v8 = vrot.slane %v1736_v1, 4  ;;  %2987 = vmatprep.subr.bf16.mxu1 %v4633_v54  ;;  %2895 = vmatprep.subr.bf16.mxu0 %v3749_v31 }
  0xe1   : > { %v4659_v24 = vsel %vm1420_vm0, %v1749_v8, %v1750_v47  ;;  %v1734_v63 = vpop.permute.xlu1 %1733  ;;  %3893 = vmatmul.mubr.msk.bf16.gmra.mxu1 %vm2874_vm3, %v4641_v0 }
  0xe2   : > { %v1724_v28 = vpop.permute.xlu0 %1723  ;;  %v1764_v31 = vsel %vm1422_vm2, %v1736_v1, %v4659_v24  ;;  %v1748_v40 = vrot.slane %v1734_v63, 4  ;;  %2988 = vmatpush1.bf16.msra.mxu1 %v4661_v3  ;;  %2896 = vmatpush1.bf16.msra.mxu0 %v3748_v32 }
  0xe3   : > { %v1743_v45 = vrot.slane %v1724_v28, 4  ;;  %2897 = vmatprep.subr.bf16.mxu0 %v3869_v56  ;;  %2989 = vmatprep.subr.bf16.mxu1 %v3783_v38  ;;  %v4683_v34 = vcombine.high %v1756_v37, %v1764_v31 }
  0xe4   : > { %v1761_v18 = vsel %vm1420_vm0, %v1748_v40, %v1749_v8  ;;  %3015 = vmatprep.mubr.bf16.mxu1 %v4442_v39  ;;  %v4697_v40 = vcombine.low %v1756_v37, %v1764_v31  ;;  %v4062_v31 = vld [vmem:[#allocation3 + $0xc] ss:$44 sps:$4 sm:$0xff]   ;;  %v4067_v37 = vld [vmem:[#allocation4 + $0x4] ss:$44 sps:$4 sm:$0xff]  }
  0xe5   : > { %v1753_v22 = vsel %vm1420_vm0, %v1743_v45, %v1744_v57  ;;  %v4679_v16 = vpop.permute.xlu1 %1739  ;;  %v1789_v8 = vsel %vm1422_vm2, %v1761_v18, %v1736_v1 }
  0xe6   : > { %v4681_v53 = vpop.permute.xlu0 %1729  ;;  %v5210_v33 = vrot.slane %v4679_v16, 4  ;;  %2990 = vmatpush1.bf16.msra.mxu1 %v3782_v46  ;;  %2898 = vmatpush2.bf16.msra.mxu0 %v3868_v62  ;;  %v1785_v10 = vsel %vm1422_vm2, %v1753_v22, %v1726_v21  ;;  %v1754_v55 = vsel %vm1422_vm2, %v1724_v28, %v1753_v22 }
  0xe7   : > { %v1746_v9 = vrot.slane %v4681_v53, 4  ;;  %2899 = vmatprep.subr.bf16.mxu0 %v4683_v34  ;;  %2991 = vmatprep.subr.bf16.mxu1 %v4497_v42  ;;  %v3853_v57 = vcombine.high %v1785_v10, %v1789_v8  ;;  %v3852_v6 = vcombine.low %v1785_v10, %v1789_v8 }
  0xe8   : > { %v1765_v32 = vsel %vm1420_vm0, %v1750_v47, %v5210_v33  ;;  %v1762_v47 = vsel %vm1422_vm2, %v1734_v63, %v1761_v18  ;;  %v5231_v33 = vrot.slane %v4494_v27, 4 }
  0xe9   : > { %v1757_v38 = vsel %vm1420_vm0, %v1745_v23, %v1746_v9  ;;  %v4701_v46 = vsel %vm1422_vm2, %v1765_v32, %v4679_v16  ;;  %v4707_v21 = vpop.permute.xlu1 %1869  ;;  %v5223_v23 = vcombine.high %v4342_v13, %v4345_v14  ;;  %v3845_v56 = vcombine.high %v1754_v55, %v1762_v47 }
  0xea   : > { %5222 = vst [vmem:[#allocation9_spill] sm:$0xff] %v4701_v46  ;;  %v4705_v1 = vsel %vm1422_vm2, %v1757_v38, %v4681_v53  ;;  %v4709_v42 = vpop.permute.xlu0 %1859  ;;  %2992 = vmatpush1.bf16.msra.mxu1 %v4499_v43  ;;  %2900 = vmatpush2.bf16.msra.mxu0 %v4697_v40  ;;  %v5224_v43 = vcombine.low %v4342_v13, %v4345_v14  ;;  %v1881_v22 = vrot.slane %v4707_v21, 4  ;;  %v4065_v13 = vld [vmem:[#allocation4 + $0x8] ss:$44 sps:$4 sm:$0xff]  }
  0xeb   : > { %2901 = vmatprep.subr.bf16.mxu0 %v3853_v57  ;;  %2993 = vmatprep.subr.bf16.mxu1 %v5223_v23  ;;  %v3844_v45 = vcombine.low %v1754_v55, %v1762_v47  ;;  %v1876_v10 = vrot.slane %v4709_v42, 4 }
  0xed   : > { %v4722_v63 = vpop.permute.xlu1 %1538 }
  0xee   : > { %v4724_v28 = vpop.permute.xlu0 %1528  ;;  %2994 = vmatpush1.bf16.msra.mxu1 %v5224_v43  ;;  %2902 = vmatpush2.bf16.msra.mxu0 %v3852_v6  ;;  %v1758_v6 = vsel %vm1422_vm2, %v4613_v7, %v1757_v38  ;;  %v1786_v38 = vsel %vm1422_vm2, %v4652_v12, %v4613_v7  ;;  %v5227_v43 = vrot.slane %v4577_v25, 4  ;;  %v1790_v7 = vsel %vm1422_vm2, %v4659_v24, %v4631_v52 }
  0xef   : > { %2903 = vmatprep.subr.bf16.mxu0 %v3845_v56  ;;  %2995 = vmatprep.subr.bf16.mxu1 %v4064_v59  ;;  %v1766_v56 = vsel %vm1422_vm2, %v4631_v52, %v1765_v32  ;;  %v5230_v52 = vrot.slane %v4502_v44, 4 }
  0xf1   : > { %v4729_v62 = vpop.permute.xlu1 %1871  ;;  %v4813_v24 = vsel %vm1420_vm0, %v5230_v52, %v1881_v22  ;;  %v3855_v52 = vcombine.high %v1786_v38, %v1790_v7 }
  0xf2   : > { %v4731_v18 = vpop.permute.xlu0 %1861  ;;  %v5209_v8 = vrot.slane %v4729_v62, 4  ;;  %2996 = vmatpush1.bf16.msra.mxu1 %v4062_v31  ;;  %2904 = vmatpush2.bf16.msra.mxu0 %v3844_v45 }
  0xf3   : > { %v5208_v57 = vrot.slane %v4731_v18, 4  ;;  %2905 = vmatprep.subr.bf16.mxu0 %v4423_v35  ;;  %2997 = vmatprep.subr.bf16.mxu1 %v4387_v29 }
  0xf4   : > { %v4742_v14 = vsel %vm1420_vm0, %v1881_v22, %v5209_v8 }
  0xf5   : > { %v4747_v47 = vsel %vm1420_vm0, %v1876_v10, %v5208_v57  ;;  %v4752_v55 = vsel %vm1553_vm1, %v4742_v14, %v4729_v62  ;;  %v4759_v23 = vpop.permute.xlu1 %1408 }
  0xf6   : > { %5225 = vst [vmem:[#allocation10_spill] sm:$0xff] %v4752_v55  ;;  %v4757_v29 = vsel %vm1553_vm1, %v4747_v47, %v4731_v18  ;;  %v4761_v59 = vpop.permute.xlu0 %1398  ;;  %v5206_v31 = vrot.slane %v4759_v23, 4  ;;  %2998 = vmatpush1.bf16.msra.mxu1 %v4389_v30  ;;  %2906 = vmatpush2.bf16.msra.mxu0 %v4426_v36 }
  0xf7   : > { %5226 = vst [vmem:[#allocation11_spill] sm:$0xff] %v4757_v29  ;;  %v5207_v45 = vrot.slane %v4761_v59, 4  ;;  %2999 = vmatprep.subr.bf16.mxu1 %v4520_v60  ;;  %2907 = vmatprep.subr.bf16.mxu0 %v4065_v13  ;;  %v4789_v13 = vcombine.high %v1758_v6, %v1766_v56 }
  0xf8   : > { %v1436_v30 = vsel %vm1420_vm0, %v5227_v43, %v5206_v31 }
  0xf9   : > { %v1428_v60 = vsel %vm1420_vm0, %v5228_v26, %v5207_v45  ;;  %5229 = vst [vmem:[#allocation12_spill] sm:$0xff] %v4789_v13  ;;  %v4796_v12 = vsel %vm1422_vm2, %v1436_v30, %v4759_v23  ;;  %v4802_v43 = vpop.permute.xlu1 %1540  ;;  %v1437_v45 = vsel %vm1422_vm2, %v4577_v25, %v1436_v30  ;;  %v5232_v25 = vcombine.high %v4360_v20, %v4356_v19 }
  0xfa   : > { %v4800_v32 = vsel %vm1422_vm2, %v1428_v60, %v4761_v59  ;;  %v4804_v31 = vpop.permute.xlu0 %1530  ;;  %v1429_v26 = vsel %vm1422_vm2, %v4579_v5, %v1428_v60  ;;  %3000 = vmatpush2.bf16.msra.mxu1 %v4522_v61  ;;  %2908 = vmatpush2.bf16.msra.mxu0 %v4067_v37  ;;  %v4823_v5 = vsel %vm1420_vm0, %v5231_v33, %v1876_v10 }
  0xfb   : > { %v4818_v8 = vcombine.low %v1429_v26, %v1437_v45  ;;  %3001 = vmatprep.subr.bf16.mxu1 %v4789_v13  ;;  %2909 = vmatprep.subr.bf16.mxu0 %v5232_v25  ;;  %v4829_v22 = vcombine.high %v1429_v26, %v1437_v45  ;;  %v4833_v61 = vcombine.low %v1758_v6, %v1766_v56  ;;  %v1965_v56 = vld [vmem:[%s5195_s4 + $0x18] sm:$0xff]  ;;  %v5236_v13 = vrot.slane %v4722_v63, 4 }
  0xfc   : > { %v5234_v10 = vcombine.low %v4360_v20, %v4356_v19  ;;  %v1888_v45 = vsel %vm1553_vm1, %v4494_v27, %v4823_v5  ;;  %v1896_v6 = vsel %vm1553_vm1, %v4502_v44, %v4813_v24  ;;  %v3854_v20 = vcombine.low %v1786_v38, %v1790_v7 }
  0xfd   : > { %5233 = vst [vmem:[#allocation13_spill] sm:$0xff] %v4833_v61  ;;  %v4835_v37 = vpop.permute.xlu1 %1731  ;;  %v1920_v26 = vsel %vm1553_vm1, %v4514_v49, %v4502_v44  ;;  %v1916_v49 = vsel %vm1553_vm1, %v4509_v48, %v4494_v27  ;;  %v3839_v38 = vcombine.high %v4347_v15, %v4354_v17  ;;  %v4884_v7 = vcombine.high %v1965_v56, %v1965_v56 }
  0xfe   : > { %v4837_v60 = vpop.permute.xlu0 %4037  ;;  %v5211_v33 = vrot.slane %v4835_v37, 4  ;;  %3002 = vmatpush2.bf16.msra.mxu1 %v4833_v61  ;;  %2910 = vmatpush2.bf16.msra.mxu0 %v5234_v10  ;;  %v4864_v10 = vcombine.high %v1888_v45, %v1896_v6  ;;  %v4895_v27 = vcombine.low %v1888_v45, %v1896_v6 }
  0xff   : > { %2911 = vmatprep.subr.bf16.mxu0 %v4615_v11  ;;  %3003 = vmatprep.subr.bf16.mxu1 %v3855_v52  ;;  %v4869_v11 = vld [vmem:[%s5195_s4] ss:$12 sps:$4 sm:$0xff]   ;;  %v3838_v52 = vcombine.low %v4347_v15, %v4354_v17  ;;  %v4900_v15 = vsel %vm1553_vm1, %v4709_v42, %v4747_v47  ;;  %v1898_v17 = vsel %vm1553_vm1, %v4707_v21, %v4742_v14 }
 0x100   : > { %v1759_v19 = vsel %vm1420_vm0, %v1746_v9, %v5211_v33  ;;  %v3878_v33 = vcombine.low %v1916_v49, %v1920_v26 }
 0x101   : > { %v4873_v57 = vpop.permute.xlu1 %4042  ;;  %v1760_v9 = vsel %vm1422_vm2, %v4681_v53, %v1759_v19  ;;  %v3879_v53 = vcombine.high %v1916_v49, %v1920_v26  ;;  %v4908_v48 = vsel %vm1422_vm2, %v1759_v19, %v4835_v37  ;;  %v1545_v26 = vrot.slane %v4724_v28, 4 }
 0x102   : > { %v4862_v25 = vpop.permute.xlu0 %1741  ;;  %3004 = vmatpush2.bf16.msra.mxu1 %v3854_v20  ;;  %2912 = vmatpush2.bf16.msra.mxu0 %v4628_v4  ;;  %v4888_v20 = vcombine.low %v1965_v56, %v1965_v56  ;;  %v5235_v4 = vrot.slane %v4679_v16, 4 }
 0x103   : > { %v5212_v44 = vrot.slane %v4862_v25, 4  ;;  %3005 = vmatprep.subr.bf16.mxu1 %v4683_v34  ;;  %3046 = vmatprep.subr.bf16.mxu0 %v4864_v10 }
 0x105   : > { %v1767_v30 = vsel %vm1420_vm0, %v5235_v4, %v5212_v44  ;;  %2914 = vmatmul.mubr.bf16.vlgmr.msra.gmra.mxu0 %v4869_v11  ;;  %v4053_v6 = vpop.permute.xlu1 %4052  ;;  %v4923_v4 = vcombine.high %v4900_v15, %v1898_v17  ;;  %v4076_v44 = vld [vmem:[#allocation4 + $0x10] ss:$44 sps:$4 sm:$0xff]  }
 0x106   : > { %v4912_v56 = vsel %vm1422_vm2, %v1767_v30, %v4862_v25  ;;  %v4048_v45 = vpop.permute.xlu0 %4047  ;;  %v1768_v47 = vsel %vm1422_vm2, %v4679_v16, %v1767_v30  ;;  %3006 = vmatpush2.bf16.msra.mxu1 %v4697_v40  ;;  %3047 = vmatpush1.bf16.msra.mxu0 %v4895_v27  ;;  %v4055_v34 = vunpack.i.h.bf16 %v4053_v6  ;;  %v4054_v55 = vunpack.i.l.bf16 %v4053_v6 }
 0x107   : > { %v4050_v19 = vunpack.i.h.bf16 %v4048_v45  ;;  %v4049_v49 = vunpack.i.l.bf16 %v4048_v45  ;;  %3048 = vmatprep.subr.bf16.mxu0 %v3879_v53  ;;  %3007 = vmatprep.subr.bf16.mxu1 %v3839_v38  ;;  %v4925_v16 = vcombine.low %v1760_v9, %v1768_v47  ;;  %v1551_v30 = vrot.slane %v4802_v43, 4 }
 0x108   : > { %2923 = vmatprep.mubr.bf16.mxu0 %v4884_v7  ;;  %v4929_v40 = vcombine.high %v1760_v9, %v1768_v47  ;;  %v1546_v45 = vrot.slane %v4804_v31, 4  ;;  %v1616_v53 = vrot.slane %v4055_v34, 4  ;;  %v1615_v38 = vrot.slane %v4054_v55, 4  ;;  %v4074_v55 = vld [vmem:[#allocation4 + $0xc] ss:$44 sps:$4 sm:$0xff]  }
 0x109   : > { %v1946_v29 = vrot.slane %v4050_v19, 4  ;;  %v1945_v14 = vrot.slane %v4049_v49, 4  ;;  %v5237_v6 = vrot.slane %v4550_v50, 4  ;;  %v5238_v19 = vrot.slane %v4729_v62, 4 }
 0x10a   : > { %3008 = vmatpush2.bf16.msra.mxu1 %v3838_v52  ;;  %3049 = vmatpush1.bf16.msra.mxu0 %v3878_v33  ;;  %v5239_v47 = vrot.slane %v4731_v18, 4  ;;  %v5240_v49 = vrot.slane %v4552_v51, 4  ;;  %v1617_v33 = vsel %vm1420_vm0, %v1546_v45, %v1615_v38 }
 0x10b   : > { %v1565_v46 = vsel %vm1420_vm0, %v5237_v6, %v5236_v13  ;;  %v1949_v9 = vsel %vm1420_vm0, %v5238_v19, %v1946_v29  ;;  %3148 = vmatprep.subr.bf16.mxu0 %v4923_v4  ;;  %3009 = vmatprep.subr.bf16.mxu1 %v4076_v44  ;;  %v1619_v13 = vsel %vm1420_vm0, %v1551_v30, %v1616_v53 }
 0x10c   : > { %v1947_v34 = vsel %vm1420_vm0, %v5239_v47, %v1945_v14  ;;  %v1557_v61 = vsel %vm1420_vm0, %v5240_v49, %v1545_v26  ;;  %v4957_v29 = vsel %vm1553_vm1, %v4729_v62, %v1949_v9  ;;  %v4961_v14 = vsel %vm1553_vm1, %v4804_v31, %v1617_v33 }
 0x10d   : > { %v4953_v52 = vsel %vm1553_vm1, %v4731_v18, %v1947_v34  ;;  %v4965_v6 = vsel %vm1553_vm1, %v4802_v43, %v1619_v13  ;;  %2924 = vmatmul.mubr.bf16.gmra.mxu0 %v4888_v20  ;;  %v1558_v38 = vsel %vm1553_vm1, %v4552_v51, %v1557_v61  ;;  %v1566_v19 = vsel %vm1553_vm1, %v4550_v50, %v1565_v46 }
 0x10e   : > { %v3890_v44 = vcombine.low %v4953_v52, %v4957_v29  ;;  %v3891_v18 = vcombine.high %v4953_v52, %v4957_v29  ;;  %v3818_v62 = vcombine.low %v4961_v14, %v4965_v6  ;;  %v3819_v53 = vcombine.high %v4961_v14, %v4965_v6  ;;  %3010 = vmatpush2.bf16.msra.mxu1 %v4074_v55 }
 0x10f   : > { %v5241_v9 = vmov 0   ;;  %3011 = vmatprep.subr.bf16.mxu1 %v4423_v35  ;;  %v3801_v47 = vcombine.high %v1558_v38, %v1566_v19  ;;  %v1921_v34 = vsel %vm1553_vm1, %v4813_v24, %v4707_v21  ;;  %v1917_v49 = vsel %vm1553_vm1, %v4823_v5, %v4709_v42 }
 0x110   : > { %3066 = vmatprep.mubr.bf16.mxu0 %v5241_v9  ;;  %v1591_v55 = vsel %vm1553_vm1, %v1565_v46, %v4722_v63  ;;  %v1587_v51 = vsel %vm1553_vm1, %v1557_v61, %v4724_v28  ;;  %v4994_v35 = vcombine.low %v4900_v15, %v1898_v17  ;;  %v3800_v50 = vcombine.low %v1558_v38, %v1566_v19 }
 0x111   : > { %v5242_v13 = vrot.slane %v4722_v63, 4  ;;  %v1559_v24 = vsel %vm1420_vm0, %v1545_v26, %v1546_v45  ;;  %v3881_v46 = vcombine.high %v1917_v49, %v1921_v34  ;;  %v3809_v42 = vcombine.high %v1587_v51, %v1591_v55 }
 0x112   : > { %3012 = vmatpush2.bf16.msra.mxu1 %v4426_v36  ;;  %v1588_v36 = vsel %vm1553_vm1, %v1559_v24, %v4804_v31  ;;  %v3880_v61 = vcombine.low %v1917_v49, %v1921_v34  ;;  %v3808_v15 = vcombine.low %v1587_v51, %v1591_v55  ;;  %v4040_v26 = vunpack.i.h.bf16 %v4837_v60 }
 0x113   : > { %3013 = vmatprep.subr.bf16.mxu1 %v3801_v47  ;;  %v1567_v21 = vsel %vm1420_vm0, %v5242_v13, %v1551_v30  ;;  %v5243_v33 = vrot.slane %v4759_v23, 4  ;;  %v5244_v19 = vrot.slane %v4761_v59, 4  ;;  %v5245_v34 = vcombine.high %v4609_v2, %v4605_v41 }
 0x114   : > { %v1592_v5 = vsel %vm1553_vm1, %v1567_v21, %v4802_v43  ;;  %v4039_v43 = vunpack.i.l.bf16 %v4837_v60  ;;  %v1485_v31 = vrot.slane %v4040_v26, 4  ;;  %v1560_v60 = vsel %vm1553_vm1, %v4724_v28, %v1559_v24  ;;  %v4085_v24 = vld [vmem:[#allocation3 + $0x14] ss:$44 sps:$4 sm:$0xff]  }
 0x115   : > { %3894 = vmatmul.mubr.msk.bf16.vlgmr.msra.gmra.mxu0 %vm2874_vm3, %v4584_v58  ;;  %v3811_v17 = vcombine.high %v1588_v36, %v1592_v5  ;;  %v1568_v45 = vsel %vm1553_vm1, %v4722_v63, %v1567_v21  ;;  %v3810_v49 = vcombine.low %v1588_v36, %v1592_v5  ;;  %v5246_v63 = vcombine.low %v4609_v2, %v4605_v41  ;;  %v4077_v41 = vld [vmem:[#allocation3 + $0x18] ss:$44 sps:$4 sm:$0xff]  }
 0x116   : > { %3149 = vmatpush1.bf16.msra.mxu0 %v4994_v35  ;;  %3014 = vmatpush2.bf16.msra.mxu1 %v3800_v50  ;;  %v1484_v30 = vrot.slane %v4039_v43, 4  ;;  %v1488_v38 = vsel %vm1420_vm0, %v5243_v33, %v1485_v31  ;;  %v5034_v28 = vcombine.high %v1560_v60, %v1568_v45  ;;  %v5045_v13 = vcombine.low %v1560_v60, %v1568_v45  ;;  %v4082_v2 = vld [vmem:[#allocation3 + $0x18] ss:$44 sps:$4 sm:$0xff]   ;;  %v5251_v43 = vld [vmem:[#allocation9_spill] sm:$0xff]  ;;  %v5254_v45 = vld [vmem:[#allocation12_spill] sm:$0xff] }
 0x117   : > { %3150 = vmatprep.subr.bf16.mxu0 %v3881_v46  ;;  %3085 = vmatprep.subr.bf16.mxu1 %v3809_v42  ;;  %v1489_v51 = vsel %vm1422_vm2, %v4759_v23, %v1488_v38  ;;  %v5247_v23 = vcombine.high %v4800_v32, %v4796_v12  ;;  %v4083_v46 = vld [vmem:[#allocation3 + $0x10] ss:$44 sps:$4 sm:$0xff]   ;;  %v4107_v5 = vld [vmem:[#allocation3 + $0x20] sm:$0xff]  ;;  %v5253_v31 = vcombine.low %v4705_v1, %v5251_v43 }
 0x118   : > { %3076 = vmatprep.mubr.bf16.mxu0 %v5241_v9  ;;  %v4106_v42 = vld [vmem:[#allocation3 + $0x4c] sm:$0xff]  ;;  %v4093_v33 = vld [vmem:[#allocation4 + $0x1c] ss:$44 sps:$4 sm:$0xff]  }
 0x119   : > { %3016 = vmatmul.mubr.bf16.vlgmr.msra.gmra.mxu1 %v4869_v11  ;;  %v3771_v36 = vcombine.high %v4107_v5, %v4106_v42 }
 0x11a   : > { %3151 = vmatpush1.bf16.msra.mxu0 %v3880_v61  ;;  %3086 = vmatpush1.bf16.msra.mxu1 %v3808_v15  ;;  %v3770_v61 = vcombine.low %v4107_v5, %v4106_v42  ;;  %v4045_v15 = vunpack.i.h.bf16 %v4873_v57 }
 0x11b   : > { %3187 = vmatprep.subr.bf16.mxu0 %v3811_v17  ;;  %3087 = vmatprep.subr.bf16.mxu1 %v3801_v47  ;;  %v1486_v47 = vsel %vm1420_vm0, %v5244_v19, %v1484_v30  ;;  %v5255_v19 = vld [vmem:[#allocation13_spill] sm:$0xff] }
 0x11c   : > { %3025 = vmatprep.mubr.bf16.mxu1 %v4884_v7  ;;  %v1487_v55 = vsel %vm1422_vm2, %v4761_v59, %v1486_v47  ;;  %v4091_v47 = vld [vmem:[#allocation4 + $0x18] ss:$44 sps:$4 sm:$0xff]  }
 0x11d   : > { %3895 = vmatmul.mubr.msk.bf16.gmra.mxu0 %vm2874_vm3, %v4641_v0  ;;  %v3795_v21 = vcombine.high %v1487_v55, %v1489_v51  ;;  %v3794_v59 = vcombine.low %v1487_v55, %v1489_v51  ;;  %v4100_v55 = vld [vmem:[#allocation4 + $0x20] ss:$44 sps:$4 sm:$0xff]  }
 0x11e   : > { %3088 = vmatpush1.bf16.msra.mxu1 %v3800_v50  ;;  %3168 = vmatprep.mubr.bf16.mxu0 %v5241_v9  ;;  %v4079_v50 = vld [vmem:[#allocation3 + $0x1c] ss:$44 sps:$4 sm:$0xff]   ;;  %v4105_v51 = vld [vmem:[#allocation4 + $0x20] ss:$44 sps:$4 sm:$0xff]  }
 0x11f   : > { %3089 = vmatprep.subr.bf16.mxu1 %v4829_v22 }
 0x121   : > { %3026 = vmatmul.mubr.bf16.gmra.mxu1 %v4888_v20 }
 0x122   : > { %3090 = vmatpush1.bf16.msra.mxu1 %v4818_v8  ;;  %3117 = vmatprep.mubr.bf16.mxu1 %v4442_v39 }
 0x123   : > { %3091 = vmatprep.subr.bf16.mxu1 %v5245_v34 }
 0x125   : > { %3896 = vmatmul.mubr.msk.bf16.vlgmr.msra.gmra.mxu0 %vm2874_vm3, %v4584_v58 }
 0x126   : > { %3188 = vmatpush1.bf16.msra.mxu0 %v3810_v49  ;;  %3092 = vmatpush1.bf16.msra.mxu1 %v5246_v63  ;;  %v5257_v49 = vcombine.low %v4908_v48, %v4912_v56  ;;  %v4102_v63 = vld [vmem:[#allocation4 + $0x24] ss:$44 sps:$4 sm:$0xff]  }
 0x127   : > { %3189 = vmatprep.subr.bf16.mxu0 %v5034_v28  ;;  %3093 = vmatprep.subr.bf16.mxu1 %v4633_v54  ;;  %v4080_v54 = vld [vmem:[#allocation3 + $0x14] ss:$44 sps:$4 sm:$0xff]  }
 0x128   : > { %3178 = vmatprep.mubr.bf16.mxu0 %v5241_v9 }
 0x12a   : > { %3190 = vmatpush1.bf16.msra.mxu0 %v5045_v13  ;;  %3094 = vmatpush1.bf16.msra.mxu1 %v4661_v3  ;;  %v5248_v3 = vcombine.low %v4800_v32, %v4796_v12  ;;  %v4090_v32 = vld [vmem:[#allocation3 + $0x20] ss:$44 sps:$4 sm:$0xff]   ;;  %v4088_v12 = vld [vmem:[#allocation3 + $0x1c] ss:$44 sps:$4 sm:$0xff]  }
 0x12b   : > { %3191 = vmatprep.subr.bf16.mxu0 %v3795_v21  ;;  %3095 = vmatprep.subr.bf16.mxu1 %v4079_v50 }
 0x12d   : > { %3897 = vmatmul.mubr.msk.bf16.gmra.mxu0 %vm2874_vm3, %v4641_v0 }
 0x12e   : > { %3192 = vmatpush1.bf16.msra.mxu0 %v3794_v59  ;;  %3096 = vmatpush1.bf16.msra.mxu1 %v4077_v41 }
 0x12f   : > { %3193 = vmatprep.subr.bf16.mxu0 %v5247_v23  ;;  %3097 = vmatprep.subr.bf16.mxu1 %v4082_v2 }
 0x130   : > { %3219 = vmatprep.mubr.bf16.mxu0 %v4442_v39  ;;  %v4044_v39 = vunpack.i.l.bf16 %v4873_v57 }
 0x132   : > { %3194 = vmatpush1.bf16.msra.mxu0 %v5248_v3  ;;  %3098 = vmatpush1.bf16.msra.mxu1 %v4080_v54  ;;  %v1815_v17 = vrot.slane %v4044_v39, 4 }
 0x133   : > { %3195 = vmatprep.subr.bf16.mxu0 %v4829_v22  ;;  %3099 = vmatprep.subr.bf16.mxu1 %v4085_v24  ;;  %v1816_v22 = vrot.slane %v4045_v15, 4 }
 0x136   : > { %3196 = vmatpush1.bf16.msra.mxu0 %v4818_v8  ;;  %3100 = vmatpush1.bf16.msra.mxu1 %v4083_v46  ;;  %v5249_v8 = vrot.slane %v4835_v37, 4 }
 0x137   : > { %3101 = vmatprep.subr.bf16.mxu1 %v4864_v10  ;;  %3197 = vmatprep.subr.bf16.mxu0 %v3771_v36  ;;  %v5250_v10 = vrot.slane %v4862_v25, 4 }
 0x138   : > { %v1817_v57 = vsel %vm1420_vm0, %v5249_v8, %v1815_v17 }
 0x139   : > { %v1819_v26 = vsel %vm1420_vm0, %v5250_v10, %v1816_v22  ;;  %v1818_v30 = vsel %vm1422_vm2, %v4835_v37, %v1817_v57  ;;  %v4094_v37 = vld [vmem:[#allocation4 + $0x14] ss:$44 sps:$4 sm:$0xff]  }
 0x13a   : > { %3198 = vmatpush1.bf16.msra.mxu0 %v3770_v61  ;;  %3102 = vmatpush2.bf16.msra.mxu1 %v4895_v27  ;;  %v5252_v27 = vcombine.high %v4705_v1, %v5251_v43  ;;  %v1820_v60 = vsel %vm1422_vm2, %v4862_v25, %v1819_v26  ;;  %v4096_v1 = vld [vmem:[#allocation4 + $0x18] ss:$44 sps:$4 sm:$0xff]   ;;  %v5256_v25 = vcombine.high %v4908_v48, %v4912_v56  ;;  %v5258_v48 = vld [vmem:[#allocation11_spill] sm:$0xff] }
 0x13b   : > { %3103 = vmatprep.subr.bf16.mxu1 %v4929_v40  ;;  %3199 = vmatprep.subr.bf16.mxu0 %v4090_v32  ;;  %v3867_v38 = vcombine.high %v1818_v30, %v1820_v60  ;;  %v3866_v34 = vcombine.low %v1818_v30, %v1820_v60  ;;  %v5259_v56 = vld [vmem:[#allocation10_spill] sm:$0xff] }
 0x13e   : > { %3200 = vmatpush1.bf16.msra.mxu0 %v4088_v12  ;;  %3104 = vmatpush2.bf16.msra.mxu1 %v4925_v16 }
 0x13f   : > { %3105 = vmatprep.subr.bf16.mxu1 %v5252_v27  ;;  %3201 = vmatprep.subr.bf16.mxu0 %v4079_v50  ;;  %v4103_v50 = vld [vmem:[#allocation4 + $0x1c] ss:$44 sps:$4 sm:$0xff]  }
 0x142   : > { %3202 = vmatpush1.bf16.msra.mxu0 %v4077_v41  ;;  %3106 = vmatpush2.bf16.msra.mxu1 %v5253_v31 }
 0x143   : > { %3203 = vmatprep.subr.bf16.mxu0 %v4923_v4  ;;  %3107 = vmatprep.subr.bf16.mxu1 %v5254_v45  ;;  %v4099_v4 = vld [vmem:[#allocation4 + $0x14] ss:$44 sps:$4 sm:$0xff]  }
 0x146   : > { %3204 = vmatpush2.bf16.msra.mxu0 %v4994_v35  ;;  %3108 = vmatpush2.bf16.msra.mxu1 %v5255_v19  ;;  %v4097_v35 = vld [vmem:[#allocation4 + $0x10] ss:$44 sps:$4 sm:$0xff]  }
 0x147   : > { %3205 = vmatprep.subr.bf16.mxu0 %v3867_v38  ;;  %3109 = vmatprep.subr.bf16.mxu1 %v4093_v33 }
 0x14a   : > { %3206 = vmatpush2.bf16.msra.mxu0 %v3866_v34  ;;  %3110 = vmatpush2.bf16.msra.mxu1 %v4091_v47 }
 0x14b   : > { %3207 = vmatprep.subr.bf16.mxu0 %v5256_v25  ;;  %3111 = vmatprep.subr.bf16.mxu1 %v4096_v1 }
 0x14e   : > { %3208 = vmatpush2.bf16.msra.mxu0 %v5257_v49  ;;  %3112 = vmatpush2.bf16.msra.mxu1 %v4094_v37 }
 0x14f   : > { %3209 = vmatprep.subr.bf16.mxu0 %v4929_v40  ;;  %3113 = vmatprep.subr.bf16.mxu1 %v4099_v4  ;;  %v5261_v40 = vcombine.low %v5258_v48, %v5259_v56 }
 0x152   : > { %3210 = vmatpush2.bf16.msra.mxu0 %v4925_v16  ;;  %3114 = vmatpush2.bf16.msra.mxu1 %v4097_v35  ;;  %v5260_v16 = vcombine.high %v5258_v48, %v5259_v56 }
 0x153   : > { %3115 = vmatprep.subr.bf16.mxu1 %v5034_v28  ;;  %3211 = vmatprep.subr.bf16.mxu0 %v4102_v63 }
 0x156   : > { %3212 = vmatpush2.bf16.msra.mxu0 %v4100_v55  ;;  %3116 = vmatpush2.bf16.msra.mxu1 %v5045_v13 }
 0x157   : > { %3250 = vmatprep.subr.bf16.mxu1 %v3891_v18  ;;  %3213 = vmatprep.subr.bf16.mxu0 %v4105_v51 }
 0x159   : > { %3118 = vmatmul.mubr.bf16.vlgmr.msra.gmra.mxu1 %v4869_v11 }
 0x15a   : > { %3214 = vmatpush2.bf16.msra.mxu0 %v4103_v50  ;;  %3251 = vmatpush1.bf16.msra.mxu1 %v3890_v44 }
 0x15b   : > { %3252 = vmatprep.subr.bf16.mxu1 %v5260_v16  ;;  %3215 = vmatprep.subr.bf16.mxu0 %v4093_v33 }
 0x15c   : > { %3127 = vmatprep.mubr.bf16.mxu1 %v4884_v7 }
 0x15e   : > { %3216 = vmatpush2.bf16.msra.mxu0 %v4091_v47  ;;  %3253 = vmatpush1.bf16.msra.mxu1 %v5261_v40 }
 0x15f   : > { %3217 = vmatprep.subr.bf16.mxu0 %v3819_v53 }
 0x161   : > { %3128 = vmatmul.mubr.bf16.gmra.mxu1 %v4888_v20 }
 0x162   : > { %3218 = vmatpush2.bf16.msra.mxu0 %v3818_v62  ;;  %3270 = vmatprep.mubr.bf16.mxu1 %v5241_v9 }
 0x165   : > { %3220 = vmatmul.mubr.bf16.vlgmr.msra.gmra.mxu0 %v4869_v11 }
 0x166   : > { %3229 = vmatprep.mubr.bf16.mxu0 %v4884_v7  ;;  %v5128_v7 = vpop.permute.xlu0 %2116 }
 0x169   : > { %3898 = vmatmul.mubr.msk.bf16.vlgmr.msra.gmra.mxu1 %vm2874_vm3, %v4584_v58 }
 0x16a   : > { %3280 = vmatprep.mubr.bf16.mxu1 %v5241_v9  ;;  %v5132_v9 = vpop.permute.xlu1 %2121 }
 0x16d   : > { %3230 = vmatmul.mubr.bf16.gmra.mxu0 %v4888_v20 }
 0x16e   : > { %v5141_v59 = vpop.permute.xlu1 %2126 }
 0x171   : > { %3899 = vmatmul.mubr.msk.bf16.gmra.mxu1 %vm2874_vm3, %v4641_v0 }
 0x199   : > { %v2966_v52 = vpop.f32.mrf.mxu1 }
 0x19b   : > { %v2968_v29 = vpop.f32.mrf.mxu1 }
 0x19d   : > { %v2970_v14 = vpop.f32.mrf.mxu1 }
 0x19f   : > { %v2972_v6 = vpop.f32.mrf.mxu1 }
 0x1a1   : > { %v2976_v44 = vpop.f32.mrf.mxu1 }
 0x1a3   : > { %v2978_v18 = vpop.f32.mrf.mxu1 }
 0x1a5   : > { %v2980_v11 = vpop.f32.mrf.mxu1 }
 0x1a7   : > { %v2981_v62 = vpop.f32.mrf.mxu1 }
 0x1c5   : > { %v2915_v58 = vpop.f32.mrf.mxu0 }
 0x1c6   : > { %v2916_v53 = vadd.f32 %v2915_v58, %v5128_v7 }
 0x1c7   : > { %v2917_v20 = vpop.f32.mrf.mxu0 }
 0x1c8   : > { %v2918_v0 = vadd.f32 %v2917_v20, %v5128_v7  ;;  %v2967_v13 = vadd.f32 %v2966_v52, %v2916_v53 }
 0x1c9   : > { %v2919_v28 = vpop.f32.mrf.mxu0 }
 0x1ca   : > { %v2969_v21 = vadd.f32 %v2968_v29, %v2918_v0  ;;  %v2920_v41 = vadd.f32 %v2919_v28, %v5132_v9 }
 0x1cb   : > { %v2921_v2 = vpop.f32.mrf.mxu0 }
 0x1cc   : > { %v3914_v54 = vpack.c.bf16 %v2969_v21, %v2967_v13  ;;  %v2922_v23 = vadd.f32 %v2921_v2, %v5132_v9  ;;  %v2971_v3 = vadd.f32 %v2970_v14, %v2920_v41 }
 0x1cd   : > { %v2925_v24 = vpop.f32.mrf.mxu0 }
 0x1ce   : > { %3369 = vst [vmem:[%s5139_s7] sm:$0xff] %v3914_v54  ;;  %v2973_v46 = vadd.f32 %v2972_v6, %v2922_v23  ;;  %v2926_v42 = vadd.f32 %v2925_v24, %v5141_v59 }
 0x1cf   : > { %v2927_v5 = vpop.f32.mrf.mxu0 }
 0x1d0   : > { %v3918_v36 = vpack.c.bf16 %v2973_v46, %v2971_v3  ;;  %v2928_v61 = vadd.f32 %v2927_v5, %v5141_v59  ;;  %v2977_v15 = vadd.f32 %v2976_v44, %v2926_v42 }
 0x1d1   : > { %v2929_v39 = vpop.f32.mrf.mxu0 }
 0x1d2   : > { %3373 = vst [vmem:[%s5139_s7 + $0x20] sm:$0xff] %v3918_v36  ;;  %v2979_v32 = vadd.f32 %v2978_v18, %v2928_v61 }
 0x1d3   : > { %v2930_v12 = vpop.f32.mrf.mxu0 }
 0x1d4   : > { %v3922_v22 = vpack.c.bf16 %v2979_v32, %v2977_v15 }
 0x1d5   : > { %v3068_v17 = vpop.f32.mrf.mxu0 }
 0x1d6   : > { %3377 = vst [vmem:[%s5139_s7 + $0x40] sm:$0xff] %v3922_v22 }
 0x1d7   : > { %v3070_v8 = vpop.f32.mrf.mxu0 }
 0x1d9   : > { %v3017_v57 = vpop.f32.mrf.mxu1  ;;  %v3072_v10 = vpop.f32.mrf.mxu0 }
 0x1da   : > { %v3018_v26 = vadd.f32 %v3017_v57, %v5128_v7 }
 0x1db   : > { %v3019_v43 = vpop.f32.mrf.mxu1  ;;  %v3074_v27 = vpop.f32.mrf.mxu0 }
 0x1dc   : > { %v3020_v31 = vadd.f32 %v3019_v43, %v5128_v7  ;;  %v3069_v45 = vadd.f32 %v3068_v17, %v3018_v26 }
 0x1dd   : > { %v3021_v30 = vpop.f32.mrf.mxu1  ;;  %v3078_v60 = vpop.f32.mrf.mxu0 }
 0x1de   : > { %v3071_v33 = vadd.f32 %v3070_v8, %v3020_v31  ;;  %v3022_v38 = vadd.f32 %v3021_v30, %v5132_v9 }
 0x1df   : > { %v3023_v19 = vpop.f32.mrf.mxu1  ;;  %v3080_v47 = vpop.f32.mrf.mxu0 }
 0x1e0   : > { %v3915_v1 = vpack.c.bf16 %v3071_v33, %v3069_v45  ;;  %v3024_v34 = vadd.f32 %v3023_v19, %v5132_v9  ;;  %v3073_v4 = vadd.f32 %v3072_v10, %v3022_v38 }
 0x1e1   : > { %v3027_v37 = vpop.f32.mrf.mxu1  ;;  %v3082_v25 = vpop.f32.mrf.mxu0 }
 0x1e2   : > { %3370 = vst [vmem:[%s5139_s7 + $0x8] sm:$0xff] %v3915_v1  ;;  %v3075_v49 = vadd.f32 %v3074_v27, %v3024_v34  ;;  %v3028_v35 = vadd.f32 %v3027_v37, %v5141_v59 }
 0x1e3   : > { %v3029_v63 = vpop.f32.mrf.mxu1  ;;  %v3083_v55 = vpop.f32.mrf.mxu0 }
 0x1e4   : > { %v3919_v51 = vpack.c.bf16 %v3075_v49, %v3073_v4  ;;  %v3030_v50 = vadd.f32 %v3029_v63, %v5141_v59  ;;  %v3079_v16 = vadd.f32 %v3078_v60, %v3028_v35 }
 0x1e5   : > { %v3170_v48 = vpop.f32.mrf.mxu0  ;;  %v3031_v56 = vpop.f32.mrf.mxu1 }
 0x1e6   : > { %3374 = vst [vmem:[%s5139_s7 + $0x28] sm:$0xff] %v3919_v51  ;;  %v3081_v40 = vadd.f32 %v3080_v47, %v3030_v50 }
 0x1e7   : > { %v3172_v52 = vpop.f32.mrf.mxu0  ;;  %v3032_v29 = vpop.f32.mrf.mxu1 }
 0x1e8   : > { %v3923_v14 = vpack.c.bf16 %v3081_v40, %v3079_v16 }
 0x1e9   : > { %v3174_v6 = vpop.f32.mrf.mxu0 }
 0x1ea   : > { %3378 = vst [vmem:[%s5139_s7 + $0x48] sm:$0xff] %v3923_v14 }
 0x1eb   : > { %v3176_v44 = vpop.f32.mrf.mxu0 }
 0x1ed   : > { %v3180_v18 = vpop.f32.mrf.mxu0 }
 0x1ef   : > { %v3182_v11 = vpop.f32.mrf.mxu0 }
 0x1f1   : > { %v3184_v62 = vpop.f32.mrf.mxu0 }
 0x1f3   : > { %v3185_v58 = vpop.f32.mrf.mxu0 }
 0x219   : > { %v3119_v53 = vpop.f32.mrf.mxu1 }
 0x21a   : > { %v3120_v20 = vadd.f32 %v3119_v53, %v5128_v7 }
 0x21b   : > { %v3121_v0 = vpop.f32.mrf.mxu1 }
 0x21c   : > { %v3122_v28 = vadd.f32 %v3121_v0, %v5128_v7  ;;  %v3171_v21 = vadd.f32 %v3170_v48, %v3120_v20 }
 0x21d   : > { %v3123_v13 = vpop.f32.mrf.mxu1 }
 0x21e   : > { %v3173_v41 = vadd.f32 %v3172_v52, %v3122_v28  ;;  %v3124_v2 = vadd.f32 %v3123_v13, %v5132_v9 }
 0x21f   : > { %v3125_v54 = vpop.f32.mrf.mxu1 }
 0x220   : > { %v3916_v23 = vpack.c.bf16 %v3173_v41, %v3171_v21  ;;  %v3126_v24 = vadd.f32 %v3125_v54, %v5132_v9  ;;  %v3175_v46 = vadd.f32 %v3174_v6, %v3124_v2 }
 0x221   : > { %v3129_v3 = vpop.f32.mrf.mxu1 }
 0x222   : > { %3371 = vst [vmem:[%s5139_s7 + $0x10] sm:$0xff] %v3916_v23  ;;  %v3177_v42 = vadd.f32 %v3176_v44, %v3126_v24  ;;  %v3130_v5 = vadd.f32 %v3129_v3, %v5141_v59 }
 0x223   : > { %v3131_v36 = vpop.f32.mrf.mxu1 }
 0x224   : > { %v3920_v61 = vpack.c.bf16 %v3177_v42, %v3175_v46  ;;  %v3132_v15 = vadd.f32 %v3131_v36, %v5141_v59  ;;  %v3181_v12 = vadd.f32 %v3180_v18, %v3130_v5 }
 0x225   : > { %v3221_v39 = vpop.f32.mrf.mxu0  ;;  %v3133_v32 = vpop.f32.mrf.mxu1 }
 0x226   : > { %3375 = vst [vmem:[%s5139_s7 + $0x30] sm:$0xff] %v3920_v61  ;;  %v3183_v22 = vadd.f32 %v3182_v11, %v3132_v15  ;;  %v3222_v10 = vadd.f32 %v3221_v39, %v5128_v7 }
 0x227   : > { %v3223_v17 = vpop.f32.mrf.mxu0  ;;  %v3134_v8 = vpop.f32.mrf.mxu1 }
 0x228   : > { %v3924_v57 = vpack.c.bf16 %v3183_v22, %v3181_v12  ;;  %v3224_v27 = vadd.f32 %v3223_v17, %v5128_v7 }
 0x229   : > { %v3225_v26 = vpop.f32.mrf.mxu0  ;;  %v3272_v43 = vpop.f32.mrf.mxu1 }
 0x22a   : > { %3379 = vst [vmem:[%s5139_s7 + $0x50] sm:$0xff] %v3924_v57  ;;  %v3273_v60 = vadd.f32 %v3272_v43, %v3222_v10  ;;  %v3226_v19 = vadd.f32 %v3225_v26, %v5132_v9 }
 0x22b   : > { %v3227_v31 = vpop.f32.mrf.mxu0  ;;  %v3274_v30 = vpop.f32.mrf.mxu1 }
 0x22c   : > { %v3275_v45 = vadd.f32 %v3274_v30, %v3224_v27  ;;  %v3228_v47 = vadd.f32 %v3227_v31, %v5132_v9 }
 0x22d   : > { %v3231_v33 = vpop.f32.mrf.mxu0  ;;  %v3276_v38 = vpop.f32.mrf.mxu1 }
 0x22e   : > { %v3917_v1 = vpack.c.bf16 %v3275_v45, %v3273_v60  ;;  %v3277_v25 = vadd.f32 %v3276_v38, %v3226_v19  ;;  %v3232_v35 = vadd.f32 %v3231_v33, %v5141_v59 }
 0x22f   : > { %v3233_v34 = vpop.f32.mrf.mxu0  ;;  %v3278_v37 = vpop.f32.mrf.mxu1 }
 0x230   : > { %3372 = vst [vmem:[%s5139_s7 + $0x18] sm:$0xff] %v3917_v1  ;;  %v3279_v4 = vadd.f32 %v3278_v37, %v3228_v47  ;;  %v3234_v63 = vadd.f32 %v3233_v34, %v5141_v59 }
 0x231   : > { %v3235_v49 = vpop.f32.mrf.mxu0  ;;  %v3282_v7 = vpop.f32.mrf.mxu1 }
 0x232   : > { %v3921_v55 = vpack.c.bf16 %v3279_v4, %v3277_v25  ;;  %v3283_v48 = vadd.f32 %v3282_v7, %v3232_v35 }
 0x233   : > { %v3236_v51 = vpop.f32.mrf.mxu0  ;;  %v3284_v50 = vpop.f32.mrf.mxu1 }
 0x234   : > { %3376 = vst [vmem:[%s5139_s7 + $0x38] sm:$0xff] %v3921_v55  ;;  %v3285_v56 = vadd.f32 %v3284_v50, %v3234_v63 }
 0x235   : > { %v3286_v9 = vpop.f32.mrf.mxu1 }
 0x236   : > { %v3925_v16 = vpack.c.bf16 %v3285_v56, %v3283_v48 }
 0x237   : > { %v3287_v40 = vpop.f32.mrf.mxu1 }
 0x238   : > { %3380 = vst [vmem:[%s5139_s7 + $0x58] sm:$0xff] %v3925_v16 }
 0x239 PF: > { %s16_s25 = sadd.s32 1, %s4178_s25   ;;  %s5262_s21 = smov %s4166_s22 }
 0x23a   : > { %p13_p0 = scmp.ge.s32.totalorder %s16_s25, 4   ;;  %s5263_s22 = smov %s4289_s30 }
 0x23b   : > { %s5264_s23 = smov %s4174_s24  ;;  %s5265_s24 = smov %s5267_s26 }
 0x23c   :  { %15 = sbr.rel (!%p13_p0) target bundleno = 3 (0x3), region = 435 }

// kernel: enhance_net_dce_pool_forward.15
= control target key start
LH: loop header
LB: loop body
LE: loop exit
PB: predicated region body
PF: predicated region fallthrough
CT: control target
= control target key end

     0   :  { %s725_s12 = smov 0   ;;  %s727_s13 = smov 0   ;;  %s814_s0 = inlined_call_operand.vmem [shape: bf16[2,24,256], index: 0, kind: input, shape index: {}]   ;;  %s815_s1 = inlined_call_operand.vmem [shape: f32[2,3,256], index: 1, kind: input, shape index: {}]   ;;  %s816_s2 = inlined_call_operand.vmem [shape: f32[2,3,256], index: 2, kind: output, shape index: {0}]   ;;  %s817_s3 = inlined_call_operand.vmem [shape: bf16[2,24,256], index: 3, kind: output, shape index: {1}]  }
   0x1   :  { %s729_s14 = smov 0  }
   0x2 LB: > { %s26_s15 = sadd.s32 1, %s699_s13  ;;  %p621_p0 = scmp.ge.s32.totalorder %s703_s14, 1  ;;  %s703_s14 = sphi %s729_s14, %s14_s14   ;;  %s699_s13 = sphi %s727_s13, %s823_s13   ;;  %s695_s12 = sphi %s725_s12, %s822_s12  }
   0x3   : > { %p28_p1 = scmp.ge.s32.totalorder %s26_s15, 2  ;;  %p180_p2 = scmp.lt.s32.totalorder %s703_s14, 3 }
   0x5   : > { %s825_s15 = smov (%p28_p1, %s26_s15), 0  ;;  %p181_p3 = pnand %p621_p0, %p180_p2 }
   0x6   : > { %p231_p4 = scmp.lt.s32.totalorder (!%p181_p3), %s695_s12, 1 }
   0x7   : > { %184 = sbr.rel (%p181_p3) target bundleno = 153 (0x99), region = 28 }
   0xc   : > { %s827_s12 = smov (!%p231_p4, %s695_s12), 1  ;;  %vm335_vm0 = vcmask 1040384   ;;  %vm336_vm1 = vcmask 1044484   ;;  %vm362_vm3 = vcmask 1041408   ;;  %vm363_vm4 = vcmask 1045508  }
   0xd   : > { %s644_s16 = smul.u32 24, %s827_s12  ;;  %s639_s17 = sshll.u32 %s827_s12, 3  ;;  %vm770_vm2 = vmor %vm335_vm0, %vm336_vm1 }
   0xe   : > { %s248_s23 = scalar_lea.vmem %s815_s1, %s639_s17  ;;  %vm778_vm5 = vmor %vm362_vm3, %vm363_vm4  ;;  %s258_s29 = scalar_lea.vmem %s816_s2, %s639_s17 }
   0xf   : > { %s238_s20 = scalar_lea.vmem %s814_s0, %s644_s16  ;;  %v308_v8 = vld [vmem:[%s248_s23] sm:$0x77]  ;;  %s268_s26 = scalar_lea.vmem %s817_s3, %s644_s16 }
  0x10   : > { %v270_v0 = vld [vmem:[%s238_s20] sm:$0xff]  ;;  %v271_v1 = vld [vmem:[%s238_s20 + $0x8] sm:$0xff]  ;;  %v272_v2 = vld [vmem:[%s238_s20 + $0x10] sm:$0xff]  ;;  %v309_v10 = vmul.f32 %v308_v8, %v308_v8 }
  0x11   : > { %v273_v3 = vunpack.c.l.bf16 %v270_v0  ;;  %v274_v4 = vunpack.c.h.bf16 %v270_v0  ;;  %v275_v5 = vunpack.c.l.bf16 %v271_v1  ;;  %v276_v6 = vunpack.c.h.bf16 %v271_v1 }
  0x12   : > { %v277_v7 = vunpack.c.l.bf16 %v272_v2  ;;  %v278_v9 = vunpack.c.h.bf16 %v272_v2  ;;  %v310_v11 = vsub.f32 %v309_v10, %v308_v8 }
  0x13   : > { %669 = vtanh.f32 %v273_v3 }
  0x14   : > { %671 = vtanh.f32 %v274_v4  ;;  %v312_v12 = vcombine.high %v310_v11, %v310_v11 }
  0x15   : > { %673 = vtanh.f32 %v275_v5 }
  0x16   : > { %675 = vtanh.f32 %v276_v6 }
  0x17   : > { %677 = vtanh.f32 %v277_v7 }
  0x18   : > { %679 = vtanh.f32 %v278_v9 }
  0x20   : > { %v670_v13 = vpop.eup %669 }
  0x21   : > { %v672_v14 = vpop.eup %671  ;;  %v314_v15 = vmul.f32 %v670_v13, %v310_v11 }
  0x22   : > { %v758_v16 = vpop.eup %673  ;;  %v641_v17 = vpack.c.bf16 %v672_v14, %v670_v13  ;;  %v315_v18 = vmul.f32 %v672_v14, %v312_v12 }
  0x23   : > { %v760_v19 = vpop.eup %675 }
  0x24   : > { %v762_v20 = vpop.eup %677  ;;  %305 = vst [vmem:[%s268_s26] sm:$0xff] %v641_v17  ;;  %v642_v21 = vpack.c.bf16 %v760_v19, %v758_v16  ;;  %v318_v22 = vcombine.low %v314_v15, %v315_v18 }
  0x25   : > { %v766_v23 = vpop.eup %679 }
  0x26   : > { %306 = vst [vmem:[%s268_s26 + $0x8] sm:$0xff] %v642_v21  ;;  %v643_v24 = vpack.c.bf16 %v766_v23, %v762_v20  ;;  %v320_v25 = vadd.f32 %v318_v22, %v308_v8 }
  0x28   : > { %307 = vst [vmem:[%s268_s26 + $0x10] sm:$0xff] %v643_v24  ;;  %v321_v26 = vmul.f32 %v320_v25, %v320_v25 }
  0x2a   : > { %v322_v27 = vsub.f32 %v321_v26, %v320_v25 }
  0x2c   : > { %v324_v28 = vcombine.high %v322_v27, %v322_v27  ;;  %v325_v29 = vrot.slane %v322_v27, 5 }
  0x2e   : > { %v326_v30 = vrot.slane %v324_v28, 5  ;;  %v329_v31 = vmul.f32 %v670_v13, %v325_v29 }
  0x30   : > { %v330_v32 = vmul.f32 %v672_v14, %v326_v30 }
  0x32   : > { %v333_v33 = vcombine.low %v329_v31, %v330_v32  ;;  %v334_v34 = vcombine.high %v329_v31, %v330_v32 }
  0x34   : > { %v631_v36 = vrot.slane %v333_v33, 11  ;;  %v340_v37 = vrot.slane %v334_v34, 7 }
  0x36   : > { %v341_v38 = vsel %vm770_vm2, %v631_v36, %v340_v37 }
  0x37   : > { %v343_v39 = vadd.f32 %v341_v38, %v320_v25 }
  0x39   : > { %v344_v40 = vmul.f32 %v343_v39, %v343_v39 }
  0x3b   : > { %v345_v41 = vsub.f32 %v344_v40, %v343_v39 }
  0x3d   : > { %v347_v42 = vcombine.high %v345_v41, %v345_v41  ;;  %v348_v43 = vrot.slane %v345_v41, 2 }
  0x3f   : > { %v349_v44 = vrot.slane %v347_v42, 2  ;;  %v352_v45 = vmul.f32 %v670_v13, %v348_v43  ;;  %v354_v46 = vmul.f32 %v758_v16, %v348_v43 }
  0x41   : > { %v353_v47 = vmul.f32 %v672_v14, %v349_v44  ;;  %v355_v48 = vmul.f32 %v760_v19, %v349_v44 }
  0x43   : > { %v360_v49 = vcombine.high %v352_v45, %v353_v47  ;;  %v361_v50 = vcombine.low %v354_v46, %v355_v48 }
  0x45   : > { %v632_v52 = vrot.slane %v360_v49, 10  ;;  %v367_v53 = vrot.slane %v361_v50, 6 }
  0x47   : > { %v368_v54 = vsel %vm778_vm5, %v632_v52, %v367_v53 }
  0x48   : > { %v370_v55 = vadd.f32 %v368_v54, %v343_v39 }
  0x4a   : > { %v371_v56 = vmul.f32 %v370_v55, %v370_v55 }
  0x4c   : > { %v372_v57 = vsub.f32 %v371_v56, %v370_v55 }
  0x4e   : > { %v374_v58 = vcombine.high %v372_v57, %v372_v57  ;;  %v375_v59 = vrot.slane %v372_v57, 7 }
  0x50   : > { %v376_v60 = vrot.slane %v374_v58, 7  ;;  %v379_v61 = vmul.f32 %v758_v16, %v375_v59 }
  0x52   : > { %v380_v62 = vmul.f32 %v760_v19, %v376_v60 }
  0x54   : > { %v383_v63 = vcombine.low %v379_v61, %v380_v62 }
  0x56   : > { %v633_v0 = vrot.slane %v383_v63, 9 }
  0x58   : > { %v387_v1 = vadd.f32 %v633_v0, %v370_v55 }
  0x5a   : > { %v388_v2 = vmul.f32 %v387_v1, %v387_v1 }
  0x5c   : > { %v389_v3 = vsub.f32 %v388_v2, %v387_v1 }
  0x5e   : > { %v391_v4 = vcombine.low %v389_v3, %v389_v3  ;;  %v394_v5 = vmul.f32 %v760_v19, %v389_v3 }
  0x60   : > { %v393_v6 = vmul.f32 %v758_v16, %v391_v4 }
  0x62   : > { %v397_v7 = vcombine.high %v393_v6, %v394_v5 }
  0x64   : > { %v399_v8 = vadd.f32 %v397_v7, %v387_v1 }
  0x66   : > { %v400_v9 = vmul.f32 %v399_v8, %v399_v8 }
  0x68   : > { %v401_v10 = vsub.f32 %v400_v9, %v399_v8 }
  0x6a   : > { %v403_v11 = vcombine.high %v401_v10, %v401_v10  ;;  %v404_v12 = vrot.slane %v401_v10, 1 }
  0x6c   : > { %v405_v13 = vrot.slane %v403_v11, 1  ;;  %v408_v14 = vmul.f32 %v758_v16, %v404_v12  ;;  %v410_v15 = vmul.f32 %v762_v20, %v404_v12 }
  0x6e   : > { %v409_v17 = vmul.f32 %v760_v19, %v405_v13  ;;  %v411_v18 = vmul.f32 %v766_v23, %v405_v13 }
  0x70   : > { %v416_v21 = vcombine.high %v408_v14, %v409_v17  ;;  %v417_v22 = vcombine.low %v410_v15, %v411_v18 }
  0x72   : > { %v634_v24 = vrot.slane %v416_v21, 11  ;;  %v420_v25 = vrot.slane %v417_v22, 7 }
  0x74   : > { %v421_v26 = vsel %vm770_vm2, %v634_v24, %v420_v25 }
  0x75   : > { %v423_v27 = vadd.f32 %v421_v26, %v399_v8 }
  0x77   : > { %v424_v28 = vmul.f32 %v423_v27, %v423_v27 }
  0x79   : > { %v425_v29 = vsub.f32 %v424_v28, %v423_v27 }
  0x7b   : > { %v427_v30 = vcombine.high %v425_v29, %v425_v29  ;;  %v428_v31 = vrot.slane %v425_v29, 6 }
  0x7d   : > { %v429_v32 = vrot.slane %v427_v30, 6  ;;  %v432_v16 = vmul.f32 %v762_v20, %v428_v31 }
  0x7f   : > { %v433_v33 = vmul.f32 %v766_v23, %v429_v32 }
  0x81   : > { %v436_v19 = vcombine.low %v432_v16, %v433_v33  ;;  %v437_v34 = vcombine.high %v432_v16, %v433_v33 }
  0x83   : > { %v635_v36 = vrot.slane %v436_v19, 10  ;;  %v440_v37 = vrot.slane %v437_v34, 6 }
  0x85   : > { %v441_v38 = vsel %vm778_vm5, %v635_v36, %v440_v37 }
  0x86   : > { %v443_v35 = vadd.f32 %v441_v38, %v423_v27 }
  0x88   : > { %v444_v39 = vmul.f32 %v443_v35, %v443_v35 }
  0x8a   : > { %v445_v40 = vsub.f32 %v444_v39, %v443_v35 }
  0x8c   : > { %v447_v41 = vcombine.high %v445_v40, %v445_v40  ;;  %v448_v42 = vrot.slane %v445_v40, 3 }
  0x8e   : > { %v449_v43 = vrot.slane %v447_v41, 3  ;;  %v452_v44 = vmul.f32 %v762_v20, %v448_v42 }
  0x90   : > { %v453_v45 = vmul.f32 %v766_v23, %v449_v43 }
  0x92   : > { %v456_v46 = vcombine.high %v452_v44, %v453_v45 }
  0x94   : > { %v636_v47 = vrot.slane %v456_v46, 9 }
  0x96   : > { %v460_v48 = vadd.f32 %v636_v47, %v443_v35 }
  0x98   : > { %461 = vst [vmem:[%s258_s29] sm:$0x77] %v460_v48 }
  0x99 PF: > { %s14_s14 = sadd.s32 1, %s703_s14   ;;  %s822_s12 = smov %s699_s13 }
  0x9a   : > { %p11_p5 = scmp.ge.s32.totalorder %s14_s14, 4   ;;  %s823_s13 = smov %s825_s15 }
  0x9c   :  { %13 = sbr.rel (!%p11_p5) target bundleno = 2 (0x2), region = 73 }

</bundles_post_ra>
